<compile_context>
chip_gen: v6e
topology: v6e:2x2x1
jax: 0.10.0
libtpu: 0.0.40
codegen_flags: <defaults>
</compile_context>

<pallas_src>
import math

import jax
import jax.numpy as jnp
from jax.experimental import pallas as pl
from jax.experimental.pallas import tpu as pltpu

_GN_EPS = 1e-5          # nn.GroupNorm default eps
_NUM_GROUPS = 32        # GroupNorm(32, C)


def _gelu(x):
    # TODO(synk): PyTorch nn.GELU() defaults to exact erf; we use the tanh
    # approximation (EUP tanh) since erf lowering inside Mosaic is not guaranteed.
    c = math.sqrt(2.0 / math.pi)
    return 0.5 * x * (1.0 + jnp.tanh(c * (x + 0.044715 * (x * x * x))))


def _group_avg_matrix(channels, num_groups):
    """(C, C) block-diagonal matrix: stats_row @ M -> per-group mean broadcast back."""
    assert channels % num_groups == 0
    gs = channels // num_groups
    cidx = jnp.arange(channels)
    same = (cidx[:, None] // gs) == (cidx[None, :] // gs)
    return same.astype(jnp.float32) / float(gs)


def _make_kernel(H, W, Cin, Cmid, Cout):
    HW = H * W
    inv_hw = 1.0 / float(HW)

    def kernel(x_ref, w1_ref, g1_ref, p1_ref, w2_ref, g2_ref, p2_ref, o_ref,
               y1h_ref, x2_ref):
        # ---------------- stage 1: conv1 as a single tap-folded MXU dot -------------
        a1 = jnp.dot(x_ref[...], w1_ref[...],
                     preferred_element_type=jnp.float32)          # (HW, Cmid) f32
        a1 = a1 + p1_ref[0:1, :]                                  # conv1 bias

        # GroupNorm-1 (centered two-pass, f32 stats; group-avg via tiny dot)
        mean1 = jnp.sum(a1, axis=0, keepdims=True) * inv_hw       # (1, Cmid)
        gmean1 = jnp.dot(mean1, g1_ref[...], preferred_element_type=jnp.float32)
        cen1 = a1 - gmean1
        var1 = jnp.sum(cen1 * cen1, axis=0, keepdims=True) * inv_hw
        gvar1 = jnp.dot(var1, g1_ref[...], preferred_element_type=jnp.float32)
        y1 = cen1 * jax.lax.rsqrt(gvar1 + _GN_EPS) * p1_ref[1:2, :] + p1_ref[2:3, :]
        y1 = _gelu(y1).astype(jnp.bfloat16).reshape(H, W, Cmid)   # bf16 for stage 2

        # --------- circular 1-px halo in VMEM (stage-2 taps become static windows) --
        y1h_ref[1:H + 1, 1:W + 1, :] = y1
        y1h_ref[0:1, 1:W + 1, :] = y1[H - 1:H, :, :]              # top halo = row H-1
        y1h_ref[H + 1:H + 2, 1:W + 1, :] = y1[0:1, :, :]          # bottom halo = row 0
        y1h_ref[:, 0:1, :] = y1h_ref[:, W:W + 1, :]               # left halo (+corners)
        y1h_ref[:, W + 1:W + 2, :] = y1h_ref[:, 1:2, :]           # right halo (+corners)

        # --------- stage 2: tap-folded im2col in VMEM, single K=9*Cmid MXU dot ------
        for ky in range(3):
            for kx in range(3):
                t = ky * 3 + kx
                tap = y1h_ref[ky:ky + H, kx:kx + W, :].reshape(HW, Cmid)
                x2_ref[:, t * Cmid:(t + 1) * Cmid] = tap

        a2 = jnp.dot(x2_ref[...], w2_ref[...],
                     preferred_element_type=jnp.float32)          # (HW, Cout) f32
        a2 = a2 + p2_ref[0:1, :]                                  # conv2 bias

        mean2 = jnp.sum(a2, axis=0, keepdims=True) * inv_hw
        gmean2 = jnp.dot(mean2, g2_ref[...], preferred_element_type=jnp.float32)
        cen2 = a2 - gmean2
        var2 = jnp.sum(cen2 * cen2, axis=0, keepdims=True) * inv_hw
        gvar2 = jnp.dot(var2, g2_ref[...], preferred_element_type=jnp.float32)
        y2 = cen2 * jax.lax.rsqrt(gvar2 + _GN_EPS) * p2_ref[1:2, :] + p2_ref[2:3, :]
        y2 = _gelu(y2)

        # lane-dense channel-major store: (Cout, HW) -> HW=H*W lanes, unmasked vst,
        # and the result is already NCHW-ordered (no wrapper transpose needed).
        o_ref[...] = jnp.transpose(y2, (1, 0)).astype(o_ref.dtype)

    return kernel


def _decoder_block_pallas(x_nhwc, w1f, p1, gmat1, w2f, p2, gmat2):
    """x_nhwc (N,H,W,Cin) f32; w1f (9*Cin,Cmid) bf16; w2f (9*Cmid,Cout) bf16;
    p* rows = [conv bias, gn gamma, gn beta]; gmat* = group-average matrices."""
    N, H, W, Cin = x_nhwc.shape
    K1, Cmid = w1f.shape
    K2, Cout = w2f.shape
    assert K1 == 9 * Cin and K2 == 9 * Cmid
    HW = H * W

    # Circular pad + stage-1 im2col in the wrapper (plain XLA, tiny at these sizes),
    # cast to bf16 so the kernel streams MXU-ready operands straight from HBM.
    xp = jnp.pad(x_nhwc, ((0, 0), (1, 1), (1, 1), (0, 0)), mode="wrap")
    taps = [xp[:, ky:ky + H, kx:kx + W, :] for ky in range(3) for kx in range(3)]
    x1 = jnp.concatenate(taps, axis=-1).reshape(N, HW, 9 * Cin).astype(jnp.bfloat16)

    kernel = _make_kernel(H, W, Cin, Cmid, Cout)

    out = pl.pallas_call(
        kernel,
        out_shape=jax.ShapeDtypeStruct((N, Cout, HW), jnp.float32),
        grid_spec=pltpu.PrefetchScalarGridSpec(
            num_scalar_prefetch=0,
            grid=(N,),
            in_specs=[
                pl.BlockSpec((None, HW, 9 * Cin), lambda n: (n, 0, 0)),
                pl.BlockSpec((9 * Cin, Cmid), lambda n: (0, 0)),
                pl.BlockSpec((Cmid, Cmid), lambda n: (0, 0)),
                pl.BlockSpec((3, Cmid), lambda n: (0, 0)),
                pl.BlockSpec((9 * Cmid, Cout), lambda n: (0, 0)),
                pl.BlockSpec((Cout, Cout), lambda n: (0, 0)),
                pl.BlockSpec((3, Cout), lambda n: (0, 0)),
            ],
            out_specs=pl.BlockSpec((None, Cout, HW), lambda n: (n, 0, 0)),
            scratch_shapes=[
                pltpu.VMEM((H + 2, W + 2, Cmid), jnp.bfloat16),   # y1 circular halo
                pltpu.VMEM((HW, 9 * Cmid), jnp.bfloat16),         # stage-2 im2col
            ],
        ),
        compiler_params=pltpu.CompilerParams(dimension_semantics=("parallel",)),
    )(x1, w1f, gmat1, p1, w2f, gmat2, p2)

    return out.reshape(N, Cout, H, W)        # already NCHW; pure reshape


def _weight_norm(v, g):
    # PyTorch weight_norm(dim=0): w = g * v / ||v||_2, norm over (ci, kh, kw).
    norm = jnp.sqrt(jnp.sum(v * v, axis=(1, 2, 3), keepdims=True))
    return g.reshape(-1, 1, 1, 1) * v / norm


def _fold_taps(w_oihw):
    # (co, ci, ky, kx) -> (9*ci, co) with rows ordered [tap-major (ky*3+kx), ci-minor]
    # to match the im2col lane order; bf16 for the MXU.
    co, ci = w_oihw.shape[0], w_oihw.shape[1]
    return jnp.transpose(w_oihw, (2, 3, 1, 0)).reshape(9 * ci, co).astype(jnp.bfloat16)


def init_decoder_block_params(key, in_channels, middle_channels, out_channels):
    assert middle_channels % _NUM_GROUPS == 0 and out_channels % _NUM_GROUPS == 0
    ks = jax.random.split(key, 8)

    def conv_v(k, cout, cin):
        bound = 1.0 / math.sqrt(cin * 9)
        return jax.random.uniform(k, (cout, cin, 3, 3), jnp.float32, -bound, bound)

    def conv_b(k, cout, cin):
        bound = 1.0 / math.sqrt(cin * 9)
        return jax.random.uniform(k, (cout,), jnp.float32, -bound, bound)

    v1 = conv_v(ks[0], middle_channels, in_channels)
    g1 = jnp.sqrt(jnp.sum(v1 * v1, axis=(1, 2, 3)))      # weight_norm init: g = ||v||
    b1 = conv_b(ks[1], middle_channels, in_channels)
    gamma1 = 1.0 + 0.1 * jax.random.normal(ks[2], (middle_channels,), jnp.float32)
    beta1 = 0.1 * jax.random.normal(ks[3], (middle_channels,), jnp.float32)

    v2 = conv_v(ks[4], out_channels, middle_channels)
    g2 = jnp.sqrt(jnp.sum(v2 * v2, axis=(1, 2, 3)))
    b2 = conv_b(ks[5], out_channels, middle_channels)
    gamma2 = 1.0 + 0.1 * jax.random.normal(ks[6], (out_channels,), jnp.float32)
    beta2 = 0.1 * jax.random.normal(ks[7], (out_channels,), jnp.float32)

    return dict(v1=v1, g1=g1, b1=b1, gamma1=gamma1, beta1=beta1,
                v2=v2, g2=g2, b2=b2, gamma2=gamma2, beta2=beta2)


@jax.jit
def decoder_block_forward(x_nchw, params):
    x = jnp.transpose(x_nchw, (0, 2, 3, 1))               # NCHW -> NHWC
    w1 = _fold_taps(_weight_norm(params["v1"], params["g1"]))
    w2 = _fold_taps(_weight_norm(params["v2"], params["g2"]))
    p1 = jnp.stack([params["b1"], params["gamma1"], params["beta1"]])
    p2 = jnp.stack([params["b2"], params["gamma2"], params["beta2"]])
    gmat1 = _group_avg_matrix(w1.shape[1], _NUM_GROUPS)
    gmat2 = _group_avg_matrix(w2.shape[1], _NUM_GROUPS)
    return _decoder_block_pallas(x, w1, p1, gmat1, w2, p2, gmat2)  # NCHW out


if __name__ == "__main__":
    # GroupNorm(32, C) forces normalized channel counts to be multiples of 32.
    N, C_IN, C_MID, C_OUT, H, W = 2, 32, 64, 32, 16, 16

    key = jax.random.PRNGKey(0)
    k_x, k_p = jax.random.split(key)
    x = jax.random.normal(k_x, (N, C_IN, H, W), jnp.float32)   # PyTorch-style NCHW
    params = init_decoder_block_params(k_p, C_IN, C_MID, C_OUT)

    y = decoder_block_forward(x, params)
    y = jax.block_until_ready(y)

    assert y.shape == (N, C_OUT, H, W), y.shape
    assert bool(jnp.all(jnp.isfinite(y)))
    print("KERNEL_OK")
</pallas_src>

<mosaic_0001>
module attributes {stable_mosaic.version = 11 : i64} {
  func.func @kernel(%arg0: i32, %arg1: memref<1x256x288xbf16, #tpu.memory_space<vmem>>, %arg2: memref<288x64xbf16, #tpu.memory_space<vmem>>, %arg3: memref<64x64xf32, #tpu.memory_space<vmem>>, %arg4: memref<3x64xf32, #tpu.memory_space<vmem>>, %arg5: memref<576x32xbf16, #tpu.memory_space<vmem>>, %arg6: memref<32x32xf32, #tpu.memory_space<vmem>>, %arg7: memref<3x32xf32, #tpu.memory_space<vmem>>, %arg8: memref<1x32x256xf32, #tpu.memory_space<vmem>>, %arg9: memref<18x18x64xbf16, #tpu.memory_space<vmem>>, %arg10: memref<256x576xbf16, #tpu.memory_space<vmem>>) attributes {dimension_semantics = [#tpu.dimension_semantics<parallel>], iteration_bounds = array<i64: 2>, scalar_prefetch = 0 : i64, scratch_operands = 2 : i64, tpu.core_type = #tpu.core_type<tc>, window_params = [{transform_indices = @transform_0, window_bounds = array<i64: 1, 256, 288>}, {pipeline_mode = #tpu.pipeline_mode<synchronous>, transform_indices = @transform_1, window_bounds = array<i64: 288, 64>}, {pipeline_mode = #tpu.pipeline_mode<synchronous>, transform_indices = @transform_2, window_bounds = array<i64: 64, 64>}, {pipeline_mode = #tpu.pipeline_mode<synchronous>, transform_indices = @transform_3, window_bounds = array<i64: 3, 64>}, {pipeline_mode = #tpu.pipeline_mode<synchronous>, transform_indices = @transform_4, window_bounds = array<i64: 576, 32>}, {pipeline_mode = #tpu.pipeline_mode<synchronous>, transform_indices = @transform_5, window_bounds = array<i64: 32, 32>}, {pipeline_mode = #tpu.pipeline_mode<synchronous>, transform_indices = @transform_6, window_bounds = array<i64: 3, 32>}, {transform_indices = @transform_7, window_bounds = array<i64: 1, 32, 256>}]} {
    %c0 = arith.constant 0 : index
    %c0_0 = arith.constant 0 : index
    %c0_1 = arith.constant 0 : index
    %0 = vector.load %arg1[%c0, %c0_0, %c0_1] : memref<1x256x288xbf16, #tpu.memory_space<vmem>>, vector<1x256x288xbf16>
    %1 = vector.shape_cast %0 : vector<1x256x288xbf16> to vector<256x288xbf16>
    %c0_2 = arith.constant 0 : index
    %c0_3 = arith.constant 0 : index
    %2 = vector.load %arg2[%c0_2, %c0_3] : memref<288x64xbf16, #tpu.memory_space<vmem>>, vector<288x64xbf16>
    %cst = arith.constant dense<0.000000e+00> : vector<256x64xf32>
    %3 = tpu.matmul %1, %2, %cst {dimension_numbers = #tpu.dot_dimension_numbers<[1], [0], [0], [1], [0, 0, 1, 1], [], []>} : vector<256x288xbf16>, vector<288x64xbf16>, vector<256x64xf32> -> vector<256x64xf32>
    %c0_4 = arith.constant 0 : index
    %c0_5 = arith.constant 0 : index
    %4 = vector.load %arg4[%c0_4, %c0_5] : memref<3x64xf32, #tpu.memory_space<vmem>>, vector<1x64xf32>
    %5 = vector.broadcast %4 : vector<1x64xf32> to vector<256x64xf32>
    %6 = arith.addf %3, %5 : vector<256x64xf32>
    %cst_6 = arith.constant dense<0.000000e+00> : vector<64xf32>
    %7 = vector.multi_reduction <add>, %6, %cst_6 [0] : vector<256x64xf32> to vector<64xf32>
    %8 = vector.shape_cast %7 : vector<64xf32> to vector<1x64xf32>
    %cst_7 = arith.constant 3.906250e-03 : f32
    %9 = vector.broadcast %cst_7 : f32 to vector<1x64xf32>
    %10 = arith.mulf %8, %9 : vector<1x64xf32>
    %c0_8 = arith.constant 0 : index
    %c0_9 = arith.constant 0 : index
    %11 = vector.load %arg3[%c0_8, %c0_9] : memref<64x64xf32, #tpu.memory_space<vmem>>, vector<64x64xf32>
    %cst_10 = arith.constant dense<0.000000e+00> : vector<1x64xf32>
    %12 = tpu.matmul %10, %11, %cst_10 {dimension_numbers = #tpu.dot_dimension_numbers<[1], [0], [0], [1], [0, 0, 1, 1], [], []>} : vector<1x64xf32>, vector<64x64xf32>, vector<1x64xf32> -> vector<1x64xf32>
    %13 = vector.broadcast %12 : vector<1x64xf32> to vector<256x64xf32>
    %14 = arith.subf %6, %13 : vector<256x64xf32>
    %15 = arith.mulf %14, %14 : vector<256x64xf32>
    %cst_11 = arith.constant dense<0.000000e+00> : vector<64xf32>
    %16 = vector.multi_reduction <add>, %15, %cst_11 [0] : vector<256x64xf32> to vector<64xf32>
    %17 = vector.shape_cast %16 : vector<64xf32> to vector<1x64xf32>
    %cst_12 = arith.constant 3.906250e-03 : f32
    %18 = vector.broadcast %cst_12 : f32 to vector<1x64xf32>
    %19 = arith.mulf %17, %18 : vector<1x64xf32>
    %c0_13 = arith.constant 0 : index
    %c0_14 = arith.constant 0 : index
    %20 = vector.load %arg3[%c0_13, %c0_14] : memref<64x64xf32, #tpu.memory_space<vmem>>, vector<64x64xf32>
    %cst_15 = arith.constant dense<0.000000e+00> : vector<1x64xf32>
    %21 = tpu.matmul %19, %20, %cst_15 {dimension_numbers = #tpu.dot_dimension_numbers<[1], [0], [0], [1], [0, 0, 1, 1], [], []>} : vector<1x64xf32>, vector<64x64xf32>, vector<1x64xf32> -> vector<1x64xf32>
    %cst_16 = arith.constant 9.99999974E-6 : f32
    %22 = vector.broadcast %cst_16 : f32 to vector<1x64xf32>
    %23 = arith.addf %21, %22 : vector<1x64xf32>
    %24 = math.rsqrt %23 : vector<1x64xf32>
    %25 = vector.broadcast %24 : vector<1x64xf32> to vector<256x64xf32>
    %26 = arith.mulf %14, %25 : vector<256x64xf32>
    %c1 = arith.constant 1 : index
    %c0_17 = arith.constant 0 : index
    %27 = vector.load %arg4[%c1, %c0_17] : memref<3x64xf32, #tpu.memory_space<vmem>>, vector<1x64xf32>
    %28 = vector.broadcast %27 : vector<1x64xf32> to vector<256x64xf32>
    %29 = arith.mulf %26, %28 : vector<256x64xf32>
    %c2 = arith.constant 2 : index
    %c0_18 = arith.constant 0 : index
    %30 = vector.load %arg4[%c2, %c0_18] : memref<3x64xf32, #tpu.memory_space<vmem>>, vector<1x64xf32>
    %31 = vector.broadcast %30 : vector<1x64xf32> to vector<256x64xf32>
    %32 = arith.addf %29, %31 : vector<256x64xf32>
    %cst_19 = arith.constant 5.000000e-01 : f32
    %33 = vector.broadcast %cst_19 : f32 to vector<256x64xf32>
    %34 = arith.mulf %33, %32 : vector<256x64xf32>
    %35 = arith.mulf %32, %32 : vector<256x64xf32>
    %36 = arith.mulf %35, %32 : vector<256x64xf32>
    %cst_20 = arith.constant 4.471500e-02 : f32
    %37 = vector.broadcast %cst_20 : f32 to vector<256x64xf32>
    %38 = arith.mulf %37, %36 : vector<256x64xf32>
    %39 = arith.addf %32, %38 : vector<256x64xf32>
    %cst_21 = arith.constant 0.797884583 : f32
    %40 = vector.broadcast %cst_21 : f32 to vector<256x64xf32>
    %41 = arith.mulf %40, %39 : vector<256x64xf32>
    %42 = math.tanh %41 : vector<256x64xf32>
    %cst_22 = arith.constant 1.000000e+00 : f32
    %43 = vector.broadcast %cst_22 : f32 to vector<256x64xf32>
    %44 = arith.addf %43, %42 : vector<256x64xf32>
    %45 = arith.mulf %34, %44 : vector<256x64xf32>
    %46 = arith.truncf %45 : vector<256x64xf32> to vector<256x64xbf16>
    %47 = vector.shape_cast %46 : vector<256x64xbf16> to vector<16x16x64xbf16>
    %c1_23 = arith.constant 1 : index
    %c1_24 = arith.constant 1 : index
    %c0_25 = arith.constant 0 : index
    %48 = vector.load %arg9[%c1_23, %c1_24, %c0_25] : memref<18x18x64xbf16, #tpu.memory_space<vmem>>, vector<16x16x64xbf16>
    tpu.vector_store %arg9[%c1_23, %c1_24, %c0_25], %47 {strides = array<i32>} : memref<18x18x64xbf16, #tpu.memory_space<vmem>>, vector<16x16x64xbf16>,
    %49 = vector.extract_strided_slice %47 {offsets = [15, 0, 0], sizes = [1, 16, 64], strides = [1, 1, 1]} : vector<16x16x64xbf16> to vector<1x16x64xbf16>
    %c0_26 = arith.constant 0 : index
    %c1_27 = arith.constant 1 : index
    %c0_28 = arith.constant 0 : index
    %50 = vector.load %arg9[%c0_26, %c1_27, %c0_28] : memref<18x18x64xbf16, #tpu.memory_space<vmem>>, vector<1x16x64xbf16>
    tpu.vector_store %arg9[%c0_26, %c1_27, %c0_28], %49 {strides = array<i32>} : memref<18x18x64xbf16, #tpu.memory_space<vmem>>, vector<1x16x64xbf16>,
    %51 = vector.extract_strided_slice %47 {offsets = [0, 0, 0], sizes = [1, 16, 64], strides = [1, 1, 1]} : vector<16x16x64xbf16> to vector<1x16x64xbf16>
    %c17 = arith.constant 17 : index
    %c1_29 = arith.constant 1 : index
    %c0_30 = arith.constant 0 : index
    %52 = vector.load %arg9[%c17, %c1_29, %c0_30] : memref<18x18x64xbf16, #tpu.memory_space<vmem>>, vector<1x16x64xbf16>
    tpu.vector_store %arg9[%c17, %c1_29, %c0_30], %51 {strides = array<i32>} : memref<18x18x64xbf16, #tpu.memory_space<vmem>>, vector<1x16x64xbf16>,
    %c0_31 = arith.constant 0 : index
    %c16 = arith.constant 16 : index
    %c0_32 = arith.constant 0 : index
    %53 = vector.load %arg9[%c0_31, %c16, %c0_32] : memref<18x18x64xbf16, #tpu.memory_space<vmem>>, vector<18x1x64xbf16>
    %c0_33 = arith.constant 0 : index
    %c0_34 = arith.constant 0 : index
    %c0_35 = arith.constant 0 : index
    %54 = vector.load %arg9[%c0_33, %c0_34, %c0_35] : memref<18x18x64xbf16, #tpu.memory_space<vmem>>, vector<18x1x64xbf16>
    tpu.vector_store %arg9[%c0_33, %c0_34, %c0_35], %53 {strides = array<i32>} : memref<18x18x64xbf16, #tpu.memory_space<vmem>>, vector<18x1x64xbf16>,
    %c0_36 = arith.constant 0 : index
    %c1_37 = arith.constant 1 : index
    %c0_38 = arith.constant 0 : index
    %55 = vector.load %arg9[%c0_36, %c1_37, %c0_38] : memref<18x18x64xbf16, #tpu.memory_space<vmem>>, vector<18x1x64xbf16>
    %c0_39 = arith.constant 0 : index
    %c17_40 = arith.constant 17 : index
    %c0_41 = arith.constant 0 : index
    %56 = vector.load %arg9[%c0_39, %c17_40, %c0_41] : memref<18x18x64xbf16, #tpu.memory_space<vmem>>, vector<18x1x64xbf16>
    tpu.vector_store %arg9[%c0_39, %c17_40, %c0_41], %55 {strides = array<i32>} : memref<18x18x64xbf16, #tpu.memory_space<vmem>>, vector<18x1x64xbf16>,
    %c0_42 = arith.constant 0 : index
    %c0_43 = arith.constant 0 : index
    %c0_44 = arith.constant 0 : index
    %57 = vector.load %arg9[%c0_42, %c0_43, %c0_44] : memref<18x18x64xbf16, #tpu.memory_space<vmem>>, vector<16x16x64xbf16>
    %58 = vector.shape_cast %57 : vector<16x16x64xbf16> to vector<256x64xbf16>
    %c0_45 = arith.constant 0 : index
    %c0_46 = arith.constant 0 : index
    %59 = vector.load %arg10[%c0_45, %c0_46] : memref<256x576xbf16, #tpu.memory_space<vmem>>, vector<256x64xbf16>
    tpu.vector_store %arg10[%c0_45, %c0_46], %58 {strides = array<i32>} : memref<256x576xbf16, #tpu.memory_space<vmem>>, vector<256x64xbf16>,
    %c0_47 = arith.constant 0 : index
    %c1_48 = arith.constant 1 : index
    %c0_49 = arith.constant 0 : index
    %60 = vector.load %arg9[%c0_47, %c1_48, %c0_49] : memref<18x18x64xbf16, #tpu.memory_space<vmem>>, vector<16x16x64xbf16>
    %61 = vector.shape_cast %60 : vector<16x16x64xbf16> to vector<256x64xbf16>
    %c0_50 = arith.constant 0 : index
    %c64 = arith.constant 64 : index
    %62 = vector.load %arg10[%c0_50, %c64] : memref<256x576xbf16, #tpu.memory_space<vmem>>, vector<256x64xbf16>
    tpu.vector_store %arg10[%c0_50, %c64], %61 {strides = array<i32>} : memref<256x576xbf16, #tpu.memory_space<vmem>>, vector<256x64xbf16>,
    %c0_51 = arith.constant 0 : index
    %c2_52 = arith.constant 2 : index
    %c0_53 = arith.constant 0 : index
    %63 = vector.load %arg9[%c0_51, %c2_52, %c0_53] : memref<18x18x64xbf16, #tpu.memory_space<vmem>>, vector<16x16x64xbf16>
    %64 = vector.shape_cast %63 : vector<16x16x64xbf16> to vector<256x64xbf16>
    %c0_54 = arith.constant 0 : index
    %c128 = arith.constant 128 : index
    %65 = vector.load %arg10[%c0_54, %c128] : memref<256x576xbf16, #tpu.memory_space<vmem>>, vector<256x64xbf16>
    tpu.vector_store %arg10[%c0_54, %c128], %64 {strides = array<i32>} : memref<256x576xbf16, #tpu.memory_space<vmem>>, vector<256x64xbf16>,
    %c1_55 = arith.constant 1 : index
    %c0_56 = arith.constant 0 : index
    %c0_57 = arith.constant 0 : index
    %66 = vector.load %arg9[%c1_55, %c0_56, %c0_57] : memref<18x18x64xbf16, #tpu.memory_space<vmem>>, vector<16x16x64xbf16>
    %67 = vector.shape_cast %66 : vector<16x16x64xbf16> to vector<256x64xbf16>
    %c0_58 = arith.constant 0 : index
    %c192 = arith.constant 192 : index
    %68 = vector.load %arg10[%c0_58, %c192] : memref<256x576xbf16, #tpu.memory_space<vmem>>, vector<256x64xbf16>
    tpu.vector_store %arg10[%c0_58, %c192], %67 {strides = array<i32>} : memref<256x576xbf16, #tpu.memory_space<vmem>>, vector<256x64xbf16>,
    %c1_59 = arith.constant 1 : index
    %c1_60 = arith.constant 1 : index
    %c0_61 = arith.constant 0 : index
    %69 = vector.load %arg9[%c1_59, %c1_60, %c0_61] : memref<18x18x64xbf16, #tpu.memory_space<vmem>>, vector<16x16x64xbf16>
    %70 = vector.shape_cast %69 : vector<16x16x64xbf16> to vector<256x64xbf16>
    %c0_62 = arith.constant 0 : index
    %c256 = arith.constant 256 : index
    %71 = vector.load %arg10[%c0_62, %c256] : memref<256x576xbf16, #tpu.memory_space<vmem>>, vector<256x64xbf16>
    tpu.vector_store %arg10[%c0_62, %c256], %70 {strides = array<i32>} : memref<256x576xbf16, #tpu.memory_space<vmem>>, vector<256x64xbf16>,
    %c1_63 = arith.constant 1 : index
    %c2_64 = arith.constant 2 : index
    %c0_65 = arith.constant 0 : index
    %72 = vector.load %arg9[%c1_63, %c2_64, %c0_65] : memref<18x18x64xbf16, #tpu.memory_space<vmem>>, vector<16x16x64xbf16>
    %73 = vector.shape_cast %72 : vector<16x16x64xbf16> to vector<256x64xbf16>
    %c0_66 = arith.constant 0 : index
    %c320 = arith.constant 320 : index
    %74 = vector.load %arg10[%c0_66, %c320] : memref<256x576xbf16, #tpu.memory_space<vmem>>, vector<256x64xbf16>
    tpu.vector_store %arg10[%c0_66, %c320], %73 {strides = array<i32>} : memref<256x576xbf16, #tpu.memory_space<vmem>>, vector<256x64xbf16>,
    %c2_67 = arith.constant 2 : index
    %c0_68 = arith.constant 0 : index
    %c0_69 = arith.constant 0 : index
    %75 = vector.load %arg9[%c2_67, %c0_68, %c0_69] : memref<18x18x64xbf16, #tpu.memory_space<vmem>>, vector<16x16x64xbf16>
    %76 = vector.shape_cast %75 : vector<16x16x64xbf16> to vector<256x64xbf16>
    %c0_70 = arith.constant 0 : index
    %c384 = arith.constant 384 : index
    %77 = vector.load %arg10[%c0_70, %c384] : memref<256x576xbf16, #tpu.memory_space<vmem>>, vector<256x64xbf16>
    tpu.vector_store %arg10[%c0_70, %c384], %76 {strides = array<i32>} : memref<256x576xbf16, #tpu.memory_space<vmem>>, vector<256x64xbf16>,
    %c2_71 = arith.constant 2 : index
    %c1_72 = arith.constant 1 : index
    %c0_73 = arith.constant 0 : index
    %78 = vector.load %arg9[%c2_71, %c1_72, %c0_73] : memref<18x18x64xbf16, #tpu.memory_space<vmem>>, vector<16x16x64xbf16>
    %79 = vector.shape_cast %78 : vector<16x16x64xbf16> to vector<256x64xbf16>
    %c0_74 = arith.constant 0 : index
    %c448 = arith.constant 448 : index
    %80 = vector.load %arg10[%c0_74, %c448] : memref<256x576xbf16, #tpu.memory_space<vmem>>, vector<256x64xbf16>
    tpu.vector_store %arg10[%c0_74, %c448], %79 {strides = array<i32>} : memref<256x576xbf16, #tpu.memory_space<vmem>>, vector<256x64xbf16>,
    %c2_75 = arith.constant 2 : index
    %c2_76 = arith.constant 2 : index
    %c0_77 = arith.constant 0 : index
    %81 = vector.load %arg9[%c2_75, %c2_76, %c0_77] : memref<18x18x64xbf16, #tpu.memory_space<vmem>>, vector<16x16x64xbf16>
    %82 = vector.shape_cast %81 : vector<16x16x64xbf16> to vector<256x64xbf16>
    %c0_78 = arith.constant 0 : index
    %c512 = arith.constant 512 : index
    %83 = vector.load %arg10[%c0_78, %c512] : memref<256x576xbf16, #tpu.memory_space<vmem>>, vector<256x64xbf16>
    tpu.vector_store %arg10[%c0_78, %c512], %82 {strides = array<i32>} : memref<256x576xbf16, #tpu.memory_space<vmem>>, vector<256x64xbf16>,
    %c0_79 = arith.constant 0 : index
    %c0_80 = arith.constant 0 : index
    %84 = vector.load %arg10[%c0_79, %c0_80] : memref<256x576xbf16, #tpu.memory_space<vmem>>, vector<256x576xbf16>
    %c0_81 = arith.constant 0 : index
    %c0_82 = arith.constant 0 : index
    %85 = vector.load %arg5[%c0_81, %c0_82] : memref<576x32xbf16, #tpu.memory_space<vmem>>, vector<576x32xbf16>
    %cst_83 = arith.constant dense<0.000000e+00> : vector<256x32xf32>
    %86 = tpu.matmul %84, %85, %cst_83 {dimension_numbers = #tpu.dot_dimension_numbers<[1], [0], [0], [1], [0, 0, 1, 1], [], []>} : vector<256x576xbf16>, vector<576x32xbf16>, vector<256x32xf32> -> vector<256x32xf32>
    %c0_84 = arith.constant 0 : index
    %c0_85 = arith.constant 0 : index
    %87 = vector.load %arg7[%c0_84, %c0_85] : memref<3x32xf32, #tpu.memory_space<vmem>>, vector<1x32xf32>
    %88 = vector.broadcast %87 : vector<1x32xf32> to vector<256x32xf32>
    %89 = arith.addf %86, %88 : vector<256x32xf32>
    %cst_86 = arith.constant dense<0.000000e+00> : vector<32xf32>
    %90 = vector.multi_reduction <add>, %89, %cst_86 [0] : vector<256x32xf32> to vector<32xf32>
    %91 = vector.shape_cast %90 : vector<32xf32> to vector<1x32xf32>
    %cst_87 = arith.constant 3.906250e-03 : f32
    %92 = vector.broadcast %cst_87 : f32 to vector<1x32xf32>
    %93 = arith.mulf %91, %92 : vector<1x32xf32>
    %c0_88 = arith.constant 0 : index
    %c0_89 = arith.constant 0 : index
    %94 = vector.load %arg6[%c0_88, %c0_89] : memref<32x32xf32, #tpu.memory_space<vmem>>, vector<32x32xf32>
    %cst_90 = arith.constant dense<0.000000e+00> : vector<1x32xf32>
    %95 = tpu.matmul %93, %94, %cst_90 {dimension_numbers = #tpu.dot_dimension_numbers<[1], [0], [0], [1], [0, 0, 1, 1], [], []>} : vector<1x32xf32>, vector<32x32xf32>, vector<1x32xf32> -> vector<1x32xf32>
    %96 = vector.broadcast %95 : vector<1x32xf32> to vector<256x32xf32>
    %97 = arith.subf %89, %96 : vector<256x32xf32>
    %98 = arith.mulf %97, %97 : vector<256x32xf32>
    %cst_91 = arith.constant dense<0.000000e+00> : vector<32xf32>
    %99 = vector.multi_reduction <add>, %98, %cst_91 [0] : vector<256x32xf32> to vector<32xf32>
    %100 = vector.shape_cast %99 : vector<32xf32> to vector<1x32xf32>
    %cst_92 = arith.constant 3.906250e-03 : f32
    %101 = vector.broadcast %cst_92 : f32 to vector<1x32xf32>
    %102 = arith.mulf %100, %101 : vector<1x32xf32>
    %c0_93 = arith.constant 0 : index
    %c0_94 = arith.constant 0 : index
    %103 = vector.load %arg6[%c0_93, %c0_94] : memref<32x32xf32, #tpu.memory_space<vmem>>, vector<32x32xf32>
    %cst_95 = arith.constant dense<0.000000e+00> : vector<1x32xf32>
    %104 = tpu.matmul %102, %103, %cst_95 {dimension_numbers = #tpu.dot_dimension_numbers<[1], [0], [0], [1], [0, 0, 1, 1], [], []>} : vector<1x32xf32>, vector<32x32xf32>, vector<1x32xf32> -> vector<1x32xf32>
    %cst_96 = arith.constant 9.99999974E-6 : f32
    %105 = vector.broadcast %cst_96 : f32 to vector<1x32xf32>
    %106 = arith.addf %104, %105 : vector<1x32xf32>
    %107 = math.rsqrt %106 : vector<1x32xf32>
    %108 = vector.broadcast %107 : vector<1x32xf32> to vector<256x32xf32>
    %109 = arith.mulf %97, %108 : vector<256x32xf32>
    %c1_97 = arith.constant 1 : index
    %c0_98 = arith.constant 0 : index
    %110 = vector.load %arg7[%c1_97, %c0_98] : memref<3x32xf32, #tpu.memory_space<vmem>>, vector<1x32xf32>
    %111 = vector.broadcast %110 : vector<1x32xf32> to vector<256x32xf32>
    %112 = arith.mulf %109, %111 : vector<256x32xf32>
    %c2_99 = arith.constant 2 : index
    %c0_100 = arith.constant 0 : index
    %113 = vector.load %arg7[%c2_99, %c0_100] : memref<3x32xf32, #tpu.memory_space<vmem>>, vector<1x32xf32>
    %114 = vector.broadcast %113 : vector<1x32xf32> to vector<256x32xf32>
    %115 = arith.addf %112, %114 : vector<256x32xf32>
    %cst_101 = arith.constant 5.000000e-01 : f32
    %116 = vector.broadcast %cst_101 : f32 to vector<256x32xf32>
    %117 = arith.mulf %116, %115 : vector<256x32xf32>
    %118 = arith.mulf %115, %115 : vector<256x32xf32>
    %119 = arith.mulf %118, %115 : vector<256x32xf32>
    %cst_102 = arith.constant 4.471500e-02 : f32
    %120 = vector.broadcast %cst_102 : f32 to vector<256x32xf32>
    %121 = arith.mulf %120, %119 : vector<256x32xf32>
    %122 = arith.addf %115, %121 : vector<256x32xf32>
    %cst_103 = arith.constant 0.797884583 : f32
    %123 = vector.broadcast %cst_103 : f32 to vector<256x32xf32>
    %124 = arith.mulf %123, %122 : vector<256x32xf32>
    %125 = math.tanh %124 : vector<256x32xf32>
    %cst_104 = arith.constant 1.000000e+00 : f32
    %126 = vector.broadcast %cst_104 : f32 to vector<256x32xf32>
    %127 = arith.addf %126, %125 : vector<256x32xf32>
    %128 = arith.mulf %117, %127 : vector<256x32xf32>
    %129 = tpu.transpose %128, [1, 0] : vector<256x32xf32> -> vector<32x256xf32>
    %c0_105 = arith.constant 0 : index
    %c0_106 = arith.constant 0 : index
    %c0_107 = arith.constant 0 : index
    %130 = vector.load %arg8[%c0_105, %c0_106, %c0_107] : memref<1x32x256xf32, #tpu.memory_space<vmem>>, vector<1x32x256xf32>
    %131 = vector.shape_cast %130 : vector<1x32x256xf32> to vector<32x256xf32>
    %132 = vector.shape_cast %129 : vector<32x256xf32> to vector<1x32x256xf32>
    tpu.vector_store %arg8[%c0_105, %c0_106, %c0_107], %132 {strides = array<i32>} : memref<1x32x256xf32, #tpu.memory_space<vmem>>, vector<1x32x256xf32>,
    return
  }
  func.func @transform_0(%arg0: i32) -> (i32, i32, i32) {
    %c0_i32 = arith.constant 0 : i32
    %c0_i32_0 = arith.constant 0 : i32
    %c0_i32_1 = arith.constant 0 : i32
    return %arg0, %c0_i32, %c0_i32_0 : i32, i32, i32
  }
  func.func @transform_1(%arg0: i32) -> (i32, i32) {
    %c0_i32 = arith.constant 0 : i32
    %c0_i32_0 = arith.constant 0 : i32
    %c0_i32_1 = arith.constant 0 : i32
    return %c0_i32, %c0_i32_0 : i32, i32
  }
  func.func @transform_2(%arg0: i32) -> (i32, i32) {
    %c0_i32 = arith.constant 0 : i32
    %c0_i32_0 = arith.constant 0 : i32
    %c0_i32_1 = arith.constant 0 : i32
    return %c0_i32, %c0_i32_0 : i32, i32
  }
  func.func @transform_3(%arg0: i32) -> (i32, i32) {
    %c0_i32 = arith.constant 0 : i32
    %c0_i32_0 = arith.constant 0 : i32
    %c0_i32_1 = arith.constant 0 : i32
    return %c0_i32, %c0_i32_0 : i32, i32
  }
  func.func @transform_4(%arg0: i32) -> (i32, i32) {
    %c0_i32 = arith.constant 0 : i32
    %c0_i32_0 = arith.constant 0 : i32
    %c0_i32_1 = arith.constant 0 : i32
    return %c0_i32, %c0_i32_0 : i32, i32
  }
  func.func @transform_5(%arg0: i32) -> (i32, i32) {
    %c0_i32 = arith.constant 0 : i32
    %c0_i32_0 = arith.constant 0 : i32
    %c0_i32_1 = arith.constant 0 : i32
    return %c0_i32, %c0_i32_0 : i32, i32
  }
  func.func @transform_6(%arg0: i32) -> (i32, i32) {
    %c0_i32 = arith.constant 0 : i32
    %c0_i32_0 = arith.constant 0 : i32
    %c0_i32_1 = arith.constant 0 : i32
    return %c0_i32, %c0_i32_0 : i32, i32
  }
  func.func @transform_7(%arg0: i32) -> (i32, i32, i32) {
    %c0_i32 = arith.constant 0 : i32
    %c0_i32_0 = arith.constant 0 : i32
    %c0_i32_1 = arith.constant 0 : i32
    return %arg0, %c0_i32, %c0_i32_0 : i32, i32, i32
  }
}

</mosaic_0001>

<bundles_post_ra>
// kernel: decoder_block_forward.1
= control target key start
LH: loop header
LB: loop body
LE: loop exit
PB: predicated region body
PF: predicated region fallthrough
CT: control target
= control target key end

     0   :  { %s8882_s24 = smov 0   ;;  %s13903_s0 = inlined_call_operand.vmem [shape: bf16[2,256,288], index: 0, kind: input, shape index: {}]   ;;  %s13904_s1 = inlined_call_operand.vmem [shape: bf16[288,64], index: 1, kind: input, shape index: {}]   ;;  %s13905_s2 = inlined_call_operand.vmem [shape: f32[64,64], index: 2, kind: input, shape index: {}]   ;;  %s13906_s3 = inlined_call_operand.vmem [shape: f32[3,64], index: 3, kind: input, shape index: {}]   ;;  %s13907_s4 = inlined_call_operand.vmem [shape: bf16[576,32], index: 4, kind: input, shape index: {}]   ;;  %s13908_s5 = inlined_call_operand.vmem [shape: f32[32,32], index: 5, kind: input, shape index: {}]   ;;  %s13909_s6 = inlined_call_operand.vmem [shape: f32[3,32], index: 6, kind: input, shape index: {}]   ;;  %s13910_s7 = inlined_call_operand.vmem [shape: f32[2,32,256], index: 7, kind: output, shape index: {}]  }
   0x1 LB: > { %s7592_s25 = sadd.s32 4294967295, %s8837_s24   ;;  %p7596_p0 = scmp.ge.s32.totalorder %s8837_s24, 1  ;;  %s8837_s24 = sphi %s8882_s24, %s17_s24  }
   0x2   : > { %p237_p1 = scmp.lt.s32.totalorder %s8837_s24, 3 }
   0x4   : > { %p238_p2 = pnand %p7596_p0, %p237_p1 }
   0x6   : > { %241 = sbr.rel (%p238_p2) target bundleno = 2408 (0x968), region = 48 }
   0xb   : > { %v8489_v0 = vld [vmem:[%s13904_s1 + $0x78] sm:$0xff]   ;;  %v8491_v2 = vld [vmem:[%s13904_s1 + $0x70] sm:$0xff]   ;;  %p269_p3 = scmp.lt.s32.totalorder %s7592_s25, 1  ;;  %v8493_v4 = vld [vmem:[%s13904_s1 + $0x68] sm:$0xff]   ;;  %vm733_vm0 = vcmask 261120   ;;  %vm8840_vm1 = vmmov 0  }
   0xc   : > { %v8490_v1 = vld [vmem:[%s13904_s1 + $0x38] sm:$0xff]   ;;  %7939 = vmatprep.subr.bf16.mxu0 %v8489_v0  ;;  %v8492_v3 = vld [vmem:[%s13904_s1 + $0x30] sm:$0xff]   ;;  %v8494_v5 = vld [vmem:[%s13904_s1 + $0x28] sm:$0xff]   ;;  %vm1104_vm2 = vcmask 523264   ;;  %vm1962_vm3 = vsmask.f32 256 }
   0xd   : > { %7940 = vmatpush3.bf16.msra.mxu0 %v8490_v1  ;;  %s14186_s25 = smov (!%p269_p3, %s7592_s25), 1  ;;  %v8495_v6 = vld [vmem:[%s13904_s1 + $0x60] sm:$0xff]   ;;  %v8497_v8 = vld [vmem:[%s13904_s1 + $0x58] sm:$0xff]   ;;  %v8504_v10 = vld [vmem:[%s13904_s1 + $0x88] sm:$0xff]   ;;  %vm1963_vm4 = vsmask.f32 4368 }
   0xe   : > { %7941 = vmatprep.subr.bf16.mxu0 %v8491_v2  ;;  %v8496_v7 = vld [vmem:[%s13904_s1 + $0x20] sm:$0xff]   ;;  %s8477_s19 = smul.u32 384, %s14186_s25  ;;  %v8498_v9 = vld [vmem:[%s13904_s1 + $0x18] sm:$0xff]   ;;  %v8499_v11 = vld [vmem:[%s13904_s1 + $0x50] sm:$0xff]   ;;  %8341 = vmatprep.subr.bf16.mxu1 %v8504_v10  ;;  %v13911_v2 = vmov 0.0   ;;  %vm2294_vm5 = vcmask 516096  }
   0xf   : > { %v8500_v12 = vld [vmem:[%s13904_s1 + $0x10] sm:$0xff]   ;;  %v8501_v13 = vld [vmem:[%s13904_s1 + $0x48] sm:$0xff]   ;;  %8342 = vmatpush3.bf16.msra.mxu1 %v8504_v10  ;;  %v8509_v15 = vld [vmem:[%s13904_s1 + $0x80] sm:$0xff]   ;;  %vm2286_vm6 = vcmask 519168   ;;  %vm2287_vm7 = vsmask.f32 7938 }
  0x10   : > { %s8929_s30 = scalar_lea.vmem %s13903_s0, %s8477_s19  ;;  %8343 = vmatprep.subr.bf16.mxu1 %v8509_v15  ;;  %v8502_v18 = vld [vmem:[%s13904_s1 + $0x8] sm:$0xff]   ;;  %v8503_v19 = vld [vmem:[%s13904_s1 + $0x40] sm:$0xff]   ;;  %vm9913_vm8 = vmor %vm1962_vm3, %vm1963_vm4  ;;  %s8841_s23 = smov 64   ;;  %vm3288_vm12 = vcmask 1042432   ;;  %vm2676_vm13 = vsmask.f32 3328 }
  0x11   : > { %7942 = vmatpush3.bf16.msra.mxu0 %v8492_v3  ;;  %v8508_v14 = vld [vmem:[%s8929_s30 + $0x4] ss:$12 sps:$4 sm:$0xff]   ;;  %v8510_v16 = vld [vmem:[%s8929_s30 + $0x8] ss:$12 sps:$4 sm:$0xff]   ;;  %v8511_v17 = vld [vmem:[%s8929_s30 + $0x20] ss:$12 sps:$4 sm:$0xff]  }
  0x12   : > { %7943 = vmatprep.subr.bf16.mxu0 %v8493_v4  ;;  %814 = vmatprep.mubr.bf16.mxu0 %v8508_v14  ;;  %v8518_v20 = vld [vmem:[%s8929_s30 + $0x38] ss:$12 sps:$4 sm:$0xff]   ;;  %v8506_v22 = vld [vmem:[%s8929_s30] ss:$12 sps:$4 sm:$0xff]   ;;  %v8519_v23 = vld [vmem:[%s8929_s30 + $0x50] ss:$12 sps:$4 sm:$0xff]  }
  0x13   : > { %8344 = vmatpush3.bf16.msra.mxu1 %v8509_v15  ;;  %8345 = vmatprep.mubr.msk.bf16.mxu1 %vm733_vm0, %v8510_v16  ;;  %v8505_v21 = vld [vmem:[%s13904_s1] sm:$0xff]   ;;  %v8526_v24 = vld [vmem:[%s8929_s30 + $0x68] ss:$12 sps:$4 sm:$0xff]   ;;  %v8517_v30 = vld [vmem:[%s8929_s30 + $0x30] ss:$12 sps:$4 sm:$0xff]   ;;  %vm3289_vm15 = vcmask 1046532  }
  0x14   : > { %v8512_v25 = vld [vmem:[%s8929_s30 + $0x1c] ss:$12 sps:$4 sm:$0xff]   ;;  %v8514_v26 = vld [vmem:[%s8929_s30 + $0x18] ss:$12 sps:$4 sm:$0xff]   ;;  %v8527_v27 = vld [vmem:[%s8929_s30 + $0x80] ss:$12 sps:$4 sm:$0xff]   ;;  %8377 = vmatprep.subr.mxu1 %v13911_v2 }
  0x15   : > { %7944 = vmatpush3.bf16.msra.mxu0 %v8494_v5  ;;  %v8534_v28 = vld [vmem:[%s8929_s30 + $0x98] ss:$12 sps:$4 sm:$0xff]   ;;  %v8515_v29 = vld [vmem:[%s8929_s30 + $0x34] ss:$12 sps:$4 sm:$0xff]   ;;  %v8535_v31 = vld [vmem:[%s8929_s30 + $0xb0] ss:$12 sps:$4 sm:$0xff]  }
  0x16   : > { %7945 = vmatprep.subr.bf16.mxu0 %v8495_v6  ;;  %8346 = vmatmul.mubr.msk.bf16.vlgmr.msra.gmra.mxu1 %vm733_vm0, %v8511_v17  ;;  %v8542_v32 = vld [vmem:[%s8929_s30 + $0xc8] ss:$12 sps:$4 sm:$0xff]   ;;  %v8520_v33 = vld [vmem:[%s8929_s30 + $0x4c] ss:$12 sps:$4 sm:$0xff]   ;;  %v8523_v37 = vld [vmem:[%s8929_s30 + $0x64] ss:$12 sps:$4 sm:$0xff]  }
  0x17   : > { %8349 = vmatprep.mubr.msk.bf16.mxu1 %vm733_vm0, %v8518_v20  ;;  %v8522_v34 = vld [vmem:[%s8929_s30 + $0x48] ss:$12 sps:$4 sm:$0xff]   ;;  %v8543_v35 = vld [vmem:[%s8929_s30 + $0xe0] ss:$12 sps:$4 sm:$0xff]   ;;  %v8550_v36 = vld [vmem:[%s8929_s30 + $0xf8] ss:$12 sps:$4 sm:$0xff]  }
  0x18   : > { %v8551_v38 = vld [vmem:[%s8929_s30 + $0x110] ss:$12 sps:$4 sm:$0xff]   ;;  %v8525_v39 = vld [vmem:[%s8929_s30 + $0x60] ss:$12 sps:$4 sm:$0xff]   ;;  %v8558_v40 = vld [vmem:[%s8929_s30 + $0x128] ss:$12 sps:$4 sm:$0xff]  }
  0x19   : > { %7946 = vmatpush3.bf16.msra.mxu0 %v8496_v7  ;;  %v8528_v41 = vld [vmem:[%s8929_s30 + $0x7c] ss:$12 sps:$4 sm:$0xff]   ;;  %v8559_v42 = vld [vmem:[%s8929_s30 + $0x140] ss:$12 sps:$4 sm:$0xff]   ;;  %v8530_v43 = vld [vmem:[%s8929_s30 + $0x78] ss:$12 sps:$4 sm:$0xff]  }
  0x1a   : > { %7947 = vmatprep.subr.bf16.mxu0 %v8497_v8  ;;  %v8566_v44 = vld [vmem:[%s8929_s30 + $0x158] ss:$12 sps:$4 sm:$0xff]   ;;  %v8531_v45 = vld [vmem:[%s8929_s30 + $0x94] ss:$12 sps:$4 sm:$0xff]   ;;  %v8567_v46 = vld [vmem:[%s8929_s30 + $0x170] ss:$12 sps:$4 sm:$0xff]  }
  0x1b   : > { %v8533_v47 = vld [vmem:[%s8929_s30 + $0x90] ss:$12 sps:$4 sm:$0xff]   ;;  %v8536_v48 = vld [vmem:[%s8929_s30 + $0xac] ss:$12 sps:$4 sm:$0xff]   ;;  %v8538_v49 = vld [vmem:[%s8929_s30 + $0xa8] ss:$12 sps:$4 sm:$0xff]  }
  0x1c   : > { %v8539_v50 = vld [vmem:[%s8929_s30 + $0xc4] ss:$12 sps:$4 sm:$0xff]   ;;  %v8541_v51 = vld [vmem:[%s8929_s30 + $0xc0] ss:$12 sps:$4 sm:$0xff]   ;;  %v8544_v52 = vld [vmem:[%s8929_s30 + $0xdc] ss:$12 sps:$4 sm:$0xff]  }
  0x1d   : > { %7948 = vmatpush3.bf16.msra.mxu0 %v8498_v9  ;;  %v8546_v53 = vld [vmem:[%s8929_s30 + $0xd8] ss:$12 sps:$4 sm:$0xff]   ;;  %v8547_v54 = vld [vmem:[%s8929_s30 + $0xf4] ss:$12 sps:$4 sm:$0xff]   ;;  %v8549_v55 = vld [vmem:[%s8929_s30 + $0xf0] ss:$12 sps:$4 sm:$0xff]  }
  0x1e   : > { %7949 = vmatprep.subr.bf16.mxu0 %v8499_v11  ;;  %8350 = vmatmul.mubr.msk.bf16.gmra.mxu1 %vm733_vm0, %v8519_v23  ;;  %v8552_v56 = vld [vmem:[%s8929_s30 + $0x10c] ss:$12 sps:$4 sm:$0xff]   ;;  %v8554_v57 = vld [vmem:[%s8929_s30 + $0x108] ss:$12 sps:$4 sm:$0xff]   ;;  %v8555_v58 = vld [vmem:[%s8929_s30 + $0x124] ss:$12 sps:$4 sm:$0xff]  }
  0x1f   : > { %8353 = vmatprep.mubr.msk.bf16.mxu1 %vm733_vm0, %v8526_v24  ;;  %v8557_v59 = vld [vmem:[%s8929_s30 + $0x120] ss:$12 sps:$4 sm:$0xff]   ;;  %v8560_v60 = vld [vmem:[%s8929_s30 + $0x13c] ss:$12 sps:$4 sm:$0xff]   ;;  %v8562_v61 = vld [vmem:[%s8929_s30 + $0x138] ss:$12 sps:$4 sm:$0xff]  }
  0x20   : > { %v8563_v62 = vld [vmem:[%s8929_s30 + $0x154] ss:$12 sps:$4 sm:$0xff]   ;;  %v8565_v63 = vld [vmem:[%s8929_s30 + $0x150] ss:$12 sps:$4 sm:$0xff]   ;;  %v8568_v0 = vld [vmem:[%s8929_s30 + $0x16c] ss:$12 sps:$4 sm:$0xff]  }
  0x21   : > { %7950 = vmatpush3.bf16.msra.mxu0 %v8500_v12  ;;  %v8570_v1 = vld [vmem:[%s8929_s30 + $0x168] ss:$12 sps:$4 sm:$0xff]   ;;  %v9020_v3 = vld [vmem:[%s13905_s2 + $0x38] sm:$0xff]  ;;  %v9041_v6 = vld [vmem:[%s13905_s2 + $0x20] sm:$0xff]  ;;  %vm2677_vm14 = vsmask.f32 7440 }
  0x22   : > { %7951 = vmatprep.subr.bf16.mxu0 %v8501_v13  ;;  %8378 = vmatpush3.msra.mxu1 %v9020_v3  ;;  %v9027_v4 = vld [vmem:[%s13905_s2 + $0x30] sm:$0xff]  ;;  %v9034_v5 = vld [vmem:[%s13905_s2 + $0x28] sm:$0xff]  ;;  %v9048_v7 = vld [vmem:[%s13905_s2 + $0x18] sm:$0xff]  ;;  %s7906_s10 = sshll.u32 %s14186_s25, 6 }
  0x23   : > { %8379 = vmatprep.subr.mxu1 %v13911_v2  ;;  %v9059_v20 = vld [vmem:[%s13905_s2 + $0x10] sm:$0xff]  ;;  %vm9923_vm9 = vmand %vm2294_vm5, %vm1962_vm3  ;;  %s278_s13 = scalar_lea.vmem %s13910_s7, %s7906_s10 }
  0x24   : > { %8380 = vmatpush3.msra.mxu1 %v9027_v4  ;;  %vm9959_vm10 = vmand %vm2286_vm6, %vm2287_vm7 }
  0x25   : > { %7952 = vmatpush3.bf16.msra.mxu0 %v8502_v18  ;;  %8381 = vmatprep.subr.mxu1 %v13911_v2  ;;  %vm10053_vm11 = vmand %vm2294_vm5, %vm2287_vm7  ;;  %vm3159_vm5 = vcmask 1043968  }
  0x26   : > { %7953 = vmatprep.subr.bf16.mxu0 %v8503_v19  ;;  %8354 = vmatmul.mubr.msk.bf16.gmra.mxu1 %vm733_vm0, %v8527_v27  ;;  %vm10543_vm3 = vmor %vm3288_vm12, %vm3289_vm15 }
  0x27   : > { %8357 = vmatprep.mubr.msk.bf16.mxu1 %vm733_vm0, %v8534_v28  ;;  %8382 = vmatpush3.msra.mxu1 %v9034_v5  ;;  %vm10574_vm4 = vmor %vm2676_vm13, %vm2677_vm14 }
  0x28   : > { %8383 = vmatprep.subr.mxu1 %v13911_v2 }
  0x29   : > { %7954 = vmatpush3.bf16.msra.mxu0 %v8505_v21  ;;  %8384 = vmatpush3.msra.mxu1 %v9041_v6 }
  0x2a   : > { %8385 = vmatprep.subr.mxu1 %v13911_v2 }
  0x2b   : > { %8386 = vmatpush3.msra.mxu1 %v9048_v7 }
  0x2c   : > { %815 = vmatmul.mubr.bf16.vlgmr.msra.gmra.mxu0 %v8506_v22  ;;  %8387 = vmatprep.subr.mxu1 %v13911_v2  ;;  %v9066_v22 = vld [vmem:[%s13905_s2 + $0x8] sm:$0xff] }
  0x2d   : > { %822 = vmatprep.mubr.bf16.mxu0 %v8512_v25  ;;  %8388 = vmatpush3.msra.mxu1 %v9059_v20  ;;  %v9075_v25 = vld [vmem:[%s13905_s2] sm:$0xff] }
  0x2e   : > { %8358 = vmatmul.mubr.msk.bf16.gmra.mxu1 %vm733_vm0, %v8535_v31  ;;  %8389 = vmatprep.subr.mxu1 %v13911_v2  ;;  %13959 = vst [vmem:[#allocation4_spill] sm:$0xff] %v9075_v25 }
  0x2f   : > { %8361 = vmatprep.mubr.msk.bf16.mxu1 %vm733_vm0, %v8542_v32  ;;  %8390 = vmatpush3.msra.mxu1 %v9066_v22 }
  0x30   : > { %8391 = vmatprep.subr.mxu1 %v13911_v2 }
  0x31   : > { %8392 = vmatpush3.msra.mxu1 %v9075_v25 }
  0x32   : > { %8396 = vmatprep.subr.mxu1 %v13911_v2 }
  0x34   : > { %823 = vmatmul.mubr.bf16.gmra.mxu0 %v8514_v26 }
  0x35   : > { %830 = vmatprep.mubr.bf16.mxu0 %v8515_v29 }
  0x36   : > { %8362 = vmatmul.mubr.msk.bf16.gmra.mxu1 %vm733_vm0, %v8543_v35 }
  0x37   : > { %8365 = vmatprep.mubr.msk.bf16.mxu1 %vm733_vm0, %v8550_v36 }
  0x3c   : > { %831 = vmatmul.mubr.bf16.gmra.mxu0 %v8517_v30 }
  0x3d   : > { %838 = vmatprep.mubr.bf16.mxu0 %v8520_v33 }
  0x3e   : > { %8366 = vmatmul.mubr.msk.bf16.gmra.mxu1 %vm733_vm0, %v8551_v38 }
  0x3f   : > { %8369 = vmatprep.mubr.msk.bf16.mxu1 %vm733_vm0, %v8558_v40 }
  0x44   : > { %839 = vmatmul.mubr.bf16.gmra.mxu0 %v8522_v34 }
  0x45   : > { %846 = vmatprep.mubr.bf16.mxu0 %v8523_v37 }
  0x46   : > { %8370 = vmatmul.mubr.msk.bf16.gmra.mxu1 %vm733_vm0, %v8559_v42 }
  0x47   : > { %8373 = vmatprep.mubr.msk.bf16.mxu1 %vm733_vm0, %v8566_v44 }
  0x4c   : > { %847 = vmatmul.mubr.bf16.gmra.mxu0 %v8525_v39 }
  0x4d   : > { %854 = vmatprep.mubr.bf16.mxu0 %v8528_v41 }
  0x4e   : > { %8374 = vmatmul.mubr.msk.bf16.gmra.mxu1 %vm733_vm0, %v8567_v46 }
  0x4f   : > { %8393 = vmatprep.mubr.msk.f32.mxu1 %vm8840_vm1, %v13911_v2 }
  0x54   : > { %855 = vmatmul.mubr.bf16.gmra.mxu0 %v8530_v43 }
  0x55   : > { %862 = vmatprep.mubr.bf16.mxu0 %v8531_v45 }
  0x5c   : > { %863 = vmatmul.mubr.bf16.gmra.mxu0 %v8533_v47 }
  0x5d   : > { %870 = vmatprep.mubr.bf16.mxu0 %v8536_v48 }
  0x64   : > { %871 = vmatmul.mubr.bf16.gmra.mxu0 %v8538_v49 }
  0x65   : > { %878 = vmatprep.mubr.bf16.mxu0 %v8539_v50 }
  0x6c   : > { %879 = vmatmul.mubr.bf16.gmra.mxu0 %v8541_v51 }
  0x6d   : > { %886 = vmatprep.mubr.bf16.mxu0 %v8544_v52 }
  0x74   : > { %887 = vmatmul.mubr.bf16.gmra.mxu0 %v8546_v53 }
  0x75   : > { %894 = vmatprep.mubr.bf16.mxu0 %v8547_v54 }
  0x7c   : > { %895 = vmatmul.mubr.bf16.gmra.mxu0 %v8549_v55 }
  0x7d   : > { %902 = vmatprep.mubr.bf16.mxu0 %v8552_v56 }
  0x84   : > { %903 = vmatmul.mubr.bf16.gmra.mxu0 %v8554_v57 }
  0x85   : > { %910 = vmatprep.mubr.bf16.mxu0 %v8555_v58  ;;  %v9120_v58 = vld [vmem:[%s13906_s3] ss:$0 sm:$0xff] }
  0x8c   : > { %911 = vmatmul.mubr.bf16.gmra.mxu0 %v8557_v59 }
  0x8d   : > { %918 = vmatprep.mubr.bf16.mxu0 %v8560_v60 }
  0x94   : > { %919 = vmatmul.mubr.bf16.gmra.mxu0 %v8562_v61 }
  0x95   : > { %926 = vmatprep.mubr.bf16.mxu0 %v8563_v62 }
  0x9c   : > { %927 = vmatmul.mubr.bf16.gmra.mxu0 %v8565_v63 }
  0x9d   : > { %934 = vmatprep.mubr.bf16.mxu0 %v8568_v0 }
  0xa4   : > { %935 = vmatmul.mubr.bf16.gmra.mxu0 %v8570_v1 }
  0xd6   : > { %v9052_v15 = vpop.f32.mrf.mxu1 }
  0xd8   : > { %v9054_v18 = vpop.f32.mrf.mxu1 }
  0xda   : > { %v9069_v23 = vpop.f32.mrf.mxu1 }
  0xdc   : > { %v980_v27 = vpop.f32.mrf.mxu1 }
  0xde   : > { %v9081_v29 = vpop.f32.mrf.mxu1 }
  0xe0   : > { %v993_v32 = vpop.f32.mrf.mxu1 }
  0xe2   : > { %v9083_v35 = vpop.f32.mrf.mxu1 }
  0xe4   : > { %v996_v38 = vpop.f32.mrf.mxu1 }
  0xe6   : > { %v9085_v40 = vpop.f32.mrf.mxu1 }
  0xe8   : > { %v9089_v43 = vpop.f32.mrf.mxu1 }
  0xea   : > { %v9095_v46 = vpop.f32.mrf.mxu1 }
  0xec   : > { %v7955_v8 = vpop.f32.mrf.mxu0  ;;  %v9101_v49 = vpop.f32.mrf.mxu1 }
  0xee   : > { %v7956_v9 = vpop.f32.mrf.mxu0  ;;  %v9105_v51 = vpop.f32.mrf.mxu1 }
  0xef   : > { %v7957_v10 = vadd.f32 %v7956_v9, %v7955_v8 }
  0xf0   : > { %v7958_v11 = vpop.f32.mrf.mxu0  ;;  %v9111_v54 = vpop.f32.mrf.mxu1 }
  0xf1   : > { %v817_v0 = vadd.f32 %v7957_v10, %v9120_v58 }
  0xf2   : > { %v7959_v12 = vpop.f32.mrf.mxu0  ;;  %v9122_v60 = vpop.f32.mrf.mxu1 }
  0xf3   : > { %v7960_v56 = vadd.f32 %v7959_v12, %v7958_v11  ;;  %v9139_v25 = vadd.f32 %v9054_v18, %v817_v0 }
  0xf4   : > { %v7961_v13 = vpop.f32.mrf.mxu0  ;;  %v9131_v11 = vpop.f32.mrf.mxu1 }
  0xf5   : > { %v820_v62 = vadd.f32 %v7960_v56, %v9120_v58 }
  0xf6   : > { %v7962_v14 = vpop.f32.mrf.mxu0  ;;  %v9143_v10 = vpop.f32.mrf.mxu1 }
  0xf7   : > { %v7963_v59 = vadd.f32 %v7962_v14, %v7961_v13  ;;  %v9135_v2 = vadd.f32 %v980_v27, %v820_v62 }
  0xf8   : > { %v7964_v16 = vpop.f32.mrf.mxu0  ;;  %v9159_v62 = vpop.f32.mrf.mxu1 }
  0xf9   : > { %v825_v8 = vadd.f32 %v7963_v59, %v9120_v58  ;;  %13960 = vst [vmem:[#allocation5_spill] sm:$0xff] %v9135_v2  ;;  %v1106_v27 = vsel %vm1104_vm2, %v9135_v2, 0.0  ;;  %v1105_v59 = vsel %vm1104_vm2, %v9139_v25, 0.0 }
  0xfa   : > { %v7965_v17 = vpop.f32.mrf.mxu0  ;;  %v9175_v2 = vpop.f32.mrf.mxu1 }
  0xfb   : > { %v7966_v63 = vadd.f32 %v7965_v17, %v7964_v16  ;;  %v9146_v17 = vadd.f32 %v9052_v15, %v825_v8 }
  0xfc   : > { %v7967_v19 = vpop.f32.mrf.mxu0 }
  0xfd   : > { %v828_v13 = vadd.f32 %v7966_v63, %v9120_v58  ;;  %13961 = vst [vmem:[#allocation6_spill] sm:$0xff] %v9146_v17 }
  0xfe   : > { %v7968_v21 = vpop.f32.mrf.mxu0 }
  0xff   : > { %v7969_v9 = vadd.f32 %v7968_v21, %v7967_v19 }
 0x100   : > { %v7970_v24 = vpop.f32.mrf.mxu0 }
 0x101   : > { %v833_v19 = vadd.f32 %v7969_v9, %v9120_v58 }
 0x102   : > { %v7971_v26 = vpop.f32.mrf.mxu0 }
 0x103   : > { %v7972_v14 = vadd.f32 %v7971_v26, %v7970_v24  ;;  %v9154_v24 = vadd.f32 %v9069_v23, %v828_v13  ;;  %v1107_v23 = vadd.f32 %v1106_v27, %v1105_v59 }
 0x104   : > { %v7973_v28 = vpop.f32.mrf.mxu0 }
 0x105   : > { %v836_v18 = vadd.f32 %v7972_v14, %v9120_v58 }
 0x106   : > { %v7974_v30 = vpop.f32.mrf.mxu0 }
 0x107   : > { %v7975_v21 = vadd.f32 %v7974_v30, %v7973_v28  ;;  %v1108_v28 = vsel %vm1104_vm2, %v9146_v17, 0.0  ;;  %v9165_v30 = vadd.f32 %v993_v32, %v833_v19 }
 0x108   : > { %v7976_v31 = vpop.f32.mrf.mxu0  ;;  %v1109_v14 = vadd.f32 %v1108_v28, %v1107_v23 }
 0x109   : > { %v841_v63 = vadd.f32 %v7975_v21, %v9120_v58  ;;  %v1112_v32 = vsel %vm1104_vm2, %v9165_v30, 0.0 }
 0x10a   : > { %v7977_v33 = vpop.f32.mrf.mxu0 }
 0x10b   : > { %v7978_v26 = vadd.f32 %v7977_v33, %v7976_v31  ;;  %v1110_v31 = vsel %vm1104_vm2, %v9154_v24, 0.0  ;;  %v9172_v33 = vadd.f32 %v996_v38, %v836_v18 }
 0x10c   : > { %v7979_v34 = vpop.f32.mrf.mxu0  ;;  %v1111_v38 = vadd.f32 %v1110_v31, %v1109_v14 }
 0x10d   : > { %v844_v9 = vadd.f32 %v7978_v26, %v9120_v58 }
 0x10e   : > { %v7980_v36 = vpop.f32.mrf.mxu0  ;;  %v1113_v26 = vadd.f32 %v1112_v32, %v1111_v38 }
 0x10f   : > { %v7981_v0 = vadd.f32 %v7980_v36, %v7979_v34  ;;  %v9182_v34 = vadd.f32 %v9081_v29, %v841_v63  ;;  %v1044_v29 = vpop.f32.mrf.mxu1 }
 0x110   : > { %v7982_v37 = vpop.f32.mrf.mxu0 }
 0x111   : > { %v849_v36 = vadd.f32 %v7981_v0, %v9120_v58  ;;  %v1116_v28 = vsel %vm1104_vm2, %v9182_v34, 0.0  ;;  %v9202_v23 = vpop.f32.mrf.mxu1 }
 0x112   : > { %v7983_v39 = vpop.f32.mrf.mxu0 }
 0x113   : > { %v7984_v13 = vadd.f32 %v7983_v39, %v7982_v37  ;;  %v1114_v37 = vsel %vm1104_vm2, %v9172_v33, 0.0  ;;  %v9189_v39 = vadd.f32 %v9083_v35, %v844_v9 }
 0x114   : > { %v9087_v41 = vpop.f32.mrf.mxu0  ;;  %v1115_v63 = vadd.f32 %v1114_v37, %v1113_v26 }
 0x115   : > { %v852_v27 = vadd.f32 %v7984_v13, %v9120_v58 }
 0x116   : > { %v7986_v42 = vpop.f32.mrf.mxu0  ;;  %v1117_v9 = vadd.f32 %v1116_v28, %v1115_v63 }
 0x117   : > { %v7987_v19 = vadd.f32 %v7986_v42, %v9087_v41  ;;  %v9197_v41 = vadd.f32 %v9089_v43, %v849_v36 }
 0x118   : > { %v9091_v44 = vpop.f32.mrf.mxu0 }
 0x119   : > { %v857_v42 = vadd.f32 %v7987_v19, %v9120_v58  ;;  %v1057_v19 = vpop.f32.mrf.mxu1 }
 0x11a   : > { %v9093_v45 = vpop.f32.mrf.mxu0 }
 0x11b   : > { %v7990_v18 = vadd.f32 %v9093_v45, %v9091_v44  ;;  %v1118_v44 = vsel %vm1104_vm2, %v9189_v39, 0.0  ;;  %v9207_v45 = vadd.f32 %v9101_v49, %v852_v27  ;;  %v9236_v28 = vpop.f32.mrf.mxu1 }
 0x11c   : > { %v9097_v47 = vpop.f32.mrf.mxu0  ;;  %v1119_v49 = vadd.f32 %v1118_v44, %v1117_v9 }
 0x11d   : > { %v860_v31 = vadd.f32 %v7990_v18, %v9120_v58  ;;  %v1122_v38 = vsel %vm1104_vm2, %v9207_v45, 0.0  ;;  %v1060_v9 = vpop.f32.mrf.mxu1 }
 0x11e   : > { %v9099_v48 = vpop.f32.mrf.mxu0 }
 0x11f   : > { %v7993_v35 = vadd.f32 %v9099_v48, %v9097_v47  ;;  %v1120_v47 = vsel %vm1104_vm2, %v9197_v41, 0.0  ;;  %v9215_v48 = vadd.f32 %v9085_v40, %v857_v42 }
 0x120   : > { %v9103_v50 = vpop.f32.mrf.mxu0  ;;  %v1121_v37 = vadd.f32 %v1120_v47, %v1119_v49 }
 0x121   : > { %v865_v14 = vadd.f32 %v7993_v35, %v9120_v58  ;;  %v1124_v18 = vsel %vm1104_vm2, %v9215_v48, 0.0 }
 0x122   : > { %v9107_v52 = vpop.f32.mrf.mxu0 }
 0x123   : > { %v7996_v43 = vadd.f32 %v9107_v52, %v9103_v50  ;;  %v9223_v50 = vadd.f32 %v9095_v46, %v860_v31  ;;  %v1123_v46 = vadd.f32 %v1122_v38, %v1121_v37  ;;  %v9261_v38 = vpop.f32.mrf.mxu1 }
 0x124   : > { %v9109_v53 = vpop.f32.mrf.mxu0 }
 0x125   : > { %v868_v52 = vadd.f32 %v7996_v43, %v9120_v58  ;;  %v1125_v63 = vadd.f32 %v1124_v18, %v1123_v46 }
 0x126   : > { %v9113_v55 = vpop.f32.mrf.mxu0 }
 0x127   : > { %v7999_v32 = vadd.f32 %v9113_v55, %v9109_v53  ;;  %v9231_v53 = vadd.f32 %v9111_v54, %v865_v14 }
 0x128   : > { %v9115_v57 = vpop.f32.mrf.mxu0 }
 0x129   : > { %v873_v55 = vadd.f32 %v7999_v32, %v9120_v58 }
 0x12a   : > { %v9124_v61 = vpop.f32.mrf.mxu0 }
 0x12b   : > { %v8002_v40 = vadd.f32 %v9124_v61, %v9115_v57  ;;  %v1126_v57 = vsel %vm1104_vm2, %v9223_v50, 0.0  ;;  %v9241_v61 = vadd.f32 %v9131_v11, %v868_v52 }
 0x12c   : > { %v9128_v1 = vpop.f32.mrf.mxu0  ;;  %v1127_v11 = vadd.f32 %v1126_v57, %v1125_v63  ;;  %v1073_v57 = vpop.f32.mrf.mxu1 }
 0x12d   : > { %v876_v35 = vadd.f32 %v8002_v40, %v9120_v58  ;;  %v1130_v14 = vsel %vm1104_vm2, %v9241_v61, 0.0 }
 0x12e   : > { %v9133_v12 = vpop.f32.mrf.mxu0 }
 0x12f   : > { %v8005_v26 = vadd.f32 %v9133_v12, %v9128_v1  ;;  %v1128_v1 = vsel %vm1104_vm2, %v9231_v53, 0.0  ;;  %v9249_v12 = vadd.f32 %v9105_v51, %v873_v55 }
 0x130   : > { %v9141_v16 = vpop.f32.mrf.mxu0  ;;  %v1129_v51 = vadd.f32 %v1128_v1, %v1127_v11  ;;  %v8372_v11 = vpop.f32.mrf.mxu1 }
 0x131   : > { %v881_v31 = vadd.f32 %v8005_v26, %v9120_v58 }
 0x132   : > { %v9149_v56 = vpop.f32.mrf.mxu0  ;;  %v1131_v37 = vadd.f32 %v1130_v14, %v1129_v51 }
 0x133   : > { %v8008_v54 = vadd.f32 %v9149_v56, %v9141_v16  ;;  %v9257_v16 = vadd.f32 %v9122_v60, %v876_v35 }
 0x134   : > { %v9161_v15 = vpop.f32.mrf.mxu0 }
 0x135   : > { %v884_v56 = vadd.f32 %v8008_v54, %v9120_v58  ;;  %v1134_v18 = vsel %vm1104_vm2, %v9257_v16, 0.0 }
 0x136   : > { %v9168_v8 = vpop.f32.mrf.mxu0 }
 0x137   : > { %v8011_v43 = vadd.f32 %v9168_v8, %v9161_v15  ;;  %v1132_v15 = vsel %vm1104_vm2, %v9249_v12, 0.0  ;;  %v9266_v8 = vadd.f32 %v9159_v62, %v881_v31  ;;  %v9271_v55 = vadd.f32 %v1044_v29, %v884_v56 }
 0x138   : > { %v9177_v17 = vpop.f32.mrf.mxu0  ;;  %v1133_v26 = vadd.f32 %v1132_v15, %v1131_v37 }
 0x139   : > { %v889_v52 = vadd.f32 %v8011_v43, %v9120_v58  ;;  %v1136_v62 = vsel %vm1104_vm2, %v9266_v8, 0.0  ;;  %v1138_v29 = vsel %vm1104_vm2, %v9271_v55, 0.0 }
 0x13a   : > { %v8013_v21 = vpop.f32.mrf.mxu0  ;;  %v1135_v54 = vadd.f32 %v1134_v18, %v1133_v26 }
 0x13b   : > { %v8014_v32 = vadd.f32 %v8013_v21, %v9177_v17  ;;  %v9277_v35 = vadd.f32 %v9143_v10, %v889_v52  ;;  %v1076_v52 = vpop.f32.mrf.mxu1 }
 0x13c   : > { %v8015_v59 = vpop.f32.mrf.mxu0  ;;  %v1137_v31 = vadd.f32 %v1136_v62, %v1135_v54 }
 0x13d   : > { %v892_v17 = vadd.f32 %v8014_v32, %v9120_v58  ;;  %v1140_v10 = vsel %vm1104_vm2, %v9277_v35, 0.0 }
 0x13e   : > { %v8016_v0 = vpop.f32.mrf.mxu0  ;;  %v1139_v56 = vadd.f32 %v1138_v29, %v1137_v31 }
 0x13f   : > { %v8017_v40 = vadd.f32 %v8016_v0, %v8015_v59  ;;  %v9283_v1 = vadd.f32 %v9175_v2, %v892_v17 }
 0x140   : > { %v8018_v13 = vpop.f32.mrf.mxu0  ;;  %v1141_v15 = vadd.f32 %v1140_v10, %v1139_v56 }
 0x141   : > { %v897_v59 = vadd.f32 %v8017_v40, %v9120_v58  ;;  %v1142_v2 = vsel %vm1104_vm2, %v9283_v1, 0.0 }
 0x142   : > { %v8019_v36 = vpop.f32.mrf.mxu0  ;;  %v1143_v18 = vadd.f32 %v1142_v2, %v1141_v15 }
 0x143   : > { %v8020_v21 = vadd.f32 %v8019_v36, %v8018_v13  ;;  %v9288_v14 = vadd.f32 %v1057_v19, %v897_v59 }
 0x144   : > { %v8021_v27 = vpop.f32.mrf.mxu0 }
 0x145   : > { %v900_v13 = vadd.f32 %v8020_v21, %v9120_v58  ;;  %v1144_v19 = vsel %vm1104_vm2, %v9288_v14, 0.0  ;;  %v8375_v21 = vpop.f32.mrf.mxu1 }
 0x146   : > { %v8022_v42 = vpop.f32.mrf.mxu0  ;;  %v1145_v59 = vadd.f32 %v1144_v19, %v1143_v18 }
 0x147   : > { %v8023_v0 = vadd.f32 %v8022_v42, %v8021_v27  ;;  %v9293_v51 = vadd.f32 %v1060_v9, %v900_v13 }
 0x148   : > { %v8024_v44 = vpop.f32.mrf.mxu0 }
 0x149   : > { %v905_v27 = vadd.f32 %v8023_v0, %v9120_v58  ;;  %v1146_v9 = vsel %vm1104_vm2, %v9293_v51, 0.0 }
 0x14a   : > { %v8025_v47 = vpop.f32.mrf.mxu0  ;;  %v1147_v29 = vadd.f32 %v1146_v9, %v1145_v59 }
 0x14b   : > { %v8026_v36 = vadd.f32 %v8025_v47, %v8024_v44  ;;  %v9299_v37 = vadd.f32 %v9202_v23, %v905_v27 }
 0x14c   : > { %v8027_v49 = vpop.f32.mrf.mxu0 }
 0x14d   : > { %v908_v44 = vadd.f32 %v8026_v36, %v9120_v58  ;;  %v1148_v23 = vsel %vm1104_vm2, %v9299_v37, 0.0  ;;  %v1089_v36 = vpop.f32.mrf.mxu1 }
 0x14e   : > { %v8028_v60 = vpop.f32.mrf.mxu0  ;;  %v1149_v27 = vadd.f32 %v1148_v23, %v1147_v29 }
 0x14f   : > { %v8029_v42 = vadd.f32 %v8028_v60, %v8027_v49  ;;  %v9305_v26 = vadd.f32 %v9236_v28, %v908_v44 }
 0x150   : > { %v8030_v46 = vpop.f32.mrf.mxu0 }
 0x151   : > { %v913_v49 = vadd.f32 %v8029_v42, %v9120_v58  ;;  %v1150_v31 = vsel %vm1104_vm2, %v9305_v26, 0.0 }
 0x152   : > { %v8031_v63 = vpop.f32.mrf.mxu0  ;;  %v1151_v2 = vadd.f32 %v1150_v31, %v1149_v27 }
 0x153   : > { %v8032_v47 = vadd.f32 %v8031_v63, %v8030_v46  ;;  %v9310_v54 = vadd.f32 %v1073_v57, %v913_v49 }
 0x154   : > { %v8033_v43 = vpop.f32.mrf.mxu0 }
 0x155   : > { %v916_v46 = vadd.f32 %v8032_v47, %v9120_v58  ;;  %v1152_v56 = vsel %vm1104_vm2, %v9310_v54, 0.0  ;;  %v8376_v47 = vpop.f32.mrf.mxu1 }
 0x156   : > { %v8034_v32 = vpop.f32.mrf.mxu0  ;;  %v1153_v19 = vadd.f32 %v1152_v56, %v1151_v2 }
 0x157   : > { %v8035_v60 = vadd.f32 %v8034_v32, %v8033_v43  ;;  %v9315_v28 = vadd.f32 %v1076_v52, %v916_v46  ;;  %v1092_v9 = vpop.f32.mrf.mxu1 }
 0x158   : > { %v8036_v40 = vpop.f32.mrf.mxu0 }
 0x159   : > { %v921_v63 = vadd.f32 %v8035_v60, %v9120_v58  ;;  %v1154_v15 = vsel %vm1104_vm2, %v9315_v28, 0.0 }
 0x15a   : > { %v8037_v17 = vpop.f32.mrf.mxu0 }
 0x15b   : > { %v8038_v62 = vadd.f32 %v8037_v17, %v8036_v40  ;;  %v9321_v57 = vadd.f32 %v9261_v38, %v921_v63  ;;  %v1155_v17 = vadd.f32 %v1154_v15, %v1153_v19 }
 0x15c   : > { %v8039_v0 = vpop.f32.mrf.mxu0 }
 0x15d   : > { %v924_v43 = vadd.f32 %v8038_v62, %v9120_v58  ;;  %v1156_v60 = vsel %vm1104_vm2, %v9321_v57, 0.0 }
 0x15e   : > { %v8040_v13 = vpop.f32.mrf.mxu0 }
 0x15f   : > { %v8041_v10 = vadd.f32 %v8040_v13, %v8039_v0  ;;  %v9326_v52 = vadd.f32 %v8372_v11, %v924_v43  ;;  %v1157_v0 = vadd.f32 %v1156_v60, %v1155_v17 }
 0x160   : > { %v8042_v42 = vpop.f32.mrf.mxu0 }
 0x161   : > { %v929_v32 = vadd.f32 %v8041_v10, %v9120_v58  ;;  %v1158_v62 = vsel %vm1104_vm2, %v9326_v52, 0.0 }
 0x162   : > { %v8043_v44 = vpop.f32.mrf.mxu0  ;;  %v1159_v13 = vadd.f32 %v1158_v62, %v1157_v0  ;;  %v13965_v62 = vld [vmem:[#allocation5_spill] sm:$0xff] }
 0x163   : > { %v8044_v40 = vadd.f32 %v8043_v44, %v8042_v42  ;;  %v9330_v18 = vadd.f32 %v1089_v36, %v929_v32 }
 0x164   : > { %v8045_v49 = vpop.f32.mrf.mxu0 }
 0x165   : > { %v932_v38 = vadd.f32 %v8044_v40, %v9120_v58  ;;  %v1160_v63 = vsel %vm1104_vm2, %v9330_v18, 0.0 }
 0x166   : > { %v8046_v46 = vpop.f32.mrf.mxu0  ;;  %v1161_v27 = vadd.f32 %v1160_v63, %v1159_v13 }
 0x167   : > { %v9335_v59 = vadd.f32 %v1092_v9, %v932_v38  ;;  %v8047_v11 = vadd.f32 %v8046_v46, %v8045_v49 }
 0x168   : > { %v8048_v23 = vpop.f32.mrf.mxu0 }
 0x169   : > { %v937_v29 = vadd.f32 %v8047_v11, %v9120_v58  ;;  %v1162_v31 = vsel %vm1104_vm2, %v9335_v59, 0.0  ;;  %v13966_v11 = vld [vmem:[#allocation6_spill] sm:$0xff] }
 0x16a   : > { %v8049_v36 = vpop.f32.mrf.mxu0  ;;  %v1163_v32 = vadd.f32 %v1162_v31, %v1161_v27 }
 0x16b   : > { %v9342_v43 = vadd.f32 %v8375_v21, %v937_v29  ;;  %v8050_v10 = vadd.f32 %v8049_v36, %v8048_v23 }
 0x16d   : > { %v1164_v42 = vsel %vm1104_vm2, %v9342_v43, 0.0  ;;  %v940_v56 = vadd.f32 %v8050_v10, %v9120_v58  ;;  %v13962_v58 = vmov 0.0  }
 0x16e   : > { %v1165_v44 = vadd.f32 %v1164_v42, %v1163_v32 }
 0x16f   : > { %v9347_v2 = vadd.f32 %v8376_v47, %v940_v56 }
 0x171   : > { %v1166_v15 = vsel %vm1104_vm2, %v9347_v2, 0.0 }
 0x172   : > { %v1167_v40 = vadd.f32 %v1166_v15, %v1165_v44 }
 0x174   : > { %v1168_v19 = vrot.slane %v1167_v40, 4 }
 0x176   : > { %v1169_v49 = vadd.f32 %v1168_v19, %v1167_v40 }
 0x178   : > { %v1170_v60 = vrot.slane %v1169_v49, 2 }
 0x17a   : > { %v1171_v21 = vadd.f32 %v1170_v60, %v1169_v49 }
 0x17c   : > { %v1172_v38 = vrot.slane %v1171_v21, 1 }
 0x17e   : > { %v1173_v17 = vadd.f32 %v1172_v38, %v1171_v21 }
 0x180   : > { %v1174_v9 = vmul.f32 0.00390625, %v1173_v17 }
 0x182   : > { %8394 = vmatmul.mubr.msk.f32.vlgmr.msra.gmra.mxu1 %vm1104_vm2, %v1174_v9 }
 0x183   : > { %8397 = vmatpush3.msra.mxu1 %v9020_v3  ;;  %8412 = vmatprep.mubr.msk.f32.mxu1 %vm8840_vm1, %v13962_v58  ;;  %v13963_v3 = vld [vmem:[#allocation4_spill] sm:$0xff] }
 0x184   : > { %8398 = vmatprep.subr.mxu1 %v13962_v58 }
 0x185   : > { %8399 = vmatpush3.msra.mxu1 %v9027_v4  ;;  %v1256_v4 = vlaneseq }
 0x186   : > { %8400 = vmatprep.subr.mxu1 %v13962_v58 }
 0x187   : > { %8401 = vmatpush3.msra.mxu1 %v9034_v5  ;;  %v1257_v5 = vshrl.u32 %v1256_v4, 7 }
 0x188   : > { %8402 = vmatprep.subr.mxu1 %v13962_v58 }
 0x189   : > { %8403 = vmatpush3.msra.mxu1 %v9041_v6  ;;  %v9369_v46 = vsub.s32 0, %v1257_v5 }
 0x18a   : > { %8404 = vmatprep.subr.mxu1 %v13962_v58 }
 0x18b   : > { %8405 = vmatpush3.msra.mxu1 %v9048_v7  ;;  %13964 = vst [vmem:[#allocation4_spill] sm:$0xff] %v9369_v46 }
 0x18c   : > { %8406 = vmatprep.subr.mxu1 %v13962_v58 }
 0x18d   : > { %8407 = vmatpush3.msra.mxu1 %v9059_v20 }
 0x18e   : > { %8408 = vmatprep.subr.mxu1 %v13962_v58 }
 0x18f   : > { %8409 = vmatpush3.msra.mxu1 %v9066_v22 }
 0x190   : > { %8410 = vmatprep.subr.mxu1 %v13962_v58 }
 0x191   : > { %8411 = vmatpush3.msra.mxu1 %v13963_v3 }
 0x242   : > { %v1252_v47 = vpop.f32.mrf.mxu1 }
 0x243   : > { %v9372_v7 = vrot.slane %v1252_v47, %v9369_v46 }
 0x244   : > { %v8395_v6 = vpop.f32.mrf.mxu1 }
 0x245   : > { %v9376_v20 = vsub.f32 %v9139_v25, %v9372_v7  ;;  %v9380_v22 = vsub.f32 %v13965_v62, %v9372_v7  ;;  %v9384_v0 = vsub.f32 %v13966_v11, %v9372_v7  ;;  %v9388_v23 = vsub.f32 %v9154_v24, %v9372_v7 }
 0x246   : > { %v9396_v25 = vsub.f32 %v9165_v30, %v9372_v7  ;;  %v9402_v36 = vsub.f32 %v9172_v33, %v9372_v7  ;;  %v9410_v42 = vsub.f32 %v9182_v34, %v9372_v7  ;;  %v9417_v33 = vsub.f32 %v9189_v39, %v9372_v7 }
 0x247   : > { %v1292_v63 = vmul.f32 %v9376_v20, %v9376_v20  ;;  %v1293_v29 = vmul.f32 %v9380_v22, %v9380_v22  ;;  %v1294_v13 = vmul.f32 %v9384_v0, %v9384_v0  ;;  %v1295_v24 = vmul.f32 %v9388_v23, %v9388_v23 }
 0x248   : > { %v1296_v30 = vmul.f32 %v9396_v25, %v9396_v25  ;;  %v1297_v44 = vmul.f32 %v9402_v36, %v9402_v36  ;;  %v9424_v34 = vsub.f32 %v9197_v41, %v9372_v7  ;;  %v1298_v19 = vmul.f32 %v9410_v42, %v9410_v42 }
 0x249   : > { %v1324_v31 = vsel %vm1104_vm2, %v1292_v63, 0.0  ;;  %v1325_v10 = vsel %vm1104_vm2, %v1293_v29, 0.0  ;;  %v1327_v56 = vsel %vm1104_vm2, %v1294_v13, 0.0  ;;  %v1329_v15 = vsel %vm1104_vm2, %v1295_v24, 0.0 }
 0x24a   : > { %v1326_v27 = vadd.f32 %v1325_v10, %v1324_v31  ;;  %v1331_v49 = vsel %vm1104_vm2, %v1296_v30, 0.0  ;;  %v9431_v39 = vsub.f32 %v9207_v45, %v9372_v7  ;;  %v1299_v21 = vmul.f32 %v9417_v33, %v9417_v33 }
 0x24b   : > { %v1333_v38 = vsel %vm1104_vm2, %v1297_v44, 0.0  ;;  %v9438_v41 = vsub.f32 %v9215_v48, %v9372_v7  ;;  %v1300_v9 = vmul.f32 %v9424_v34, %v9424_v34  ;;  %v1335_v3 = vsel %vm1104_vm2, %v1298_v19, 0.0 }
 0x24c   : > { %v1328_v32 = vadd.f32 %v1327_v56, %v1326_v27  ;;  %v9445_v45 = vsub.f32 %v9223_v50, %v9372_v7  ;;  %v1301_v5 = vmul.f32 %v9431_v39, %v9431_v39  ;;  %v1337_v47 = vsel %vm1104_vm2, %v1299_v21, 0.0 }
 0x24d   : > { %v9452_v48 = vsub.f32 %v9231_v53, %v9372_v7  ;;  %v1302_v62 = vmul.f32 %v9438_v41, %v9438_v41  ;;  %v1339_v11 = vsel %vm1104_vm2, %v1300_v9, 0.0  ;;  %v9459_v50 = vsub.f32 %v9241_v61, %v9372_v7 }
 0x24e   : > { %v1330_v40 = vadd.f32 %v1329_v15, %v1328_v32  ;;  %v1303_v29 = vmul.f32 %v9445_v45, %v9445_v45  ;;  %v1341_v13 = vsel %vm1104_vm2, %v1301_v5, 0.0  ;;  %v9466_v53 = vsub.f32 %v9249_v12, %v9372_v7 }
 0x24f   : > { %v1304_v31 = vmul.f32 %v9452_v48, %v9452_v48  ;;  %v1343_v10 = vsel %vm1104_vm2, %v1302_v62, 0.0  ;;  %v9473_v61 = vsub.f32 %v9257_v16, %v9372_v7  ;;  %v1305_v30 = vmul.f32 %v9459_v50, %v9459_v50 }
 0x250   : > { %v1332_v60 = vadd.f32 %v1331_v49, %v1330_v40  ;;  %v1345_v56 = vsel %vm1104_vm2, %v1303_v29, 0.0  ;;  %v9480_v12 = vsub.f32 %v9266_v8, %v9372_v7  ;;  %v1306_v44 = vmul.f32 %v9466_v53, %v9466_v53 }
 0x251   : > { %v1347_v15 = vsel %vm1104_vm2, %v1304_v31, 0.0  ;;  %v9487_v16 = vsub.f32 %v9271_v55, %v9372_v7  ;;  %v1307_v19 = vmul.f32 %v9473_v61, %v9473_v61  ;;  %v1349_v49 = vsel %vm1104_vm2, %v1305_v30, 0.0 }
 0x252   : > { %v1334_v17 = vadd.f32 %v1333_v38, %v1332_v60  ;;  %v9494_v8 = vsub.f32 %v9277_v35, %v9372_v7  ;;  %v1308_v21 = vmul.f32 %v9480_v12, %v9480_v12  ;;  %v1351_v38 = vsel %vm1104_vm2, %v1306_v44, 0.0 }
 0x253   : > { %v9501_v55 = vsub.f32 %v9283_v1, %v9372_v7  ;;  %v1309_v9 = vmul.f32 %v9487_v16, %v9487_v16  ;;  %v9508_v35 = vsub.f32 %v9288_v14, %v9372_v7  ;;  %v9515_v1 = vsub.f32 %v9293_v51, %v9372_v7 }
 0x254   : > { %v1336_v4 = vadd.f32 %v1335_v3, %v1334_v17  ;;  %v1353_v3 = vsel %vm1104_vm2, %v1307_v19, 0.0  ;;  %v1310_v5 = vmul.f32 %v9494_v8, %v9494_v8  ;;  %v9522_v14 = vsub.f32 %v9299_v37, %v9372_v7 }
 0x255   : > { %v1311_v62 = vmul.f32 %v9501_v55, %v9501_v55  ;;  %v1312_v29 = vmul.f32 %v9508_v35, %v9508_v35  ;;  %v9529_v51 = vsub.f32 %v9305_v26, %v9372_v7  ;;  %v1313_v31 = vmul.f32 %v9515_v1, %v9515_v1 }
 0x256   : > { %v1338_v6 = vadd.f32 %v1337_v47, %v1336_v4  ;;  %v1355_v47 = vsel %vm1104_vm2, %v1308_v21, 0.0  ;;  %v9536_v37 = vsub.f32 %v9310_v54, %v9372_v7  ;;  %v1314_v30 = vmul.f32 %v9522_v14, %v9522_v14 }
 0x257   : > { %v9543_v26 = vsub.f32 %v9315_v28, %v9372_v7  ;;  %v1315_v44 = vmul.f32 %v9529_v51, %v9529_v51  ;;  %v9550_v54 = vsub.f32 %v9321_v57, %v9372_v7  ;;  %v9557_v28 = vsub.f32 %v9326_v52, %v9372_v7 }
 0x258   : > { %v1340_v63 = vadd.f32 %v1339_v11, %v1338_v6  ;;  %v1357_v11 = vsel %vm1104_vm2, %v1309_v9, 0.0  ;;  %v1316_v19 = vmul.f32 %v9536_v37, %v9536_v37  ;;  %v9564_v57 = vsub.f32 %v9330_v18, %v9372_v7 }
 0x259   : > { %v1317_v21 = vmul.f32 %v9543_v26, %v9543_v26  ;;  %v1318_v9 = vmul.f32 %v9550_v54, %v9550_v54  ;;  %v9571_v52 = vsub.f32 %v9335_v59, %v9372_v7  ;;  %v9578_v18 = vsub.f32 %v9342_v43, %v9372_v7 }
 0x25a   : > { %v1342_v24 = vadd.f32 %v1341_v13, %v1340_v63  ;;  %v1359_v13 = vsel %vm1104_vm2, %v1310_v5, 0.0  ;;  %v1319_v5 = vmul.f32 %v9557_v28, %v9557_v28  ;;  %v1291_v59 = vsub.f32 %v9347_v2, %v9372_v7 }
 0x25c   : > { %v1344_v27 = vadd.f32 %v1343_v10, %v1342_v24  ;;  %v1361_v10 = vsel %vm1104_vm2, %v1311_v62, 0.0  ;;  %v1320_v62 = vmul.f32 %v9564_v57, %v9564_v57 }
 0x25e   : > { %v1346_v32 = vadd.f32 %v1345_v56, %v1344_v27  ;;  %v1363_v56 = vsel %vm1104_vm2, %v1312_v29, 0.0  ;;  %v1321_v29 = vmul.f32 %v9571_v52, %v9571_v52  ;;  %v1379_v43 = vsel %vm1104_vm2, %v1320_v62, 0.0 }
 0x260   : > { %v1348_v40 = vadd.f32 %v1347_v15, %v1346_v32  ;;  %v1365_v15 = vsel %vm1104_vm2, %v1313_v31, 0.0  ;;  %v1322_v31 = vmul.f32 %v9578_v18, %v9578_v18 }
 0x262   : > { %v1350_v60 = vadd.f32 %v1349_v49, %v1348_v40  ;;  %v1367_v49 = vsel %vm1104_vm2, %v1314_v30, 0.0  ;;  %v1381_v30 = vsel %vm1104_vm2, %v1321_v29, 0.0 }
 0x264   : > { %v1352_v17 = vadd.f32 %v1351_v38, %v1350_v60  ;;  %v1369_v38 = vsel %vm1104_vm2, %v1315_v44, 0.0 }
 0x266   : > { %v1354_v4 = vadd.f32 %v1353_v3, %v1352_v17  ;;  %v1371_v3 = vsel %vm1104_vm2, %v1316_v19, 0.0 }
 0x268   : > { %v1356_v6 = vadd.f32 %v1355_v47, %v1354_v4  ;;  %v1373_v47 = vsel %vm1104_vm2, %v1317_v21, 0.0 }
 0x26a   : > { %v1358_v63 = vadd.f32 %v1357_v11, %v1356_v6  ;;  %v1375_v11 = vsel %vm1104_vm2, %v1318_v9, 0.0 }
 0x26c   : > { %v1360_v24 = vadd.f32 %v1359_v13, %v1358_v63  ;;  %v1377_v13 = vsel %vm1104_vm2, %v1319_v5, 0.0 }
 0x26e   : > { %v1362_v27 = vadd.f32 %v1361_v10, %v1360_v24 }
 0x270   : > { %v1364_v32 = vadd.f32 %v1363_v56, %v1362_v27  ;;  %v1323_v27 = vmul.f32 %v1291_v59, %v1291_v59 }
 0x272   : > { %v1366_v40 = vadd.f32 %v1365_v15, %v1364_v32  ;;  %v1383_v32 = vsel %vm1104_vm2, %v1322_v31, 0.0  ;;  %v1385_v2 = vsel %vm1104_vm2, %v1323_v27, 0.0 }
 0x274   : > { %v1368_v60 = vadd.f32 %v1367_v49, %v1366_v40 }
 0x276   : > { %v1370_v17 = vadd.f32 %v1369_v38, %v1368_v60 }
 0x278   : > { %v1372_v4 = vadd.f32 %v1371_v3, %v1370_v17 }
 0x27a   : > { %v1374_v6 = vadd.f32 %v1373_v47, %v1372_v4 }
 0x27c   : > { %v1376_v63 = vadd.f32 %v1375_v11, %v1374_v6 }
 0x27e   : > { %v1378_v24 = vadd.f32 %v1377_v13, %v1376_v63 }
 0x280   : > { %v1380_v10 = vadd.f32 %v1379_v43, %v1378_v24 }
 0x282   : > { %v1382_v56 = vadd.f32 %v1381_v30, %v1380_v10 }
 0x284   : > { %v1384_v44 = vadd.f32 %v1383_v32, %v1382_v56 }
 0x286   : > { %v1386_v7 = vadd.f32 %v1385_v2, %v1384_v44 }
 0x288   : > { %v1387_v15 = vrot.slane %v1386_v7, 4 }
 0x28a   : > { %v1388_v40 = vadd.f32 %v1387_v15, %v1386_v7 }
 0x28c   : > { %v1389_v19 = vrot.slane %v1388_v40, 2 }
 0x28e   : > { %v1390_v49 = vadd.f32 %v1389_v19, %v1388_v40 }
 0x290   : > { %v1391_v60 = vrot.slane %v1390_v49, 1 }
 0x292   : > { %v1392_v21 = vadd.f32 %v1391_v60, %v1390_v49 }
 0x294   : > { %v1393_v38 = vmul.f32 0.00390625, %v1392_v21 }
 0x296   : > { %8413 = vmatmul.mubr.msk.f32.vlgmr.msra.gmra.mxu1 %vm1104_vm2, %v1393_v38 }
 0x356   : > { %v1463_v17 = vpop.f32.mrf.mxu1 }
 0x357   : > { %v1464_v9 = vadd.f32 1e-05, %v1463_v17 }
 0x358   : > { %v8414_v3 = vpop.f32.mrf.mxu1 }
 0x359   : > { %8698 = vrsqrt.f32 %v1464_v9 }
 0x366   : > { %v8699_v4 = vpop.eup %8698 }
 0x367   : > { %v1471_v5 = vrot.slane %v8699_v4, %v9369_v46 }
 0x369   : > { %v1472_v47 = vmul.f32 %v1471_v5, %v9376_v20  ;;  %v1473_v6 = vmul.f32 %v1471_v5, %v9380_v22  ;;  %v1474_v62 = vmul.f32 %v1471_v5, %v9384_v0  ;;  %v1475_v11 = vmul.f32 %v1471_v5, %v9388_v23 }
 0x36a   : > { %v1476_v63 = vmul.f32 %v1471_v5, %v9396_v25  ;;  %v1477_v29 = vmul.f32 %v1471_v5, %v9402_v36  ;;  %v1478_v13 = vmul.f32 %v1471_v5, %v9410_v42  ;;  %v1479_v24 = vmul.f32 %v1471_v5, %v9417_v33 }
 0x36b   : > { %v1480_v31 = vmul.f32 %v1471_v5, %v9424_v34  ;;  %v1481_v43 = vmul.f32 %v1471_v5, %v9431_v39  ;;  %v1482_v20 = vmul.f32 %v1471_v5, %v9438_v41  ;;  %v1483_v22 = vmul.f32 %v1471_v5, %v9445_v45  ;;  %v7685_v34 = vld [vmem:[%s13906_s3 + $0x1] ss:$0 sm:$0xff] }
 0x36c   : > { %v1484_v0 = vmul.f32 %v1471_v5, %v9452_v48  ;;  %v1485_v23 = vmul.f32 %v1471_v5, %v9459_v50  ;;  %v1486_v25 = vmul.f32 %v1471_v5, %v9466_v53  ;;  %v1487_v36 = vmul.f32 %v1471_v5, %v9473_v61 }
 0x36d   : > { %v1488_v42 = vmul.f32 %v1471_v5, %v9480_v12  ;;  %v1489_v33 = vmul.f32 %v1471_v5, %v9487_v16  ;;  %v1490_v39 = vmul.f32 %v1471_v5, %v9494_v8  ;;  %v1491_v41 = vmul.f32 %v1471_v5, %v9501_v55 }
 0x36e   : > { %v1492_v45 = vmul.f32 %v1471_v5, %v9508_v35  ;;  %v1493_v48 = vmul.f32 %v1471_v5, %v9515_v1  ;;  %v1494_v50 = vmul.f32 %v1471_v5, %v9522_v14  ;;  %v1495_v53 = vmul.f32 %v1471_v5, %v9529_v51 }
 0x36f   : > { %v1496_v61 = vmul.f32 %v1471_v5, %v9536_v37  ;;  %v1497_v12 = vmul.f32 %v1471_v5, %v9543_v26  ;;  %v1498_v16 = vmul.f32 %v1471_v5, %v9550_v54  ;;  %v1499_v10 = vmul.f32 %v1471_v5, %v9557_v28 }
 0x370   : > { %v1500_v8 = vmul.f32 %v1471_v5, %v9564_v57  ;;  %v1501_v55 = vmul.f32 %v1471_v5, %v9571_v52  ;;  %v1502_v35 = vmul.f32 %v1471_v5, %v9578_v18  ;;  %v1503_v27 = vmul.f32 %v1471_v5, %v1291_v59  ;;  %v9633_v57 = vld [vmem:[%s13906_s3 + $0x2] ss:$0 sm:$0xff] }
 0x371   : > { %v1509_v1 = vmul.f32 %v7685_v34, %v1472_v47  ;;  %v1510_v30 = vmul.f32 %v7685_v34, %v1473_v6  ;;  %v1511_v14 = vmul.f32 %v7685_v34, %v1474_v62  ;;  %v1512_v56 = vmul.f32 %v7685_v34, %v1475_v11 }
 0x372   : > { %v1519_v51 = vmul.f32 %v7685_v34, %v1482_v20  ;;  %v1520_v32 = vmul.f32 %v7685_v34, %v1483_v22  ;;  %v1521_v37 = vmul.f32 %v7685_v34, %v1484_v0  ;;  %v1522_v44 = vmul.f32 %v7685_v34, %v1485_v23 }
 0x373   : > { %v1523_v26 = vmul.f32 %v7685_v34, %v1486_v25  ;;  %v1524_v2 = vmul.f32 %v7685_v34, %v1487_v36  ;;  %v1525_v54 = vmul.f32 %v7685_v34, %v1488_v42  ;;  %v1526_v7 = vmul.f32 %v7685_v34, %v1489_v33 }
 0x374   : > { %v1527_v28 = vmul.f32 %v7685_v34, %v1490_v39  ;;  %v1528_v15 = vmul.f32 %v7685_v34, %v1491_v41  ;;  %v1529_v52 = vmul.f32 %v7685_v34, %v1492_v45  ;;  %v1530_v18 = vmul.f32 %v7685_v34, %v1493_v48 }
 0x375   : > { %v1531_v59 = vmul.f32 %v7685_v34, %v1494_v50  ;;  %v1532_v40 = vmul.f32 %v7685_v34, %v1495_v53  ;;  %v1533_v19 = vmul.f32 %v7685_v34, %v1496_v61  ;;  %v1534_v49 = vmul.f32 %v7685_v34, %v1497_v12 }
 0x376   : > { %v1535_v60 = vmul.f32 %v7685_v34, %v1498_v16  ;;  %v1536_v21 = vmul.f32 %v7685_v34, %v1499_v10  ;;  %v1537_v38 = vmul.f32 %v7685_v34, %v1500_v8  ;;  %v1538_v17 = vmul.f32 %v7685_v34, %v1501_v55 }
 0x377   : > { %v1539_v9 = vmul.f32 %v7685_v34, %v1502_v35  ;;  %v1540_v3 = vmul.f32 %v7685_v34, %v1503_v27  ;;  %v1546_v4 = vadd.f32 %v9633_v57, %v1509_v1  ;;  %v1547_v5 = vadd.f32 %v9633_v57, %v1510_v30 }
 0x378   : > { %v1513_v47 = vmul.f32 %v7685_v34, %v1476_v63  ;;  %v1514_v6 = vmul.f32 %v7685_v34, %v1477_v29  ;;  %v1515_v62 = vmul.f32 %v7685_v34, %v1478_v13  ;;  %v1516_v11 = vmul.f32 %v7685_v34, %v1479_v24 }
 0x379   : > { %v1517_v20 = vmul.f32 %v7685_v34, %v1480_v31  ;;  %v1518_v22 = vmul.f32 %v7685_v34, %v1481_v43  ;;  %v1610_v0 = vmul.f32 %v1546_v4, %v1546_v4  ;;  %v1611_v23 = vmul.f32 %v1547_v5, %v1547_v5 }
 0x37a   : > { %v1548_v25 = vadd.f32 %v9633_v57, %v1511_v14  ;;  %v1549_v36 = vadd.f32 %v9633_v57, %v1512_v56  ;;  %v9640_v42 = vadd.f32 %v9633_v57, %v1519_v51  ;;  %v9643_v33 = vadd.f32 %v9633_v57, %v1520_v32 }
 0x37b   : > { %v1642_v39 = vmul.f32 %v1610_v0, %v1546_v4  ;;  %v1643_v41 = vmul.f32 %v1611_v23, %v1547_v5  ;;  %v9646_v63 = vadd.f32 %v9633_v57, %v1521_v37  ;;  %v9649_v29 = vadd.f32 %v9633_v57, %v1522_v44 }
 0x37c   : > { %v9652_v13 = vadd.f32 %v9633_v57, %v1523_v26  ;;  %v9655_v24 = vadd.f32 %v9633_v57, %v1524_v2  ;;  %v9658_v31 = vadd.f32 %v9633_v57, %v1525_v54  ;;  %v9661_v43 = vadd.f32 %v9633_v57, %v1526_v7 }
 0x37d   : > { %v1674_v34 = vmul.f32 0.044715, %v1642_v39  ;;  %v1675_v45 = vmul.f32 0.044715, %v1643_v41  ;;  %v9664_v48 = vadd.f32 %v9633_v57, %v1527_v28  ;;  %v9667_v50 = vadd.f32 %v9633_v57, %v1528_v15 }
 0x37e   : > { %v9670_v53 = vadd.f32 %v9633_v57, %v1529_v52  ;;  %v9673_v61 = vadd.f32 %v9633_v57, %v1530_v18  ;;  %v9676_v12 = vadd.f32 %v9633_v57, %v1531_v59  ;;  %v9679_v16 = vadd.f32 %v9633_v57, %v1532_v40 }
 0x37f   : > { %v1706_v10 = vadd.f32 %v1674_v34, %v1546_v4  ;;  %v1707_v8 = vadd.f32 %v1675_v45, %v1547_v5  ;;  %v9682_v55 = vadd.f32 %v9633_v57, %v1533_v19  ;;  %v9685_v35 = vadd.f32 %v9633_v57, %v1534_v49 }
 0x380   : > { %13967 = vst [vmem:[#allocation5_spill] sm:$0xff] %v9676_v12  ;;  %13968 = vst [vmem:[#allocation6_spill] sm:$0xff] %v9679_v16  ;;  %v9688_v27 = vadd.f32 %v9633_v57, %v1535_v60  ;;  %v9691_v1 = vadd.f32 %v9633_v57, %v1536_v21  ;;  %v9694_v30 = vadd.f32 %v9633_v57, %v1537_v38  ;;  %v1578_v59 = vmul.f32 0.5, %v1546_v4 }
 0x381   : > { %13969 = vst [vmem:[#allocation7_spill] sm:$0xff] %v9682_v55  ;;  %13970 = vst [vmem:[#allocation8_spill] sm:$0xff] %v9685_v35  ;;  %v9697_v14 = vadd.f32 %v9633_v57, %v1538_v17  ;;  %v1738_v56 = vmul.f32 0.7978846, %v1706_v10  ;;  %v1739_v51 = vmul.f32 0.7978846, %v1707_v8  ;;  %v9700_v32 = vadd.f32 %v9633_v57, %v1539_v9 }
 0x382   : > { %13971 = vst [vmem:[#allocation9_spill] sm:$0xff] %v9688_v27  ;;  %13972 = vst [vmem:[#allocation10_spill] sm:$0xff] %v9691_v1  ;;  %v9703_v37 = vadd.f32 %v9633_v57, %v1540_v3  ;;  %v9706_v44 = vadd.f32 %v9633_v57, %v1513_v47  ;;  %v1612_v26 = vmul.f32 %v1548_v25, %v1548_v25  ;;  %v1579_v19 = vmul.f32 0.5, %v1547_v5 }
 0x383   : > { %13973 = vst [vmem:[#allocation11_spill] sm:$0xff] %v9694_v30  ;;  %13974 = vst [vmem:[#allocation12_spill] sm:$0xff] %v9697_v14  ;;  %v1613_v2 = vmul.f32 %v1549_v36, %v1549_v36  ;;  %8700 = vtanh.f32 %v1738_v56  ;;  %v9709_v54 = vadd.f32 %v9633_v57, %v1514_v6  ;;  %v9712_v7 = vadd.f32 %v9633_v57, %v1515_v62 }
 0x384   : > { %13975 = vst [vmem:[#allocation13_spill] sm:$0xff] %v9700_v32  ;;  %13976 = vst [vmem:[#allocation14_spill] sm:$0xff] %v9703_v37  ;;  %v9715_v28 = vadd.f32 %v9633_v57, %v1516_v11  ;;  %8702 = vtanh.f32 %v1739_v51  ;;  %v9718_v15 = vadd.f32 %v9633_v57, %v1517_v20  ;;  %v1644_v52 = vmul.f32 %v1612_v26, %v1548_v25 }
 0x385   : > { %v1645_v18 = vmul.f32 %v1613_v2, %v1549_v36  ;;  %v9721_v40 = vadd.f32 %v9633_v57, %v1518_v22  ;;  %v9723_v49 = vmul.f32 0.5, %v1548_v25  ;;  %v9725_v38 = vmul.f32 0.5, %v1549_v36 }
 0x386   : > { %v1676_v60 = vmul.f32 0.044715, %v1644_v52  ;;  %v9728_v17 = vmul.f32 0.5, %v9706_v44  ;;  %v9731_v9 = vmul.f32 0.5, %v9709_v54  ;;  %v9734_v3 = vmul.f32 0.5, %v9712_v7 }
 0x387   : > { %v1677_v21 = vmul.f32 0.044715, %v1645_v18  ;;  %v9737_v57 = vmul.f32 0.5, %v9715_v28  ;;  %v9740_v5 = vmul.f32 0.5, %v9718_v15  ;;  %v9743_v6 = vmul.f32 0.5, %v9721_v40 }
 0x388   : > { %13977 = vst [vmem:[#allocation15_spill] sm:$0xff] %v9728_v17  ;;  %13978 = vst [vmem:[#allocation16_spill] sm:$0xff] %v9731_v9  ;;  %v1708_v4 = vadd.f32 %v1676_v60, %v1548_v25  ;;  %v9746_v62 = vmul.f32 0.5, %v9640_v42  ;;  %v9749_v11 = vmul.f32 0.5, %v9643_v33  ;;  %v9752_v20 = vmul.f32 0.5, %v9646_v63 }
 0x389   : > { %13979 = vst [vmem:[#allocation17_spill] sm:$0xff] %v9734_v3  ;;  %v1709_v47 = vadd.f32 %v1677_v21, %v1549_v36  ;;  %13980 = vst [vmem:[#allocation18_spill] sm:$0xff] %v9737_v57  ;;  %v9755_v23 = vmul.f32 0.5, %v9649_v29  ;;  %v9758_v25 = vmul.f32 0.5, %v9652_v13  ;;  %v9761_v36 = vmul.f32 0.5, %v9655_v24 }
 0x38a   : > { %13981 = vst [vmem:[#allocation19_spill] sm:$0xff] %v9740_v5  ;;  %13982 = vst [vmem:[#allocation20_spill] sm:$0xff] %v9743_v6  ;;  %v1740_v22 = vmul.f32 0.7978846, %v1708_v4  ;;  %v9764_v39 = vmul.f32 0.5, %v9658_v31  ;;  %v9767_v41 = vmul.f32 0.5, %v9661_v43  ;;  %v1615_v46 = vmul.f32 %v9709_v54, %v9709_v54 }
 0x38b   : > { %13983 = vst [vmem:[#allocation21_spill] sm:$0xff] %v9746_v62  ;;  %13984 = vst [vmem:[#allocation22_spill] sm:$0xff] %v9749_v11  ;;  %v1741_v0 = vmul.f32 0.7978846, %v1709_v47  ;;  %v9770_v34 = vmul.f32 0.5, %v9664_v48  ;;  %v9773_v45 = vmul.f32 0.5, %v9667_v50  ;;  %v1616_v58 = vmul.f32 %v9712_v7, %v9712_v7 }
 0x38c   : > { %13985 = vst [vmem:[#allocation23_spill] sm:$0xff] %v9752_v20  ;;  %13986 = vst [vmem:[#allocation24_spill] sm:$0xff] %v9755_v23  ;;  %8704 = vtanh.f32 %v1740_v22  ;;  %v9776_v10 = vmul.f32 0.5, %v9670_v53  ;;  %v9779_v8 = vmul.f32 0.5, %v9673_v61  ;;  %v9782_v56 = vmul.f32 0.5, %v9676_v12 }
 0x38d   : > { %13987 = vst [vmem:[#allocation25_spill] sm:$0xff] %v9758_v25  ;;  %13988 = vst [vmem:[#allocation26_spill] sm:$0xff] %v9761_v36  ;;  %8706 = vtanh.f32 %v1741_v0  ;;  %v9785_v51 = vmul.f32 0.5, %v9679_v16  ;;  %v9788_v26 = vmul.f32 0.5, %v9682_v55  ;;  %v9791_v2 = vmul.f32 0.5, %v9685_v35 }
 0x38e   : > { %13989 = vst [vmem:[#allocation27_spill] sm:$0xff] %v9764_v39  ;;  %13990 = vst [vmem:[#allocation28_spill] sm:$0xff] %v9767_v41  ;;  %v9794_v52 = vmul.f32 0.5, %v9688_v27  ;;  %v9797_v18 = vmul.f32 0.5, %v9691_v1  ;;  %v9800_v60 = vmul.f32 0.5, %v9694_v30  ;;  %v9803_v21 = vmul.f32 0.5, %v9697_v14 }
 0x38f   : > { %13991 = vst [vmem:[#allocation29_spill] sm:$0xff] %v9770_v34  ;;  %13992 = vst [vmem:[#allocation30_spill] sm:$0xff] %v9773_v45  ;;  %v9806_v4 = vmul.f32 0.5, %v9700_v32  ;;  %v9809_v47 = vmul.f32 0.5, %v9703_v37  ;;  %v1614_v22 = vmul.f32 %v9706_v44, %v9706_v44  ;;  %v9857_v45 = vmul.f32 %v9661_v43, %v9661_v43 }
 0x390   : > { %13993 = vst [vmem:[#allocation31_spill] sm:$0xff] %v9776_v10  ;;  %13994 = vst [vmem:[#allocation32_spill] sm:$0xff] %v9779_v8  ;;  %v8701_v0 = vpop.eup %8700  ;;  %v9849_v10 = vmul.f32 %v9655_v24, %v9655_v24  ;;  %v9861_v41 = vmul.f32 %v9664_v48, %v9664_v48  ;;  %v9873_v36 = vmul.f32 %v9673_v61, %v9673_v61 }
 0x391   : > { %13995 = vst [vmem:[#allocation33_spill] sm:$0xff] %v9782_v56  ;;  %13996 = vst [vmem:[#allocation34_spill] sm:$0xff] %v9785_v51  ;;  %v9837_v51 = vmul.f32 %v9646_v63, %v9646_v63  ;;  %v9845_v56 = vmul.f32 %v9652_v13, %v9652_v13  ;;  %v1646_v25 = vmul.f32 %v1614_v22, %v9706_v44 }
 0x392   : > { %13997 = vst [vmem:[#allocation35_spill] sm:$0xff] %v9788_v26  ;;  %13998 = vst [vmem:[#allocation36_spill] sm:$0xff] %v9791_v2  ;;  %v9833_v2 = vmul.f32 %v9643_v33, %v9643_v33  ;;  %v9879_v23 = vmul.f32 %v9676_v12, %v9676_v12  ;;  %v9883_v20 = vmul.f32 %v9679_v16, %v9679_v16 }
 0x393   : > { %13999 = vst [vmem:[#allocation37_spill] sm:$0xff] %v9794_v52  ;;  %14000 = vst [vmem:[#allocation38_spill] sm:$0xff] %v9797_v18  ;;  %v9825_v18 = vmul.f32 %v9721_v40, %v9721_v40  ;;  %v9829_v52 = vmul.f32 %v9640_v42, %v9640_v42  ;;  %v9891_v22 = vmul.f32 %v9685_v35, %v9685_v35 }
 0x394   : > { %14001 = vst [vmem:[#allocation39_spill] sm:$0xff] %v9800_v60  ;;  %14002 = vst [vmem:[#allocation40_spill] sm:$0xff] %v9803_v21  ;;  %v1617_v21 = vmul.f32 %v9715_v28, %v9715_v28  ;;  %v8703_v60 = vpop.eup %8702  ;;  %v9895_v6 = vmul.f32 %v9688_v27, %v9688_v27  ;;  %v9899_v5 = vmul.f32 %v9691_v1, %v9691_v1 }
 0x395   : > { %14003 = vst [vmem:[#allocation41_spill] sm:$0xff] %v9806_v4  ;;  %14004 = vst [vmem:[#allocation42_spill] sm:$0xff] %v9809_v47  ;;  %v9821_v4 = vmul.f32 %v9718_v15, %v9718_v15  ;;  %v1802_v47 = vadd.f32 1.0, %v8701_v0  ;;  %v1803_v26 = vadd.f32 1.0, %v8703_v60  ;;  %v9841_v0 = vmul.f32 %v9649_v29, %v9649_v29 }
 0x396   : > { %v9853_v60 = vmul.f32 %v9658_v31, %v9658_v31  ;;  %14006 = vst [vmem:[#allocation44_spill] sm:$0xff] %v9891_v22  ;;  %14007 = vst [vmem:[#allocation45_spill] sm:$0xff] %v9895_v6  ;;  %v9903_v57 = vmul.f32 %v9694_v30, %v9694_v30  ;;  %v9907_v17 = vmul.f32 %v9697_v14, %v9697_v14 }
 0x397   : > { %v1834_v8 = vmul.f32 %v1802_v47, %v1578_v59  ;;  %v1835_v34 = vmul.f32 %v1803_v26, %v1579_v19  ;;  %v9865_v59 = vmul.f32 %v9667_v50, %v9667_v50  ;;  %v9869_v47 = vmul.f32 %v9670_v53, %v9670_v53  ;;  %14008 = vst [vmem:[#allocation46_spill] sm:$0xff] %v9899_v5  ;;  %v2296_v5 = vld [vmem:[#allocation2 + $0x14] sm:$0x1] }
 0x398   : > { %v1647_v19 = vmul.f32 %v1615_v46, %v9709_v54  ;;  %v1678_v46 = vmul.f32 0.044715, %v1646_v25  ;;  %14009 = vst [vmem:[#allocation47_spill] sm:$0xff] %v9903_v57  ;;  %14010 = vst [vmem:[#allocation48_spill] sm:$0xff] %v9907_v17  ;;  %v9929_v17 = vmul.f32 %v9703_v37, %v9703_v37  ;;  %v1648_v22 = vmul.f32 %v1616_v58, %v9712_v7 }
 0x399   : > { %v7907_v39 = vpack.c.bf16 %v1834_v8, %v1834_v8  ;;  %v7908_v26 = vpack.c.bf16 %v1835_v34, %v1835_v34  ;;  %v9887_v8 = vmul.f32 %v9682_v55, %v9682_v55  ;;  %v8705_v3 = vpop.eup %8704  ;;  %v9935_v35 = vmul.f32 %v1617_v21, %v9715_v28 }
 0x39a   : > { %v1679_v34 = vmul.f32 0.044715, %v1647_v19  ;;  %v1710_v25 = vadd.f32 %v1678_v46, %v9706_v44  ;;  %v8707_v27 = vpop.eup %8706  ;;  %v1804_v6 = vadd.f32 1.0, %v8705_v3  ;;  %v1650_v58 = vmul.f32 %v9821_v4, %v9718_v15 }
 0x39b   : > { %14005 = vst [vmem:[#allocation43_spill] sm:$0xff] %v9887_v8  ;;  %v1966_v11 = vshrl.u32 %v7907_v39, 16  ;;  %v1974_v62 = vshrl.u32 %v7908_v26, 16  ;;  %v1977_v57 = vshll.u32 %v7908_v26, 16  ;;  %v1655_v4 = vmul.f32 %v9841_v0, %v9649_v29 }
 0x39c   : > { %v1711_v19 = vadd.f32 %v1679_v34, %v9709_v54  ;;  %v2416_v54 = vld [vmem:[#allocation2 + $0xd4] sm:$0x1]  ;;  %v1805_v34 = vadd.f32 1.0, %v8707_v27  ;;  %v1836_v14 = vmul.f32 %v1804_v6, %v9723_v49  ;;  %v1969_v49 = vshll.u32 %v7907_v39, 16 }
 0x39d   : > { %v1968_v9 = vrot.slane %v1966_v11, 7  ;;  %v1976_v30 = vrot.slane %v1974_v62, 7  ;;  %v9919_v11 = vmul.f32 %v9700_v32, %v9700_v32  ;;  %v1742_v62 = vmul.f32 0.7978846, %v1710_v25 }
 0x39e   : > { %v1743_v32 = vmul.f32 0.7978846, %v1711_v19  ;;  %v7909_v8 = vpack.c.bf16 %v1836_v14, %v1836_v14  ;;  %v1651_v14 = vmul.f32 %v9825_v18, %v9721_v40  ;;  %v1653_v6 = vmul.f32 %v9833_v2, %v9643_v33  ;;  %v2289_v18 = vld [vmem:[#allocation2 + $0xc] sm:$0xf] }
 0x39f   : > { %14013 = vst [vmem:[#allocation49_spill] sm:$0xff] %v9919_v11  ;;  %v1972_v46 = vrot.slane %v1968_v9, 4  ;;  %v1979_v26 = vor.u32 %v1977_v57, %v1976_v30  ;;  %v1981_v3 = vrot.slane %v1976_v30, 4  ;;  %v1837_v11 = vmul.f32 %v1805_v34, %v9725_v38  ;;  %v2412_v2 = vld [vmem:[#allocation2 + $0xcc] sm:$0xf] }
 0x3a0   : > { %8708 = vtanh.f32 %v1742_v62  ;;  %v1983_v57 = vshrl.u32 %v7909_v8, 16  ;;  %v1971_v21 = vor.u32 %v1969_v49, %v1968_v9  ;;  %v14016_v19 = vmov 0  ;;  %v2299_v62 = vld [vmem:[#allocation2 + $0x18] sm:$0xf] }
 0x3a1   : > { %v1980_v27 = vsel %vm9913_vm8, %v1972_v46, %v1979_v26  ;;  %v2297_v25 = vsel %vm9923_vm9, %v1981_v3, %v2296_v5  ;;  %v2417_v30 = vsel %vm9923_vm9, %v1981_v3, %v2416_v54  ;;  %v7910_v38 = vpack.c.bf16 %v1837_v11, %v1837_v11  ;;  %v2303_v26 = vld [vmem:[#allocation2 + $0x20] sm:$0x1] }
 0x3a2   : > { %2293 = vst.msk [vmem:[#allocation2 + $0x10] sm:$0xf] %vm2286_vm6, %v1980_v27  ;;  %2415 = vst.msk [vmem:[#allocation2 + $0xd0] sm:$0xf] %vm2286_vm6, %v1980_v27  ;;  %8710 = vtanh.f32 %v1743_v32  ;;  %v1652_v5 = vmul.f32 %v9829_v52, %v9640_v42  ;;  %v1654_v32 = vmul.f32 %v9837_v51, %v9646_v63  ;;  %v14017_v19 = vsel %vm9959_vm10, 4294967295, %v14016_v19 }
 0x3a3   : > { %2298 = vst [vmem:[#allocation2 + $0x14] sm:$0x1] %v2297_v25  ;;  %2418 = vst [vmem:[#allocation2 + $0xd4] sm:$0x1] %v2417_v30  ;;  %v1991_v39 = vshrl.u32 %v7910_v38, 16  ;;  %v1985_v11 = vrot.slane %v1983_v57, 7  ;;  %v1656_v52 = vmul.f32 %v9845_v56, %v9652_v13  ;;  %v1657_v9 = vmul.f32 %v9849_v10, %v9655_v24 }
 0x3a4   : > { %14018 = vst [vmem:[#allocation50_spill] sm:$0xff] %v14017_v19  ;;  %v1658_v51 = vmul.f32 %v9853_v60, %v9658_v31  ;;  %v1994_v0 = vshll.u32 %v7910_v38, 16  ;;  %v1986_v46 = vshll.u32 %v7909_v8, 16  ;;  %v1659_v34 = vmul.f32 %v9857_v45, %v9661_v43  ;;  %v14019_v57 = vld [vmem:[#allocation43_spill] sm:$0xff] }
 0x3a5   : > { %v1993_v54 = vrot.slane %v1991_v39, 7  ;;  %v1989_v3 = vrot.slane %v1985_v11, 4  ;;  %v1660_v27 = vmul.f32 %v9861_v41, %v9664_v48  ;;  %v1661_v56 = vmul.f32 %v9865_v59, %v9667_v50 }
 0x3a6   : > { %v1662_v10 = vmul.f32 %v9869_v47, %v9670_v53  ;;  %v1988_v30 = vor.u32 %v1986_v46, %v1985_v11  ;;  %v2290_v8 = vsel %vm9959_vm10, %v1971_v21, %v2289_v18  ;;  %v1663_v45 = vmul.f32 %v9873_v36, %v9673_v61  ;;  %v14022_v11 = vld [vmem:[#allocation9_spill] sm:$0xff]  ;;  %v14025_v46 = vld [vmem:[#allocation46_spill] sm:$0xff] }
 0x3a7   : > { %v1996_v60 = vor.u32 %v1994_v0, %v1993_v54  ;;  %v1998_v25 = vrot.slane %v1993_v54, 4  ;;  %v1664_v38 = vmul.f32 %v9879_v23, %v9676_v12  ;;  %v1665_v41 = vmul.f32 %v9883_v20, %v9679_v16  ;;  %2291 = vst [vmem:[#allocation2 + $0xc] sm:$0xf] %v2290_v8  ;;  %v14020_v20 = vld [vmem:[#allocation8_spill] sm:$0xff]  ;;  %v14024_v0 = vld [vmem:[#allocation10_spill] sm:$0xff]  ;;  %v14026_v8 = vld [vmem:[#allocation11_spill] sm:$0xff] }
 0x3a8   : > { %v2413_v59 = vsel %vm9959_vm10, %v1971_v21, %v2412_v2  ;;  %v1666_v39 = vmul.f32 %v14019_v57, %v9682_v55  ;;  %v2300_v23 = vsel %vm9959_vm10, %v1988_v30, %v2299_v62  ;;  %v14021_v21 = vld [vmem:[#allocation44_spill] sm:$0xff]  ;;  %v14023_v2 = vld [vmem:[#allocation45_spill] sm:$0xff]  ;;  %v1685_v16 = vmul.f32 0.044715, %v1653_v6 }
 0x3a9   : > { %v3468_v49 = vld [vmem:[#allocation2 + $0x10] sm:$0xf]  ;;  %v1997_v47 = vsel %vm9913_vm8, %v1989_v3, %v1996_v60  ;;  %v2304_v36 = vsel %vm9923_vm9, %v1998_v25, %v2303_v26  ;;  %2414 = vst [vmem:[#allocation2 + $0xcc] sm:$0xf] %v2413_v59  ;;  %v1667_v18 = vmul.f32 %v14021_v21, %v14020_v20  ;;  %v1668_v54 = vmul.f32 %v14023_v2, %v14022_v11  ;;  %v14029_v62 = vld [vmem:[#allocation48_spill] sm:$0xff]  ;;  %v14030_v21 = vld [vmem:[#allocation13_spill] sm:$0xff] }
 0x3aa   : > { %3533 = vrot.lane.b32.xlu1 %v3468_v49, %s8841_s23  ;;  %2302 = vst.msk [vmem:[#allocation2 + $0x1c] sm:$0xf] %vm2286_vm6, %v1997_v47  ;;  %v1669_v3 = vmul.f32 %v14025_v46, %v14024_v0  ;;  %2301 = vst [vmem:[#allocation2 + $0x18] sm:$0xf] %v2300_v23  ;;  %v1680_v60 = vmul.f32 0.044715, %v1648_v22  ;;  %v1673_v22 = vmul.f32 %v9929_v17, %v9703_v37 }
 0x3ab   : > { %2305 = vst [vmem:[#allocation2 + $0x20] sm:$0x1] %v2304_v36  ;;  %v14027_v26 = vld [vmem:[#allocation47_spill] sm:$0xff]  ;;  %v14028_v49 = vld [vmem:[#allocation12_spill] sm:$0xff]  ;;  %v1681_v59 = vmul.f32 0.044715, %v9935_v35 }
 0x3ac   : > { %v1670_v25 = vmul.f32 %v14027_v26, %v14026_v8  ;;  %v1671_v30 = vmul.f32 %v14029_v62, %v14028_v49  ;;  %v1682_v47 = vmul.f32 0.044715, %v1650_v58  ;;  %v14031_v20 = vld [vmem:[#allocation49_spill] sm:$0xff]  ;;  %v1683_v2 = vmul.f32 0.044715, %v1651_v14  ;;  %v14032_v49 = vld [vmem:[#allocation15_spill] sm:$0xff] }
 0x3ad   : > { %v8709_v57 = vpop.eup %8708  ;;  %v1672_v55 = vmul.f32 %v14031_v20, %v14030_v21  ;;  %v1684_v11 = vmul.f32 0.044715, %v1652_v5  ;;  %v1686_v36 = vmul.f32 0.044715, %v1654_v32  ;;  %v1687_v23 = vmul.f32 0.044715, %v1655_v4 }
 0x3ae   : > { %v1806_v46 = vadd.f32 1.0, %v8709_v57  ;;  %v1688_v8 = vmul.f32 0.044715, %v1656_v52  ;;  %v1689_v0 = vmul.f32 0.044715, %v1657_v9  ;;  %v1712_v35 = vadd.f32 %v1680_v60, %v9712_v7  ;;  %v14033_v17 = vld [vmem:[#allocation16_spill] sm:$0xff] }
 0x3af   : > { %v8711_v26 = vpop.eup %8710  ;;  %v1690_v62 = vmul.f32 0.044715, %v1658_v51  ;;  %v1691_v19 = vmul.f32 0.044715, %v1659_v34  ;;  %v1692_v20 = vmul.f32 0.044715, %v1660_v27  ;;  %v1713_v57 = vadd.f32 %v1681_v59, %v9715_v28 }
 0x3b0   : > { %v1807_v58 = vadd.f32 1.0, %v8711_v26  ;;  %v1838_v12 = vmul.f32 %v1806_v46, %v14032_v49  ;;  %v1693_v14 = vmul.f32 0.044715, %v1661_v56  ;;  %v1694_v5 = vmul.f32 0.044715, %v1662_v10 }
 0x3b1   : > { %v1695_v6 = vmul.f32 0.044715, %v1663_v45  ;;  %v3470_v21 = vld [vmem:[#allocation2 + $0x1c] sm:$0xf]  ;;  %v2443_v52 = vld [vmem:[#allocation2 + $0x18] sm:$0x1]  ;;  %v1714_v9 = vadd.f32 %v1682_v47, %v9718_v15  ;;  %v1715_v7 = vadd.f32 %v1683_v2, %v9721_v40  ;;  %v1716_v15 = vadd.f32 %v1684_v11, %v9640_v42 }
 0x3b2   : > { %v1839_v32 = vmul.f32 %v1807_v58, %v14033_v17  ;;  %v7911_v4 = vpack.c.bf16 %v1838_v12, %v1838_v12  ;;  %v2421_v37 = vld [vmem:[#allocation2 + $0x20] sm:$0x1]  ;;  %3537 = vrot.lane.b32.xlu1 %v3470_v21, %s8841_s23  ;;  %v1696_v34 = vmul.f32 0.044715, %v1664_v38  ;;  %v1697_v27 = vmul.f32 0.044715, %v1665_v41 }
 0x3b3   : > { %v2444_v51 = vsel %vm9923_vm9, %v2421_v37, %v2443_v52  ;;  %v1698_v56 = vmul.f32 0.044715, %v1666_v39  ;;  %v1699_v45 = vmul.f32 0.044715, %v1667_v18  ;;  %v1700_v60 = vmul.f32 0.044715, %v1668_v54 }
 0x3b4   : > { %v7912_v10 = vpack.c.bf16 %v1839_v32, %v1839_v32  ;;  %v2000_v28 = vshrl.u32 %v7911_v4, 16  ;;  %2445 = vst [vmem:[#allocation2 + $0x18] sm:$0x1] %v2444_v51  ;;  %v1701_v12 = vmul.f32 0.044715, %v1669_v3  ;;  %v1717_v21 = vadd.f32 %v1685_v16, %v9643_v33  ;;  %v14039_v52 = vld [vmem:[#allocation9_spill] sm:$0xff] }
 0x3b5   : > { %v1744_v49 = vmul.f32 0.7978846, %v1712_v35  ;;  %v1745_v59 = vmul.f32 0.7978846, %v1713_v57  ;;  %v1718_v2 = vadd.f32 %v1686_v36, %v9646_v63  ;;  %v2003_v37 = vshll.u32 %v7911_v4, 16 }
 0x3b6   : > { %v2002_v47 = vrot.slane %v2000_v28, 7  ;;  %v2008_v40 = vshrl.u32 %v7912_v10, 16  ;;  %v1702_v38 = vmul.f32 0.044715, %v1670_v25  ;;  %v1719_v41 = vadd.f32 %v1687_v23, %v9649_v29  ;;  %v2310_v39 = vld [vmem:[#allocation2 + $0x2c] sm:$0x1] }
 0x3b7   : > { %8712 = vtanh.f32 %v1744_v49  ;;  %v2011_v54 = vshll.u32 %v7912_v10, 16  ;;  %v1703_v3 = vmul.f32 0.044715, %v1671_v30  ;;  %v1704_v26 = vmul.f32 0.044715, %v1672_v55  ;;  %v14043_v28 = vld [vmem:[#allocation11_spill] sm:$0xff] }
 0x3b8   : > { %v2006_v46 = vrot.slane %v2002_v47, 4  ;;  %v2010_v18 = vrot.slane %v2008_v40, 7  ;;  %8714 = vtanh.f32 %v1745_v59  ;;  %v10025_v35 = vmul.f32 0.044715, %v1673_v22  ;;  %v2306_v11 = vld [vmem:[#allocation2 + $0x24] sm:$0xf] }
 0x3b9   : > { %v2005_v42 = vor.u32 %v2003_v37, %v2002_v47  ;;  %v1720_v63 = vadd.f32 %v1688_v8, %v9652_v13  ;;  %v1721_v16 = vadd.f32 %v1689_v0, %v9655_v24  ;;  %v2436_v36 = vld [vmem:[#allocation2 + $0xd4] sm:$0x1]  ;;  %v1722_v29 = vadd.f32 %v1690_v62, %v9658_v31  ;;  %v2488_v30 = vld [vmem:[#allocation2 + $0xcc] sm:$0x1]  ;;  %v14035_v8 = vld [vmem:[#allocation5_spill] sm:$0xff] }
 0x3ba   : > { %v2013_v58 = vor.u32 %v2011_v54, %v2010_v18  ;;  %v2015_v33 = vrot.slane %v2010_v18, 4  ;;  %v1723_v23 = vadd.f32 %v1691_v19, %v9661_v43  ;;  %v1724_v57 = vadd.f32 %v1692_v20, %v9664_v48  ;;  %v14036_v20 = vld [vmem:[#allocation6_spill] sm:$0xff]  ;;  %v14044_v49 = vld [vmem:[#allocation12_spill] sm:$0xff]  ;;  %v2561_v54 = vld [vmem:[#allocation2 + $0xd4] sm:$0x1] }
 0x3bb   : > { %v3469_v25 = vld [vmem:[#allocation2 + $0x18] sm:$0xf]  ;;  %v1725_v55 = vadd.f32 %v1693_v14, %v9667_v50  ;;  %v1726_v24 = vadd.f32 %v1694_v5, %v9670_v53  ;;  %v1727_v0 = vadd.f32 %v1695_v6, %v9673_v61  ;;  %v2307_v43 = vsel %vm9959_vm10, %v2005_v42, %v2306_v11  ;;  %v14037_v5 = vld [vmem:[#allocation7_spill] sm:$0xff] }
 0x3bc   : > { %v2014_v22 = vsel %vm9913_vm8, %v2006_v46, %v2013_v58  ;;  %3535 = vrot.lane.b32.xlu0 %v3469_v25, %s8841_s23  ;;  %v2311_v13 = vsel %vm9923_vm9, %v2015_v33, %v2310_v39  ;;  %v1746_v48 = vmul.f32 0.7978846, %v1714_v9  ;;  %v1747_v50 = vmul.f32 0.7978846, %v1715_v7  ;;  %2308 = vst [vmem:[#allocation2 + $0x24] sm:$0xf] %v2307_v43 }
 0x3bd   : > { %2309 = vst.msk [vmem:[#allocation2 + $0x28] sm:$0xf] %vm2286_vm6, %v2014_v22  ;;  %2312 = vst [vmem:[#allocation2 + $0x2c] sm:$0x1] %v2311_v13  ;;  %v1748_v19 = vmul.f32 0.7978846, %v1716_v15  ;;  %v1728_v62 = vadd.f32 %v1696_v34, %v14035_v8  ;;  %v1729_v14 = vadd.f32 %v1697_v27, %v14036_v20  ;;  %v2489_v53 = vsel %vm9923_vm9, %v2436_v36, %v2488_v30 }
 0x3be   : > { %v1749_v17 = vmul.f32 0.7978846, %v1717_v21  ;;  %v1730_v61 = vadd.f32 %v1698_v56, %v14037_v5  ;;  %v14038_v6 = vld [vmem:[#allocation8_spill] sm:$0xff]  ;;  %v1750_v4 = vmul.f32 0.7978846, %v1718_v2  ;;  %8716 = vtanh.f32 %v1746_v48  ;;  %v14040_v7 = vld [vmem:[#allocation10_spill] sm:$0xff] }
 0x3bf   : > { %v1731_v32 = vadd.f32 %v1699_v45, %v14038_v6  ;;  %2490 = vst [vmem:[#allocation2 + $0xcc] sm:$0x1] %v2489_v53  ;;  %v1732_v9 = vadd.f32 %v1700_v60, %v14039_v52  ;;  %v1733_v51 = vadd.f32 %v1701_v12, %v14040_v7  ;;  %v1751_v10 = vmul.f32 0.7978846, %v1719_v41  ;;  %v2420_v34 = vld [vmem:[#allocation2 + $0x14] sm:$0x1] }
 0x3c0   : > { %8718 = vtanh.f32 %v1747_v50  ;;  %v1734_v56 = vadd.f32 %v1702_v38, %v14043_v28  ;;  %v1735_v45 = vadd.f32 %v1703_v3, %v14044_v49  ;;  %v1752_v59 = vmul.f32 0.7978846, %v1720_v63  ;;  %v2440_v15 = vld [vmem:[#allocation2 + $0xc] sm:$0x1]  ;;  %v2493_v47 = vld [vmem:[#allocation2 + $0x18] sm:$0x1] }
 0x3c1   : > { %8720 = vtanh.f32 %v1748_v19  ;;  %v14045_v60 = vld [vmem:[#allocation13_spill] sm:$0xff]  ;;  %v1753_v12 = vmul.f32 0.7978846, %v1721_v16  ;;  %v1754_v21 = vmul.f32 0.7978846, %v1722_v29  ;;  %v2441_v3 = vsel %vm9923_vm9, %v2420_v34, %v2440_v15  ;;  %v14046_v33 = vld [vmem:[#allocation14_spill] sm:$0xff] }
 0x3c2   : > { %v1736_v40 = vadd.f32 %v1704_v26, %v14045_v60  ;;  %8722 = vtanh.f32 %v1749_v17  ;;  %v2516_v2 = vld [vmem:[#allocation2 + $0x20] sm:$0x1]  ;;  %v1755_v37 = vmul.f32 0.7978846, %v1723_v23  ;;  %v1756_v41 = vmul.f32 0.7978846, %v1724_v57 }
 0x3c3   : > { %v1757_v39 = vmul.f32 0.7978846, %v1725_v55  ;;  %8724 = vtanh.f32 %v1750_v4  ;;  %v1758_v42 = vmul.f32 0.7978846, %v1726_v24  ;;  %v2517_v26 = vsel %vm10053_vm11, %v2493_v47, %v2516_v2  ;;  %v2446_v16 = vld [vmem:[#allocation2 + $0x24] sm:$0x1] }
 0x3c4   : > { %v8713_v46 = vpop.eup %8712  ;;  %v3472_v18 = vld [vmem:[#allocation2 + $0x28] sm:$0xf]  ;;  %v2422_v38 = vld [vmem:[#allocation2 + $0x2c] sm:$0x1]  ;;  %8726 = vtanh.f32 %v1751_v10  ;;  %v1737_v63 = vadd.f32 %v10025_v35, %v14046_v33  ;;  %v1759_v25 = vmul.f32 0.7978846, %v1727_v0 }
 0x3c5   : > { %v8715_v11 = vpop.eup %8714  ;;  %3541 = vrot.lane.b32.xlu1 %v3472_v18, %s8841_s23  ;;  %v1808_v58 = vadd.f32 1.0, %v8713_v46  ;;  %8728 = vtanh.f32 %v1752_v59  ;;  %2442 = vst [vmem:[#allocation2 + $0xc] sm:$0x1] %v2441_v3  ;;  %2518 = vst [vmem:[#allocation2 + $0x20] sm:$0x1] %v2517_v26  ;;  %v2447_v29 = vsel %vm9923_vm9, %v2422_v38, %v2446_v16  ;;  %v14047_v55 = vld [vmem:[#allocation17_spill] sm:$0xff] }
 0x3c6   : > { %v1809_v36 = vadd.f32 1.0, %v8715_v11  ;;  %v1760_v23 = vmul.f32 0.7978846, %v1728_v62  ;;  %8730 = vtanh.f32 %v1753_v12  ;;  %v2508_v57 = vld [vmem:[#allocation2 + $0xcc] sm:$0x1]  ;;  %v14050_v46 = vld [vmem:[#allocation20_spill] sm:$0xff] }
 0x3c7   : > { %v1840_v30 = vmul.f32 %v1808_v58, %v14047_v55  ;;  %2448 = vst [vmem:[#allocation2 + $0x24] sm:$0x1] %v2447_v29  ;;  %v1761_v22 = vmul.f32 0.7978846, %v1729_v14  ;;  %8732 = vtanh.f32 %v1754_v21  ;;  %v2562_v35 = vsel %vm10053_vm11, %v2508_v57, %v2561_v54  ;;  %v14048_v13 = vld [vmem:[#allocation18_spill] sm:$0xff]  ;;  %v14049_v21 = vld [vmem:[#allocation19_spill] sm:$0xff] }
 0x3c8   : > { %v1841_v24 = vmul.f32 %v1809_v36, %v14048_v13  ;;  %v1762_v0 = vmul.f32 0.7978846, %v1730_v61  ;;  %v1763_v43 = vmul.f32 0.7978846, %v1731_v32  ;;  %8734 = vtanh.f32 %v1755_v37  ;;  %2563 = vst [vmem:[#allocation2 + $0xd4] sm:$0x1] %v2562_v35 }
 0x3c9   : > { %v7913_v48 = vpack.c.bf16 %v1840_v30, %v1840_v30  ;;  %v1764_v50 = vmul.f32 0.7978846, %v1732_v9  ;;  %v1765_v19 = vmul.f32 0.7978846, %v1733_v51  ;;  %8736 = vtanh.f32 %v1756_v41  ;;  %v2513_v17 = vld [vmem:[#allocation2 + $0x14] sm:$0x1] }
 0x3ca   : > { %v7914_v8 = vpack.c.bf16 %v1841_v24, %v1841_v24  ;;  %v1766_v62 = vmul.f32 0.7978846, %v1734_v56  ;;  %v1767_v20 = vmul.f32 0.7978846, %v1735_v45  ;;  %8738 = vtanh.f32 %v1757_v39  ;;  %v2313_v9 = vld [vmem:[#allocation2 + $0x30] sm:$0xf] }
 0x3cb   : > { %v2017_v14 = vshrl.u32 %v7913_v48, 16  ;;  %v1768_v53 = vmul.f32 0.7978846, %v1736_v40  ;;  %v10073_v5 = vmul.f32 0.7978846, %v1737_v63  ;;  %8740 = vtanh.f32 %v1758_v42  ;;  %v8717_v6 = vpop.eup %8716 }
 0x3cc   : > { %v2025_v4 = vshrl.u32 %v7914_v8, 16  ;;  %v2028_v61 = vshll.u32 %v7914_v8, 16  ;;  %v2020_v32 = vshll.u32 %v7913_v48, 16  ;;  %8742 = vtanh.f32 %v1759_v25  ;;  %v2492_v52 = vld [vmem:[#allocation2 + $0xc] sm:$0x1] }
 0x3cd   : > { %v8719_v7 = vpop.eup %8718  ;;  %v2019_v51 = vrot.slane %v2017_v14, 7  ;;  %v1810_v10 = vadd.f32 1.0, %v8717_v6  ;;  %8744 = vtanh.f32 %v1760_v23  ;;  %v2514_v34 = vsel %vm10053_vm11, %v2492_v52, %v2513_v17  ;;  %v10077_v28 = vld [vmem:[#allocation2 + $0xc] sm:$0xf]  ;;  %v2317_v60 = vld [vmem:[#allocation2 + $0x38] sm:$0x1] }
 0x3ce   : > { %v8721_v56 = vpop.eup %8720  ;;  %v2027_v49 = vrot.slane %v2025_v4, 7  ;;  %v3471_v45 = vld [vmem:[#allocation2 + $0x24] sm:$0xf]  ;;  %v1811_v59 = vadd.f32 1.0, %v8719_v7  ;;  %8746 = vtanh.f32 %v1761_v22  ;;  %2515 = vst [vmem:[#allocation2 + $0x14] sm:$0x1] %v2514_v34 }
 0x3cf   : > { %v8723_v47 = vpop.eup %8722  ;;  %v2023_v40 = vrot.slane %v2019_v51, 4  ;;  %3539 = vrot.lane.b32.xlu0 %v3471_v45, %s8841_s23  ;;  %v2022_v12 = vor.u32 %v2020_v32, %v2019_v51  ;;  %v1842_v2 = vmul.f32 %v1810_v10, %v14049_v21  ;;  %8748 = vtanh.f32 %v1762_v0  ;;  %v14052_v51 = vld [vmem:[#allocation22_spill] sm:$0xff]  ;;  %v14053_v10 = vld [vmem:[#allocation23_spill] sm:$0xff]  ;;  %v2634_v31 = vld [vmem:[#allocation2 + $0x18] sm:$0xf] }
 0x3d0   : > { %v8725_v37 = vpop.eup %8724  ;;  %v2030_v41 = vor.u32 %v2028_v61, %v2027_v49  ;;  %v2032_v39 = vrot.slane %v2027_v49, 4  ;;  %v1843_v18 = vmul.f32 %v1811_v59, %v14050_v46  ;;  %8750 = vtanh.f32 %v1763_v43  ;;  %v14055_v46 = vld [vmem:[#allocation25_spill] sm:$0xff] }
 0x3d1   : > { %v8727_v54 = vpop.eup %8726  ;;  %v7915_v38 = vpack.c.bf16 %v1842_v2, %v1842_v2  ;;  %8752 = vtanh.f32 %v1764_v50  ;;  %v2314_v42 = vsel %vm9959_vm10, %v2022_v12, %v2313_v9  ;;  %v1812_v3 = vadd.f32 1.0, %v8721_v56  ;;  %v14054_v56 = vld [vmem:[#allocation24_spill] sm:$0xff] }
 0x3d2   : > { %v8729_v26 = vpop.eup %8728  ;;  %v2031_v11 = vsel %vm9913_vm8, %v2023_v40, %v2030_v41  ;;  %v2318_v58 = vsel %vm9923_vm9, %v2032_v39, %v2317_v60  ;;  %v7916_v33 = vpack.c.bf16 %v1843_v18, %v1843_v18  ;;  %8754 = vtanh.f32 %v1765_v19  ;;  %2315 = vst [vmem:[#allocation2 + $0x30] sm:$0xf] %v2314_v42  ;;  %v2324_v19 = vld [vmem:[#allocation2 + $0x44] sm:$0x1] }
 0x3d3   : > { %v8731_v63 = vpop.eup %8730  ;;  %2316 = vst.msk [vmem:[#allocation2 + $0x34] sm:$0xf] %vm2286_vm6, %v2031_v11  ;;  %v2034_v16 = vshrl.u32 %v7915_v38, 16  ;;  %8756 = vtanh.f32 %v1766_v62  ;;  %v2037_v25 = vshll.u32 %v7915_v38, 16  ;;  %2319 = vst [vmem:[#allocation2 + $0x38] sm:$0x1] %v2318_v58 }
 0x3d4   : > { %v1813_v36 = vadd.f32 1.0, %v8723_v47  ;;  %v8733_v29 = vpop.eup %8732  ;;  %v2042_v23 = vshrl.u32 %v7916_v33, 16  ;;  %v2045_v57 = vshll.u32 %v7916_v33, 16  ;;  %8758 = vtanh.f32 %v1767_v20  ;;  %v14057_v11 = vld [vmem:[#allocation27_spill] sm:$0xff] }
 0x3d5   : > { %v1814_v55 = vadd.f32 1.0, %v8725_v37  ;;  %v8735_v30 = vpop.eup %8734  ;;  %v2036_v22 = vrot.slane %v2034_v16, 7  ;;  %8760 = vtanh.f32 %v1768_v53  ;;  %v1815_v35 = vadd.f32 1.0, %v8727_v54  ;;  %v14051_v53 = vld [vmem:[#allocation21_spill] sm:$0xff] }
 0x3d6   : > { %v1816_v13 = vadd.f32 1.0, %v8729_v26  ;;  %v8737_v24 = vpop.eup %8736  ;;  %v2044_v0 = vrot.slane %v2042_v23, 7  ;;  %8762 = vtanh.f32 %v10073_v5  ;;  %v1817_v43 = vadd.f32 1.0, %v8731_v63 }
 0x3d7   : > { %v1818_v48 = vadd.f32 1.0, %v8733_v29  ;;  %v8739_v50 = vpop.eup %8738  ;;  %v2040_v8 = vrot.slane %v2036_v22, 4  ;;  %v1819_v62 = vadd.f32 1.0, %v8735_v30  ;;  %v1820_v17 = vadd.f32 1.0, %v8737_v24  ;;  %v14059_v30 = vld [vmem:[#allocation29_spill] sm:$0xff] }
 0x3d8   : > { %v10091_v14 = vor.u32 %v2037_v25, %v2036_v22  ;;  %v8741_v20 = vpop.eup %8740  ;;  %v2047_v6 = vor.u32 %v2045_v57, %v2044_v0  ;;  %v2049_v4 = vrot.slane %v2044_v0, 4  ;;  %v1821_v61 = vadd.f32 1.0, %v8739_v50 }
 0x3d9   : > { %v1844_v32 = vmul.f32 %v1812_v3, %v14051_v53  ;;  %v8743_v52 = vpop.eup %8742  ;;  %v2449_v7 = vld [vmem:[#allocation2 + $0x30] sm:$0x1]  ;;  %v1822_v9 = vadd.f32 1.0, %v8741_v20  ;;  %v1845_v5 = vmul.f32 %v1813_v36, %v14052_v51  ;;  %v10096_v34 = vmul.f32 %v1814_v55, %v14053_v10  ;;  %v14056_v3 = vld [vmem:[#allocation26_spill] sm:$0xff]  ;;  %v14058_v36 = vld [vmem:[#allocation28_spill] sm:$0xff] }
 0x3da   : > { %v10099_v49 = vmul.f32 %v1815_v35, %v14054_v56  ;;  %v8745_v45 = vpop.eup %8744  ;;  %v3474_v59 = vld [vmem:[#allocation2 + $0x34] sm:$0xf]  ;;  %v2048_v47 = vsel %vm9913_vm8, %v2040_v8, %v2047_v6  ;;  %v2423_v60 = vld [vmem:[#allocation2 + $0x38] sm:$0x1]  ;;  %v1823_v40 = vadd.f32 1.0, %v8743_v52  ;;  %v2325_v12 = vsel %vm9923_vm9, %v2049_v4, %v2324_v19  ;;  %v14060_v35 = vld [vmem:[#allocation30_spill] sm:$0xff] }
 0x3db   : > { %v10105_v21 = vpack.c.bf16 %v1844_v32, %v1844_v32  ;;  %v8747_v2 = vpop.eup %8746  ;;  %3545 = vrot.lane.b32.xlu1 %v3474_v59, %s8841_s23  ;;  %2323 = vst.msk [vmem:[#allocation2 + $0x40] sm:$0xf] %vm2286_vm6, %v2048_v47  ;;  %v2450_v37 = vsel %vm9923_vm9, %v2423_v60, %v2449_v7  ;;  %v1824_v41 = vadd.f32 1.0, %v8745_v45  ;;  %v7918_v39 = vpack.c.bf16 %v1845_v5, %v1845_v5  ;;  %v14061_v19 = vld [vmem:[#allocation31_spill] sm:$0xff]  ;;  %v14062_v8 = vld [vmem:[#allocation32_spill] sm:$0xff]  ;;  %v14063_v53 = vld [vmem:[#allocation33_spill] sm:$0xff] }
 0x3dc   : > { %v1848_v18 = vmul.f32 %v1816_v13, %v14055_v46  ;;  %2326 = vst [vmem:[#allocation2 + $0x44] sm:$0x1] %v2325_v12  ;;  %v8749_v54 = vpop.eup %8748  ;;  %2451 = vst [vmem:[#allocation2 + $0x30] sm:$0x1] %v2450_v37  ;;  %v1825_v38 = vadd.f32 1.0, %v8747_v2  ;;  %v1849_v26 = vmul.f32 %v1817_v43, %v14056_v3  ;;  %v1850_v58 = vmul.f32 %v1818_v48, %v14057_v11  ;;  %v14065_v10 = vld [vmem:[#allocation35_spill] sm:$0xff] }
 0x3dd   : > { %v2051_v42 = vshrl.u32 %v10105_v21, 16  ;;  %v8751_v33 = vpop.eup %8750  ;;  %v1826_v63 = vadd.f32 1.0, %v8749_v54  ;;  %v2059_v16 = vshrl.u32 %v7918_v39, 16  ;;  %v2062_v25 = vshll.u32 %v7918_v39, 16  ;;  %v2320_v51 = vld [vmem:[#allocation2 + $0x3c] sm:$0xf] }
 0x3de   : > { %v1851_v29 = vmul.f32 %v1819_v62, %v14058_v36  ;;  %v8753_v23 = vpop.eup %8752  ;;  %v1827_v57 = vadd.f32 1.0, %v8751_v33  ;;  %v1852_v22 = vmul.f32 %v1820_v17, %v14059_v30  ;;  %v1853_v13 = vmul.f32 %v1821_v61, %v14060_v35  ;;  %v14064_v62 = vld [vmem:[#allocation34_spill] sm:$0xff]  ;;  %v14066_v56 = vld [vmem:[#allocation36_spill] sm:$0xff]  ;;  %v14067_v60 = vld [vmem:[#allocation37_spill] sm:$0xff] }
 0x3df   : > { %v2053_v55 = vrot.slane %v2051_v42, 7  ;;  %v8755_v24 = vpop.eup %8754  ;;  %v1828_v0 = vadd.f32 1.0, %v8753_v23  ;;  %v2061_v50 = vrot.slane %v2059_v16, 7  ;;  %v1854_v43 = vmul.f32 %v1822_v9, %v14061_v19  ;;  %v14068_v12 = vld [vmem:[#allocation38_spill] sm:$0xff]  ;;  %v14070_v33 = vld [vmem:[#allocation40_spill] sm:$0xff] }
 0x3e0   : > { %v1855_v48 = vmul.f32 %v1823_v40, %v14062_v8  ;;  %v8757_v20 = vpop.eup %8756  ;;  %v1829_v6 = vadd.f32 1.0, %v8755_v24  ;;  %v1856_v32 = vmul.f32 %v1824_v41, %v14063_v53  ;;  %v1857_v52 = vmul.f32 %v1825_v38, %v14064_v62  ;;  %v14069_v38 = vld [vmem:[#allocation39_spill] sm:$0xff]  ;;  %v14072_v35 = vld [vmem:[#allocation42_spill] sm:$0xff] }
 0x3e1   : > { %v2057_v4 = vrot.slane %v2053_v55, 4  ;;  %v8759_v7 = vpop.eup %8758  ;;  %v1830_v5 = vadd.f32 1.0, %v8757_v20  ;;  %v2064_v17 = vor.u32 %v2062_v25, %v2061_v50  ;;  %v1858_v61 = vmul.f32 %v1826_v63, %v14065_v10  ;;  %v14071_v25 = vld [vmem:[#allocation41_spill] sm:$0xff] }
 0x3e2   : > { %v1859_v45 = vmul.f32 %v1827_v57, %v14066_v56  ;;  %v8761_v59 = vpop.eup %8760  ;;  %v3476_v47 = vld [vmem:[#allocation2 + $0x40] sm:$0xf]  ;;  %v1831_v9 = vadd.f32 1.0, %v8759_v7  ;;  %v1860_v40 = vmul.f32 %v1828_v0, %v14067_v60  ;;  %v1861_v2 = vmul.f32 %v1829_v6, %v14068_v12 }
 0x3e3   : > { %v2054_v37 = vshll.u32 %v10105_v21, 16  ;;  %v8763_v41 = vpop.eup %8762  ;;  %3549 = vrot.lane.b32.xlu1 %v3476_v47, %s8841_s23  ;;  %v3473_v39 = vld [vmem:[#allocation2 + $0x30] sm:$0xf]  ;;  %v1832_v46 = vadd.f32 1.0, %v8761_v59  ;;  %v2065_v54 = vsel %vm9913_vm8, %v2057_v4, %v2064_v17  ;;  %v1862_v42 = vmul.f32 %v1830_v5, %v14069_v38 }
 0x3e4   : > { %v2066_v3 = vrot.slane %v2061_v50, 4  ;;  %3543 = vrot.lane.b32.xlu0 %v3473_v39, %s8841_s23  ;;  %v1833_v11 = vadd.f32 1.0, %v8763_v41  ;;  %2330 = vst.msk [vmem:[#allocation2 + $0x4c] sm:$0xf] %vm2286_vm6, %v2065_v54  ;;  %v1863_v63 = vmul.f32 %v1831_v9, %v14070_v33  ;;  %v2321_v21 = vsel %vm9959_vm10, %v10091_v14, %v2320_v51 }
 0x3e5   : > { %v10139_v16 = vpack.c.bf16 %v10096_v34, %v10096_v34  ;;  %v1864_v36 = vmul.f32 %v1832_v46, %v14071_v25  ;;  %2322 = vst [vmem:[#allocation2 + $0x3c] sm:$0xf] %v2321_v21  ;;  %v7920_v23 = vpack.c.bf16 %v10099_v49, %v10099_v49  ;;  %v10144_v57 = vpack.c.bf16 %v1848_v18, %v1848_v18  ;;  %v2331_v34 = vld [vmem:[#allocation2 + $0x50] sm:$0x1] }
 0x3e6   : > { %v10146_v30 = vpack.c.bf16 %v1849_v26, %v1849_v26  ;;  %v1865_v24 = vmul.f32 %v1833_v11, %v14072_v35  ;;  %v10149_v0 = vpack.c.bf16 %v1850_v58, %v1850_v58  ;;  %v10151_v50 = vpack.c.bf16 %v1851_v29, %v1851_v29 }
 0x3e7   : > { %v10153_v14 = vpack.c.bf16 %v1852_v22, %v1852_v22  ;;  %v10155_v19 = vpack.c.bf16 %v1853_v13, %v1853_v13  ;;  %v10157_v8 = vpack.c.bf16 %v1854_v43, %v1854_v43  ;;  %v10159_v20 = vpack.c.bf16 %v1855_v48, %v1855_v48  ;;  %v2424_v48 = vld [vmem:[#allocation2 + $0x44] sm:$0x1] }
 0x3e8   : > { %v10161_v49 = vpack.c.bf16 %v1856_v32, %v1856_v32  ;;  %v10163_v18 = vpack.c.bf16 %v1857_v52, %v1857_v52  ;;  %v10165_v26 = vpack.c.bf16 %v1858_v61, %v1858_v61  ;;  %v10167_v6 = vpack.c.bf16 %v1859_v45, %v1859_v45 }
 0x3e9   : > { %v10169_v58 = vpack.c.bf16 %v1860_v40, %v1860_v40  ;;  %v10171_v29 = vpack.c.bf16 %v1861_v2, %v1861_v2  ;;  %v10173_v22 = vpack.c.bf16 %v1862_v42, %v1862_v42  ;;  %v10175_v13 = vpack.c.bf16 %v1863_v63, %v1863_v63 }
 0x3ea   : > { %v10177_v43 = vpack.c.bf16 %v1864_v36, %v1864_v36  ;;  %v10179_v4 = vpack.c.bf16 %v1865_v24, %v1865_v24  ;;  %v2056_v53 = vor.u32 %v2054_v37, %v2053_v55  ;;  %v2332_v32 = vsel %vm9923_vm9, %v2066_v3, %v2331_v34  ;;  %v2327_v24 = vld [vmem:[#allocation2 + $0x48] sm:$0xf] }
 0x3eb   : > { %v2068_v62 = vshrl.u32 %v10139_v16, 16  ;;  %v3478_v52 = vld [vmem:[#allocation2 + $0x4c] sm:$0xf]  ;;  %v2076_v7 = vshrl.u32 %v7920_v23, 16  ;;  %v2079_v51 = vshll.u32 %v7920_v23, 16  ;;  %v2071_v5 = vshll.u32 %v10139_v16, 16 }
 0x3ec   : > { %v2085_v17 = vshrl.u32 %v10144_v57, 16  ;;  %2333 = vst [vmem:[#allocation2 + $0x50] sm:$0x1] %v2332_v32  ;;  %3553 = vrot.lane.b32.xlu1 %v3478_v52, %s8841_s23  ;;  %v2452_v10 = vld [vmem:[#allocation2 + $0x3c] sm:$0x1]  ;;  %v2088_v56 = vshll.u32 %v10144_v57, 16 }
 0x3ed   : > { %v2070_v61 = vrot.slane %v2068_v62, 7  ;;  %v2093_v55 = vshrl.u32 %v10146_v30, 16  ;;  %v2096_v45 = vshll.u32 %v10146_v30, 16  ;;  %v2453_v59 = vsel %vm9923_vm9, %v2424_v48, %v2452_v10 }
 0x3ee   : > { %v10192_v47 = vrot.slane %v2076_v7, 7  ;;  %v2102_v9 = vshrl.u32 %v10149_v0, 16  ;;  %v2105_v60 = vshll.u32 %v10149_v0, 16  ;;  %2454 = vst [vmem:[#allocation2 + $0x3c] sm:$0x1] %v2453_v59  ;;  %v2110_v12 = vshrl.u32 %v10151_v50, 16 }
 0x3ef   : > { %v2074_v40 = vrot.slane %v2070_v61, 4  ;;  %v2113_v2 = vshll.u32 %v10151_v50, 16  ;;  %v2119_v37 = vshrl.u32 %v10153_v14, 16  ;;  %v2122_v46 = vshll.u32 %v10153_v14, 16  ;;  %v2568_v0 = vld [vmem:[#allocation2 + $0x18] sm:$0xf] }
 0x3f0   : > { %v2081_v41 = vor.u32 %v2079_v51, %v10192_v47  ;;  %v2083_v39 = vrot.slane %v10192_v47, 4  ;;  %v2127_v54 = vshrl.u32 %v10155_v19, 16  ;;  %v2130_v38 = vshll.u32 %v10155_v19, 16  ;;  %2600 = vst.msk [vmem:[#allocation3 + $0x50] sm:$0xf] %vm2286_vm6, %v2568_v0 }
 0x3f1   : > { %v2136_v42 = vshrl.u32 %v10157_v8, 16  ;;  %v2139_v3 = vshll.u32 %v10157_v8, 16  ;;  %v2144_v11 = vshrl.u32 %v10159_v20, 16  ;;  %v2153_v21 = vshrl.u32 %v10161_v49, 16 }
 0x3f2   : > { %v2082_v33 = vsel %vm9913_vm8, %v2074_v40, %v2081_v41  ;;  %v2161_v25 = vshrl.u32 %v10163_v18, 16  ;;  %v2170_v23 = vshrl.u32 %v10165_v26, 16  ;;  %v2178_v34 = vshrl.u32 %v10167_v6, 16 }
 0x3f3   : > { %2337 = vst.msk [vmem:[#allocation2 + $0x58] sm:$0xf] %vm2286_vm6, %v2082_v33  ;;  %v2187_v32 = vshrl.u32 %v10169_v58, 16  ;;  %v2195_v52 = vshrl.u32 %v10171_v29, 16  ;;  %v2204_v51 = vshrl.u32 %v10173_v22, 16  ;;  %v2212_v47 = vshrl.u32 %v10175_v13, 16 }
 0x3f4   : > { %v2221_v41 = vshrl.u32 %v10177_v43, 16  ;;  %v2229_v15 = vshrl.u32 %v10179_v4, 16  ;;  %v2328_v7 = vsel %vm9959_vm10, %v2056_v53, %v2327_v24  ;;  %v10234_v48 = vor.u32 %v2071_v5, %v2070_v61  ;;  %v2338_v33 = vld [vmem:[#allocation2 + $0x5c] sm:$0x1] }
 0x3f5   : > { %v3475_v59 = vld [vmem:[#allocation2 + $0x3c] sm:$0xf]  ;;  %2329 = vst [vmem:[#allocation2 + $0x48] sm:$0xf] %v2328_v7  ;;  %v2087_v10 = vrot.slane %v2085_v17, 7  ;;  %v10236_v35 = vrot.slane %v2093_v55, 7 }
 0x3f6   : > { %3547 = vrot.lane.b32.xlu0 %v3475_v59, %s8841_s23  ;;  %v10238_v40 = vrot.slane %v2102_v9, 7  ;;  %v10240_v36 = vrot.slane %v2110_v12, 7  ;;  %v10242_v16 = vrot.slane %v2119_v37, 7  ;;  %v10244_v59 = vrot.slane %v2127_v54, 7 }
 0x3f7   : > { %v10246_v63 = vrot.slane %v2136_v42, 7  ;;  %v10248_v62 = vrot.slane %v2144_v11, 7  ;;  %v10250_v5 = vrot.slane %v2153_v21, 7  ;;  %v10252_v61 = vrot.slane %v2161_v25, 7 }
 0x3f8   : > { %v10254_v17 = vrot.slane %v2170_v23, 7  ;;  %v10256_v55 = vrot.slane %v2178_v34, 7  ;;  %v10259_v9 = vrot.slane %v2187_v32, 7  ;;  %v10261_v12 = vrot.slane %v2195_v52, 7  ;;  %v2425_v23 = vld [vmem:[#allocation2 + $0x50] sm:$0x1] }
 0x3f9   : > { %v10263_v37 = vrot.slane %v2204_v51, 7  ;;  %v10265_v54 = vrot.slane %v2212_v47, 7  ;;  %v10267_v42 = vrot.slane %v2221_v41, 7  ;;  %v10269_v11 = vrot.slane %v2229_v15, 7  ;;  %v2566_v52 = vld [vmem:[#allocation2 + $0xc] sm:$0xf] }
 0x3fa   : > { %v3480_v53 = vld [vmem:[#allocation2 + $0x58] sm:$0xf]  ;;  %v2339_v21 = vsel %vm9923_vm9, %v2083_v39, %v2338_v33  ;;  %v2091_v25 = vrot.slane %v2087_v10, 4  ;;  %v2098_v24 = vor.u32 %v2096_v45, %v10236_v35  ;;  %v10278_v34 = vor.u32 %v2088_v56, %v2087_v10  ;;  %2598 = vst.msk [vmem:[#allocation3 + $0x28] sm:$0xf] %vm2286_vm6, %v2566_v52 }
 0x3fb   : > { %3557 = vrot.lane.b32.xlu1 %v3480_v53, %s8841_s23  ;;  %v2100_v32 = vrot.slane %v10236_v35, 4  ;;  %v10284_v15 = vor.u32 %v2105_v60, %v10238_v40  ;;  %2340 = vst [vmem:[#allocation2 + $0x5c] sm:$0x1] %v2339_v21  ;;  %v2108_v39 = vrot.slane %v10238_v40, 4  ;;  %v2115_v30 = vor.u32 %v2113_v2, %v10240_v36  ;;  %v2334_v41 = vld [vmem:[#allocation2 + $0x54] sm:$0xf] }
 0x3fc   : > { %v10294_v57 = vor.u32 %v2122_v46, %v10242_v16  ;;  %v2455_v56 = vld [vmem:[#allocation2 + $0x48] sm:$0x1]  ;;  %v2099_v60 = vsel %vm9913_vm8, %v2091_v25, %v2098_v24  ;;  %v2125_v7 = vrot.slane %v10242_v16, 4  ;;  %v2132_v50 = vor.u32 %v2130_v38, %v10244_v59  ;;  %v2341_v25 = vld [vmem:[#allocation2 + $0x60] sm:$0xf] }
 0x3fd   : > { %v2456_v14 = vsel %vm9923_vm9, %v2425_v23, %v2455_v56  ;;  %2344 = vst.msk [vmem:[#allocation2 + $0x64] sm:$0xf] %vm2286_vm6, %v2099_v60  ;;  %v10311_v46 = vor.u32 %v2139_v3, %v10246_v63  ;;  %v2142_v16 = vrot.slane %v10246_v63, 4  ;;  %v14073_v19 = vshll.u32 %v10159_v20, 16  ;;  %v10347_v56 = vld [vmem:[#allocation2 + $0x6c] sm:$0xf] }
 0x3fe   : > { %2457 = vst [vmem:[#allocation2 + $0x48] sm:$0x1] %v2456_v14  ;;  %v14074_v10 = vshll.u32 %v10161_v49, 16  ;;  %v2159_v40 = vrot.slane %v10250_v5, 4  ;;  %v14075_v8 = vshll.u32 %v10163_v18, 16  ;;  %v14076_v20 = vshll.u32 %v10165_v26, 16 }
 0x3ff   : > { %v2149_v38 = vor.u32 %v14073_v19, %v10248_v62  ;;  %v2176_v53 = vrot.slane %v10254_v17, 4  ;;  %v14077_v49 = vshll.u32 %v10167_v6, 16  ;;  %v14078_v18 = vshll.u32 %v10169_v58, 16  ;;  %v10349_v6 = vld [vmem:[#allocation2 + $0x78] sm:$0xf] }
 0x400   : > { %v10321_v47 = vor.u32 %v14074_v10, %v10250_v5  ;;  %v2166_v3 = vor.u32 %v14075_v8, %v10252_v61  ;;  %v10331_v33 = vor.u32 %v14076_v20, %v10254_v17  ;;  %v2345_v5 = vld [vmem:[#allocation2 + $0x68] sm:$0x1]  ;;  %v2193_v52 = vrot.slane %v10259_v9, 4  ;;  %v2570_v17 = vld [vmem:[#allocation2 + $0x24] sm:$0xf] }
 0x401   : > { %v2183_v21 = vor.u32 %v14077_v49, %v10256_v55  ;;  %v10341_v24 = vor.u32 %v14078_v18, %v10259_v9  ;;  %v14079_v26 = vshll.u32 %v10171_v29, 16  ;;  %v2352_v60 = vld [vmem:[#allocation2 + $0x74] sm:$0x1]  ;;  %v2359_v14 = vld [vmem:[#allocation2 + $0x80] sm:$0x1]  ;;  %v14080_v58 = vshll.u32 %v10173_v22, 16 }
 0x402   : > { %v2210_v9 = vrot.slane %v10263_v37, 4  ;;  %v14081_v29 = vshll.u32 %v10175_v13, 16  ;;  %2602 = vst.msk [vmem:[#allocation3 + $0x78] sm:$0xf] %vm2286_vm6, %v2570_v17  ;;  %v10362_v20 = vld [vmem:[#allocation2 + $0x84] sm:$0xf]  ;;  %v2150_v2 = vsel %vm9913_vm8, %v2142_v16, %v2149_v38  ;;  %v2349_v1 = vsel %vm9959_vm10, %v10284_v15, %v10347_v56 }
 0x403   : > { %v2200_v0 = vor.u32 %v14079_v26, %v10261_v12  ;;  %v10355_v10 = vor.u32 %v14080_v58, %v10263_v37  ;;  %v10364_v49 = vld [vmem:[#allocation2 + $0x90] sm:$0xf]  ;;  %v2366_v18 = vld [vmem:[#allocation2 + $0x8c] sm:$0x1]  ;;  %v2373_v26 = vld [vmem:[#allocation2 + $0x98] sm:$0x1] }
 0x404   : > { %v2217_v8 = vor.u32 %v14081_v29, %v10265_v54  ;;  %v14082_v22 = vshll.u32 %v10177_v43, 16  ;;  %v2227_v37 = vrot.slane %v10267_v42, 4  ;;  %v14083_v13 = vshll.u32 %v10179_v4, 16  ;;  %v10376_v17 = vld [vmem:[#allocation2 + $0x9c] sm:$0xf] }
 0x405   : > { %v10378_v23 = vld [vmem:[#allocation2 + $0xa8] sm:$0xf]  ;;  %v2380_v63 = vld [vmem:[#allocation2 + $0xa4] sm:$0x1]  ;;  %v2387_v51 = vld [vmem:[#allocation2 + $0xb0] sm:$0x1]  ;;  %v2335_v43 = vsel %vm9959_vm10, %v10234_v48, %v2334_v41  ;;  %v2167_v48 = vsel %vm9913_vm8, %v2159_v40, %v2166_v3  ;;  %v2342_v40 = vsel %vm9959_vm10, %v10278_v34, %v2341_v25  ;;  %v2346_v3 = vsel %vm9923_vm9, %v2100_v32, %v2345_v5 }
 0x406   : > { %v10370_v58 = vor.u32 %v14082_v22, %v10267_v42  ;;  %v2234_v29 = vor.u32 %v14083_v13, %v10269_v11  ;;  %v2116_v22 = vsel %vm9913_vm8, %v2108_v39, %v2115_v30  ;;  %v2133_v42 = vsel %vm9913_vm8, %v2125_v7, %v2132_v50  ;;  %v10388_v4 = vld [vmem:[#allocation2 + $0xb4] sm:$0xf]  ;;  %v10390_v13 = vld [vmem:[#allocation2 + $0xbc] sm:$0x1]  ;;  %v10392_v19 = vld [vmem:[#allocation2 + $0xc0] sm:$0xf] }
 0x407   : > { %v3482_v45 = vld [vmem:[#allocation2 + $0x64] sm:$0xf]  ;;  %2336 = vst [vmem:[#allocation2 + $0x54] sm:$0xf] %v2335_v43  ;;  %v2184_v39 = vsel %vm9913_vm8, %v2176_v53, %v2183_v21  ;;  %v2201_v30 = vsel %vm9913_vm8, %v2193_v52, %v2200_v0  ;;  %2351 = vst.msk [vmem:[#allocation2 + $0x70] sm:$0xf] %vm2286_vm6, %v2116_v22  ;;  %v2218_v16 = vsel %vm9913_vm8, %v2210_v9, %v2217_v8 }
 0x408   : > { %2358 = vst.msk [vmem:[#allocation2 + $0x7c] sm:$0xf] %vm2286_vm6, %v2133_v42  ;;  %v10404_v7 = vld [vmem:[#allocation2] sm:$0xf]  ;;  %v2401_v50 = vld [vmem:[#allocation2 + $0xc8] sm:$0x1]  ;;  %3561 = vrot.lane.b32.xlu1 %v3482_v45, %s8841_s23  ;;  %v2235_v38 = vsel %vm9913_vm8, %v2227_v37, %v2234_v29  ;;  %v2356_v32 = vsel %vm9959_vm10, %v10294_v57, %v10349_v6  ;;  %v2370_v25 = vsel %vm9959_vm10, %v10321_v47, %v10364_v49 }
 0x409   : > { %v3477_v41 = vld [vmem:[#allocation2 + $0x48] sm:$0xf]  ;;  %2365 = vst.msk [vmem:[#allocation2 + $0x88] sm:$0xf] %vm2286_vm6, %v2150_v2  ;;  %2372 = vst.msk [vmem:[#allocation2 + $0x94] sm:$0xf] %vm2286_vm6, %v2167_v48  ;;  %v2377_v56 = vsel %vm9959_vm10, %v10331_v33, %v10376_v17  ;;  %v2384_v6 = vsel %vm9959_vm10, %v10341_v24, %v10378_v23  ;;  %v2391_v23 = vsel %vm9959_vm10, %v10355_v10, %v10388_v4 }
 0x40a   : > { %2379 = vst.msk [vmem:[#allocation2 + $0xa0] sm:$0xf] %vm2286_vm6, %v2184_v39  ;;  %2386 = vst.msk [vmem:[#allocation2 + $0xac] sm:$0xf] %vm2286_vm6, %v2201_v30  ;;  %v2408_v45 = vld [vmem:[#allocation2 + $0x8] sm:$0x1]  ;;  %3551 = vrot.lane.b32.xlu0 %v3477_v41, %s8841_s23  ;;  %v2398_v24 = vsel %vm9959_vm10, %v10370_v58, %v10392_v19  ;;  %v2405_v49 = vsel %vm9959_vm10, %v10370_v58, %v10404_v7 }
 0x40b   : > { %v14084_v35 = vrot.slane %v10240_v36, 4  ;;  %v14085_v2 = vrot.slane %v10244_v59, 4  ;;  %2343 = vst [vmem:[#allocation2 + $0x60] sm:$0xf] %v2342_v40  ;;  %2347 = vst [vmem:[#allocation2 + $0x68] sm:$0x1] %v2346_v3  ;;  %v2363_v59 = vsel %vm9959_vm10, %v10311_v46, %v10362_v20 }
 0x40c   : > { %2393 = vst.msk [vmem:[#allocation2 + $0xb8] sm:$0xf] %vm2286_vm6, %v2218_v16  ;;  %2400 = vst.msk [vmem:[#allocation2 + $0xc4] sm:$0xf] %vm2286_vm6, %v2235_v38  ;;  %v8571_v36 = vld [vmem:[%s13907_s4 + $0xf8] sm:$0xff]   ;;  %v14086_v57 = vrot.slane %v10248_v62, 4 }
 0x40d   : > { %v2353_v34 = vsel %vm9923_vm9, %v14084_v35, %v2352_v60  ;;  %v2360_v53 = vsel %vm9923_vm9, %v14085_v2, %v2359_v14  ;;  %2407 = vst.msk [vmem:[#allocation2 + $0x4] sm:$0xf] %vm2286_vm6, %v2235_v38  ;;  %v8572_v15 = vld [vmem:[%s13907_s4 + $0xb8] sm:$0xff]   ;;  %v14087_v5 = vrot.slane %v10252_v61, 4  ;;  %2350 = vst [vmem:[#allocation2 + $0x6c] sm:$0xf] %v2349_v1  ;;  %8199 = vmatprep.subr.bf16.mxu0 %v8571_v36 }
 0x40e   : > { %v2367_v21 = vsel %vm9923_vm9, %v14086_v57, %v2366_v18  ;;  %2354 = vst [vmem:[#allocation2 + $0x74] sm:$0x1] %v2353_v34  ;;  %2357 = vst [vmem:[#allocation2 + $0x78] sm:$0xf] %v2356_v32  ;;  %v10464_v46 = vld [vmem:[#allocation2 + $0x10] sm:$0xf]  ;;  %8200 = vmatpush3.bf16.msra.mxu0 %v8572_v15 }
 0x40f   : > { %v2374_v52 = vsel %vm9923_vm9, %v14087_v5, %v2373_v26  ;;  %2361 = vst [vmem:[#allocation2 + $0x80] sm:$0x1] %v2360_v53  ;;  %v2494_v62 = vld [vmem:[#allocation2 + $0x24] sm:$0x1]  ;;  %v2572_v0 = vld [vmem:[#allocation2 + $0x30] sm:$0xf] }
 0x410   : > { %v14088_v47 = vrot.slane %v10256_v55, 4  ;;  %v14089_v60 = vrot.slane %v10261_v12, 4  ;;  %2364 = vst [vmem:[#allocation2 + $0x84] sm:$0xf] %v2363_v59  ;;  %2368 = vst [vmem:[#allocation2 + $0x8c] sm:$0x1] %v2367_v21 }
 0x411   : > { %2371 = vst [vmem:[#allocation2 + $0x90] sm:$0xf] %v2370_v25  ;;  %2375 = vst [vmem:[#allocation2 + $0x98] sm:$0x1] %v2374_v52  ;;  %v2495_v33 = vld [vmem:[#allocation2 + $0x30] sm:$0x1] }
 0x412   : > { %v2381_v61 = vsel %vm9923_vm9, %v14088_v47, %v2380_v63  ;;  %v2388_v14 = vsel %vm9923_vm9, %v14089_v60, %v2387_v51  ;;  %v2496_v9 = vld [vmem:[#allocation2 + $0x3c] sm:$0x1]  ;;  %v2497_v55 = vld [vmem:[#allocation2 + $0x48] sm:$0x1]  ;;  %2604 = vst.msk [vmem:[#allocation3 + $0xa0] sm:$0xf] %vm2286_vm6, %v2572_v0 }
 0x413   : > { %v2426_v63 = vld [vmem:[#allocation2 + $0x5c] sm:$0x1]  ;;  %v14090_v12 = vrot.slane %v10265_v54, 4  ;;  %v14091_v8 = vrot.slane %v10269_v11, 4  ;;  %2378 = vst [vmem:[#allocation2 + $0x9c] sm:$0xf] %v2377_v56 }
 0x414   : > { %2382 = vst [vmem:[#allocation2 + $0xa4] sm:$0x1] %v2381_v61  ;;  %2385 = vst [vmem:[#allocation2 + $0xa8] sm:$0xf] %v2384_v6  ;;  %v2519_v10 = vld [vmem:[#allocation2 + $0x2c] sm:$0x1] }
 0x415   : > { %v2395_v51 = vsel %vm9923_vm9, %v14090_v12, %v10390_v13  ;;  %v2402_v20 = vsel %vm9923_vm9, %v14091_v8, %v2401_v50  ;;  %2389 = vst [vmem:[#allocation2 + $0xb0] sm:$0x1] %v2388_v14  ;;  %v2574_v54 = vld [vmem:[#allocation2 + $0x3c] sm:$0xf]  ;;  %v14092_v18 = vmov %v14091_v8  ;;  %2392 = vst [vmem:[#allocation2 + $0xb4] sm:$0xf] %v2391_v23  ;;  %v2520_v11 = vsel %vm10053_vm11, %v2494_v62, %v2519_v10 }
 0x416   : > { %v2409_v19 = vsel %vm9923_vm9, %v14092_v18, %v2408_v45  ;;  %2396 = vst [vmem:[#allocation2 + $0xbc] sm:$0x1] %v2395_v51  ;;  %2399 = vst [vmem:[#allocation2 + $0xc0] sm:$0xf] %v2398_v24  ;;  %v10508_v26 = vld [vmem:[#allocation2 + $0x10] sm:$0xf] }
 0x417   : > { %2403 = vst [vmem:[#allocation2 + $0xc8] sm:$0x1] %v2402_v20  ;;  %v2522_v37 = vld [vmem:[#allocation2 + $0x38] sm:$0x1]  ;;  %v2525_v29 = vld [vmem:[#allocation2 + $0x44] sm:$0x1] }
 0x418   : > { %v2528_v17 = vld [vmem:[#allocation2 + $0x50] sm:$0x1]  ;;  %2606 = vst.msk [vmem:[#allocation3 + $0xc8] sm:$0xf] %vm2286_vm6, %v2574_v54  ;;  %v2458_v43 = vld [vmem:[#allocation2 + $0x54] sm:$0x1]  ;;  %v2523_v58 = vsel %vm10053_vm11, %v2495_v33, %v2522_v37  ;;  %v2526_v42 = vsel %vm10053_vm11, %v2496_v9, %v2525_v29 }
 0x419   : > { %v3484_v22 = vld [vmem:[#allocation2 + $0x70] sm:$0xf]  ;;  %2406 = vst [vmem:[#allocation2] sm:$0xf] %v2405_v49  ;;  %2410 = vst [vmem:[#allocation2 + $0x8] sm:$0x1] %v2409_v19  ;;  %v2529_v4 = vsel %vm10053_vm11, %v2497_v55, %v2528_v17  ;;  %v2459_v13 = vsel %vm9923_vm9, %v2426_v63, %v2458_v43 }
 0x41a   : > { %3565 = vrot.lane.b32.xlu1 %v3484_v22, %s8841_s23  ;;  %v4157_v48 = vld [vmem:[#allocation2 + $0x14] sm:$0x1]  ;;  %v4253_v39 = vrot.slane %v10464_v46, 5  ;;  %v2707_v30 = vshll.u32 %v10077_v28, 16  ;;  %v10524_v7 = vld [vmem:[#allocation2 + $0x1c] sm:$0xf] }
 0x41b   : > { %2521 = vst [vmem:[#allocation2 + $0x2c] sm:$0x1] %v2520_v11  ;;  %2524 = vst [vmem:[#allocation2 + $0x38] sm:$0x1] %v2523_v58  ;;  %v2427_v50 = vld [vmem:[#allocation2 + $0x68] sm:$0x1] }
 0x41c   : > { %2527 = vst [vmem:[#allocation2 + $0x44] sm:$0x1] %v2526_v42  ;;  %2530 = vst [vmem:[#allocation2 + $0x50] sm:$0x1] %v2529_v4  ;;  %v2461_v41 = vld [vmem:[#allocation2 + $0x60] sm:$0x1] }
 0x41d   : > { %2460 = vst [vmem:[#allocation2 + $0x54] sm:$0x1] %v2459_v13  ;;  %v2462_v16 = vsel %vm9923_vm9, %v2427_v50, %v2461_v41  ;;  %v2428_v38 = vld [vmem:[#allocation2 + $0x74] sm:$0x1]  ;;  %v2464_v40 = vld [vmem:[#allocation2 + $0x6c] sm:$0x1] }
 0x41e   : > { %v14093_v3 = vshrl.u32 %v10077_v28, 16  ;;  %2463 = vst [vmem:[#allocation2 + $0x60] sm:$0x1] %v2462_v16  ;;  %v3467_v1 = vld [vmem:[#allocation2 + $0xc] sm:$0xf]  ;;  %v2465_v35 = vsel %vm9923_vm9, %v2428_v38, %v2464_v40  ;;  %v4256_v34 = vrot.slane %v4157_v48, 5 }
 0x41f   : > { %v2709_v32 = vrot.slane %v2707_v30, 5  ;;  %v2713_v2 = vshll.u32 %v10508_v26, 16  ;;  %3531 = vrot.lane.b32.xlu1 %v3467_v1, %s8841_s23  ;;  %2466 = vst [vmem:[#allocation2 + $0x6c] sm:$0x1] %v2465_v35  ;;  %v4160_v53 = vld [vmem:[#allocation2 + $0x20] sm:$0x1] }
 0x420   : > { %v2706_v45 = vrot.slane %v14093_v3, 4  ;;  %v10534_v36 = vld [vmem:[#allocation2 + $0x1c] sm:$0xf]  ;;  %v2728_v15 = vshrl.u32 %v2634_v31, 16  ;;  %v2731_v59 = vshll.u32 %v2634_v31, 16  ;;  %v4255_v28 = vrot.slane %v4253_v39, 4 }
 0x421   : > { %v2637_v57 = vld [vmem:[#allocation2 + $0x24] sm:$0xf]  ;;  %v4260_v25 = vrot.slane %v10524_v7, 5  ;;  %v2640_v5 = vld [vmem:[#allocation2 + $0x30] sm:$0xf]  ;;  %v2717_v14 = vshrl.u32 %v10508_v26, 16 }
 0x422   : > { %v10538_v21 = vld [vmem:[#allocation2 + $0x4] sm:$0xf]  ;;  %v2419_v62 = vld [vmem:[#allocation2 + $0x8] sm:$0x1]  ;;  %v2437_v0 = vld [vmem:[#allocation2] sm:$0x1]  ;;  %v2710_v56 = vor.u32 %v2709_v32, %v2706_v45  ;;  %v4257_v6 = vsel %vm10543_vm3, %v4255_v28, %v4256_v34 }
 0x423   : > { %v2730_v47 = vrot.slane %v2728_v15, 4  ;;  %v2733_v61 = vrot.slane %v2731_v59, 5  ;;  %v2438_v60 = vsel %vm9923_vm9, %v2419_v62, %v2437_v0  ;;  %v10552_v33 = vld [vmem:[#allocation2 + $0x28] sm:$0xf]  ;;  %v2752_v9 = vshrl.u32 %v2637_v57, 16  ;;  %4365 = vrot.lane.b32.xlu1 %v4257_v6, %s8841_s23  ;;  %v8573_v49 = vld [vmem:[%s13907_s4 + $0xf0] sm:$0xff]  }
 0x424   : > { %v10554_v55 = vld [vmem:[#allocation2 + $0x28] sm:$0xf]  ;;  %v3479_v63 = vld [vmem:[#allocation2 + $0x54] sm:$0xf]  ;;  %2439 = vst [vmem:[#allocation2] sm:$0x1] %v2438_v60  ;;  %8201 = vmatprep.subr.bf16.mxu0 %v8573_v49 }
 0x425   : > { %v2689_v23 = vshll.u32 %v10538_v21, 16  ;;  %v10558_v12 = vrot.slane %v2713_v2, 5  ;;  %v4263_v51 = vrot.slane %v4160_v53, 5  ;;  %v2755_v24 = vshll.u32 %v2637_v57, 16  ;;  %3555 = vrot.lane.b32.xlu0 %v3479_v63, %s8841_s23  ;;  %v2643_v54 = vld [vmem:[#allocation2 + $0x3c] sm:$0xf] }
 0x426   : > { %v2693_v8 = vshrl.u32 %v10538_v21, 16  ;;  %v2737_v20 = vshll.u32 %v10534_v36, 16  ;;  %v2776_v10 = vshrl.u32 %v2640_v5, 16  ;;  %v3486_v18 = vld [vmem:[#allocation2 + $0x7c] sm:$0xf]  ;;  %v10566_v19 = vrot.slane %v2710_v56, 4 }
 0x427   : > { %v4262_v37 = vrot.slane %v4260_v25, 4  ;;  %v2734_v29 = vor.u32 %v2733_v61, %v2730_v47  ;;  %v10570_v17 = vld [vmem:[#allocation2 + $0x34] sm:$0xf]  ;;  %v2779_v43 = vshll.u32 %v2640_v5, 16  ;;  %v2754_v31 = vrot.slane %v2752_v9, 4  ;;  %3569 = vrot.lane.b32.xlu1 %v3486_v18, %s8841_s23 }
 0x428   : > { %v2757_v11 = vrot.slane %v2755_v24, 5  ;;  %v2761_v58 = vshll.u32 %v10552_v33, 16  ;;  %v4163_v42 = vld [vmem:[#allocation2 + $0x2c] sm:$0x1]  ;;  %v13938_v4 = vrot.slane %v10554_v55, 5  ;;  %v10580_v48 = vrot.slane %v2689_v23, 5 }
 0x429   : > { %v3481_v13 = vld [vmem:[#allocation2 + $0x60] sm:$0xf]  ;;  %v4264_v30 = vsel %vm10543_vm3, %v4262_v37, %v4263_v51  ;;  %v2741_v50 = vshrl.u32 %v10534_v36, 16  ;;  %v2800_v41 = vshrl.u32 %v2643_v54, 16  ;;  %v10587_v16 = vrot.slane %v2737_v20, 5  ;;  %v8574_v1 = vld [vmem:[%s13907_s4 + $0xb0] sm:$0xff]  }
 0x42a   : > { %3559 = vrot.lane.b32.xlu0 %v3481_v13, %s8841_s23  ;;  %v2778_v38 = vrot.slane %v2776_v10, 4  ;;  %v2781_v40 = vrot.slane %v2779_v43, 5  ;;  %v10589_v3 = vld [vmem:[#allocation2 + $0x40] sm:$0xf]  ;;  %v2803_v45 = vshll.u32 %v2643_v54, 16  ;;  %v2716_v35 = vsel %vm10574_vm4, %v10566_v19, %v10558_v12  ;;  %8202 = vmatpush3.bf16.msra.mxu0 %v8574_v1 }
 0x42b   : > { %v10598_v34 = vrot.slane %v2734_v29, 4  ;;  %v2765_v32 = vshrl.u32 %v10552_v33, 16  ;;  %v4270_v2 = vrot.slane %v4163_v42, 5  ;;  %v2646_v53 = vld [vmem:[#allocation2 + $0x48] sm:$0xf]  ;;  %v2758_v59 = vor.u32 %v2757_v11, %v2754_v31  ;;  %4369 = vrot.lane.b32.xlu1 %v4264_v30, %s8841_s23 }
 0x42c   : > { %v2628_v15 = vld [vmem:[#allocation2] sm:$0xf]  ;;  %v10601_v57 = vrot.slane %v2761_v58, 5  ;;  %v4269_v28 = vrot.slane %v13938_v4, 4  ;;  %v2785_v5 = vshll.u32 %v10570_v17, 16  ;;  %v2802_v47 = vrot.slane %v2800_v41, 4 }
 0x42d   : > { %v3483_v62 = vld [vmem:[#allocation2 + $0x6c] sm:$0xf]  ;;  %v2680_v0 = vshrl.u32 %v2628_v15, 16  ;;  %v2683_v56 = vshll.u32 %v2628_v15, 16  ;;  %v2805_v61 = vrot.slane %v2803_v45, 5  ;;  %v2782_v6 = vor.u32 %v2781_v40, %v2778_v38 }
 0x42e   : > { %3563 = vrot.lane.b32.xlu0 %v3483_v62, %s8841_s23  ;;  %v2789_v60 = vshrl.u32 %v10570_v17, 16  ;;  %v2824_v9 = vshrl.u32 %v2646_v53, 16  ;;  %v2827_v63 = vshll.u32 %v2646_v53, 16  ;;  %v2649_v23 = vld [vmem:[#allocation2 + $0x54] sm:$0xf]  ;;  %v2740_v20 = vsel %vm10574_vm4, %v10598_v34, %v10587_v16 }
 0x42f   : > { %v2682_v51 = vrot.slane %v2680_v0, 4  ;;  %v2685_v24 = vrot.slane %v2683_v56, 5  ;;  %v2809_v10 = vshll.u32 %v10589_v3, 16  ;;  %v10614_v54 = vld [vmem:[#allocation2 + $0x34] sm:$0xf]  ;;  %v10616_v18 = vrot.slane %v2758_v59, 4 }
 0x430   : > { %v3488_v49 = vld [vmem:[#allocation2 + $0x88] sm:$0xf]  ;;  %v4271_v37 = vsel %vm10543_vm3, %v4269_v28, %v4270_v2  ;;  %v2826_v29 = vrot.slane %v2824_v9, 4  ;;  %v2829_v43 = vrot.slane %v2827_v63, 5  ;;  %v10621_v11 = vrot.slane %v2785_v5, 5 }
 0x431   : > { %v2686_v31 = vor.u32 %v2685_v24, %v2682_v51  ;;  %3573 = vrot.lane.b32.xlu1 %v3488_v49, %s8841_s23  ;;  %v2806_v58 = vor.u32 %v2805_v61, %v2802_v47  ;;  %v4166_v42 = vld [vmem:[#allocation2 + $0x38] sm:$0x1]  ;;  %v10623_v13 = vld [vmem:[#allocation2 + $0x4c] sm:$0xf]  ;;  %v2848_v30 = vshrl.u32 %v2649_v23, 16  ;;  %v10627_v38 = vrot.slane %v2782_v6, 4 }
 0x432   : > { %v10625_v41 = vld [vmem:[#allocation2 + $0x40] sm:$0xf]  ;;  %v2813_v40 = vshrl.u32 %v10589_v3, 16  ;;  %v13937_v45 = vrot.slane %v10614_v54, 5  ;;  %v2851_v1 = vshll.u32 %v2649_v23, 16  ;;  %v10631_v15 = vrot.slane %v2809_v10, 5 }
 0x433   : > { %14098 = vst [vmem:[#allocation43_spill] sm:$0xff] %v10625_v41  ;;  %v2652_v2 = vld [vmem:[#allocation2 + $0x60] sm:$0xf]  ;;  %v2687_v53 = vrot.slane %v2686_v31, 4  ;;  %v2830_v59 = vor.u32 %v2829_v43, %v2826_v29  ;;  %v10633_v28 = vld [vmem:[#allocation2 + $0x58] sm:$0xf]  ;;  %v2764_v62 = vsel %vm10574_vm4, %v10616_v18, %v10601_v57  ;;  %v2788_v24 = vsel %vm10574_vm4, %v10627_v38, %v10621_v11 }
 0x434   : > { %v2850_v5 = vrot.slane %v2848_v30, 4  ;;  %v4277_v0 = vrot.slane %v4166_v42, 5  ;;  %v2833_v56 = vshll.u32 %v10623_v13, 16  ;;  %v2853_v47 = vrot.slane %v2851_v1, 5  ;;  %v2633_v23 = vld [vmem:[#allocation2 + $0x14] sm:$0x1] }
 0x435   : > { %v2692_v61 = vsel %vm10574_vm4, %v2687_v53, %v10580_v48  ;;  %4373 = vrot.lane.b32.xlu1 %v4271_v37, %s8841_s23  ;;  %v10644_v6 = vrot.slane %v2806_v58, 4  ;;  %v2872_v9 = vshrl.u32 %v2652_v2, 16  ;;  %v2875_v63 = vshll.u32 %v2652_v2, 16  ;;  %v2491_v51 = vld [vmem:[#allocation2] sm:$0x1]  ;;  %v8575_v2 = vld [vmem:[%s13907_s4 + $0x78] sm:$0xff]  }
 0x436   : > { %3063 = vrot.lane.b32.xlu0 %v2692_v61, %s8841_s23  ;;  %v4276_v10 = vrot.slane %v13937_v45, 4  ;;  %v2857_v49 = vshll.u32 %v10633_v28, 16  ;;  %v4169_v29 = vld [vmem:[#allocation2 + $0x44] sm:$0x1]  ;;  %v13939_v37 = vrot.slane %v10625_v41, 5  ;;  %v10657_v31 = vrot.slane %v2830_v59, 4  ;;  %8087 = vmatprep.subr.bf16.mxu1 %v8575_v2  ;;  %v3536_v41 = vpop.permute.xlu0 %3535 }
 0x437   : > { %v10655_v43 = vld [vmem:[#allocation2 + $0x64] sm:$0xf]  ;;  %v2854_v58 = vor.u32 %v2853_v47, %v2850_v5  ;;  %v2874_v42 = vrot.slane %v2872_v9, 4  ;;  %v2877_v30 = vrot.slane %v2875_v63, 5  ;;  %v2510_v1 = vld [vmem:[#allocation2 + $0x8] sm:$0x1] }
 0x438   : > { %v3490_v53 = vld [vmem:[#allocation2 + $0x94] sm:$0xf]  ;;  %v4278_v61 = vsel %vm10543_vm3, %v4276_v10, %v4277_v0  ;;  %v10664_v45 = vrot.slane %v2833_v56, 5  ;;  %v2719_v4 = vrot.slane %v2717_v14, 4  ;;  %v2511_v59 = vsel %vm10053_vm11, %v2491_v51, %v2510_v1  ;;  %v4155_v5 = vld [vmem:[#allocation2 + $0xc] sm:$0xe] }
 0x439   : > { %v8576_v47 = vld [vmem:[%s13907_s4 + $0xe8] sm:$0xff]   ;;  %3577 = vrot.lane.b32.xlu1 %v3490_v53, %s8841_s23  ;;  %v2812_v0 = vsel %vm10574_vm4, %v10644_v6, %v10631_v15  ;;  %v2878_v14 = vor.u32 %v2877_v30, %v2874_v42  ;;  %2512 = vst [vmem:[#allocation2 + $0x8] sm:$0x1] %v2511_v59  ;;  %v2636_v9 = vld [vmem:[#allocation2 + $0x20] sm:$0x1]  ;;  %v10686_v51 = vrot.slane %v2857_v49, 5 }
 0x43a   : > { %v4556_v63 = vld [vmem:[#allocation2 + $0x18] sm:$0xf]  ;;  %3067 = vrot.lane.b32.xlu0 %v2716_v35, %s8841_s23  ;;  %v4283_v10 = vrot.slane %v13939_v37, 4  ;;  %v4284_v1 = vrot.slane %v4169_v29, 5  ;;  %v2723_v53 = vshll.u32 %v2633_v23, 16  ;;  %8203 = vmatprep.subr.bf16.mxu0 %v8576_v47  ;;  %v2836_v30 = vsel %vm10574_vm4, %v10657_v31, %v10664_v45  ;;  %v8578_v37 = vld [vmem:[%s13907_s4 + $0xa8] sm:$0xff]  }
 0x43b   : > { %v8577_v42 = vld [vmem:[%s13907_s4 + $0x38] sm:$0xff]   ;;  %v10697_v2 = vrot.slane %v2854_v58, 4  ;;  %v2881_v19 = vshll.u32 %v10655_v43, 16  ;;  %v2743_v35 = vrot.slane %v2741_v50, 4  ;;  %v2720_v49 = vor.u32 %v2719_v4, %v10558_v12  ;;  %v2655_v47 = vld [vmem:[#allocation2 + $0x6c] sm:$0xf]  ;;  %8204 = vmatpush3.bf16.msra.mxu0 %v8578_v37 }
 0x43c   : > { %v2695_v23 = vrot.slane %v2693_v8, 4  ;;  %v4605_v29 = vshrl.u32 %v4556_v63, 16  ;;  %v4608_v59 = vshll.u32 %v4556_v63, 16  ;;  %8088 = vmatpush3.bf16.msra.mxu1 %v8577_v42  ;;  %v10709_v58 = vrot.slane %v2878_v14, 4  ;;  %v10712_v12 = vld [vmem:[#allocation2 + $0x1c] sm:$0xf] }
 0x43d   : > { %4377 = vrot.lane.b32.xlu1 %v4278_v61, %s8841_s23  ;;  %v7735_v50 = vrot.slane %v4155_v5, 9  ;;  %v2747_v26 = vshll.u32 %v2636_v9, 16  ;;  %v3492_v21 = vld [vmem:[#allocation2 + $0xa0] sm:$0xf]  ;;  %v4285_v8 = vsel %vm10543_vm3, %v4283_v10, %v4284_v1  ;;  %v10722_v4 = vrot.slane %v2723_v53, 5 }
 0x43e   : > { %3071 = vrot.lane.b32.xlu0 %v2740_v20, %s8841_s23  ;;  %v4607_v61 = vrot.slane %v4605_v29, 4  ;;  %v4610_v14 = vrot.slane %v4608_v59, 5  ;;  %v10724_v63 = vld [vmem:[#allocation2 + $0x4c] sm:$0xf]  ;;  %v10730_v9 = vrot.slane %v2881_v19, 5  ;;  %v2744_v34 = vor.u32 %v2743_v35, %v10587_v16 }
 0x43f   : > { %14099 = vst [vmem:[#allocation44_spill] sm:$0xff] %v10724_v63  ;;  %v2896_v20 = vshrl.u32 %v2655_v47, 16  ;;  %v2429_v42 = vld [vmem:[#allocation2 + $0x80] sm:$0x1]  ;;  %v2467_v36 = vld [vmem:[#allocation2 + $0x78] sm:$0x1]  ;;  %v2696_v53 = vor.u32 %v2695_v23, %v10580_v48  ;;  %v10744_v16 = vsel %vm10543_vm3, %v7735_v50, %v4253_v39 }
 0x440   : > { %v2721_v10 = vrot.slane %v2720_v49, 4  ;;  %v2630_v1 = vld [vmem:[#allocation2 + $0x8] sm:$0x1]  ;;  %v4614_v29 = vshll.u32 %v10712_v12, 16  ;;  %v2899_v59 = vshll.u32 %v2655_v47, 16  ;;  %v10746_v19 = vrot.slane %v2747_v26, 5 }
 0x441   : > { %3581 = vrot.lane.b32.xlu1 %v3492_v21, %s8841_s23  ;;  %v2898_v35 = vrot.slane %v2896_v20, 4  ;;  %v2639_v48 = vld [vmem:[#allocation2 + $0x2c] sm:$0x1]  ;;  %v4559_v49 = vld [vmem:[#allocation2 + $0x24] sm:$0xf]  ;;  %v2699_v23 = vshll.u32 %v2630_v1, 16  ;;  %v4611_v47 = vor.u32 %v4610_v14, %v4607_v61  ;;  %v2468_v18 = vsel %vm9923_vm9, %v2429_v42, %v2467_v36 }
 0x442   : > { %3075 = vrot.lane.b32.xlu0 %v2764_v62, %s8841_s23  ;;  %v2726_v46 = vsel %vm10574_vm4, %v2721_v10, %v10722_v4  ;;  %v4172_v39 = vld [vmem:[#allocation2 + $0x50] sm:$0x1]  ;;  %v2901_v26 = vrot.slane %v2899_v59, 5  ;;  %v4158_v21 = vld [vmem:[#allocation2 + $0x18] sm:$0xe]  ;;  %v10759_v20 = vrot.slane %v2744_v34, 4 }
 0x443   : > { %v10757_v50 = vld [vmem:[#allocation2 + $0x70] sm:$0xf]  ;;  %v13940_v37 = vrot.slane %v10724_v63, 5  ;;  %v2767_v56 = vrot.slane %v2765_v32, 4  ;;  %v2642_v62 = vld [vmem:[#allocation2 + $0x38] sm:$0x1] }
 0x444   : > { %v10766_v5 = vrot.slane %v2696_v53, 4  ;;  %v10768_v4 = vrot.slane %v4614_v29, 5  ;;  %v2771_v14 = vshll.u32 %v2639_v48, 16  ;;  %2469 = vst [vmem:[#allocation2 + $0x78] sm:$0x1] %v2468_v18  ;;  %v8579_v34 = vld [vmem:[%s13907_s4 + $0x70] sm:$0xff]   ;;  %v2902_v36 = vor.u32 %v2901_v26, %v2898_v35 }
 0x445   : > { %4381 = vrot.lane.b32.xlu1 %v4285_v8, %s8841_s23  ;;  %v4291_v32 = vrot.slane %v4172_v39, 5  ;;  %v2791_v42 = vrot.slane %v2789_v60, 4  ;;  %v2498_v10 = vld [vmem:[#allocation2 + $0x54] sm:$0x1]  ;;  %v10790_v8 = vrot.slane %v2699_v23, 5  ;;  %v10792_v53 = vrot.slane %v4611_v47, 4  ;;  %8089 = vmatprep.subr.bf16.mxu1 %v8579_v34 }
 0x446   : > { %v8580_v1 = vld [vmem:[%s13907_s4 + $0x30] sm:$0xff]   ;;  %3079 = vrot.lane.b32.xlu0 %v2788_v24, %s8841_s23  ;;  %v2905_v29 = vshll.u32 %v10757_v50, 16  ;;  %v4629_v17 = vshrl.u32 %v4559_v49, 16  ;;  %v2531_v60 = vld [vmem:[#allocation2 + $0x5c] sm:$0x1]  ;;  %v8581_v59 = vld [vmem:[%s13907_s4 + $0x68] sm:$0xff]   ;;  %v2768_v48 = vor.u32 %v2767_v56, %v10601_v57 }
 0x447   : > { %v4290_v35 = vrot.slane %v13940_v37, 4  ;;  %v7736_v38 = vrot.slane %v4158_v21, 9  ;;  %v4632_v24 = vshll.u32 %v4559_v49, 16  ;;  %v2430_v23 = vld [vmem:[#allocation2 + $0x8c] sm:$0x1]  ;;  %8090 = vmatpush3.bf16.msra.mxu1 %v8580_v1  ;;  %v10805_v26 = vrot.slane %v2771_v14, 5  ;;  %v3534_v37 = vpop.permute.xlu1 %3533 }
 0x448   : > { %v8582_v47 = vld [vmem:[%s13907_s4 + $0x28] sm:$0xff]   ;;  %v2795_v18 = vshll.u32 %v2642_v62, 16  ;;  %v4631_v61 = vrot.slane %v4629_v17, 4  ;;  %v2470_v33 = vld [vmem:[#allocation2 + $0x84] sm:$0x1]  ;;  %8091 = vmatprep.subr.bf16.mxu1 %v8581_v59  ;;  %v10810_v57 = vrot.slane %v2902_v36, 4  ;;  %v2792_v56 = vor.u32 %v2791_v42, %v10621_v11 }
 0x449   : > { %v10807_v34 = vld [vmem:[#allocation2 + $0x28] sm:$0xf]  ;;  %3069 = vrot.lane.b32.xlu1 %v2726_v46, %s8841_s23  ;;  %v4634_v49 = vrot.slane %v4632_v24, 5  ;;  %v2532_v21 = vsel %vm10053_vm11, %v2498_v10, %v2531_v60  ;;  %v10815_v1 = vld [vmem:[#allocation2 + $0x58] sm:$0xf]  ;;  %v8583_v62 = vld [vmem:[%s13907_s4 + $0x60] sm:$0xff]   ;;  %v10838_v42 = vsel %vm10543_vm3, %v4290_v35, %v4291_v32  ;;  %v10852_v60 = vsel %vm10543_vm3, %v7736_v38, %v4260_v25 }
 0x44a   : > { %14100 = vst [vmem:[#allocation45_spill] sm:$0xff] %v10815_v1  ;;  %v10817_v14 = vld [vmem:[#allocation2 + $0x7c] sm:$0xf]  ;;  %3083 = vrot.lane.b32.xlu0 %v2812_v0, %s8841_s23  ;;  %v3494_v46 = vld [vmem:[#allocation2 + $0xac] sm:$0xf]  ;;  %v10840_v10 = vrot.slane %v2905_v29, 5  ;;  %v2471_v29 = vsel %vm9923_vm9, %v2430_v23, %v2470_v33 }
 0x44b   : > { %2533 = vst [vmem:[#allocation2 + $0x5c] sm:$0x1] %v2532_v21  ;;  %v10842_v6 = vld [vmem:[#allocation2 + $0x44] sm:$0x1]  ;;  %v10846_v17 = vrot.slane %v2768_v48, 4  ;;  %v2815_v32 = vrot.slane %v2813_v40, 4  ;;  %8092 = vmatpush3.bf16.msra.mxu1 %v8582_v47  ;;  %v4635_v7 = vor.u32 %v4634_v49, %v4631_v61 }
 0x44c   : > { %v10844_v0 = vld [vmem:[#allocation2 + $0x4] sm:$0xf]  ;;  %v2658_v59 = vld [vmem:[#allocation2 + $0x78] sm:$0xf]  ;;  %v10863_v24 = vrot.slane %v2795_v18, 5  ;;  %8093 = vmatprep.subr.bf16.mxu1 %v8583_v62  ;;  %v10874_v33 = vrot.slane %v2792_v56, 4 }
 0x44d   : > { %14101 = vst [vmem:[#allocation46_spill] sm:$0xff] %v10844_v0  ;;  %v10858_v35 = vld [vmem:[#allocation2 + $0x24] sm:$0xe]  ;;  %v2920_v21 = vshrl.u32 %v2658_v59, 16  ;;  %v2923_v25 = vshll.u32 %v2658_v59, 16  ;;  %3585 = vrot.lane.b32.xlu1 %v3494_v46, %s8841_s23  ;;  %v4638_v61 = vshll.u32 %v10807_v34, 16 }
 0x44e   : > { %v8584_v48 = vld [vmem:[%s13907_s4 + $0x20] sm:$0xff]   ;;  %2472 = vst [vmem:[#allocation2 + $0x84] sm:$0x1] %v2471_v29  ;;  %v3194_v38 = vld [vmem:[#allocation2 + $0x8] sm:$0x1]  ;;  %v8585_v47 = vld [vmem:[%s13907_s4 + $0x58] sm:$0xff]   ;;  %3087 = vrot.lane.b32.xlu0 %v2836_v30, %s8841_s23  ;;  %v2816_v29 = vor.u32 %v2815_v32, %v10631_v15  ;;  %v14102_v32 = vsel %vm10574_vm4, %v10759_v20, %v10746_v19  ;;  %v14103_v19 = vsel %vm10574_vm4, %v10697_v2, %v10686_v51 }
 0x44f   : > { %v2564_v23 = vld [vmem:[#allocation2] sm:$0xf]  ;;  %v13942_v18 = vrot.slane %v10815_v1, 5  ;;  %v2929_v49 = vshll.u32 %v10817_v14, 16  ;;  %v2819_v56 = vshll.u32 %v10842_v6, 16  ;;  %v13941_v62 = vrot.slane %v10844_v0, 5  ;;  %8094 = vmatpush3.bf16.msra.mxu1 %v8584_v48 }
 0x450   : > { %2596 = vst.msk [vmem:[#allocation3] sm:$0xf] %vm2286_vm6, %v2564_v23  ;;  %v10891_v46 = vrot.slane %v2920_v21, 4  ;;  %v2925_v59 = vrot.slane %v2923_v25, 5  ;;  %v3296_v39 = vrot.slane %v3194_v38, 5  ;;  %v10894_v31 = vrot.slane %v4635_v7, 4  ;;  %8095 = vmatprep.subr.bf16.mxu1 %v8585_v47 }
 0x451   : > { %v4562_v3 = vld [vmem:[#allocation2 + $0x30] sm:$0xf]  ;;  %v7737_v36 = vrot.slane %v10858_v35, 9  ;;  %v3295_v6 = vrot.slane %v13941_v62, 4  ;;  %v10900_v11 = vld [vmem:[#allocation2 + $0x34] sm:$0xf]  ;;  %3073 = vrot.lane.b32.xlu1 %v14102_v32, %s8841_s23  ;;  %v3538_v62 = vpop.permute.xlu1 %3537 }
 0x452   : > { %v10902_v23 = vld [vmem:[#allocation2 + $0x10] sm:$0xf]  ;;  %v10904_v21 = vld [vmem:[#allocation2 + $0x14] sm:$0x1]  ;;  %v8586_v15 = vld [vmem:[%s13907_s4 + $0xe0] sm:$0xff]   ;;  %v10919_v48 = vrot.slane %v4638_v61, 5  ;;  %3091 = vrot.lane.b32.xlu0 %v14103_v19, %s8841_s23  ;;  %v2926_v30 = vor.u32 %v2925_v59, %v10891_v46 }
 0x453   : > { %v2648_v25 = vld [vmem:[#allocation2 + $0x50] sm:$0x1]  ;;  %v8587_v38 = vld [vmem:[%s13907_s4 + $0x18] sm:$0xff]   ;;  %v10933_v20 = vrot.slane %v13942_v18, 4  ;;  %v3297_v61 = vsel %vm10543_vm3, %v3295_v6, %v3296_v39  ;;  %v4653_v47 = vshrl.u32 %v4562_v3, 16  ;;  %v4656_v32 = vshll.u32 %v4562_v3, 16  ;;  %8205 = vmatprep.subr.bf16.mxu0 %v8586_v15 }
 0x454   : > { %v2499_v7 = vld [vmem:[#allocation2 + $0x60] sm:$0x1]  ;;  %v10938_v35 = vrot.slane %v2929_v49, 5  ;;  %v10940_v40 = vrot.slane %v2816_v29, 4  ;;  %v10942_v2 = vrot.slane %v2819_v56, 5  ;;  %8096 = vmatpush3.bf16.msra.mxu1 %v8587_v38  ;;  %v14104_v46 = vrot.slane %v10554_v55, 5 }
 0x455   : > { %3436 = vst.msk [vmem:[#allocation3 + $0x18] sm:$0xf] %vm2286_vm6, %v3297_v61  ;;  %v2534_v19 = vld [vmem:[#allocation2 + $0x68] sm:$0x1]  ;;  %v10945_v18 = vld [vmem:[#allocation2 + $0x1c] sm:$0xf]  ;;  %4385 = vrot.lane.b32.xlu1 %v10838_v42, %s8841_s23 }
 0x456   : > { %v4175_v3 = vld [vmem:[#allocation2 + $0x5c] sm:$0x1]  ;;  %v10955_v49 = vsel %vm10543_vm3, %v7737_v36, %v14104_v46  ;;  %3628 = vst.msk [vmem:[#allocation3 + $0x18] sm:$0xf] %vm3159_vm5, %v3534_v37  ;;  %v14106_v56 = vshrl.u32 %v10623_v13, 16  ;;  %v2843_v29 = vshll.u32 %v2648_v25, 16  ;;  %v2535_v36 = vsel %vm10053_vm11, %v2499_v7, %v2534_v19 }
 0x457   : > { %14105 = vst [vmem:[#allocation47_spill] sm:$0xff] %v10955_v49  ;;  %v2661_v6 = vld [vmem:[#allocation2 + $0x84] sm:$0xf]  ;;  %v3200_v15 = vld [vmem:[#allocation2 + $0x20] sm:$0x1]  ;;  %v4662_v38 = vshll.u32 %v10900_v11, 16  ;;  %v14107_v25 = vsel %vm10574_vm4, %v10709_v58, %v10730_v9  ;;  %v3542_v49 = vpop.permute.xlu1 %3541 }
 0x458   : > { %v10960_v59 = vrot.slane %v14106_v56, 4  ;;  %v3300_v55 = vrot.slane %v10902_v23, 5  ;;  %v3303_v61 = vrot.slane %v10904_v21, 5  ;;  %v10969_v37 = vld [vmem:[#allocation2 + $0x88] sm:$0xf]  ;;  %3095 = vrot.lane.b32.xlu0 %v14107_v25, %s8841_s23  ;;  %v10977_v42 = vrot.slane %v4653_v47, 4 }
 0x459   : > { %v3195_v13 = vld [vmem:[#allocation2 + $0xc] sm:$0xe]  ;;  %v10979_v46 = vrot.slane %v4656_v32, 5  ;;  %2536 = vst [vmem:[#allocation2 + $0x68] sm:$0x1] %v2535_v36  ;;  %v2944_v23 = vshrl.u32 %v2661_v6, 16 }
 0x45a   : > { %v2947_v21 = vshll.u32 %v2661_v6, 16  ;;  %v2431_v56 = vld [vmem:[#allocation2 + $0x98] sm:$0x1]  ;;  %v10981_v39 = vld [vmem:[#allocation2 + $0x28] sm:$0xf]  ;;  %v8588_v7 = vld [vmem:[%s13907_s4 + $0xa0] sm:$0xff]   ;;  %v2840_v6 = vor.u32 %v10960_v59, %v10664_v45 }
 0x45b   : > { %v4298_v19 = vrot.slane %v4175_v3, 5  ;;  %v10986_v1 = vrot.slane %v2926_v30, 4  ;;  %v3302_v47 = vrot.slane %v3300_v55, 4  ;;  %v2473_v32 = vld [vmem:[#allocation2 + $0x90] sm:$0x1]  ;;  %v2946_v36 = vrot.slane %v2944_v23, 4  ;;  %8206 = vmatpush3.bf16.msra.mxu0 %v8588_v7 }
 0x45c   : > { %v2949_v25 = vrot.slane %v2947_v21, 5  ;;  %v3307_v63 = vrot.slane %v10945_v18, 5  ;;  %v3203_v0 = vld [vmem:[#allocation2 + $0x2c] sm:$0x1]  ;;  %v14108_v30 = vsel %vm10574_vm4, %v10846_v17, %v10805_v26  ;;  %v11001_v3 = vrot.slane %v2843_v29, 5  ;;  %v14136_v44 = vld [vmem:[#allocation45_spill] sm:$0xff] }
 0x45d   : > { %3077 = vrot.lane.b32.xlu1 %v14108_v30, %s8841_s23  ;;  %v11003_v58 = vrot.slane %v4662_v38, 5  ;;  %v3304_v45 = vsel %vm10543_vm3, %v3302_v47, %v3303_v61  ;;  %v3310_v59 = vrot.slane %v3200_v15, 5  ;;  %v3198_v18 = vld [vmem:[#allocation2 + $0x18] sm:$0xe]  ;;  %v14109_v23 = vsel %vm10574_vm4, %v10766_v5, %v10790_v8  ;;  %v11016_v17 = vld [vmem:[#allocation2 + $0x64] sm:$0xf] }
 0x45e   : > { %3065 = vrot.lane.b32.xlu0 %v14109_v23, %s8841_s23  ;;  %v4659_v26 = vor.u32 %v10979_v46, %v10977_v42  ;;  %3438 = vst.msk [vmem:[#allocation3 + $0x40] sm:$0xf] %vm2286_vm6, %v3304_v45  ;;  %v2953_v29 = vshll.u32 %v10969_v37, 16  ;;  %v3309_v38 = vrot.slane %v3307_v63, 4  ;;  %v7720_v61 = vrot.slane %v3195_v13, 9  ;;  %v8589_v15 = vld [vmem:[%s13907_s4 + $0x50] sm:$0xff]  }
 0x45f   : > { %3630 = vst.msk [vmem:[#allocation3 + $0x40] sm:$0xf] %vm3159_vm5, %v3538_v62  ;;  %v2950_v21 = vor.u32 %v2949_v25, %v2946_v36  ;;  %v11023_v5 = vld [vmem:[#allocation2 + $0x5c] sm:$0x1]  ;;  %v2474_v8 = vsel %vm9923_vm9, %v2431_v56, %v2473_v32  ;;  %v3314_v42 = vrot.slane %v10981_v39, 5  ;;  %v3317_v46 = vrot.slane %v3203_v0, 5  ;;  %8097 = vmatprep.subr.bf16.mxu1 %v8589_v15  ;;  %v3540_v15 = vpop.permute.xlu0 %3539 }
 0x460   : > { %v11028_v7 = vld [vmem:[#allocation2 + $0x34] sm:$0xf]  ;;  %v3496_v47 = vld [vmem:[#allocation2 + $0xb8] sm:$0xf]  ;;  %v11036_v62 = vsel %vm10543_vm3, %v10933_v20, %v4298_v19  ;;  %v3311_v36 = vsel %vm10543_vm3, %v3309_v38, %v3310_v59  ;;  %v3301_v56 = vsel %vm10543_vm3, %v7720_v61, %v3300_v55  ;;  %v14110_v0 = vshrl.u32 %v10633_v28, 16  ;;  %v8591_v20 = vld [vmem:[%s13907_s4 + $0x48] sm:$0xff]  }
 0x461   : > { %v8590_v13 = vld [vmem:[%s13907_s4 + $0x10] sm:$0xff]   ;;  %2475 = vst [vmem:[#allocation2 + $0x90] sm:$0x1] %v2474_v8  ;;  %v11046_v25 = vld [vmem:[#allocation2 + $0x38] sm:$0x1]  ;;  %3589 = vrot.lane.b32.xlu1 %v3496_v47, %s8841_s23  ;;  %v11052_v19 = vrot.slane %v2840_v6, 4 }
 0x462   : > { %v11044_v32 = vrot.slane %v14110_v0, 4  ;;  %v3201_v30 = vld [vmem:[#allocation2 + $0x24] sm:$0xe]  ;;  %v4666_v45 = vshrl.u32 %v10900_v11, 16  ;;  %v11055_v55 = vld [vmem:[#allocation2 + $0x68] sm:$0x1]  ;;  %8098 = vmatpush3.bf16.msra.mxu1 %v8590_v13  ;;  %4363 = vrot.lane.b32.xlu0 %v10744_v16, %s8841_s23  ;;  %v14112_v0 = vsel %vm10574_vm4, %v10874_v33, %v10863_v24  ;;  %v14113_v33 = vsel %vm10574_vm4, %v10792_v53, %v10768_v4 }
 0x463   : > { %3440 = vst.msk [vmem:[#allocation3 + $0x68] sm:$0xf] %vm2286_vm6, %v3311_v36  ;;  %3437 = vst.msk [vmem:[#allocation3 + $0x2c] sm:$0xf] %vm2286_vm6, %v3301_v56  ;;  %v3316_v28 = vrot.slane %v3314_v42, 4  ;;  %v7721_v59 = vrot.slane %v3198_v18, 9  ;;  %v3546_v18 = vpop.permute.xlu1 %3545  ;;  %8099 = vmatprep.subr.bf16.mxu1 %v8591_v20 }
 0x464   : > { %v11067_v23 = vrot.slane %v4659_v26, 4  ;;  %v13947_v38 = vrot.slane %v11016_v17, 5  ;;  %3632 = vst.msk [vmem:[#allocation3 + $0x68] sm:$0xf] %vm3159_vm5, %v3542_v49  ;;  %3629 = vst.msk [vmem:[#allocation3 + $0x2c] sm:$0xf] %vm3159_vm5, %v3536_v41 }
 0x465   : > { %v2867_v61 = vshll.u32 %v11023_v5, 16  ;;  %v2654_v8 = vld [vmem:[#allocation2 + $0x68] sm:$0x1]  ;;  %v11076_v13 = vrot.slane %v2950_v21, 4  ;;  %v11078_v26 = vrot.slane %v2953_v29, 5  ;;  %v3318_v47 = vsel %vm10543_vm3, %v3316_v28, %v3317_v46  ;;  %v8593_v5 = vld [vmem:[%s13907_s4 + $0x40] sm:$0xff]   ;;  %3081 = vrot.lane.b32.xlu1 %v14112_v0, %s8841_s23 }
 0x466   : > { %v8592_v16 = vld [vmem:[%s13907_s4 + $0x8] sm:$0xff]   ;;  %v3308_v41 = vsel %vm10543_vm3, %v7721_v59, %v3307_v63  ;;  %v11084_v49 = vld [vmem:[#allocation2 + $0x30] sm:$0xe]  ;;  %v4305_v36 = vrot.slane %v11055_v55, 5  ;;  %v2864_v21 = vor.u32 %v11044_v32, %v10686_v51  ;;  %3442 = vst.msk [vmem:[#allocation3 + $0x90] sm:$0xf] %vm2286_vm6, %v3318_v47  ;;  %v2846_v51 = vsel %vm10574_vm4, %v11052_v19, %v11001_v3  ;;  %4988 = vrot.lane.b32.xlu0 %v14113_v33, %s8841_s23 }
 0x467   : > { %3439 = vst.msk [vmem:[#allocation3 + $0x54] sm:$0xf] %vm2286_vm6, %v3308_v41  ;;  %v14111_v29 = vshrl.u32 %v10655_v43, 16  ;;  %v3321_v63 = vrot.slane %v11028_v7, 5  ;;  %v4565_v56 = vld [vmem:[#allocation2 + $0x3c] sm:$0xf]  ;;  %8100 = vmatpush3.bf16.msra.mxu1 %v8592_v16  ;;  %v14120_v3 = vsel %vm10574_vm4, %v10894_v31, %v10919_v48 }
 0x468   : > { %3634 = vst.msk [vmem:[#allocation3 + $0x90] sm:$0xf] %vm3159_vm5, %v3546_v18  ;;  %3631 = vst.msk [vmem:[#allocation3 + $0x54] sm:$0xf] %vm3159_vm5, %v3540_v15  ;;  %v2891_v43 = vshll.u32 %v2654_v8, 16  ;;  %v3324_v32 = vrot.slane %v11046_v25, 5  ;;  %8101 = vmatprep.subr.bf16.mxu1 %v8593_v5 }
 0x469   : > { %v11096_v46 = vrot.slane %v14111_v29, 4  ;;  %v7722_v20 = vrot.slane %v3201_v30, 9  ;;  %v11112_v55 = vld [vmem:[#allocation2 + $0x20] sm:$0x1]  ;;  %v3204_v28 = vld [vmem:[#allocation2 + $0x30] sm:$0xe]  ;;  %4389 = vrot.lane.b32.xlu1 %v11036_v62, %s8841_s23  ;;  %v14115_v62 = vsel %vm10574_vm4, %v10810_v57, %v10840_v10 }
 0x46a   : > { %v2576_v59 = vld [vmem:[#allocation2 + $0x48] sm:$0xf]  ;;  %v8594_v24 = vld [vmem:[%s13907_s4] sm:$0xff]   ;;  %v4304_v30 = vrot.slane %v13947_v38, 4  ;;  %v11129_v18 = vrot.slane %v2867_v61, 5  ;;  %v3323_v15 = vrot.slane %v3321_v63, 4  ;;  %v3550_v38 = vpop.permute.xlu1 %3549  ;;  %3099 = vrot.lane.b32.xlu0 %v14115_v62, %s8841_s23 }
 0x46b   : > { %v11133_v8 = vld [vmem:[#allocation2 + $0x40] sm:$0xf]  ;;  %2608 = vst.msk [vmem:[#allocation3 + $0xf0] sm:$0xf] %vm2286_vm6, %v2576_v59  ;;  %v3315_v16 = vsel %vm10543_vm3, %v7722_v20, %v3314_v42  ;;  %v4677_v61 = vshrl.u32 %v4565_v56, 16  ;;  %v4680_v47 = vshll.u32 %v4565_v56, 16  ;;  %v2888_v59 = vor.u32 %v11096_v46, %v10730_v9  ;;  %v3544_v9 = vpop.permute.xlu0 %3543  ;;  %8102 = vmatpush3.bf16.msra.mxu1 %v8594_v24 }
 0x46c   : > { %v3209_v41 = vld [vmem:[#allocation2 + $0x44] sm:$0x1]  ;;  %v2500_v29 = vld [vmem:[#allocation2 + $0x6c] sm:$0x1]  ;;  %v11144_v0 = vrot.slane %v2864_v21, 4  ;;  %v7738_v5 = vrot.slane %v11084_v49, 9  ;;  %v3325_v33 = vsel %vm10543_vm3, %v3323_v15, %v3324_v32  ;;  %v11158_v21 = vsel %vm10543_vm3, %v4304_v30, %v4305_v36 }
 0x46d   : > { %3441 = vst.msk [vmem:[#allocation3 + $0x7c] sm:$0xf] %vm2286_vm6, %v3315_v16  ;;  %v11152_v39 = vld [vmem:[#allocation2 + $0x40] sm:$0xf]  ;;  %v2537_v42 = vld [vmem:[#allocation2 + $0x74] sm:$0x1] }
 0x46e   : > { %v11160_v56 = vrot.slane %v2891_v43, 5  ;;  %3444 = vst.msk [vmem:[#allocation3 + $0xb8] sm:$0xf] %vm2286_vm6, %v3325_v33  ;;  %v14114_v49 = vshrl.u32 %v10712_v12, 16  ;;  %v3328_v32 = vrot.slane %v11133_v8, 5  ;;  %v4624_v12 = vshll.u32 %v11112_v55, 16 }
 0x46f   : > { %v2664_v20 = vld [vmem:[#allocation2 + $0x90] sm:$0xf]  ;;  %v11168_v15 = vld [vmem:[#allocation2 + $0x4c] sm:$0xf]  ;;  %3636 = vst.msk [vmem:[#allocation3 + $0xb8] sm:$0xf] %vm3159_vm5, %v3550_v38  ;;  %v2538_v30 = vsel %vm10053_vm11, %v2500_v29, %v2537_v42 }
 0x470   : > { %v11165_v46 = vrot.slane %v14114_v49, 4  ;;  %3633 = vst.msk [vmem:[#allocation3 + $0x7c] sm:$0xf] %vm3159_vm5, %v3544_v9  ;;  %v3331_v36 = vrot.slane %v3209_v41, 5  ;;  %v7723_v43 = vrot.slane %v3204_v28, 9  ;;  %v8598_v57 = vld [vmem:[%s13907_s4 + $0xd8] sm:$0xff]  }
 0x471   : > { %v11181_v16 = vld [vmem:[#allocation2 + $0x50] sm:$0x1]  ;;  %v3207_v24 = vld [vmem:[#allocation2 + $0x3c] sm:$0xe]  ;;  %v2578_v33 = vld [vmem:[#allocation2 + $0x54] sm:$0xf]  ;;  %8207 = vmatprep.subr.bf16.mxu0 %v8598_v57 }
 0x472   : > { %v11186_v49 = vrot.slane %v4677_v61, 4  ;;  %v11188_v38 = vrot.slane %v4680_v47, 5  ;;  %v4686_v9 = vshll.u32 %v11152_v39, 16  ;;  %v3330_v55 = vrot.slane %v3328_v32, 4  ;;  %2539 = vst [vmem:[#allocation2 + $0x74] sm:$0x1] %v2538_v30 }
 0x473   : > { %2610 = vst.msk [vmem:[#allocation3 + $0x118] sm:$0xf] %vm2286_vm6, %v2578_v33  ;;  %v8599_v28 = vld [vmem:[%s13907_s4 + $0x118] sm:$0xff]   ;;  %v11197_v41 = vrot.slane %v2888_v59, 4  ;;  %v3322_v61 = vsel %vm10543_vm3, %v7723_v43, %v3321_v63  ;;  %v2968_v47 = vshrl.u32 %v2664_v20, 16  ;;  %v2971_v29 = vshll.u32 %v2664_v20, 16 }
 0x474   : > { %v2432_v42 = vld [vmem:[#allocation2 + $0xa4] sm:$0x1]  ;;  %v11203_v62 = vld [vmem:[#allocation2 + $0x58] sm:$0xf]  ;;  %v14116_v33 = vsel %vm10574_vm4, %v10940_v40, %v10942_v2  ;;  %v14117_v63 = vrot.slane %v10614_v54, 5  ;;  %v3332_v43 = vsel %vm10543_vm3, %v3330_v55, %v3331_v36  ;;  %8415 = vmatprep.subr.bf16.mxu1 %v8599_v28  ;;  %v3335_v36 = vrot.slane %v11168_v15, 5 }
 0x475   : > { %v3485_v30 = vld [vmem:[#allocation2 + $0x78] sm:$0xf]  ;;  %3085 = vrot.lane.b32.xlu1 %v14116_v33, %s8841_s23  ;;  %3443 = vst.msk [vmem:[#allocation3 + $0xa4] sm:$0xf] %vm2286_vm6, %v3322_v61  ;;  %v11225_v40 = vld [vmem:[#allocation2 + $0x94] sm:$0xf] }
 0x476   : > { %v11220_v20 = vsel %vm10543_vm3, %v7738_v5, %v14117_v63  ;;  %v2580_v2 = vld [vmem:[#allocation2 + $0x60] sm:$0xf]  ;;  %3567 = vrot.lane.b32.xlu0 %v3485_v30, %s8841_s23  ;;  %v3498_v57 = vld [vmem:[#allocation2 + $0xc4] sm:$0xf]  ;;  %v4621_v5 = vor.u32 %v11165_v46, %v10768_v4  ;;  %v11234_v33 = vrot.slane %v4624_v12, 5  ;;  %v4683_v30 = vor.u32 %v11188_v38, %v11186_v49  ;;  %v8600_v46 = vld [vmem:[%s13907_s4 + $0x98] sm:$0xff]  }
 0x477   : > { %3446 = vst.msk [vmem:[#allocation3 + $0xe0] sm:$0xf] %vm2286_vm6, %v3332_v43  ;;  %v2476_v55 = vld [vmem:[#allocation2 + $0x9c] sm:$0x1]  ;;  %v3210_v28 = vld [vmem:[#allocation2 + $0x48] sm:$0xe]  ;;  %8208 = vmatpush3.bf16.msra.mxu0 %v8600_v46 }
 0x478   : > { %v3215_v61 = vld [vmem:[#allocation2 + $0x5c] sm:$0x1]  ;;  %2612 = vst.msk [vmem:[#allocation3 + $0x140] sm:$0xf] %vm2286_vm6, %v2580_v2  ;;  %v11241_v63 = vrot.slane %v4686_v9, 5  ;;  %v3338_v53 = vrot.slane %v11181_v16, 5 }
 0x479   : > { %v7724_v25 = vrot.slane %v3207_v24, 9  ;;  %v2501_v4 = vld [vmem:[#allocation2 + $0x78] sm:$0x1]  ;;  %v14118_v15 = vshrl.u32 %v10757_v50, 16  ;;  %v11251_v43 = vrot.slane %v2968_v47, 4  ;;  %v11253_v2 = vrot.slane %v2971_v29, 5  ;;  %3593 = vrot.lane.b32.xlu1 %v3498_v57, %s8841_s23  ;;  %v3554_v24 = vpop.permute.xlu1 %3553 }
 0x47a   : > { %v3337_v59 = vrot.slane %v3335_v36, 4  ;;  %v11255_v49 = vld [vmem:[#allocation2 + $0x2c] sm:$0x1]  ;;  %v2540_v38 = vld [vmem:[#allocation2 + $0x80] sm:$0x1]  ;;  %v8605_v16 = vld [vmem:[%s13907_s4 + $0xd0] sm:$0xff]   ;;  %v2477_v47 = vsel %vm9923_vm9, %v2432_v42, %v2476_v55  ;;  %4367 = vrot.lane.b32.xlu0 %v10852_v60, %s8841_s23 }
 0x47b   : > { %v11249_v12 = vrot.slane %v14118_v15, 4  ;;  %v11257_v9 = vld [vmem:[#allocation2 + $0x64] sm:$0xf]  ;;  %v3329_v50 = vsel %vm10543_vm3, %v7724_v25, %v3328_v32  ;;  %v3342_v29 = vrot.slane %v11203_v62, 5  ;;  %v3345_v15 = vrot.slane %v3215_v61, 5  ;;  %8209 = vmatprep.subr.bf16.mxu0 %v8605_v16 }
 0x47c   : > { %v2567_v54 = vld [vmem:[#allocation2 + $0x10] sm:$0xf]  ;;  %v2565_v7 = vld [vmem:[#allocation2 + $0x4] sm:$0xf]  ;;  %v11272_v6 = vrot.slane %v4621_v5, 4  ;;  %v2977_v8 = vshll.u32 %v11225_v40, 16  ;;  %v3339_v25 = vsel %vm10543_vm3, %v3337_v59, %v3338_v53  ;;  %v2541_v53 = vsel %vm10053_vm11, %v2501_v4, %v2540_v38 }
 0x47d   : > { %3638 = vst.msk [vmem:[#allocation3 + $0xe0] sm:$0xf] %vm3159_vm5, %v3554_v24  ;;  %v14119_v32 = vshrl.u32 %v10807_v34, 16  ;;  %2478 = vst [vmem:[#allocation2 + $0x9c] sm:$0x1] %v2477_v47  ;;  %v4690_v60 = vshrl.u32 %v11152_v39, 16  ;;  %v2974_v61 = vor.u32 %v11253_v2, %v11251_v43  ;;  %3089 = vrot.lane.b32.xlu1 %v2846_v51, %s8841_s23 }
 0x47e   : > { %3445 = vst.msk [vmem:[#allocation3 + $0xcc] sm:$0xf] %vm2286_vm6, %v3329_v50  ;;  %v3218_v62 = vld [vmem:[#allocation2 + $0x68] sm:$0x1]  ;;  %2599 = vst.msk [vmem:[#allocation3 + $0x3c] sm:$0xf] %vm2286_vm6, %v2567_v54  ;;  %v4627_v59 = vsel %vm10574_vm4, %v11272_v6, %v11234_v33  ;;  %v2912_v54 = vor.u32 %v11249_v12, %v10840_v10  ;;  %4992 = vrot.lane.b32.xlu0 %v14120_v3, %s8841_s23  ;;  %v14131_v6 = vsel %vm10574_vm4, %v11067_v23, %v11003_v58 }
 0x47f   : > { %v4644_v42 = vrot.slane %v14119_v32, 4  ;;  %2597 = vst.msk [vmem:[#allocation3 + $0x14] sm:$0xf] %vm2286_vm6, %v2565_v7  ;;  %v2657_v57 = vld [vmem:[#allocation2 + $0x74] sm:$0x1]  ;;  %v3344_v5 = vrot.slane %v3342_v29, 4 }
 0x480   : > { %3448 = vst.msk [vmem:[#allocation3 + $0x108] sm:$0xf] %vm2286_vm6, %v3339_v25  ;;  %v7725_v55 = vrot.slane %v3210_v28, 9  ;;  %v8606_v34 = vld [vmem:[%s13907_s4 + $0x90] sm:$0xff]   ;;  %v11294_v7 = vrot.slane %v4683_v30, 4  ;;  %v4648_v4 = vshll.u32 %v11255_v49, 16 }
 0x481   : > { %2542 = vst [vmem:[#allocation2 + $0x80] sm:$0x1] %v2541_v53  ;;  %v3213_v28 = vld [vmem:[#allocation2 + $0x54] sm:$0xe]  ;;  %v3346_v30 = vsel %vm10543_vm3, %v3344_v5, %v3345_v15  ;;  %v11311_v46 = vld [vmem:[#allocation2 + $0x3c] sm:$0xe]  ;;  %8210 = vmatpush3.bf16.msra.mxu0 %v8606_v34  ;;  %v4645_v2 = vor.u32 %v4644_v42, %v10919_v48  ;;  %4393 = vrot.lane.b32.xlu1 %v11158_v21, %s8841_s23 }
 0x482   : > { %v3336_v10 = vsel %vm10543_vm3, %v7725_v55, %v3335_v36  ;;  %v3349_v12 = vrot.slane %v11257_v9, 5  ;;  %v4568_v43 = vld [vmem:[#allocation2 + $0x48] sm:$0xf]  ;;  %v2915_v19 = vshll.u32 %v2657_v57, 16  ;;  %v11320_v51 = vrot.slane %v2977_v8, 5 }
 0x483   : > { %3450 = vst.msk [vmem:[#allocation3 + $0x130] sm:$0xf] %vm2286_vm6, %v3346_v30  ;;  %3447 = vst.msk [vmem:[#allocation3 + $0xf4] sm:$0xf] %vm2286_vm6, %v3336_v10  ;;  %v3352_v36 = vrot.slane %v3218_v62, 5  ;;  %v2981_v38 = vshrl.u32 %v11225_v40, 16  ;;  %v4689_v48 = vsel %vm10574_vm4, %v11294_v7, %v11241_v63 }
 0x484   : > { %v11325_v49 = vld [vmem:[#allocation2 + $0x38] sm:$0x1]  ;;  %v14121_v9 = vshrl.u32 %v10817_v14, 16  ;;  %v3351_v24 = vrot.slane %v3349_v12, 4  ;;  %v7726_v31 = vrot.slane %v3213_v28, 9  ;;  %v11336_v47 = vrot.slane %v4666_v45, 4 }
 0x485   : > { %v3192_v50 = vld [vmem:[#allocation2] sm:$0xe]  ;;  %v4701_v15 = vshrl.u32 %v4568_v43, 16  ;;  %v4704_v8 = vshll.u32 %v4568_v43, 16  ;;  %v11340_v14 = vrot.slane %v2974_v61, 4  ;;  %v11342_v32 = vrot.slane %v4648_v4, 5  ;;  %v3548_v61 = vpop.permute.xlu0 %3547 }
 0x486   : > { %v2935_v16 = vrot.slane %v14121_v9, 4  ;;  %v3216_v25 = vld [vmem:[#allocation2 + $0x60] sm:$0xe]  ;;  %v3353_v42 = vsel %vm10543_vm3, %v3351_v24, %v3352_v36  ;;  %v3343_v62 = vsel %vm10543_vm3, %v7726_v31, %v3342_v29  ;;  %v11348_v57 = vld [vmem:[#allocation2 + $0x4c] sm:$0xf]  ;;  %v14122_v45 = vsel %vm10574_vm4, %v10986_v1, %v10938_v35 }
 0x487   : > { %v2502_v11 = vld [vmem:[#allocation2 + $0x84] sm:$0x1]  ;;  %3103 = vrot.lane.b32.xlu0 %v14122_v45, %s8841_s23  ;;  %v11356_v21 = vrot.slane %v2912_v54, 4  ;;  %v11358_v5 = vrot.slane %v2915_v19, 5  ;;  %v11360_v55 = vrot.slane %v4645_v2, 4  ;;  %v7739_v53 = vrot.slane %v11311_v46, 9 }
 0x488   : > { %3452 = vst.msk [vmem:[#allocation3 + $0x158] sm:$0xf] %vm2286_vm6, %v3353_v42  ;;  %3449 = vst.msk [vmem:[#allocation3 + $0x11c] sm:$0xf] %vm2286_vm6, %v3343_v62  ;;  %v2543_v29 = vld [vmem:[#allocation2 + $0x8c] sm:$0x1]  ;;  %v2936_v28 = vor.u32 %v2935_v16, %v10938_v35  ;;  %v4669_v46 = vor.u32 %v11336_v47, %v11003_v58  ;;  %v14123_v35 = vsel %vm10574_vm4, %v11144_v0, %v11129_v18 }
 0x489   : > { %v3660_v34 = vld [vmem:[#allocation2 + $0x10] sm:$0xf]  ;;  %v4672_v1 = vshll.u32 %v11325_v49, 16  ;;  %v7719_v4 = vrot.slane %v3192_v50, 9  ;;  %v7727_v54 = vrot.slane %v3216_v25, 9  ;;  %v4703_v3 = vrot.slane %v4701_v15, 4  ;;  %3093 = vrot.lane.b32.xlu1 %v14123_v35, %s8841_s23 }
 0x48a   : > { %v2667_v30 = vld [vmem:[#allocation2 + $0x9c] sm:$0xf]  ;;  %v3487_v10 = vld [vmem:[#allocation2 + $0x84] sm:$0xf]  ;;  %3635 = vst.msk [vmem:[#allocation3 + $0xa4] sm:$0xf] %vm3159_vm5, %v3548_v61  ;;  %v2544_v2 = vsel %vm10053_vm11, %v2502_v11, %v2543_v29  ;;  %v2980_v49 = vsel %vm10574_vm4, %v11340_v14, %v11320_v51  ;;  %v4651_v9 = vsel %vm10574_vm4, %v11360_v55, %v11342_v32  ;;  %v2918_v29 = vsel %vm10574_vm4, %v11356_v21, %v11358_v5 }
 0x48b   : > { %v2660_v43 = vld [vmem:[#allocation2 + $0x80] sm:$0x1]  ;;  %v4706_v19 = vrot.slane %v4704_v8, 5  ;;  %v11372_v36 = vld [vmem:[#allocation2 + $0x14] sm:$0x1]  ;;  %v14124_v16 = vld [vmem:[#allocation46_spill] sm:$0xff]  ;;  %v3350_v50 = vsel %vm10543_vm3, %v7727_v54, %v3349_v12  ;;  %3571 = vrot.lane.b32.xlu0 %v3487_v10, %s8841_s23  ;;  %v14132_v21 = vsel %vm10574_vm4, %v11076_v13, %v11078_v26 }
 0x48c   : > { %v14125_v24 = vrot.slane %v14124_v16, 5  ;;  %2545 = vst [vmem:[#allocation2 + $0x8c] sm:$0x1] %v2544_v2  ;;  %v2433_v18 = vld [vmem:[#allocation2 + $0xb0] sm:$0x1]  ;;  %v8611_v15 = vld [vmem:[%s13907_s4 + $0xc8] sm:$0xff]  }
 0x48d   : > { %v2569_v0 = vld [vmem:[#allocation2 + $0x1c] sm:$0xf]  ;;  %v4492_v47 = vld [vmem:[#allocation2 + $0x18] sm:$0xf]  ;;  %v14126_v8 = vld [vmem:[#allocation43_spill] sm:$0xff]  ;;  %v4710_v62 = vshll.u32 %v11348_v57, 16  ;;  %8211 = vmatprep.subr.bf16.mxu0 %v8611_v15  ;;  %v4707_v35 = vor.u32 %v4706_v19, %v4703_v3 }
 0x48e   : > { %v3294_v31 = vsel %vm10543_vm3, %v7719_v4, %v14125_v24  ;;  %v14127_v25 = vrot.slane %v14126_v8, 5  ;;  %3451 = vst.msk [vmem:[#allocation3 + $0x144] sm:$0xf] %vm2286_vm6, %v3350_v50  ;;  %v2992_v12 = vshrl.u32 %v2667_v30, 16  ;;  %v2995_v11 = vshll.u32 %v2667_v30, 16 }
 0x48f   : > { %3435 = vst.msk [vmem:[#allocation3 + $0x4] sm:$0xf] %vm2286_vm6, %v3294_v31  ;;  %v2479_v45 = vld [vmem:[#allocation2 + $0xa8] sm:$0x1]  ;;  %2601 = vst.msk [vmem:[#allocation3 + $0x64] sm:$0xf] %vm2286_vm6, %v2569_v0 }
 0x490   : > { %v11402_v42 = vsel %vm10543_vm3, %v7739_v53, %v14127_v25  ;;  %4524 = vst.msk [vmem:[#allocation3 + $0xc] sm:$0xf] %vm2286_vm6, %v4492_v47  ;;  %v3558_v53 = vpop.permute.xlu1 %3557  ;;  %v11413_v61 = vrot.slane %v2936_v28, 4  ;;  %v11415_v4 = vrot.slane %v4672_v1, 5  ;;  %v3717_v54 = vshll.u32 %v3660_v34, 16  ;;  %v14130_v47 = vld [vmem:[#allocation47_spill] sm:$0xff] }
 0x491   : > { %v11417_v10 = vld [vmem:[#allocation2 + $0x70] sm:$0xf]  ;;  %3640 = vst.msk [vmem:[#allocation3 + $0x108] sm:$0xf] %vm3159_vm5, %v3558_v53  ;;  %v2939_v30 = vshll.u32 %v2660_v43, 16  ;;  %v11420_v2 = vrot.slane %v4669_v46, 4  ;;  %v14128_v28 = vsel %vm10574_vm4, %v11197_v41, %v11160_v56  ;;  %4371 = vrot.lane.b32.xlu0 %v14130_v47, %s8841_s23 }
 0x492   : > { %v4714_v16 = vshrl.u32 %v11348_v57, 16  ;;  %v3221_v24 = vld [vmem:[#allocation2 + $0x74] sm:$0x1]  ;;  %3097 = vrot.lane.b32.xlu1 %v14128_v28, %s8841_s23  ;;  %v14129_v1 = vshrl.u32 %v10969_v37, 16  ;;  %v11431_v50 = vld [vmem:[#allocation2 + $0xa0] sm:$0xf]  ;;  %v2480_v37 = vsel %vm9923_vm9, %v2433_v18, %v2479_v45 }
 0x493   : > { %v11433_v0 = vrot.slane %v3717_v54, 5  ;;  %v3721_v43 = vshrl.u32 %v3660_v34, 16  ;;  %v3727_v46 = vshll.u32 %v11372_v36, 16  ;;  %v2503_v3 = vld [vmem:[#allocation2 + $0x90] sm:$0x1]  ;;  %v11438_v15 = vrot.slane %v4710_v62, 5 }
 0x494   : > { %v2959_v31 = vrot.slane %v14129_v1, 4  ;;  %v3663_v19 = vld [vmem:[#allocation2 + $0x1c] sm:$0xf]  ;;  %v2994_v8 = vrot.slane %v2992_v12, 4  ;;  %v2997_v56 = vrot.slane %v2995_v11, 5  ;;  %v4692_v53 = vrot.slane %v4690_v60, 4 }
 0x495   : > { %v2582_v41 = vld [vmem:[#allocation2 + $0x6c] sm:$0xf]  ;;  %v3723_v25 = vrot.slane %v3721_v43, 4  ;;  %2481 = vst [vmem:[#allocation2 + $0xa8] sm:$0x1] %v2480_v37  ;;  %v3356_v34 = vrot.slane %v11417_v10, 5  ;;  %v4675_v62 = vsel %vm10574_vm4, %v11420_v2, %v11415_v4  ;;  %4996 = vrot.lane.b32.xlu0 %v14131_v6, %s8841_s23 }
 0x496   : > { %v3359_v36 = vrot.slane %v3221_v24, 5  ;;  %v2546_v54 = vld [vmem:[#allocation2 + $0x98] sm:$0x1]  ;;  %2614 = vst.msk [vmem:[#allocation3 + $0x168] sm:$0xf] %vm2286_vm6, %v2582_v41  ;;  %v11446_v28 = vrot.slane %v2939_v30, 5  ;;  %4990 = vrot.lane.b32.xlu1 %v4627_v59, %s8841_s23  ;;  %v2960_v45 = vor.u32 %v2959_v31, %v11078_v26  ;;  %v2998_v33 = vor.u32 %v2997_v56, %v2994_v8 }
 0x497   : > { %v11452_v18 = vrot.slane %v4707_v35, 4  ;;  %v4567_v12 = vld [vmem:[#allocation2 + $0x44] sm:$0x1]  ;;  %v2547_v39 = vsel %vm10053_vm11, %v2503_v3, %v2546_v54  ;;  %v3664_v60 = vld [vmem:[#allocation2 + $0x20] sm:$0x1]  ;;  %v3724_v30 = vor.u32 %v3723_v25, %v11433_v0  ;;  %v3729_v24 = vrot.slane %v3727_v46, 5 }
 0x498   : > { %v2663_v11 = vld [vmem:[#allocation2 + $0x8c] sm:$0x1]  ;;  %v3358_v35 = vrot.slane %v3356_v34, 4  ;;  %2548 = vst [vmem:[#allocation2 + $0x98] sm:$0x1] %v2547_v39  ;;  %v3001_v59 = vshll.u32 %v11431_v50, 16  ;;  %v4693_v47 = vor.u32 %v4692_v53, %v11241_v63  ;;  %v2942_v58 = vsel %vm10574_vm4, %v11413_v61, %v11446_v28 }
 0x499   : > { %v8613_v1 = vld [vmem:[%s13907_s4 + $0x88] sm:$0xff]   ;;  %v3005_v31 = vshrl.u32 %v11431_v50, 16  ;;  %v3741_v43 = vshll.u32 %v3663_v19, 16  ;;  %v3725_v3 = vrot.slane %v3724_v30, 4  ;;  %v4696_v37 = vshll.u32 %v4567_v12, 16  ;;  %3107 = vrot.lane.b32.xlu0 %v14132_v21, %s8841_s23  ;;  %v8618_v57 = vld [vmem:[%s13907_s4 + $0xc0] sm:$0xff]  }
 0x49a   : > { %v2571_v46 = vld [vmem:[#allocation2 + $0x28] sm:$0xf]  ;;  %v3360_v41 = vsel %vm10543_vm3, %v3358_v35, %v3359_v36  ;;  %v4571_v25 = vld [vmem:[#allocation2 + $0x54] sm:$0xf]  ;;  %8212 = vmatpush3.bf16.msra.mxu0 %v8613_v1  ;;  %v2963_v23 = vshll.u32 %v2663_v11, 16  ;;  %v3745_v56 = vshrl.u32 %v3663_v19, 16  ;;  %3101 = vrot.lane.b32.xlu1 %v2918_v29, %s8841_s23  ;;  %v4713_v53 = vsel %vm10574_vm4, %v11452_v18, %v11438_v15  ;;  %v3562_v1 = vpop.permute.xlu1 %3561 }
 0x49b   : > { %2603 = vst.msk [vmem:[#allocation3 + $0x8c] sm:$0xf] %vm2286_vm6, %v2571_v46  ;;  %3454 = vst.msk [vmem:[#allocation3 + $0x180] sm:$0xf] %vm2286_vm6, %v3360_v41  ;;  %v11486_v8 = vrot.slane %v3741_v43, 5  ;;  %v3730_v61 = vsel %vm10574_vm4, %v3725_v3, %v3729_v24  ;;  %v11502_v36 = vrot.slane %v2981_v38, 4  ;;  %v3552_v3 = vpop.permute.xlu0 %3551  ;;  %8213 = vmatprep.subr.bf16.mxu0 %v8618_v57 }
 0x49c   : > { %v4170_v19 = vld [vmem:[#allocation2 + $0x48] sm:$0xe]  ;;  %v3751_v54 = vshll.u32 %v3664_v60, 16  ;;  %v11504_v28 = vld [vmem:[#allocation2 + $0x7c] sm:$0xf]  ;;  %v11512_v5 = vrot.slane %v2960_v45, 4 }
 0x49d   : > { %v11514_v29 = vrot.slane %v3001_v59, 5  ;;  %4124 = vst.msk [vmem:[#allocation3 + $0x1c] sm:$0xf] %vm2286_vm6, %v3730_v61  ;;  %v3747_v40 = vrot.slane %v3745_v56, 4  ;;  %v11517_v38 = vld [vmem:[#allocation2 + $0x50] sm:$0x1] }
 0x49e   : > { %v4725_v12 = vshrl.u32 %v4571_v25, 16  ;;  %v2504_v39 = vld [vmem:[#allocation2 + $0x9c] sm:$0x1]  ;;  %v11519_v60 = vrot.slane %v2998_v33, 4  ;;  %v11521_v11 = vrot.slane %v4693_v47, 4  ;;  %v11523_v30 = vrot.slane %v4696_v37, 5  ;;  %4994 = vrot.lane.b32.xlu1 %v4651_v9, %s8841_s23 }
 0x49f   : > { %v11525_v24 = vld [vmem:[#allocation2 + $0x58] sm:$0xf]  ;;  %v4728_v13 = vshll.u32 %v4571_v25, 16  ;;  %v3224_v26 = vld [vmem:[#allocation2 + $0x80] sm:$0x1]  ;;  %v11527_v6 = vrot.slane %v2963_v23, 5  ;;  %v3748_v43 = vor.u32 %v3747_v40, %v11486_v8  ;;  %v2984_v33 = vor.u32 %v11502_v36, %v11320_v51 }
 0x4a0   : > { %v2549_v45 = vld [vmem:[#allocation2 + $0xa4] sm:$0x1]  ;;  %v3489_v35 = vld [vmem:[#allocation2 + $0x90] sm:$0xf]  ;;  %v7740_v59 = vrot.slane %v4170_v19, 9  ;;  %v3753_v46 = vrot.slane %v3751_v54, 5  ;;  %v4699_v61 = vsel %vm10574_vm4, %v11521_v11, %v11523_v30 }
 0x4a1   : > { %3642 = vst.msk [vmem:[#allocation3 + $0x130] sm:$0xf] %vm3159_vm5, %v3562_v1  ;;  %v11541_v47 = vrot.slane %v4714_v16, 4  ;;  %v11543_v37 = vrot.slane %v4725_v12, 4  ;;  %v3363_v41 = vrot.slane %v11504_v28, 5  ;;  %3575 = vrot.lane.b32.xlu0 %v3489_v35, %s8841_s23  ;;  %v3749_v55 = vrot.slane %v3748_v43, 4 }
 0x4a2   : > { %v2670_v25 = vld [vmem:[#allocation2 + $0xa8] sm:$0xf]  ;;  %3637 = vst.msk [vmem:[#allocation3 + $0xcc] sm:$0xf] %vm3159_vm5, %v3552_v3  ;;  %v2666_v32 = vld [vmem:[#allocation2 + $0x98] sm:$0x1]  ;;  %v2550_v56 = vsel %vm10053_vm11, %v2504_v39, %v2549_v45  ;;  %v3004_v16 = vsel %vm10574_vm4, %v11519_v60, %v11514_v29  ;;  %3105 = vrot.lane.b32.xlu1 %v2942_v58, %s8841_s23 }
 0x4a3   : > { %v4730_v9 = vrot.slane %v4728_v13, 5  ;;  %v3366_v23 = vrot.slane %v3224_v26, 5  ;;  %v4720_v36 = vshll.u32 %v11517_v38, 16  ;;  %v3365_v19 = vrot.slane %v3363_v41, 4  ;;  %2551 = vst [vmem:[#allocation2 + $0xa4] sm:$0x1] %v2550_v56  ;;  %v3566_v56 = vpop.permute.xlu1 %3565 }
 0x4a4   : > { %v3666_v54 = vld [vmem:[#allocation2 + $0x28] sm:$0xf]  ;;  %v8619_v21 = vld [vmem:[%s13907_s4 + $0x80] sm:$0xff]   ;;  %v3754_v40 = vsel %vm10574_vm4, %v3749_v55, %v3753_v46  ;;  %v4734_v12 = vshll.u32 %v11525_v24, 16  ;;  %v3016_v39 = vshrl.u32 %v2670_v25, 16  ;;  %v3019_v13 = vshll.u32 %v2670_v25, 16 }
 0x4a5   : > { %v2573_v26 = vld [vmem:[#allocation2 + $0x34] sm:$0xf]  ;;  %v2966_v38 = vsel %vm10574_vm4, %v11512_v5, %v11527_v6  ;;  %v2987_v45 = vshll.u32 %v2666_v32, 16  ;;  %v14133_v35 = vld [vmem:[#allocation44_spill] sm:$0xff]  ;;  %4126 = vst.msk [vmem:[#allocation3 + $0x44] sm:$0xf] %vm2286_vm6, %v3754_v40  ;;  %v3367_v46 = vsel %vm10543_vm3, %v3365_v19, %v3366_v23  ;;  %8214 = vmatpush3.bf16.msra.mxu0 %v8619_v21  ;;  %4375 = vrot.lane.b32.xlu0 %v11220_v20, %s8841_s23 }
 0x4a6   : > { %v14134_v1 = vrot.slane %v14133_v35, 5  ;;  %v3667_v3 = vld [vmem:[#allocation2 + $0x2c] sm:$0x1]  ;;  %2605 = vst.msk [vmem:[#allocation3 + $0xb4] sm:$0xf] %vm2286_vm6, %v2573_v26  ;;  %v11587_v5 = vrot.slane %v2984_v33, 4  ;;  %v4717_v6 = vor.u32 %v11541_v47, %v11438_v15  ;;  %4998 = vrot.lane.b32.xlu1 %v4675_v62, %s8841_s23 }
 0x4a7   : > { %v4494_v58 = vld [vmem:[#allocation2 + $0x24] sm:$0xf]  ;;  %3456 = vst.msk [vmem:[#allocation3 + $0x1a8] sm:$0xf] %vm2286_vm6, %v3367_v46  ;;  %v3007_v25 = vrot.slane %v3005_v31, 4  ;;  %v14135_v23 = vmov 0.0  }
 0x4a8   : > { %v11579_v43 = vsel %vm10543_vm3, %v7740_v59, %v14134_v1  ;;  %v4731_v59 = vor.u32 %v4730_v9, %v11543_v37  ;;  %v2434_v32 = vld [vmem:[#allocation2 + $0xbc] sm:$0x1]  ;;  %v2482_v55 = vld [vmem:[#allocation2 + $0xb4] sm:$0x1]  ;;  %4526 = vst.msk [vmem:[#allocation3 + $0x34] sm:$0xf] %vm2286_vm6, %v4494_v58  ;;  %8455 = vmatprep.subr.mxu0 %v14135_v23 }
 0x4a9   : > { %v3018_v20 = vrot.slane %v3016_v39, 4  ;;  %v3021_v33 = vrot.slane %v3019_v13, 5  ;;  %v3765_v57 = vshll.u32 %v3666_v54, 16  ;;  %v3769_v19 = vshrl.u32 %v3666_v54, 16  ;;  %v11597_v21 = vld [vmem:[#allocation2 + $0x88] sm:$0xf]  ;;  %5000 = vrot.lane.b32.xlu0 %v4689_v48, %s8841_s23 }
 0x4aa   : > { %3644 = vst.msk [vmem:[#allocation3 + $0x158] sm:$0xf] %vm3159_vm5, %v3566_v56  ;;  %v11600_v47 = vrot.slane %v4720_v36, 5  ;;  %v11602_v37 = vrot.slane %v4734_v12, 5  ;;  %v4738_v50 = vshrl.u32 %v11525_v24, 16  ;;  %v3775_v31 = vshll.u32 %v3667_v3, 16  ;;  %3109 = vrot.lane.b32.xlu1 %v2966_v38, %s8841_s23 }
 0x4ab   : > { %v3227_v9 = vld [vmem:[#allocation2 + $0x8c] sm:$0x1]  ;;  %v11611_v54 = vrot.slane %v2987_v45, 5  ;;  %v11613_v40 = vrot.slane %v3765_v57, 5  ;;  %v3771_v39 = vrot.slane %v3769_v19, 4  ;;  %v2483_v36 = vsel %vm9923_vm9, %v2434_v32, %v2482_v55  ;;  %v3532_v45 = vpop.permute.xlu1 %3531 }
 0x4ac   : > { %v2505_v12 = vld [vmem:[#allocation2 + $0xa8] sm:$0x1]  ;;  %v3669_v13 = vld [vmem:[#allocation2 + $0x34] sm:$0xf]  ;;  %v11623_v24 = vrot.slane %v4717_v6, 4  ;;  %v11625_v4 = vrot.slane %v4731_v59, 4  ;;  %v3008_v2 = vor.u32 %v3007_v25, %v11514_v29  ;;  %v3022_v35 = vor.u32 %v3021_v33, %v3018_v20 }
 0x4ad   : > { %v11628_v62 = vld [vmem:[#allocation2 + $0xac] sm:$0xf]  ;;  %2484 = vst [vmem:[#allocation2 + $0xb4] sm:$0x1] %v2483_v36  ;;  %v13949_v26 = vrot.slane %v11597_v21, 5  ;;  %v3772_v1 = vor.u32 %v3771_v39, %v11613_v40  ;;  %v3777_v46 = vrot.slane %v3775_v31, 5  ;;  %v2990_v56 = vsel %vm10574_vm4, %v11587_v5, %v11611_v54  ;;  %3111 = vrot.lane.b32.xlu0 %v2980_v49, %s8841_s23 }
 0x4ae   : > { %v4573_v3 = vld [vmem:[#allocation2 + $0x5c] sm:$0x1]  ;;  %v3373_v58 = vrot.slane %v3227_v9, 5  ;;  %v2552_v63 = vld [vmem:[#allocation2 + $0xb0] sm:$0x1]  ;;  %v4723_v7 = vsel %vm10574_vm4, %v11623_v24, %v11600_v47  ;;  %v4740_v48 = vrot.slane %v4738_v50, 4  ;;  %v4737_v38 = vsel %vm10574_vm4, %v11625_v4, %v11602_v37  ;;  %5002 = vrot.lane.b32.xlu1 %v4699_v61, %s8841_s23 }
 0x4af   : > { %3627 = vst.msk [vmem:[#allocation3 + $0x4] sm:$0xf] %vm3159_vm5, %v3532_v45  ;;  %v3372_v6 = vrot.slane %v13949_v26, 4  ;;  %v2553_v59 = vsel %vm10053_vm11, %v2505_v12, %v2552_v63  ;;  %v3670_v25 = vld [vmem:[#allocation2 + $0x38] sm:$0x1]  ;;  %v3025_v20 = vshll.u32 %v11628_v62, 16  ;;  %v4366_v39 = vpop.permute.xlu1 %4365  ;;  %v3556_v45 = vpop.permute.xlu0 %3555 }
 0x4b0   : > { %v11641_v32 = vld [vmem:[#allocation2 + $0x64] sm:$0xf]  ;;  %v2584_v55 = vld [vmem:[#allocation2 + $0x78] sm:$0xf]  ;;  %v3029_v33 = vshrl.u32 %v11628_v62, 16  ;;  %v3773_v57 = vrot.slane %v3772_v1, 4 }
 0x4b1   : > { %2554 = vst [vmem:[#allocation2 + $0xb0] sm:$0x1] %v2553_v59  ;;  %v11650_v19 = vld [vmem:[#allocation2 + $0x60] sm:$0xf]  ;;  %2616 = vst.msk [vmem:[#allocation3 + $0x190] sm:$0xf] %vm2286_vm6, %v2584_v55  ;;  %v3374_v50 = vsel %vm10543_vm3, %v3372_v6, %v3373_v58 }
 0x4b2   : > { %v2669_v5 = vld [vmem:[#allocation2 + $0xa4] sm:$0x1]  ;;  %v3789_v31 = vshll.u32 %v3669_v13, 16  ;;  %v3793_v9 = vshrl.u32 %v3669_v13, 16  ;;  %v2575_v54 = vld [vmem:[#allocation2 + $0x40] sm:$0xf]  ;;  %v3778_v51 = vsel %vm10574_vm4, %v3773_v57, %v3777_v46  ;;  %v4741_v13 = vor.u32 %v4740_v48, %v11602_v37  ;;  %3113 = vrot.lane.b32.xlu1 %v2990_v56, %s8841_s23 }
 0x4b3   : > { %v11665_v36 = vrot.slane %v3008_v2, 4  ;;  %v11667_v12 = vrot.slane %v3022_v35, 4  ;;  %v4744_v14 = vshll.u32 %v4573_v3, 16  ;;  %3458 = vst.msk [vmem:[#allocation3 + $0x1d0] sm:$0xf] %vm2286_vm6, %v3374_v50  ;;  %v3799_v1 = vshll.u32 %v3670_v25, 16  ;;  %v3570_v61 = vpop.permute.xlu1 %3569 }
 0x4b4   : > { %v11672_v49 = vld [vmem:[#allocation2 + $0x94] sm:$0xf]  ;;  %2607 = vst.msk [vmem:[#allocation3 + $0xdc] sm:$0xf] %vm2286_vm6, %v2575_v54  ;;  %v3491_v62 = vld [vmem:[#allocation2 + $0x9c] sm:$0xf] }
 0x4b5   : > { %4460 = vst.msk [vmem:[#allocation3 + $0x1c] sm:$0xf] %vm3159_vm5, %v4366_v39  ;;  %v11678_v2 = vrot.slane %v3789_v31, 5  ;;  %v3795_v35 = vrot.slane %v3793_v9, 4  ;;  %3639 = vst.msk [vmem:[#allocation3 + $0xf4] sm:$0xf] %vm3159_vm5, %v3556_v45  ;;  %3579 = vrot.lane.b32.xlu0 %v3491_v62, %s8841_s23  ;;  %v3560_v9 = vpop.permute.xlu0 %3559 }
 0x4b6   : > { %4128 = vst.msk [vmem:[#allocation3 + $0x6c] sm:$0xf] %vm2286_vm6, %v3778_v51  ;;  %v3011_v46 = vshll.u32 %v2669_v5, 16  ;;  %v11687_v3 = vrot.slane %v3025_v20, 5  ;;  %v4758_v58 = vshll.u32 %v11641_v32, 16  ;;  %v4762_v63 = vshrl.u32 %v11641_v32, 16  ;;  %5006 = vrot.lane.b32.xlu1 %v4723_v7, %s8841_s23 }
 0x4b7   : > { %v3230_v48 = vld [vmem:[#allocation2 + $0x98] sm:$0x1]  ;;  %v2555_v6 = vld [vmem:[#allocation2 + $0xbc] sm:$0x1]  ;;  %v11692_v59 = vld [vmem:[#allocation2 + $0x54] sm:$0xe]  ;;  %v3796_v25 = vor.u32 %v3795_v35, %v11678_v2  ;;  %v4370_v56 = vpop.permute.xlu1 %4369 }
 0x4b8   : > { %v3801_v55 = vrot.slane %v3799_v1, 5  ;;  %v4749_v57 = vshrl.u32 %v11650_v19, 16  ;;  %v4752_v11 = vshll.u32 %v11650_v19, 16  ;;  %v2506_v30 = vld [vmem:[#allocation2 + $0xb4] sm:$0x1]  ;;  %v3028_v32 = vsel %vm10574_vm4, %v11667_v12, %v11687_v3 }
 0x4b9   : > { %v11701_v20 = vrot.slane %v4744_v14, 5  ;;  %v11703_v5 = vrot.slane %v3029_v33, 4  ;;  %v13948_v50 = vrot.slane %v11672_v49, 5  ;;  %v2673_v31 = vld [vmem:[#allocation2 + $0xb4] sm:$0xf]  ;;  %v11707_v54 = vrot.slane %v4741_v13, 4  ;;  %4379 = vrot.lane.b32.xlu0 %v11402_v42, %s8841_s23 }
 0x4ba   : > { %3646 = vst.msk [vmem:[#allocation3 + $0x180] sm:$0xf] %vm3159_vm5, %v3570_v61  ;;  %v3797_v19 = vrot.slane %v3796_v25, 4  ;;  %v11709_v39 = vld [vmem:[#allocation2 + $0x68] sm:$0x1]  ;;  %v3380_v51 = vrot.slane %v3230_v48, 5  ;;  %v2556_v62 = vsel %vm10053_vm11, %v2506_v30, %v2555_v6 }
 0x4bb   : > { %v2674_v45 = vld [vmem:[#allocation2 + $0xb8] sm:$0xf]  ;;  %3641 = vst.msk [vmem:[#allocation3 + $0x11c] sm:$0xf] %vm3159_vm5, %v3560_v9  ;;  %v3013_v33 = vrot.slane %v3011_v46, 5  ;;  %v11715_v35 = vrot.slane %v4758_v58, 5  ;;  %v4747_v46 = vsel %vm10574_vm4, %v11707_v54, %v11701_v20  ;;  %v3032_v58 = vor.u32 %v11703_v5, %v11687_v3  ;;  %v3574_v7 = vpop.permute.xlu1 %3573 }
 0x4bc   : > { %v2672_v14 = vld [vmem:[#allocation2 + $0xb0] sm:$0x1]  ;;  %v4764_v1 = vrot.slane %v4762_v63, 4  ;;  %v3379_v13 = vrot.slane %v13948_v50, 4  ;;  %2557 = vst [vmem:[#allocation2 + $0xbc] sm:$0x1] %v2556_v62  ;;  %v3802_v48 = vsel %vm10574_vm4, %v3797_v19, %v3801_v55 }
 0x4bd   : > { %v4751_v6 = vrot.slane %v4749_v57, 4  ;;  %v4754_v25 = vrot.slane %v4752_v11, 5  ;;  %v3040_v30 = vshrl.u32 %v2673_v31, 16  ;;  %v3672_v61 = vld [vmem:[#allocation2 + $0x40] sm:$0xf]  ;;  %v7741_v63 = vrot.slane %v11692_v59, 9  ;;  %v3564_v57 = vpop.permute.xlu0 %3563  ;;  %5004 = vrot.lane.b32.xlu0 %v4713_v53, %s8841_s23 }
 0x4be   : > { %4130 = vst.msk [vmem:[#allocation3 + $0x94] sm:$0xf] %vm2286_vm6, %v3802_v48  ;;  %v3381_v42 = vsel %vm10543_vm3, %v3379_v13, %v3380_v51  ;;  %v3673_v55 = vld [vmem:[#allocation2 + $0x44] sm:$0x1]  ;;  %v3035_v11 = vshll.u32 %v2672_v14, 16  ;;  %v3049_v9 = vshll.u32 %v2674_v45, 16  ;;  %v4765_v5 = vor.u32 %v4764_v1, %v11715_v35 }
 0x4bf   : > { %4462 = vst.msk [vmem:[#allocation3 + $0x44] sm:$0xf] %vm3159_vm5, %v4370_v56  ;;  %v3053_v19 = vshrl.u32 %v2674_v45, 16  ;;  %v3043_v62 = vshll.u32 %v2673_v31, 16  ;;  %v4578_v50 = vld [vmem:[#allocation2 + $0x70] sm:$0xf]  ;;  %v4755_v31 = vor.u32 %v4754_v25, %v4751_v6  ;;  %v3014_v15 = vsel %vm10574_vm4, %v11665_v36, %v3013_v33 }
 0x4c0   : > { %3460 = vst.msk [vmem:[#allocation3 + $0x1f8] sm:$0xf] %vm2286_vm6, %v3381_v42  ;;  %v4768_v51 = vshll.u32 %v11709_v39, 16  ;;  %v3813_v14 = vshll.u32 %v3672_v61, 16  ;;  %v3817_v13 = vshrl.u32 %v3672_v61, 16  ;;  %v3042_v45 = vrot.slane %v3040_v30, 4  ;;  %3117 = vrot.lane.b32.xlu1 %v3014_v15, %s8841_s23 }
 0x4c1   : > { %3643 = vst.msk [vmem:[#allocation3 + $0x144] sm:$0xf] %vm3159_vm5, %v3564_v57  ;;  %v2435_v48 = vld [vmem:[#allocation2 + $0xc8] sm:$0x1]  ;;  %v2577_v56 = vld [vmem:[#allocation2 + $0x4c] sm:$0xf]  ;;  %3115 = vrot.lane.b32.xlu0 %v3004_v16, %s8841_s23  ;;  %v3064_v60 = vpop.permute.xlu0 %3063 }
 0x4c2   : > { %v3045_v42 = vrot.slane %v3043_v62, 5  ;;  %v3823_v47 = vshll.u32 %v3673_v55, 16  ;;  %2609 = vst.msk [vmem:[#allocation3 + $0x104] sm:$0xf] %vm2286_vm6, %v2577_v56  ;;  %v4496_v24 = vld [vmem:[#allocation2 + $0x30] sm:$0xf] }
 0x4c3   : > { %v11751_v39 = vrot.slane %v3813_v14, 5  ;;  %v3819_v1 = vrot.slane %v3817_v13, 4  ;;  %v4782_v61 = vshll.u32 %v4578_v50, 16  ;;  %v4786_v57 = vshrl.u32 %v4578_v50, 16  ;;  %v2485_v26 = vld [vmem:[#allocation2 + $0xc0] sm:$0x1] }
 0x4c4   : > { %4528 = vst.msk [vmem:[#allocation3 + $0x5c] sm:$0xf] %vm2286_vm6, %v4496_v24  ;;  %v11758_v18 = vrot.slane %v3035_v11, 5  ;;  %v2675_v53 = vld [vmem:[#allocation2 + $0xbc] sm:$0x1]  ;;  %v11760_v6 = vrot.slane %v3049_v9, 5  ;;  %v3046_v11 = vor.u32 %v3045_v42, %v3042_v45  ;;  %5010 = vrot.lane.b32.xlu1 %v4747_v46, %s8841_s23 }
 0x4c5   : > { %3648 = vst.msk [vmem:[#allocation3 + $0x1a8] sm:$0xf] %vm3159_vm5, %v3574_v7  ;;  %v3055_v25 = vrot.slane %v3053_v19, 4  ;;  %v4579_v30 = vld [vmem:[#allocation2 + $0x74] sm:$0x1]  ;;  %v3033_v55 = vrot.slane %v3032_v58, 4  ;;  %v3820_v62 = vor.u32 %v3819_v1, %v11751_v39  ;;  %v2486_v58 = vsel %vm9923_vm9, %v2435_v48, %v2485_v26 }
 0x4c6   : > { %v11763_v50 = vrot.slane %v4768_v51, 5  ;;  %v3825_v14 = vrot.slane %v3823_v47, 5  ;;  %v11766_v13 = vld [vmem:[#allocation2 + $0xa0] sm:$0xf]  ;;  %v11774_v36 = vrot.slane %v4765_v5, 4  ;;  %v11776_v33 = vrot.slane %v4755_v31, 4  ;;  %v4374_v51 = vpop.permute.xlu1 %4373 }
 0x4c7   : > { %v11780_v9 = vld [vmem:[#allocation2 + $0x70] sm:$0xf]  ;;  %v3233_v19 = vld [vmem:[#allocation2 + $0xa4] sm:$0x1]  ;;  %v3059_v56 = vshll.u32 %v2675_v53, 16  ;;  %v3821_v47 = vrot.slane %v3820_v62, 4  ;;  %v3038_v16 = vsel %vm10574_vm4, %v3033_v55, %v11758_v18  ;;  %v3056_v48 = vor.u32 %v3055_v25, %v11760_v6 }
 0x4c8   : > { %v11782_v24 = vrot.slane %v4782_v61, 5  ;;  %v4788_v7 = vrot.slane %v4786_v57, 4  ;;  %2487 = vst [vmem:[#allocation2 + $0xc0] sm:$0x1] %v2486_v58  ;;  %v3659_v29 = vld [vmem:[#allocation2 + $0xc] sm:$0xf]  ;;  %v4771_v59 = vsel %vm10574_vm4, %v11774_v36, %v11763_v50  ;;  %3121 = vrot.lane.b32.xlu1 %v3038_v16, %s8841_s23 }
 0x4c9   : > { %4464 = vst.msk [vmem:[#allocation3 + $0x6c] sm:$0xf] %vm3159_vm5, %v4374_v51  ;;  %v14137_v26 = vrot.slane %v14136_v44, 5  ;;  %v4181_v31 = vld [vmem:[#allocation2 + $0x74] sm:$0x1]  ;;  %v13952_v45 = vrot.slane %v11766_v13, 5 }
 0x4ca   : > { %3160 = vst.msk [vmem:[#allocation3] sm:$0xf] %vm3159_vm5, %v3064_v60  ;;  %v3493_v42 = vld [vmem:[#allocation2 + $0xa8] sm:$0xf]  ;;  %v4792_v1 = vshll.u32 %v4579_v30, 16  ;;  %v3387_v61 = vrot.slane %v3233_v19, 5  ;;  %v3578_v25 = vpop.permute.xlu1 %3577  ;;  %v4761_v30 = vsel %vm10574_vm4, %v11776_v33, %v11715_v35  ;;  %v4789_v50 = vor.u32 %v4788_v7, %v11782_v24 }
 0x4cb   : > { %v11794_v5 = vsel %vm10543_vm3, %v7741_v63, %v14137_v26  ;;  %v3826_v63 = vsel %vm10574_vm4, %v3821_v47, %v3825_v14  ;;  %v2586_v57 = vld [vmem:[#allocation2 + $0x84] sm:$0xf]  ;;  %3583 = vrot.lane.b32.xlu0 %v3493_v42, %s8841_s23  ;;  %v11812_v15 = vrot.slane %v3046_v11, 4  ;;  %v4309_v20 = vrot.slane %v11780_v9, 5  ;;  %v11816_v54 = vld [vmem:[#allocation2 + $0x60] sm:$0xe]  ;;  %v3068_v11 = vpop.permute.xlu0 %3067 }
 0x4cc   : > { %4132 = vst.msk [vmem:[#allocation3 + $0xbc] sm:$0xf] %vm2286_vm6, %v3826_v63  ;;  %v3386_v46 = vrot.slane %v13952_v45, 4  ;;  %v3708_v18 = vshrl.u32 %v3659_v29, 16  ;;  %v4577_v53 = vld [vmem:[#allocation2 + $0x6c] sm:$0xf]  ;;  %5014 = vrot.lane.b32.xlu1 %v4771_v59, %s8841_s23 }
 0x4cd   : > { %2618 = vst.msk [vmem:[#allocation3 + $0x1b8] sm:$0xf] %vm2286_vm6, %v2586_v57  ;;  %v11825_v55 = vrot.slane %v3059_v56, 5  ;;  %v3711_v62 = vshll.u32 %v3659_v29, 16  ;;  %v4581_v14 = vld [vmem:[#allocation2 + $0x7c] sm:$0xf] }
 0x4ce   : > { %v2579_v36 = vld [vmem:[#allocation2 + $0x58] sm:$0xf]  ;;  %3650 = vst.msk [vmem:[#allocation3 + $0x1d0] sm:$0xf] %vm3159_vm5, %v3578_v25  ;;  %v11829_v58 = vrot.slane %v3056_v48, 4  ;;  %v4312_v19 = vrot.slane %v4181_v31, 5  ;;  %v3388_v51 = vsel %vm10543_vm3, %v3386_v46, %v3387_v61  ;;  %v3052_v48 = vsel %vm10574_vm4, %v11812_v15, %v11760_v6 }
 0x4cf   : > { %v3710_v47 = vrot.slane %v3708_v18, 4  ;;  %v3675_v60 = vld [vmem:[#allocation2 + $0x4c] sm:$0xf]  ;;  %2611 = vst.msk [vmem:[#allocation3 + $0x12c] sm:$0xf] %vm2286_vm6, %v2579_v36  ;;  %v11836_v56 = vrot.slane %v4792_v1, 5  ;;  %4383 = vrot.lane.b32.xlu0 %v11579_v43, %s8841_s23  ;;  %v4378_v1 = vpop.permute.xlu1 %4377 }
 0x4d0   : > { %3162 = vst.msk [vmem:[#allocation3 + $0x28] sm:$0xf] %vm3159_vm5, %v3068_v11  ;;  %v3713_v7 = vrot.slane %v3711_v62, 5  ;;  %v4773_v29 = vshrl.u32 %v4577_v53, 16  ;;  %v4776_v44 = vshll.u32 %v4577_v53, 16  ;;  %v4311_v31 = vrot.slane %v4309_v20, 4  ;;  %v3072_v53 = vpop.permute.xlu0 %3071 }
 0x4d1   : > { %3462 = vst.msk [vmem:[#allocation3 + $0x220] sm:$0xf] %vm2286_vm6, %v3388_v51  ;;  %v3676_v26 = vld [vmem:[#allocation2 + $0x50] sm:$0x1]  ;;  %v4582_v16 = vld [vmem:[#allocation2 + $0x80] sm:$0x1]  ;;  %v3062_v61 = vsel %vm10574_vm4, %v11829_v58, %v11825_v55 }
 0x4d2   : > { %v4806_v42 = vshll.u32 %v4581_v14, 16  ;;  %v4810_v63 = vshrl.u32 %v4581_v14, 16  ;;  %v11851_v57 = vrot.slane %v4789_v50, 4  ;;  %v7742_v43 = vrot.slane %v11816_v54, 9  ;;  %v4584_v18 = vld [vmem:[#allocation2 + $0x88] sm:$0xf]  ;;  %3125 = vrot.lane.b32.xlu1 %v3062_v61, %s8841_s23 }
 0x4d3   : > { %v3714_v46 = vor.u32 %v3713_v7, %v3710_v47  ;;  %4466 = vst.msk [vmem:[#allocation3 + $0x94] sm:$0xf] %vm3159_vm5, %v4378_v1  ;;  %v11857_v25 = vsel %vm10543_vm3, %v4311_v31, %v4312_v19  ;;  %v11859_v62 = vld [vmem:[#allocation2 + $0x7c] sm:$0xf]  ;;  %v3837_v14 = vshll.u32 %v3675_v60, 16  ;;  %v3841_v36 = vshrl.u32 %v3675_v60, 16  ;;  %5008 = vrot.lane.b32.xlu0 %v4737_v38, %s8841_s23 }
 0x4d4   : > { %v3847_v11 = vshll.u32 %v3676_v26, 16  ;;  %v4580_v51 = vld [vmem:[#allocation2 + $0x78] sm:$0xf]  ;;  %3164 = vst.msk [vmem:[#allocation3 + $0x50] sm:$0xf] %vm3159_vm5, %v3072_v53  ;;  %v4816_v55 = vshll.u32 %v4582_v16, 16  ;;  %v3076_v1 = vpop.permute.xlu0 %3075 }
 0x4d5   : > { %v3715_v54 = vrot.slane %v3714_v46, 4  ;;  %v4775_v50 = vrot.slane %v4773_v29, 4  ;;  %v4778_v58 = vrot.slane %v4776_v44, 5  ;;  %v2581_v47 = vld [vmem:[#allocation2 + $0x64] sm:$0xf]  ;;  %v11869_v19 = vrot.slane %v4806_v42, 5  ;;  %v3582_v29 = vpop.permute.xlu1 %3581 }
 0x4d6   : > { %v11871_v60 = vrot.slane %v4810_v63, 4  ;;  %v11873_v7 = vld [vmem:[#allocation2 + $0x80] sm:$0x1]  ;;  %v11875_v26 = vrot.slane %v3837_v14, 5  ;;  %v3843_v59 = vrot.slane %v3841_v36, 4  ;;  %v4795_v44 = vsel %vm10574_vm4, %v11851_v57, %v11836_v56 }
 0x4d7   : > { %v3219_v31 = vld [vmem:[#allocation2 + $0x6c] sm:$0xe]  ;;  %2613 = vst.msk [vmem:[#allocation3 + $0x154] sm:$0xf] %vm2286_vm6, %v2581_v47  ;;  %v14138_v37 = vrot.slane %v11016_v17, 5  ;;  %v3720_v38 = vsel %vm10574_vm4, %v3715_v54, %v11433_v0  ;;  %v4830_v42 = vshll.u32 %v4584_v18, 16  ;;  %v4779_v0 = vor.u32 %v4778_v58, %v4775_v50  ;;  %3119 = vrot.lane.b32.xlu0 %v3028_v32, %s8841_s23  ;;  %5018 = vrot.lane.b32.xlu1 %v4795_v44, %s8841_s23 }
 0x4d8   : > { %v4179_v16 = vld [vmem:[#allocation2 + $0x6c] sm:$0xe]  ;;  %3652 = vst.msk [vmem:[#allocation3 + $0x1f8] sm:$0xf] %vm3159_vm5, %v3582_v29  ;;  %v3844_v56 = vor.u32 %v3843_v59, %v11875_v26  ;;  %v3849_v17 = vrot.slane %v3847_v11, 5  ;;  %v4834_v57 = vshrl.u32 %v4584_v18, 16  ;;  %v4813_v18 = vor.u32 %v11871_v60, %v11869_v19 }
 0x4d9   : > { %v11886_v4 = vsel %vm10543_vm3, %v7742_v43, %v14138_v37  ;;  %v11891_v63 = vld [vmem:[#allocation2 + $0xac] sm:$0xf]  ;;  %4123 = vst.msk [vmem:[#allocation3 + $0x8] sm:$0xf] %vm2286_vm6, %v3720_v38  ;;  %v4797_v46 = vshrl.u32 %v4580_v51, 16  ;;  %v4316_v14 = vrot.slane %v11859_v62, 5 }
 0x4da   : > { %v11896_v43 = vld [vmem:[#allocation2 + $0xb0] sm:$0x1]  ;;  %v3662_v53 = vld [vmem:[#allocation2 + $0x18] sm:$0xf]  ;;  %3166 = vst.msk [vmem:[#allocation3 + $0x78] sm:$0xf] %vm3159_vm5, %v3076_v1 }
 0x4db   : > { %v4800_v36 = vshll.u32 %v4580_v51, 16  ;;  %v7728_v54 = vrot.slane %v3219_v31, 9  ;;  %v4493_v47 = vld [vmem:[#allocation2 + $0x1c] sm:$0xf]  ;;  %v11909_v11 = vrot.slane %v4816_v55, 5  ;;  %v7743_v59 = vrot.slane %v4179_v16, 9  ;;  %v4382_v31 = vpop.permute.xlu1 %4381  ;;  %v3080_v55 = vpop.permute.xlu0 %3079  ;;  %4397 = vrot.lane.b32.xlu1 %v11857_v25, %s8841_s23 }
 0x4dc   : > { %v3845_v61 = vrot.slane %v3844_v56, 4  ;;  %v11911_v50 = vld [vmem:[#allocation2 + $0x8c] sm:$0x1]  ;;  %v11913_v58 = vld [vmem:[#allocation2 + $0x88] sm:$0xf]  ;;  %v4319_v29 = vrot.slane %v11873_v7, 5 }
 0x4dd   : > { %4525 = vst.msk [vmem:[#allocation3 + $0x20] sm:$0xf] %vm2286_vm6, %v4493_v47  ;;  %v4498_v51 = vld [vmem:[#allocation2 + $0x3c] sm:$0xf]  ;;  %v11917_v37 = vrot.slane %v4830_v42, 5  ;;  %v4836_v12 = vrot.slane %v4834_v57, 4  ;;  %v3357_v3 = vsel %vm10543_vm3, %v7728_v54, %v3356_v34  ;;  %v11948_v44 = vsel %vm10543_vm3, %v7743_v59, %v4309_v20 }
 0x4de   : > { %v11923_v32 = vld [vmem:[#allocation2 + $0x78] sm:$0xe]  ;;  %4530 = vst.msk [vmem:[#allocation3 + $0x84] sm:$0xf] %vm2286_vm6, %v4498_v51  ;;  %v3495_v60 = vld [vmem:[#allocation2 + $0xb4] sm:$0xf]  ;;  %v3850_v38 = vsel %vm10574_vm4, %v3845_v61, %v3849_v17 }
 0x4df   : > { %4468 = vst.msk [vmem:[#allocation3 + $0xbc] sm:$0xf] %vm3159_vm5, %v4382_v31  ;;  %v4799_v7 = vrot.slane %v4797_v46, 4  ;;  %v4802_v16 = vrot.slane %v4800_v36, 5  ;;  %v13951_v10 = vrot.slane %v11891_v63, 5  ;;  %v11935_v34 = vrot.slane %v4779_v0, 4  ;;  %3587 = vrot.lane.b32.xlu0 %v3495_v60, %s8841_s23  ;;  %v3070_v61 = vpop.permute.xlu1 %3069  ;;  %v3084_v20 = vpop.permute.xlu0 %3083 }
 0x4e0   : > { %3453 = vst.msk [vmem:[#allocation3 + $0x16c] sm:$0xf] %vm2286_vm6, %v3357_v3  ;;  %v11931_v42 = vld [vmem:[#allocation2 + $0x84] sm:$0xf]  ;;  %v4318_v1 = vrot.slane %v4316_v14, 4  ;;  %v3394_v17 = vrot.slane %v11896_v43, 5  ;;  %v4837_v43 = vor.u32 %v4836_v12, %v11917_v37 }
 0x4e1   : > { %3168 = vst.msk [vmem:[#allocation3 + $0xa0] sm:$0xf] %vm3159_vm5, %v3080_v55  ;;  %v11940_v56 = vld [vmem:[#allocation2 + $0x8c] sm:$0x1]  ;;  %v3732_v57 = vshrl.u32 %v3662_v53, 16  ;;  %v4814_v36 = vrot.slane %v4813_v18, 4  ;;  %v4803_v59 = vor.u32 %v4802_v16, %v4799_v7  ;;  %v4785_v12 = vsel %vm10574_vm4, %v11935_v34, %v11782_v24 }
 0x4e2   : > { %4134 = vst.msk [vmem:[#allocation3 + $0xe4] sm:$0xf] %vm2286_vm6, %v3850_v38  ;;  %v2583_v46 = vld [vmem:[#allocation2 + $0x70] sm:$0xf]  ;;  %v3393_v0 = vrot.slane %v13951_v10, 4  ;;  %v3735_v54 = vshll.u32 %v3662_v53, 16 }
 0x4e3   : > { %2615 = vst.msk [vmem:[#allocation3 + $0x17c] sm:$0xf] %vm2286_vm6, %v2583_v46  ;;  %v2588_v47 = vld [vmem:[#allocation2 + $0x90] sm:$0xf]  ;;  %v4840_v51 = vshll.u32 %v11911_v50, 16  ;;  %v4323_v18 = vrot.slane %v11913_v58, 5  ;;  %v4819_v50 = vsel %vm10574_vm4, %v4814_v36, %v11909_v11  ;;  %4387 = vrot.lane.b32.xlu0 %v11794_v5, %s8841_s23  ;;  %v3586_v36 = vpop.permute.xlu1 %3585 }
 0x4e4   : > { %v3734_v31 = vrot.slane %v3732_v57, 4  ;;  %v4587_v9 = vld [vmem:[#allocation2 + $0x94] sm:$0xf]  ;;  %2620 = vst.msk [vmem:[#allocation3 + $0x1e0] sm:$0xf] %vm2286_vm6, %v2588_v47  ;;  %v7744_v53 = vrot.slane %v11923_v32, 9  ;;  %v3395_v3 = vsel %vm10543_vm3, %v3393_v0, %v3394_v17  ;;  %v4320_v32 = vsel %vm10543_vm3, %v4318_v1, %v4319_v29  ;;  %5022 = vrot.lane.b32.xlu1 %v4819_v50, %s8841_s23 }
 0x4e5   : > { %3163 = vst.msk [vmem:[#allocation3 + $0x3c] sm:$0xf] %vm3159_vm5, %v3070_v61  ;;  %v3737_v55 = vrot.slane %v3735_v54, 5  ;;  %3170 = vst.msk [vmem:[#allocation3 + $0xc8] sm:$0xf] %vm3159_vm5, %v3084_v20  ;;  %v4821_v38 = vshrl.u32 %v11931_v42, 16 }
 0x4e6   : > { %3464 = vst.msk [vmem:[#allocation3 + $0x248] sm:$0xf] %vm2286_vm6, %v3395_v3  ;;  %v11974_v60 = vld [vmem:[#allocation2 + $0x98] sm:$0x1]  ;;  %v3679_v25 = vld [vmem:[#allocation2 + $0x5c] sm:$0x1] }
 0x4e7   : > { %v3678_v7 = vld [vmem:[#allocation2 + $0x58] sm:$0xf]  ;;  %v4326_v11 = vrot.slane %v11940_v56, 5  ;;  %v3738_v16 = vor.u32 %v3737_v55, %v3734_v31  ;;  %v4854_v17 = vshll.u32 %v4587_v9, 16  ;;  %v4824_v57 = vshll.u32 %v11931_v42, 16  ;;  %v3088_v56 = vpop.permute.xlu0 %3087  ;;  %5012 = vrot.lane.b32.xlu0 %v4761_v30, %s8841_s23  ;;  %v3074_v35 = vpop.permute.xlu1 %3073 }
 0x4e8   : > { %v4495_v46 = vld [vmem:[#allocation2 + $0x28] sm:$0xf]  ;;  %v11981_v29 = vrot.slane %v4837_v43, 4  ;;  %v11983_v1 = vrot.slane %v4840_v51, 5  ;;  %v4325_v0 = vrot.slane %v4323_v18, 4  ;;  %v4858_v54 = vshrl.u32 %v4587_v9, 16  ;;  %4401 = vrot.lane.b32.xlu1 %v4320_v32, %s8841_s23 }
 0x4e9   : > { %v11987_v47 = vld [vmem:[#allocation2 + $0x94] sm:$0xf]  ;;  %v11989_v61 = vld [vmem:[#allocation2 + $0x84] sm:$0xe]  ;;  %v11991_v5 = vld [vmem:[#allocation2 + $0xa0] sm:$0xf]  ;;  %v12001_v43 = vsel %vm10543_vm3, %v7744_v53, %v4316_v14 }
 0x4ea   : > { %4527 = vst.msk [vmem:[#allocation3 + $0x48] sm:$0xf] %vm2286_vm6, %v4495_v46  ;;  %v11995_v42 = vrot.slane %v4803_v59, 4  ;;  %v3739_v51 = vrot.slane %v3738_v16, 4  ;;  %v12003_v31 = vrot.slane %v4821_v38, 4  ;;  %v12007_v20 = vrot.slane %v4824_v57, 5 }
 0x4eb   : > { %3654 = vst.msk [vmem:[#allocation3 + $0x220] sm:$0xf] %vm3159_vm5, %v3586_v36  ;;  %v2507_v9 = vld [vmem:[#allocation2 + $0xc0] sm:$0x1]  ;;  %3172 = vst.msk [vmem:[#allocation3 + $0xf0] sm:$0xf] %vm3159_vm5, %v3088_v56  ;;  %v12017_v62 = vsel %vm10543_vm3, %v4325_v0, %v4326_v11  ;;  %3123 = vrot.lane.b32.xlu0 %v3052_v48, %s8841_s23 }
 0x4ec   : > { %v3861_v3 = vshll.u32 %v3678_v7, 16  ;;  %v3865_v55 = vshrl.u32 %v3678_v7, 16  ;;  %v3871_v59 = vshll.u32 %v3679_v25, 16  ;;  %v2585_v46 = vld [vmem:[#allocation2 + $0x7c] sm:$0xf]  ;;  %v3744_v14 = vsel %vm10574_vm4, %v3739_v51, %v11486_v8 }
 0x4ed   : > { %v12022_v53 = vrot.slane %v4854_v17, 5  ;;  %v4864_v50 = vshll.u32 %v11974_v60, 16  ;;  %v12025_v38 = vld [vmem:[#allocation2 + $0x98] sm:$0x1]  ;;  %v12027_v7 = vld [vmem:[#allocation2 + $0x90] sm:$0xf]  ;;  %v3092_v60 = vpop.permute.xlu0 %3091  ;;  %v4843_v17 = vsel %vm10574_vm4, %v11981_v29, %v11983_v1  ;;  %v4827_v27 = vor.u32 %v12007_v20, %v12003_v31 }
 0x4ee   : > { %v2558_v25 = vld [vmem:[#allocation2 + $0xc8] sm:$0x1]  ;;  %2617 = vst.msk [vmem:[#allocation3 + $0x1a4] sm:$0xf] %vm2286_vm6, %v2585_v46  ;;  %4125 = vst.msk [vmem:[#allocation3 + $0x30] sm:$0xf] %vm2286_vm6, %v3744_v14  ;;  %v4809_v32 = vsel %vm10574_vm4, %v11995_v42, %v11869_v19  ;;  %5026 = vrot.lane.b32.xlu1 %v4843_v17, %s8841_s23 }
 0x4ef   : > { %v12031_v33 = vrot.slane %v4858_v54, 4  ;;  %v12033_v30 = vrot.slane %v3861_v3, 5  ;;  %v3867_v11 = vrot.slane %v3865_v55, 4  ;;  %v3222_v8 = vld [vmem:[#allocation2 + $0x78] sm:$0xe]  ;;  %v2559_v16 = vsel %vm10053_vm11, %v2507_v9, %v2558_v25 }
 0x4f0   : > { %3165 = vst.msk [vmem:[#allocation3 + $0x64] sm:$0xf] %vm3159_vm5, %v3074_v35  ;;  %v4330_v57 = vrot.slane %v11987_v47, 5  ;;  %v7745_v36 = vrot.slane %v11989_v61, 9  ;;  %v4878_v0 = vshll.u32 %v11991_v5, 16  ;;  %v3873_v29 = vrot.slane %v3871_v59, 5  ;;  %v4386_v59 = vpop.permute.xlu1 %4385 }
 0x4f1   : > { %v12045_v54 = vld [vmem:[#allocation2 + $0xb8] sm:$0xf]  ;;  %2560 = vst [vmem:[#allocation2 + $0xc8] sm:$0x1] %v2559_v16  ;;  %v4497_v56 = vld [vmem:[#allocation2 + $0x34] sm:$0xf]  ;;  %v3868_v51 = vor.u32 %v3867_v11, %v12033_v30  ;;  %v4861_v46 = vor.u32 %v12031_v33, %v12022_v53  ;;  %v3096_v35 = vpop.permute.xlu0 %3095 }
 0x4f2   : > { %3174 = vst.msk [vmem:[#allocation3 + $0x118] sm:$0xf] %vm3159_vm5, %v3092_v60  ;;  %v4882_v1 = vshrl.u32 %v11991_v5, 16  ;;  %v12053_v9 = vld [vmem:[#allocation2 + $0xbc] sm:$0x1]  ;;  %v4845_v5 = vshrl.u32 %v12027_v7, 16  ;;  %v12103_v28 = vsel %vm10543_vm3, %v7745_v36, %v4323_v18  ;;  %4405 = vrot.lane.b32.xlu1 %v12017_v62, %s8841_s23 }
 0x4f3   : > { %v12055_v61 = vld [vmem:[#allocation2 + $0x24] sm:$0xf]  ;;  %4529 = vst.msk [vmem:[#allocation3 + $0x70] sm:$0xf] %vm2286_vm6, %v4497_v56  ;;  %v4500_v3 = vld [vmem:[#allocation2 + $0x48] sm:$0xf] }
 0x4f4   : > { %v4848_v31 = vshll.u32 %v12027_v7, 16  ;;  %v7729_v20 = vrot.slane %v3222_v8, 9  ;;  %4532 = vst.msk [vmem:[#allocation3 + $0xac] sm:$0xf] %vm2286_vm6, %v4500_v3  ;;  %v2587_v55 = vld [vmem:[#allocation2 + $0x88] sm:$0xf] }
 0x4f5   : > { %v12073_v14 = vrot.slane %v4864_v50, 5  ;;  %v4333_v6 = vrot.slane %v12025_v38, 5  ;;  %v3869_v15 = vrot.slane %v3868_v51, 4  ;;  %v12076_v48 = vld [vmem:[#allocation2 + $0xa4] sm:$0x1]  ;;  %v4332_v11 = vrot.slane %v4330_v57, 4 }
 0x4f6   : > { %v12078_v25 = vld [vmem:[#allocation2 + $0xa0] sm:$0xf]  ;;  %2619 = vst.msk [vmem:[#allocation3 + $0x1cc] sm:$0xf] %vm2286_vm6, %v2587_v55  ;;  %v2590_v7 = vld [vmem:[#allocation2 + $0x9c] sm:$0xf]  ;;  %v3364_v38 = vsel %vm10543_vm3, %v7729_v20, %v3363_v41 }
 0x4f7   : > { %4470 = vst.msk [vmem:[#allocation3 + $0xe4] sm:$0xf] %vm3159_vm5, %v4386_v59  ;;  %v12084_v8 = vrot.slane %v4878_v0, 5  ;;  %v12086_v50 = vrot.slane %v4882_v1, 4  ;;  %v12092_v33 = vld [vmem:[#allocation2 + $0x90] sm:$0xe]  ;;  %v3874_v41 = vsel %vm10574_vm4, %v3869_v15, %v3873_v29  ;;  %v3078_v29 = vpop.permute.xlu1 %3077  ;;  %v12123_v3 = vsel %vm10543_vm3, %v4332_v11, %v4333_v6  ;;  %v3066_v59 = vpop.permute.xlu0 %3065 }
 0x4f8   : > { %2622 = vst.msk [vmem:[#allocation3 + $0x208] sm:$0xf] %vm2286_vm6, %v2590_v7  ;;  %v4499_v16 = vld [vmem:[#allocation2 + $0x40] sm:$0xf]  ;;  %v12097_v56 = vrot.slane %v4827_v27, 4  ;;  %v13950_v0 = vrot.slane %v12045_v54, 5 }
 0x4f9   : > { %3176 = vst.msk [vmem:[#allocation3 + $0x140] sm:$0xf] %vm3159_vm5, %v3096_v35  ;;  %v3497_v60 = vld [vmem:[#allocation2 + $0xc0] sm:$0xf]  ;;  %v2589_v51 = vld [vmem:[#allocation2 + $0x94] sm:$0xf] }
 0x4fa   : > { %3455 = vst.msk [vmem:[#allocation3 + $0x194] sm:$0xf] %vm2286_vm6, %v3364_v38  ;;  %4531 = vst.msk [vmem:[#allocation3 + $0x98] sm:$0xf] %vm2286_vm6, %v4499_v16  ;;  %3591 = vrot.lane.b32.xlu0 %v3497_v60, %s8841_s23  ;;  %v12111_v17 = vld [vmem:[#allocation3 + $0x3c] sm:$0xff]  ;;  %v12114_v58 = vrot.slane %v4845_v5, 4 }
 0x4fb   : > { %4136 = vst.msk [vmem:[#allocation3 + $0x10c] sm:$0xf] %vm2286_vm6, %v3874_v41  ;;  %v12116_v18 = vrot.slane %v4848_v31, 5  ;;  %v3401_v36 = vrot.slane %v12053_v9, 5  ;;  %v3756_v27 = vshrl.u32 %v12055_v61, 16  ;;  %v4862_v1 = vrot.slane %v4861_v46, 4 }
 0x4fc   : > { %2621 = vst.msk [vmem:[#allocation3 + $0x1f4] sm:$0xf] %vm2286_vm6, %v2589_v51  ;;  %v12125_v20 = vld [vmem:[#allocation2 + $0xa4] sm:$0x1]  ;;  %v3400_v5 = vrot.slane %v13950_v0, 4  ;;  %v3759_v31 = vshll.u32 %v12055_v61, 16  ;;  %v4885_v46 = vor.u32 %v12086_v50, %v12084_v8  ;;  %v4364_v0 = vpop.permute.xlu0 %4363 }
 0x4fd   : > { %v4589_v55 = vld [vmem:[#allocation2 + $0x9c] sm:$0xf]  ;;  %v12130_v9 = vld [vmem:[#allocation3 + $0x28] sm:$0xff]  ;;  %3167 = vst.msk [vmem:[#allocation3 + $0x8c] sm:$0xf] %vm3159_vm5, %v3078_v29  ;;  %v4888_v15 = vshll.u32 %v12076_v48, 16  ;;  %v4867_v62 = vsel %vm10574_vm4, %v4862_v1, %v12073_v14  ;;  %v4851_v41 = vor.u32 %v12116_v18, %v12114_v58 }
 0x4fe   : > { %v4337_v6 = vrot.slane %v12078_v25, 5  ;;  %v3758_v7 = vrot.slane %v3756_v27, 4  ;;  %v4593_v35 = vld [vmem:[#allocation2 + $0xac] sm:$0xf]  ;;  %3161 = vst.msk [vmem:[#allocation3 + $0x14] sm:$0xf] %vm3159_vm5, %v3066_v59  ;;  %v7773_v61 = vcombine.low %v12130_v9, %v12111_v17  ;;  %v3402_v38 = vsel %vm10543_vm3, %v3400_v5, %v3401_v36  ;;  %4391 = vrot.lane.b32.xlu0 %v11886_v4, %s8841_s23  ;;  %v3590_v27 = vpop.permute.xlu1 %3589  ;;  %5030 = vrot.lane.b32.xlu1 %v4867_v62, %s8841_s23 }
 0x4ff   : > { %v7746_v11 = vrot.slane %v12092_v33, 9  ;;  %v3761_v50 = vrot.slane %v3759_v31, 5  ;;  %v12145_v16 = vld [vmem:[#allocation2 + $0xac] sm:$0xf]  ;;  %v12147_v48 = vld [vmem:[#allocation2 + $0x64] sm:$0xf]  ;;  %v4833_v33 = vsel %vm10574_vm4, %v12097_v56, %v11917_v37 }
 0x500   : > { %v4501_v60 = vld [vmem:[#allocation2 + $0x4c] sm:$0xf]  ;;  %3466 = vst.msk [vmem:[#allocation3 + $0x270] sm:$0xf] %vm2286_vm6, %v3402_v38  ;;  %v4869_v51 = vshrl.u32 %v4589_v55, 16  ;;  %v4902_v14 = vshll.u32 %v4593_v35, 16 }
 0x501   : > { %v12161_v36 = vld [vmem:[#allocation2 + $0x68] sm:$0x1]  ;;  %4533 = vst.msk [vmem:[#allocation3 + $0xc0] sm:$0xf] %vm2286_vm6, %v4501_v60  ;;  %v4502_v4 = vld [vmem:[#allocation2 + $0x54] sm:$0xf]  ;;  %v3762_v29 = vor.u32 %v3761_v50, %v3758_v7 }
 0x502   : > { %v12164_v5 = vld [vmem:[#allocation2 + $0xb0] sm:$0x1]  ;;  %v4906_v1 = vshrl.u32 %v4593_v35, 16  ;;  %v4872_v31 = vshll.u32 %v4589_v55, 16  ;;  %4534 = vst.msk [vmem:[#allocation3 + $0xd4] sm:$0xf] %vm2286_vm6, %v4502_v4  ;;  %5016 = vrot.lane.b32.xlu0 %v4785_v12, %s8841_s23  ;;  %4409 = vrot.lane.b32.xlu1 %v12123_v3, %s8841_s23 }
 0x503   : > { %v2591_v59 = vld [vmem:[#allocation2 + $0xa0] sm:$0xf]  ;;  %3656 = vst.msk [vmem:[#allocation3 + $0x248] sm:$0xf] %vm3159_vm5, %v3590_v27  ;;  %v12168_v58 = vrot.slane %v4885_v46, 4  ;;  %v12170_v18 = vrot.slane %v4888_v15, 5  ;;  %v12186_v46 = vsel %vm10543_vm3, %v7746_v11, %v4330_v57 }
 0x504   : > { %v4339_v38 = vrot.slane %v4337_v6, 4  ;;  %v4340_v7 = vrot.slane %v12125_v20, 5  ;;  %v12175_v50 = vld [vmem:[#allocation2 + $0xb0] sm:$0x1]  ;;  %2623 = vst.msk [vmem:[#allocation3 + $0x21c] sm:$0xf] %vm2286_vm6, %v2591_v59  ;;  %v4989_v59 = vpop.permute.xlu0 %4988 }
 0x505   : > { %4459 = vst.msk [vmem:[#allocation3 + $0x8] sm:$0xf] %vm3159_vm5, %v4364_v0  ;;  %v12180_v55 = vld [vmem:[#allocation3 + $0x64] sm:$0xff]  ;;  %v3763_v15 = vrot.slane %v3762_v29, 4  ;;  %v12188_v35 = vrot.slane %v4869_v51, 4  ;;  %v12190_v20 = vrot.slane %v4872_v31, 5  ;;  %v3082_v29 = vpop.permute.xlu1 %3081 }
 0x506   : > { %v12192_v60 = vld [vmem:[#allocation2 + $0xb8] sm:$0xf]  ;;  %v2592_v4 = vld [vmem:[#allocation2 + $0xa8] sm:$0xf]  ;;  %v13953_v47 = vrot.slane %v12145_v16, 5  ;;  %v3885_v57 = vshll.u32 %v12147_v48, 16  ;;  %4395 = vrot.lane.b32.xlu0 %v11948_v44, %s8841_s23 }
 0x507   : > { %v3889_v0 = vshrl.u32 %v12147_v48, 16  ;;  %v3895_v11 = vshll.u32 %v12161_v36, 16  ;;  %v12204_v62 = vld [vmem:[#allocation2 + $0xa8] sm:$0xf]  ;;  %2624 = vst.msk [vmem:[#allocation3 + $0x230] sm:$0xf] %vm2286_vm6, %v2592_v4  ;;  %v3768_v24 = vsel %vm10574_vm4, %v3763_v15, %v11613_v40  ;;  %v4891_v40 = vsel %vm10574_vm4, %v12168_v58, %v12170_v18 }
 0x508   : > { %v4503_v51 = vld [vmem:[#allocation2 + $0x58] sm:$0xf]  ;;  %v12207_v27 = vld [vmem:[#allocation3 + $0x50] sm:$0xff]  ;;  %v12209_v31 = vrot.slane %v4851_v41, 4  ;;  %v12214_v34 = vrot.slane %v4902_v14, 5  ;;  %v12216_v12 = vrot.slane %v4906_v1, 4  ;;  %v12232_v14 = vsel %vm10543_vm3, %v4339_v38, %v4340_v7  ;;  %5034 = vrot.lane.b32.xlu1 %v4891_v40, %s8841_s23 }
 0x509   : > { %v12218_v48 = vld [vmem:[#allocation2 + $0x9c] sm:$0xe]  ;;  %v12220_v36 = vld [vmem:[#allocation2 + $0x84] sm:$0xe]  ;;  %4535 = vst.msk [vmem:[#allocation3 + $0xe8] sm:$0xf] %vm2286_vm6, %v4503_v51  ;;  %v4875_v15 = vor.u32 %v12190_v20, %v12188_v35 }
 0x50a   : > { %v8595_v4 = vld [vmem:[#allocation3] ss:$20 sps:$4 sm:$0xff]   ;;  %v8597_v10 = vld [vmem:[#allocation3 + $0x4] ss:$20 sps:$4 sm:$0xff]   ;;  %3169 = vst.msk [vmem:[#allocation3 + $0xb4] sm:$0xf] %vm3159_vm5, %v3082_v29  ;;  %5020 = vrot.lane.b32.xlu0 %v4809_v32, %s8841_s23 }
 0x50b   : > { %4127 = vst.msk [vmem:[#allocation3 + $0x58] sm:$0xf] %vm2286_vm6, %v3768_v24  ;;  %v4912_v1 = vshll.u32 %v12164_v5, 16  ;;  %v4347_v51 = vrot.slane %v12175_v50, 5  ;;  %v12245_v58 = vld [vmem:[%s13907_s4 + $0x110] sm:$0xff]   ;;  %v12247_v18 = vrot.slane %v3885_v57, 5  ;;  %6257 = vmatprep.mubr.bf16.mxu1 %v8597_v10  ;;  %v4390_v57 = vpop.permute.xlu1 %4389  ;;  %v4909_v10 = vor.u32 %v12216_v12, %v12214_v34 }
 0x50c   : > { %5084 = vst.msk [vmem:[#allocation3 + $0xc] sm:$0xf] %vm3159_vm5, %v4989_v59  ;;  %v3891_v38 = vrot.slane %v3889_v0, 4  ;;  %v2593_v7 = vld [vmem:[#allocation2 + $0xac] sm:$0xf]  ;;  %v4346_v3 = vrot.slane %v13953_v47, 4  ;;  %6258 = vmatmul.mubr.bf16.vlgmr.msra.gmra.mxu1 %v8595_v4  ;;  %v3100_v4 = vpop.permute.xlu0 %3099  ;;  %4413 = vrot.lane.b32.xlu1 %v12232_v14, %s8841_s23 }
 0x50d   : > { %v8601_v5 = vld [vmem:[#allocation3 + $0x2c] ss:$20 sps:$4 sm:$0xff]   ;;  %v3897_v35 = vrot.slane %v3895_v11, 5  ;;  %v12253_v20 = vld [vmem:[#allocation2 + $0xbc] sm:$0x1]  ;;  %v4926_v50 = vshll.u32 %v12192_v60, 16 }
 0x50e   : > { %v4930_v29 = vshrl.u32 %v12192_v60, 16  ;;  %v12257_v24 = vld [vmem:[#allocation2 + $0x30] sm:$0xf]  ;;  %2625 = vst.msk [vmem:[#allocation3 + $0x244] sm:$0xf] %vm2286_vm6, %v2593_v7  ;;  %v3892_v44 = vor.u32 %v3891_v38, %v12247_v18  ;;  %v4893_v0 = vshrl.u32 %v12204_v62, 16  ;;  %6265 = vmatprep.mubr.bf16.mxu1 %v8601_v5  ;;  %4399 = vrot.lane.b32.xlu0 %v12001_v43, %s8841_s23 }
 0x50f   : > { %v4896_v11 = vshll.u32 %v12204_v62, 16  ;;  %v12265_v59 = vld [vmem:[#allocation2 + $0xb8] sm:$0xf]  ;;  %v4505_v45 = vld [vmem:[#allocation2 + $0x64] sm:$0xf]  ;;  %v12275_v38 = vrot.slane %v4912_v1, 5 }
 0x510   : > { %v4504_v41 = vld [vmem:[#allocation2 + $0x60] sm:$0xf]  ;;  %v8830_v60 = vld [vmem:[%s13907_s4 + $0x118] sm:$0xff]   ;;  %4472 = vst.msk [vmem:[#allocation3 + $0x10c] sm:$0xf] %vm3159_vm5, %v4390_v57  ;;  %v7747_v62 = vrot.slane %v12218_v48, 9 }
 0x511   : > { %8416 = vmatpush3.bf16.msra.mxu1 %v8830_v60  ;;  %v7730_v7 = vrot.slane %v12220_v36, 9  ;;  %v12279_v47 = vld [vmem:[#allocation2 + $0xc4] sm:$0xf]  ;;  %v12284_v60 = vld [vmem:[%s13907_s4 + $0x108] sm:$0xff]   ;;  %4537 = vst.msk [vmem:[#allocation3 + $0x110] sm:$0xf] %vm2286_vm6, %v4505_v45  ;;  %v12296_v36 = vsel %vm10543_vm3, %v4346_v3, %v4347_v51 }
 0x512   : > { %4536 = vst.msk [vmem:[#allocation3 + $0xfc] sm:$0xf] %vm2286_vm6, %v4504_v41  ;;  %v2595_v5 = vld [vmem:[#allocation2 + $0xb8] sm:$0xf]  ;;  %v12290_v1 = vld [vmem:[#allocation3 + $0x8c] sm:$0xff]  ;;  %v12292_v48 = vrot.slane %v4875_v15, 4  ;;  %8417 = vmatprep.subr.bf16.mxu1 %v12245_v58  ;;  %5024 = vrot.lane.b32.xlu0 %v4833_v33, %s8841_s23 }
 0x513   : > { %3178 = vst.msk [vmem:[#allocation3 + $0x168] sm:$0xf] %vm3159_vm5, %v3100_v4  ;;  %v3893_v57 = vrot.slane %v3892_v44, 4  ;;  %v12299_v12 = vrot.slane %v4926_v50, 5  ;;  %v2594_v45 = vld [vmem:[#allocation2 + $0xb4] sm:$0xf]  ;;  %v3086_v4 = vpop.permute.xlu1 %3085 }
 0x514   : > { %2627 = vst.msk [vmem:[#allocation3 + $0x26c] sm:$0xf] %vm2286_vm6, %v2595_v5  ;;  %v12308_v41 = vrot.slane %v4930_v29, 4  ;;  %v12310_v40 = vrot.slane %v4893_v0, 4  ;;  %v12312_v15 = vrot.slane %v4896_v11, 5  ;;  %v14139_v51 = vrot.slane %v11597_v21, 5  ;;  %v3568_v0 = vpop.permute.xlu0 %3567  ;;  %6266 = vmatmul.mubr.bf16.gmra.mxu1 %v7773_v61 }
 0x515   : > { %2626 = vst.msk [vmem:[#allocation3 + $0x258] sm:$0xf] %vm2286_vm6, %v2594_v45  ;;  %v4507_v50 = vld [vmem:[#allocation2 + $0x70] sm:$0xf]  ;;  %v4910_v5 = vrot.slane %v4909_v10, 4  ;;  %v3898_v19 = vsel %vm10574_vm4, %v3893_v57, %v3897_v35  ;;  %v4936_v42 = vshll.u32 %v12253_v20, 16  ;;  %v12338_v35 = vsel %vm10543_vm3, %v7747_v62, %v4337_v6  ;;  %8418 = vmatpush3.bf16.msra.mxu1 %v12245_v58 }
 0x516   : > { %v3371_v3 = vsel %vm10543_vm3, %v7730_v7, %v14139_v51  ;;  %v12319_v44 = vld [vmem:[#allocation3 + $0x78] sm:$0xff]  ;;  %v12325_v32 = vld [vmem:[#allocation2 + $0xbc] sm:$0x1]  ;;  %v12327_v21 = vld [vmem:[#allocation2 + $0xa8] sm:$0xe]  ;;  %v3780_v29 = vshrl.u32 %v12257_v24, 16  ;;  %8419 = vmatprep.subr.bf16.mxu1 %v12284_v60  ;;  %v4933_v51 = vor.u32 %v12308_v41, %v12299_v12  ;;  %4403 = vrot.lane.b32.xlu0 %v12103_v28, %s8841_s23 }
 0x517   : > { %3457 = vst.msk [vmem:[#allocation3 + $0x1bc] sm:$0xf] %vm2286_vm6, %v3371_v3  ;;  %4539 = vst.msk [vmem:[#allocation3 + $0x138] sm:$0xf] %vm2286_vm6, %v4507_v50  ;;  %v4351_v20 = vrot.slane %v12265_v59, 5  ;;  %v3783_v11 = vshll.u32 %v12257_v24, 16  ;;  %v4915_v25 = vsel %vm10574_vm4, %v4910_v5, %v12275_v38  ;;  %v4899_v3 = vor.u32 %v12312_v15, %v12310_v40 }
 0x518   : > { %3171 = vst.msk [vmem:[#allocation3 + $0xdc] sm:$0xf] %vm3159_vm5, %v3086_v4  ;;  %v4595_v7 = vld [vmem:[#allocation2 + $0xb4] sm:$0xf]  ;;  %3645 = vst.msk [vmem:[#allocation3 + $0x16c] sm:$0xf] %vm3159_vm5, %v3568_v0  ;;  %v4368_v10 = vpop.permute.xlu0 %4367  ;;  %5038 = vrot.lane.b32.xlu1 %v4915_v25, %s8841_s23 }
 0x519   : > { %4138 = vst.msk [vmem:[#allocation3 + $0x134] sm:$0xf] %vm2286_vm6, %v3898_v19  ;;  %v12350_v6 = vld [vmem:[#allocation3 + $0xb4] sm:$0xff]  ;;  %v3782_v62 = vrot.slane %v3780_v29, 4  ;;  %v4950_v24 = vshll.u32 %v12279_v47, 16  ;;  %v8651_v14 = vld [vmem:[%s13907_s4 + $0x100] sm:$0xff]   ;;  %v3594_v19 = vpop.permute.xlu1 %3593  ;;  %8420 = vmatpush3.bf16.msra.mxu1 %v12284_v60 }
 0x51a   : > { %v12357_v57 = vld [vmem:[#allocation2 + $0xd0] sm:$0xf]  ;;  %v8603_v38 = vld [vmem:[#allocation3 + $0x54] ss:$20 sps:$4 sm:$0xff]   ;;  %v12365_v45 = vld [vmem:[#allocation3 + $0xa0] sm:$0xff]  ;;  %v3785_v50 = vrot.slane %v3783_v11, 5  ;;  %8421 = vmatprep.subr.bf16.mxu1 %v8651_v14 }
 0x51b   : > { %v4954_v4 = vshrl.u32 %v12279_v47, 16  ;;  %v12372_v5 = vld [vmem:[#allocation2 + $0xc4] sm:$0xf]  ;;  %v12377_v43 = vrot.slane %v4936_v42, 5  ;;  %v7748_v29 = vrot.slane %v12327_v21, 9  ;;  %v4917_v0 = vshrl.u32 %v4595_v7, 16  ;;  %6273 = vmatprep.mubr.bf16.mxu1 %v8603_v38 }
 0x51c   : > { %v4920_v58 = vshll.u32 %v4595_v7, 16  ;;  %v4509_v41 = vld [vmem:[#allocation2 + $0x7c] sm:$0xf]  ;;  %3658 = vst.msk [vmem:[#allocation3 + $0x270] sm:$0xf] %vm3159_vm5, %v3594_v19  ;;  %v7788_v47 = vcombine.low %v12365_v45, %v12350_v6  ;;  %v4353_v40 = vrot.slane %v4351_v20, 4  ;;  %v3786_v9 = vor.u32 %v3785_v50, %v3782_v62  ;;  %4417 = vrot.lane.b32.xlu1 %v12296_v36, %s8841_s23 }
 0x51d   : > { %v4354_v17 = vrot.slane %v12325_v32, 5  ;;  %v4600_v61 = vld [vmem:[#allocation2 + $0xc8] sm:$0x1]  ;;  %4541 = vst.msk [vmem:[#allocation3 + $0x160] sm:$0xf] %vm2286_vm6, %v4509_v41  ;;  %v12390_v42 = vrot.slane %v4950_v24, 5  ;;  %v3090_v38 = vpop.permute.xlu1 %3089  ;;  %8422 = vmatpush3.bf16.msra.mxu1 %v8651_v14 }
 0x51e   : > { %v4506_v15 = vld [vmem:[#allocation2 + $0x6c] sm:$0xf]  ;;  %4461 = vst.msk [vmem:[#allocation3 + $0x30] sm:$0xf] %vm3159_vm5, %v4368_v10  ;;  %v12392_v21 = vrot.slane %v4954_v4, 4  ;;  %v12394_v11 = vrot.slane %v4917_v0, 4 }
 0x51f   : > { %v12396_v7 = vrot.slane %v4920_v58, 5  ;;  %v12398_v32 = vld [vmem:[#allocation2 + $0xc8] sm:$0x1]  ;;  %4538 = vst.msk [vmem:[#allocation3 + $0x124] sm:$0xf] %vm2286_vm6, %v4506_v15  ;;  %v4934_v60 = vrot.slane %v4933_v51, 4  ;;  %v4993_v51 = vpop.permute.xlu0 %4992 }
 0x520   : > { %v12407_v10 = vrot.slane %v4899_v3, 4  ;;  %v3787_v25 = vrot.slane %v3786_v9, 4  ;;  %v12409_v62 = vld [vmem:[#allocation2 + $0xd4] sm:$0x1]  ;;  %v4974_v58 = vshll.u32 %v12357_v57, 16  ;;  %v14140_v50 = vrot.slane %v12145_v16, 5 }
 0x521   : > { %v4598_v24 = vld [vmem:[#allocation2 + $0xc0] sm:$0xf]  ;;  %v4960_v19 = vshll.u32 %v4600_v61, 16  ;;  %v4358_v37 = vrot.slane %v12372_v5, 5  ;;  %v4978_v56 = vshrl.u32 %v12357_v57, 16  ;;  %v4939_v3 = vsel %vm10574_vm4, %v4934_v60, %v12377_v43 }
 0x522   : > { %v12416_v4 = vsel %vm10543_vm3, %v7748_v29, %v14140_v50  ;;  %v3228_v33 = vld [vmem:[#allocation2 + $0x90] sm:$0xe]  ;;  %3173 = vst.msk [vmem:[#allocation3 + $0x104] sm:$0xf] %vm3159_vm5, %v3090_v38  ;;  %v12426_v16 = vsel %vm10543_vm3, %v4353_v40, %v4354_v17  ;;  %v3792_v29 = vsel %vm10574_vm4, %v3787_v25, %v11678_v2  ;;  %v4361_v0 = vrot.slane %v12398_v32, 5  ;;  %v4394_v32 = vpop.permute.xlu1 %4393  ;;  %5042 = vrot.lane.b32.xlu1 %v4939_v3, %s8841_s23 }
 0x523   : > { %v3671_v41 = vld [vmem:[#allocation2 + $0x3c] sm:$0xf]  ;;  %v4511_v57 = vld [vmem:[#allocation2 + $0x88] sm:$0xf]  ;;  %5086 = vst.msk [vmem:[#allocation3 + $0x34] sm:$0xf] %vm3159_vm5, %v4993_v51  ;;  %v4957_v43 = vor.u32 %v12392_v21, %v12390_v42  ;;  %v4923_v40 = vor.u32 %v12396_v7, %v12394_v11  ;;  %v4905_v61 = vsel %vm10574_vm4, %v12407_v10, %v12214_v34  ;;  %v14141_v7 = vcombine.low %v12207_v27, %v12180_v55 }
 0x524   : > { %4129 = vst.msk [vmem:[#allocation3 + $0x80] sm:$0xf] %vm2286_vm6, %v3792_v29  ;;  %v12440_v17 = vld [vmem:[#allocation2 + $0xb4] sm:$0xe]  ;;  %v12442_v2 = vrot.slane %v4974_v58, 5  ;;  %v4980_v9 = vrot.slane %v4978_v56, 4  ;;  %v3104_v56 = vpop.permute.xlu0 %3103 }
 0x525   : > { %4543 = vst.msk [vmem:[#allocation3 + $0x188] sm:$0xf] %vm2286_vm6, %v4511_v57  ;;  %v4508_v14 = vld [vmem:[#allocation2 + $0x78] sm:$0xf]  ;;  %v8607_v36 = vld [vmem:[#allocation3 + $0x7c] ss:$20 sps:$4 sm:$0xff]   ;;  %6274 = vmatmul.mubr.bf16.gmra.mxu1 %v14141_v7 }
 0x526   : > { %v4941_v15 = vshrl.u32 %v4598_v24, 16  ;;  %v4944_v21 = vshll.u32 %v4598_v24, 16  ;;  %v7731_v11 = vrot.slane %v3228_v33, 9  ;;  %4540 = vst.msk [vmem:[#allocation3 + $0x14c] sm:$0xf] %vm2286_vm6, %v4508_v14  ;;  %v12455_v60 = vrot.slane %v4960_v19, 5  ;;  %6281 = vmatprep.mubr.bf16.mxu1 %v8607_v36  ;;  %4421 = vrot.lane.b32.xlu1 %v12426_v16, %s8841_s23 }
 0x527   : > { %v4360_v28 = vrot.slane %v4358_v37, 4  ;;  %v4984_v25 = vshll.u32 %v12409_v62, 16  ;;  %v12460_v58 = vld [vmem:[#allocation2 + $0xc0] sm:$0xe]  ;;  %v3804_v38 = vshrl.u32 %v3671_v41, 16  ;;  %v7749_v55 = vrot.slane %v12440_v17, 9 }
 0x528   : > { %v12462_v50 = vld [vmem:[#allocation2 + $0xcc] sm:$0xf]  ;;  %v3231_v24 = vld [vmem:[#allocation2 + $0x9c] sm:$0xe]  ;;  %4474 = vst.msk [vmem:[#allocation3 + $0x134] sm:$0xf] %vm3159_vm5, %v4394_v32  ;;  %v4981_v27 = vor.u32 %v4980_v9, %v12442_v2 }
 0x529   : > { %v14142_v19 = vrot.slane %v11672_v49, 5  ;;  %v3807_v62 = vshll.u32 %v3671_v41, 16  ;;  %v3674_v51 = vld [vmem:[#allocation2 + $0x48] sm:$0xf]  ;;  %3180 = vst.msk [vmem:[#allocation3 + $0x190] sm:$0xf] %vm3159_vm5, %v3104_v56  ;;  %v12477_v36 = vsel %vm10543_vm3, %v4360_v28, %v4361_v0  ;;  %v14143_v41 = vsel %vm10574_vm4, %v12209_v31, %v12022_v53  ;;  %v3094_v0 = vpop.permute.xlu1 %3093 }
 0x52a   : > { %v3234_v29 = vld [vmem:[#allocation2 + $0xa8] sm:$0xe]  ;;  %v4958_v57 = vrot.slane %v4957_v43, 4  ;;  %v12473_v14 = vrot.slane %v4923_v40, 4  ;;  %v3806_v49 = vrot.slane %v3804_v38, 4  ;;  %5028 = vrot.lane.b32.xlu0 %v14143_v41, %s8841_s23  ;;  %v12488_v3 = vrot.slane %v4944_v21, 5 }
 0x52b   : > { %v3378_v33 = vsel %vm10543_vm3, %v7731_v11, %v14142_v19  ;;  %v3677_v9 = vld [vmem:[#allocation2 + $0x54] sm:$0xf]  ;;  %v12486_v11 = vrot.slane %v4941_v15, 4  ;;  %v3809_v43 = vrot.slane %v3807_v62, 5  ;;  %v7732_v40 = vrot.slane %v3231_v24, 9 }
 0x52c   : > { %3459 = vst.msk [vmem:[#allocation3 + $0x1e4] sm:$0xf] %vm2286_vm6, %v3378_v33  ;;  %v3237_v7 = vld [vmem:[#allocation2 + $0xb4] sm:$0xe]  ;;  %v4963_v32 = vsel %vm10574_vm4, %v4958_v57, %v12455_v60  ;;  %v12493_v28 = vrot.slane %v4984_v25, 5  ;;  %v3828_v38 = vshrl.u32 %v3674_v51, 16  ;;  %v3572_v33 = vpop.permute.xlu0 %3571 }
 0x52d   : > { %v3831_v56 = vshll.u32 %v3674_v51, 16  ;;  %v3684_v19 = vld [vmem:[#allocation2 + $0x70] sm:$0xf]  ;;  %3175 = vst.msk [vmem:[#allocation3 + $0x12c] sm:$0xf] %vm3159_vm5, %v3094_v0  ;;  %v12496_v53 = vrot.slane %v4981_v27, 4  ;;  %v3810_v15 = vor.u32 %v3809_v43, %v3806_v49  ;;  %v4947_v41 = vor.u32 %v12488_v3, %v12486_v11  ;;  %5046 = vrot.lane.b32.xlu1 %v4963_v32, %s8841_s23 }
 0x52e   : > { %v7750_v31 = vrot.slane %v12460_v58, 9  ;;  %v4965_v21 = vshrl.u32 %v12462_v50, 16  ;;  %v4513_v24 = vld [vmem:[#allocation2 + $0x94] sm:$0xf]  ;;  %3647 = vst.msk [vmem:[#allocation3 + $0x194] sm:$0xf] %vm3159_vm5, %v3572_v33  ;;  %4407 = vrot.lane.b32.xlu0 %v12186_v46, %s8841_s23 }
 0x52f   : > { %v14144_v60 = vrot.slane %v11766_v13, 5  ;;  %v3830_v62 = vrot.slane %v3828_v38, 4  ;;  %v3833_v51 = vrot.slane %v3831_v56, 5  ;;  %v7733_v27 = vrot.slane %v3234_v29, 9  ;;  %4545 = vst.msk [vmem:[#allocation3 + $0x1b0] sm:$0xf] %vm2286_vm6, %v4513_v24 }
 0x530   : > { %v4510_v57 = vld [vmem:[#allocation2 + $0x84] sm:$0xf]  ;;  %v8609_v49 = vld [vmem:[#allocation3 + $0xa4] ss:$20 sps:$4 sm:$0xff]   ;;  %v3811_v43 = vrot.slane %v3810_v15, 4  ;;  %v4968_v16 = vshll.u32 %v12462_v50, 16  ;;  %v14145_v29 = vcombine.low %v12319_v44, %v12290_v1  ;;  %v4372_v24 = vpop.permute.xlu0 %4371  ;;  %v4987_v1 = vsel %vm10574_vm4, %v12496_v53, %v12493_v28 }
 0x531   : > { %v3385_v25 = vsel %vm10543_vm3, %v7732_v40, %v14144_v60  ;;  %v3852_v13 = vshrl.u32 %v3677_v9, 16  ;;  %4542 = vst.msk [vmem:[#allocation3 + $0x174] sm:$0xf] %vm2286_vm6, %v4510_v57  ;;  %v3098_v40 = vpop.permute.xlu1 %3097  ;;  %v3834_v0 = vor.u32 %v3833_v51, %v3830_v62  ;;  %v14146_v46 = vrot.slane %v11891_v63, 5  ;;  %v3685_v15 = vld [vmem:[#allocation2 + $0x74] sm:$0x1]  ;;  %4425 = vrot.lane.b32.xlu1 %v12477_v36, %s8841_s23 }
 0x532   : > { %3461 = vst.msk [vmem:[#allocation3 + $0x20c] sm:$0xf] %vm2286_vm6, %v3385_v25  ;;  %6282 = vmatmul.mubr.bf16.gmra.mxu1 %v14145_v29  ;;  %v3855_v56 = vshll.u32 %v3677_v9, 16  ;;  %v7734_v33 = vrot.slane %v3237_v7, 9  ;;  %v3680_v50 = vld [vmem:[#allocation2 + $0x60] sm:$0xf]  ;;  %v3816_v63 = vsel %vm10574_vm4, %v3811_v43, %v11751_v39  ;;  %v14148_v39 = vsel %vm10574_vm4, %v12292_v48, %v12084_v8 }
 0x533   : > { %v3392_v38 = vsel %vm10543_vm3, %v7733_v27, %v14146_v46  ;;  %6289 = vmatprep.mubr.bf16.mxu1 %v8609_v49  ;;  %3177 = vst.msk [vmem:[#allocation3 + $0x154] sm:$0xf] %vm3159_vm5, %v3098_v40  ;;  %v3854_v44 = vrot.slane %v3852_v13, 4  ;;  %v3909_v9 = vshll.u32 %v3684_v19, 16  ;;  %4463 = vst.msk [vmem:[#allocation3 + $0x58] sm:$0xf] %vm3159_vm5, %v4372_v24  ;;  %5032 = vrot.lane.b32.xlu0 %v14148_v39, %s8841_s23 }
 0x534   : > { %3463 = vst.msk [vmem:[#allocation3 + $0x234] sm:$0xf] %vm2286_vm6, %v3392_v38  ;;  %4131 = vst.msk [vmem:[#allocation3 + $0xa8] sm:$0xf] %vm2286_vm6, %v3816_v63  ;;  %v3835_v7 = vrot.slane %v3834_v0, 4  ;;  %v3857_v60 = vrot.slane %v3855_v56, 5  ;;  %v4997_v8 = vpop.permute.xlu0 %4996 }
 0x535   : > { %v14147_v25 = vrot.slane %v12045_v54, 5  ;;  %v3913_v51 = vshrl.u32 %v3684_v19, 16  ;;  %v3687_v27 = vld [vmem:[#allocation2 + $0x7c] sm:$0xf]  ;;  %v12544_v57 = vrot.slane %v4965_v21, 4  ;;  %v12547_v32 = vrot.slane %v3909_v9, 5  ;;  %v4991_v43 = vpop.permute.xlu1 %4990  ;;  %5050 = vrot.lane.b32.xlu1 %v4987_v1, %s8841_s23 }
 0x536   : > { %v3919_v49 = vshll.u32 %v3685_v15, 16  ;;  %v3876_v54 = vshrl.u32 %v3680_v50, 16  ;;  %v3840_v19 = vsel %vm10574_vm4, %v3835_v7, %v11875_v26  ;;  %v3858_v13 = vor.u32 %v3857_v60, %v3854_v44  ;;  %v3688_v0 = vld [vmem:[#allocation2 + $0x80] sm:$0x1]  ;;  %v3683_v46 = vld [vmem:[#allocation2 + $0x6c] sm:$0xf] }
 0x537   : > { %v3399_v62 = vsel %vm10543_vm3, %v7734_v33, %v14147_v25  ;;  %v3915_v29 = vrot.slane %v3913_v51, 4  ;;  %v3879_v40 = vshll.u32 %v3680_v50, 16  ;;  %v8614_v48 = vld [vmem:[#allocation3 + $0xcc] ss:$20 sps:$4 sm:$0xff]   ;;  %5085 = vst.msk [vmem:[#allocation3 + $0x20] sm:$0xf] %vm3159_vm5, %v4991_v43  ;;  %4411 = vrot.lane.b32.xlu0 %v12338_v35, %s8841_s23 }
 0x538   : > { %3465 = vst.msk [vmem:[#allocation3 + $0x25c] sm:$0xf] %vm2286_vm6, %v3399_v62  ;;  %v12553_v21 = vrot.slane %v4968_v16, 5  ;;  %4133 = vst.msk [vmem:[#allocation3 + $0xd0] sm:$0xf] %vm2286_vm6, %v3840_v19  ;;  %v3921_v38 = vrot.slane %v3919_v49, 5 }
 0x539   : > { %v3878_v56 = vrot.slane %v3876_v54, 4  ;;  %v3933_v33 = vshll.u32 %v3687_v27, 16  ;;  %5088 = vst.msk [vmem:[#allocation3 + $0x5c] sm:$0xf] %vm3159_vm5, %v4997_v8  ;;  %v3859_v26 = vrot.slane %v3858_v13, 4  ;;  %v3916_v15 = vor.u32 %v3915_v29, %v12547_v32  ;;  %v12562_v16 = vld [vmem:[#allocation3 + $0xdc] sm:$0xff]  ;;  %v3102_v36 = vpop.permute.xlu1 %3101  ;;  %v3108_v54 = vpop.permute.xlu0 %3107 }
 0x53a   : > { %v3881_v50 = vrot.slane %v3879_v40, 5  ;;  %v3937_v24 = vshrl.u32 %v3687_v27, 16  ;;  %v3690_v63 = vld [vmem:[#allocation2 + $0x88] sm:$0xf]  ;;  %v3943_v9 = vshll.u32 %v3688_v0, 16  ;;  %v3900_v7 = vshrl.u32 %v3683_v46, 16  ;;  %6290 = vmatmul.mubr.bf16.gmra.mxu1 %v7788_v47 }
 0x53b   : > { %v12564_v44 = vrot.slane %v3933_v33, 5  ;;  %v3903_v60 = vshll.u32 %v3683_v46, 16  ;;  %v4515_v25 = vld [vmem:[#allocation2 + $0xa0] sm:$0xf]  ;;  %v3864_v62 = vsel %vm10574_vm4, %v3859_v26, %v12033_v30  ;;  %v3917_v51 = vrot.slane %v3916_v15, 4  ;;  %6297 = vmatprep.mubr.bf16.mxu1 %v8614_v48  ;;  %5036 = vrot.lane.b32.xlu0 %v4905_v61, %s8841_s23 }
 0x53c   : > { %v3882_v27 = vor.u32 %v3881_v50, %v3878_v56  ;;  %v3939_v35 = vrot.slane %v3937_v24, 4  ;;  %v3691_v39 = vld [vmem:[#allocation2 + $0x8c] sm:$0x1]  ;;  %v12572_v49 = vld [vmem:[#allocation2 + $0x78] sm:$0xf]  ;;  %v12579_v6 = vrot.slane %v4947_v41, 4  ;;  %v4971_v26 = vor.u32 %v12553_v21, %v12544_v57 }
 0x53d   : > { %4547 = vst.msk [vmem:[#allocation3 + $0x1d8] sm:$0xf] %vm2286_vm6, %v4515_v25  ;;  %4135 = vst.msk [vmem:[#allocation3 + $0xf8] sm:$0xf] %vm2286_vm6, %v3864_v62  ;;  %v3945_v30 = vrot.slane %v3943_v9, 5  ;;  %v3902_v45 = vrot.slane %v3900_v7, 4  ;;  %v3922_v11 = vsel %vm10574_vm4, %v3917_v51, %v3921_v38  ;;  %v4995_v38 = vpop.permute.xlu1 %4994  ;;  %v3576_v61 = vpop.permute.xlu0 %3575 }
 0x53e   : > { %3179 = vst.msk [vmem:[#allocation3 + $0x17c] sm:$0xf] %vm3159_vm5, %v3102_v36  ;;  %v3905_v47 = vrot.slane %v3903_v60, 5  ;;  %v12582_v43 = vld [vmem:[#allocation2 + $0x18] sm:$0xe]  ;;  %v3883_v3 = vrot.slane %v3882_v27, 4  ;;  %v3940_v41 = vor.u32 %v3939_v35, %v12564_v44 }
 0x53f   : > { %v4512_v19 = vld [vmem:[#allocation2 + $0x90] sm:$0xf]  ;;  %3182 = vst.msk [vmem:[#allocation3 + $0x1b8] sm:$0xf] %vm3159_vm5, %v3108_v54  ;;  %v3957_v13 = vshll.u32 %v3690_v63, 16  ;;  %v5418_v0 = vld [vmem:[#allocation3 + $0xc8] sm:$0xff]  ;;  %4415 = vrot.lane.b32.xlu0 %v12416_v4, %s8841_s23 }
 0x540   : > { %v5117_v29 = vld [vmem:[#allocation2 + $0x1c] sm:$0xf]  ;;  %v12594_v40 = vld [vmem:[#allocation2 + $0x20] sm:$0x1]  ;;  %4544 = vst.msk [vmem:[#allocation3 + $0x19c] sm:$0xf] %vm2286_vm6, %v4512_v19  ;;  %v3906_v28 = vor.u32 %v3905_v47, %v3902_v45  ;;  %v7793_v48 = vcombine.low %v5418_v0, %v12562_v16  ;;  %v3888_v34 = vsel %vm10574_vm4, %v3883_v3, %v12247_v18 }
 0x541   : > { %4140 = vst.msk [vmem:[#allocation3 + $0x15c] sm:$0xf] %vm2286_vm6, %v3922_v11  ;;  %v3961_v53 = vshrl.u32 %v3690_v63, 16  ;;  %v3967_v1 = vshll.u32 %v3691_v39, 16  ;;  %v3924_v46 = vshrl.u32 %v12572_v49, 16  ;;  %v3941_v10 = vrot.slane %v3940_v41, 4  ;;  %v3106_v35 = vpop.permute.xlu1 %3105  ;;  %v4376_v45 = vpop.permute.xlu0 %4375 }
 0x542   : > { %v3693_v8 = vld [vmem:[#allocation2 + $0x94] sm:$0xf]  ;;  %v8624_v33 = vld [vmem:[#allocation3 + $0xc] ss:$20 sps:$4 sm:$0xff]   ;;  %5087 = vst.msk [vmem:[#allocation3 + $0x48] sm:$0xf] %vm3159_vm5, %v4995_v38  ;;  %6298 = vmatmul.mubr.bf16.gmra.mxu1 %v7793_v48 }
 0x543   : > { %v8622_v56 = vld [vmem:[#allocation3 + $0x8] ss:$20 sps:$4 sm:$0xff]   ;;  %4137 = vst.msk [vmem:[#allocation3 + $0x120] sm:$0xf] %vm2286_vm6, %v3888_v34  ;;  %v3907_v15 = vrot.slane %v3906_v28, 4  ;;  %v12613_v50 = vrot.slane %v3957_v13, 5  ;;  %6418 = vmatprep.mubr.bf16.mxu0 %v8624_v33  ;;  %v3946_v57 = vsel %vm10574_vm4, %v3941_v10, %v3945_v30 }
 0x544   : > { %v3963_v24 = vrot.slane %v3961_v53, 4  ;;  %v3969_v63 = vrot.slane %v3967_v1, 5  ;;  %3649 = vst.msk [vmem:[#allocation3 + $0x1bc] sm:$0xf] %vm3159_vm5, %v3576_v61  ;;  %v8616_v16 = vld [vmem:[#allocation3 + $0xf4] ss:$20 sps:$4 sm:$0xff]   ;;  %6419 = vmatmul.mubr.bf16.vlgmr.msra.gmra.mxu0 %v8622_v56  ;;  %v4352_v56 = vsel %vm10543_vm3, %v7749_v55, %v4351_v20 }
 0x545   : > { %v3926_v21 = vrot.slane %v3924_v46, 4  ;;  %v3927_v18 = vshll.u32 %v12572_v49, 16  ;;  %v7751_v9 = vrot.slane %v12582_v43, 9  ;;  %v12622_v7 = vld [vmem:[#allocation3 + $0x104] sm:$0xff]  ;;  %4142 = vst.msk [vmem:[#allocation3 + $0x184] sm:$0xf] %vm2286_vm6, %v3946_v57  ;;  %v3912_v60 = vsel %vm10574_vm4, %v3907_v15, %v12547_v32  ;;  %6305 = vmatprep.mubr.bf16.mxu1 %v8616_v16  ;;  %v5001_v59 = vpop.permute.xlu0 %5000 }
 0x546   : > { %v3964_v25 = vor.u32 %v3963_v24, %v12613_v50  ;;  %v5214_v36 = vrot.slane %v5117_v29, 5  ;;  %v5217_v62 = vrot.slane %v12594_v40, 5  ;;  %v3694_v51 = vld [vmem:[#allocation2 + $0x98] sm:$0x1]  ;;  %v3689_v27 = vld [vmem:[#allocation2 + $0x84] sm:$0xf]  ;;  %v4929_v32 = vsel %vm10574_vm4, %v12473_v14, %v12299_v12 }
 0x547   : > { %v12630_v39 = vrot.slane %v4971_v26, 4  ;;  %4139 = vst.msk [vmem:[#allocation3 + $0x148] sm:$0xf] %vm2286_vm6, %v3912_v60  ;;  %v3929_v4 = vrot.slane %v3927_v18, 5  ;;  %v3981_v49 = vshll.u32 %v3693_v8, 16  ;;  %v3985_v54 = vshrl.u32 %v3693_v8, 16  ;;  %5040 = vrot.lane.b32.xlu0 %v4929_v32, %s8841_s23  ;;  %v4999_v26 = vpop.permute.xlu1 %4998 }
 0x548   : > { %v12633_v30 = vld [vmem:[#allocation2 + $0x24] sm:$0xe]  ;;  %3181 = vst.msk [vmem:[#allocation3 + $0x1a4] sm:$0xf] %vm3159_vm5, %v3106_v35  ;;  %v3965_v47 = vrot.slane %v3964_v25, 4  ;;  %v5215_v43 = vsel %vm10543_vm3, %v7751_v9, %v5214_v36  ;;  %v5216_v19 = vrot.slane %v5214_v36, 4 }
 0x549   : > { %v5120_v11 = vld [vmem:[#allocation2 + $0x28] sm:$0xf]  ;;  %v12642_v3 = vld [vmem:[#allocation2 + $0x2c] sm:$0x1]  ;;  %4465 = vst.msk [vmem:[#allocation3 + $0x80] sm:$0xf] %vm3159_vm5, %v4376_v45  ;;  %v3930_v13 = vor.u32 %v3929_v4, %v3926_v21  ;;  %v4953_v45 = vsel %vm10574_vm4, %v12579_v6, %v12390_v42 }
 0x54a   : > { %v5424_v41 = vld [vmem:[#allocation3 + $0xf0] sm:$0xff]  ;;  %5356 = vst.msk [vmem:[#allocation3 + $0x10] sm:$0xf] %vm2286_vm6, %v5215_v43  ;;  %v12646_v29 = vrot.slane %v3981_v49, 5  ;;  %v3987_v40 = vrot.slane %v3985_v54, 4  ;;  %v3991_v12 = vshll.u32 %v3694_v51, 16  ;;  %v3970_v53 = vsel %vm10574_vm4, %v3965_v47, %v3969_v63 }
 0x54b   : > { %v5122_v14 = vld [vmem:[#allocation2 + $0x30] sm:$0xe]  ;;  %v5123_v0 = vld [vmem:[#allocation2 + $0x34] sm:$0xf]  ;;  %v12648_v28 = vld [vmem:[#allocation2 + $0x38] sm:$0x1]  ;;  %v5218_v1 = vsel %vm10543_vm3, %v5216_v19, %v5217_v62  ;;  %v7798_v33 = vcombine.low %v5424_v41, %v12622_v7  ;;  %4419 = vrot.lane.b32.xlu0 %v4352_v56, %s8841_s23  ;;  %v3110_v51 = vpop.permute.xlu1 %3109 }
 0x54c   : > { %v3948_v46 = vshrl.u32 %v3689_v27, 16  ;;  %v3951_v8 = vshll.u32 %v3689_v27, 16  ;;  %v4517_v48 = vld [vmem:[#allocation2 + $0xac] sm:$0xf]  ;;  %v4514_v38 = vld [vmem:[#allocation2 + $0x9c] sm:$0xf]  ;;  %v3988_v15 = vor.u32 %v3987_v40, %v12646_v29 }
 0x54d   : > { %v8627_v34 = vld [vmem:[#allocation3 + $0x34] ss:$20 sps:$4 sm:$0xff]   ;;  %v8629_v10 = vld [vmem:[#allocation3 + $0x30] ss:$20 sps:$4 sm:$0xff]   ;;  %4144 = vst.msk [vmem:[#allocation3 + $0x1ac] sm:$0xf] %vm2286_vm6, %v3970_v53  ;;  %6306 = vmatmul.mubr.bf16.gmra.mxu1 %v7798_v33 }
 0x54e   : > { %v3931_v61 = vrot.slane %v3930_v13, 4  ;;  %5357 = vst.msk [vmem:[#allocation3 + $0x24] sm:$0xf] %vm2286_vm6, %v5218_v1  ;;  %4549 = vst.msk [vmem:[#allocation3 + $0x200] sm:$0xf] %vm2286_vm6, %v4517_v48  ;;  %v3993_v20 = vrot.slane %v3991_v12, 5  ;;  %6426 = vmatprep.mubr.bf16.mxu0 %v8627_v34 }
 0x54f   : > { %4546 = vst.msk [vmem:[#allocation3 + $0x1c4] sm:$0xf] %vm2286_vm6, %v4514_v38  ;;  %v3950_v17 = vrot.slane %v3948_v46, 4  ;;  %v3953_v55 = vrot.slane %v3951_v8, 5  ;;  %v7752_v24 = vrot.slane %v12633_v30, 9  ;;  %v3989_v21 = vrot.slane %v3988_v15, 4  ;;  %6427 = vmatmul.mubr.bf16.gmra.mxu0 %v8629_v10  ;;  %v3112_v30 = vpop.permute.xlu0 %3111  ;;  %5044 = vrot.lane.b32.xlu0 %v4953_v45, %s8841_s23  ;;  %v5003_v48 = vpop.permute.xlu1 %5002 }
 0x550   : > { %5089 = vst.msk [vmem:[#allocation3 + $0x70] sm:$0xf] %vm3159_vm5, %v4999_v26  ;;  %v3696_v63 = vld [vmem:[#allocation2 + $0xa0] sm:$0xf]  ;;  %5090 = vst.msk [vmem:[#allocation3 + $0x84] sm:$0xf] %vm3159_vm5, %v5001_v59  ;;  %v3936_v57 = vsel %vm10574_vm4, %v3931_v61, %v12564_v44  ;;  %v4359_v8 = vsel %vm10543_vm3, %v7750_v31, %v4358_v37 }
 0x551   : > { %v8620_v16 = vld [vmem:[#allocation3 + $0x11c] ss:$20 sps:$4 sm:$0xff]   ;;  %v5221_v18 = vrot.slane %v5120_v11, 5  ;;  %v5224_v9 = vrot.slane %v12642_v3, 5  ;;  %4141 = vst.msk [vmem:[#allocation3 + $0x170] sm:$0xf] %vm2286_vm6, %v3936_v57  ;;  %v3954_v7 = vor.u32 %v3953_v55, %v3950_v17  ;;  %v3994_v44 = vsel %vm10574_vm4, %v3989_v21, %v3993_v20 }
 0x552   : > { %v7753_v60 = vrot.slane %v5122_v14, 9  ;;  %v5228_v25 = vrot.slane %v5123_v0, 5  ;;  %v5231_v36 = vrot.slane %v12648_v28, 5  ;;  %v3697_v62 = vld [vmem:[#allocation2 + $0xa4] sm:$0x1]  ;;  %v4005_v4 = vshll.u32 %v3696_v63, 16  ;;  %6313 = vmatprep.mubr.bf16.mxu1 %v8620_v16 }
 0x553   : > { %v5222_v27 = vsel %vm10543_vm3, %v7752_v24, %v5221_v18  ;;  %v5223_v35 = vrot.slane %v5221_v18, 4  ;;  %v3692_v49 = vld [vmem:[#allocation2 + $0x90] sm:$0xf]  ;;  %v12681_v54 = vld [vmem:[#allocation2 + $0x3c] sm:$0xe]  ;;  %v3955_v32 = vrot.slane %v3954_v7, 4  ;;  %v3580_v33 = vpop.permute.xlu0 %3579  ;;  %4423 = vrot.lane.b32.xlu0 %v4359_v8, %s8841_s23  ;;  %v3114_v21 = vpop.permute.xlu1 %3113 }
 0x554   : > { %3183 = vst.msk [vmem:[#allocation3 + $0x1cc] sm:$0xf] %vm3159_vm5, %v3110_v51  ;;  %v5229_v47 = vsel %vm10543_vm3, %v7753_v60, %v5228_v25  ;;  %v5230_v43 = vrot.slane %v5228_v25, 4  ;;  %v5126_v19 = vld [vmem:[#allocation2 + $0x40] sm:$0xf]  ;;  %v5430_v3 = vld [vmem:[#allocation3 + $0x118] sm:$0xff] }
 0x555   : > { %4146 = vst.msk [vmem:[#allocation3 + $0x1d4] sm:$0xf] %vm2286_vm6, %v3994_v44  ;;  %5358 = vst.msk [vmem:[#allocation3 + $0x38] sm:$0xf] %vm2286_vm6, %v5222_v27  ;;  %v12692_v11 = vld [vmem:[#allocation2 + $0x48] sm:$0xe]  ;;  %v5225_v42 = vsel %vm10543_vm3, %v5223_v35, %v5224_v9  ;;  %v3960_v0 = vsel %vm10574_vm4, %v3955_v32, %v12613_v50  ;;  %v4977_v35 = vsel %vm10574_vm4, %v12630_v39, %v12442_v2 }
 0x556   : > { %3184 = vst.msk [vmem:[#allocation3 + $0x1e0] sm:$0xf] %vm3159_vm5, %v3112_v30  ;;  %v5433_v41 = vld [vmem:[#allocation3 + $0x12c] sm:$0xff]  ;;  %v12698_v6 = vrot.slane %v4005_v4, 5  ;;  %v4009_v13 = vshrl.u32 %v3696_v63, 16  ;;  %v4015_v40 = vshll.u32 %v3697_v62, 16  ;;  %v5232_v28 = vsel %vm10543_vm3, %v5230_v43, %v5231_v36 }
 0x557   : > { %5360 = vst.msk [vmem:[#allocation3 + $0x60] sm:$0xf] %vm2286_vm6, %v5229_v47  ;;  %v12700_v12 = vld [vmem:[#allocation2 + $0x44] sm:$0x1]  ;;  %v5129_v14 = vld [vmem:[#allocation2 + $0x4c] sm:$0xf]  ;;  %v7803_v26 = vcombine.low %v5430_v3, %v5433_v41  ;;  %v4380_v25 = vpop.permute.xlu0 %4379  ;;  %5048 = vrot.lane.b32.xlu0 %v4977_v35, %s8841_s23 }
 0x558   : > { %5359 = vst.msk [vmem:[#allocation3 + $0x4c] sm:$0xf] %vm2286_vm6, %v5225_v42  ;;  %v3972_v53 = vshrl.u32 %v3692_v49, 16  ;;  %v3975_v1 = vshll.u32 %v3692_v49, 16  ;;  %v12709_v46 = vld [vmem:[#allocation2 + $0xac] sm:$0xf] }
 0x559   : > { %v8633_v38 = vld [vmem:[#allocation3 + $0x5c] ss:$20 sps:$4 sm:$0xff]   ;;  %v8635_v56 = vld [vmem:[#allocation3 + $0x58] ss:$20 sps:$4 sm:$0xff]   ;;  %4143 = vst.msk [vmem:[#allocation3 + $0x198] sm:$0xf] %vm2286_vm6, %v3960_v0  ;;  %6314 = vmatmul.mubr.bf16.gmra.mxu1 %v7803_v26 }
 0x55a   : > { %5361 = vst.msk [vmem:[#allocation3 + $0x74] sm:$0xf] %vm2286_vm6, %v5232_v28  ;;  %v4011_v50 = vrot.slane %v4009_v13, 4  ;;  %v8625_v34 = vld [vmem:[#allocation3 + $0x144] ss:$20 sps:$4 sm:$0xff]   ;;  %v3974_v10 = vrot.slane %v3972_v53, 4  ;;  %6434 = vmatprep.mubr.bf16.mxu0 %v8633_v38 }
 0x55b   : > { %5091 = vst.msk [vmem:[#allocation3 + $0x98] sm:$0xf] %vm3159_vm5, %v5003_v48  ;;  %v3977_v5 = vrot.slane %v3975_v1, 5  ;;  %v7754_v58 = vrot.slane %v12681_v54, 9  ;;  %v5130_v61 = vld [vmem:[#allocation2 + $0x50] sm:$0x1]  ;;  %6435 = vmatmul.mubr.bf16.gmra.mxu0 %v8635_v56  ;;  %6321 = vmatprep.mubr.bf16.mxu1 %v8625_v34  ;;  %v5005_v42 = vpop.permute.xlu0 %5004 }
 0x55c   : > { %3651 = vst.msk [vmem:[#allocation3 + $0x1e4] sm:$0xf] %vm3159_vm5, %v3580_v33  ;;  %v4012_v37 = vor.u32 %v4011_v50, %v12698_v6  ;;  %v4017_v31 = vrot.slane %v4015_v40, 5  ;;  %v5235_v15 = vrot.slane %v5126_v19, 5  ;;  %v7755_v59 = vrot.slane %v12692_v11, 9  ;;  %v12725_v17 = vld [vmem:[#allocation3 + $0x154] sm:$0xff]  ;;  %v5007_v19 = vpop.permute.xlu1 %5006 }
 0x55d   : > { %v3700_v20 = vld [vmem:[#allocation2 + $0xb0] sm:$0x1]  ;;  %v3978_v55 = vor.u32 %v3977_v5, %v3974_v10  ;;  %v5238_v24 = vrot.slane %v12700_v12, 5  ;;  %v5242_v63 = vrot.slane %v5129_v14, 5  ;;  %v4029_v16 = vshll.u32 %v12709_v46, 16  ;;  %v5436_v36 = vld [vmem:[#allocation3 + $0x140] sm:$0xff] }
 0x55e   : > { %v3695_v57 = vld [vmem:[#allocation2 + $0x9c] sm:$0xf]  ;;  %v4013_v18 = vrot.slane %v4012_v37, 4  ;;  %v5236_v9 = vsel %vm10543_vm3, %v7754_v58, %v5235_v15  ;;  %v5245_v7 = vrot.slane %v5130_v61, 5  ;;  %v5131_v60 = vld [vmem:[#allocation2 + $0x54] sm:$0xe]  ;;  %v7808_v43 = vcombine.low %v5436_v36, %v12725_v17 }
 0x55f   : > { %3185 = vst.msk [vmem:[#allocation3 + $0x1f4] sm:$0xf] %vm3159_vm5, %v3114_v21  ;;  %v3979_v62 = vrot.slane %v3978_v55, 4  ;;  %v5237_v51 = vrot.slane %v5235_v15, 4  ;;  %v5243_v44 = vsel %vm10543_vm3, %v7755_v59, %v5242_v63  ;;  %v5132_v27 = vld [vmem:[#allocation2 + $0x58] sm:$0xf]  ;;  %v3116_v5 = vpop.permute.xlu0 %3115 }
 0x560   : > { %5362 = vst.msk [vmem:[#allocation3 + $0x88] sm:$0xf] %vm2286_vm6, %v5236_v9  ;;  %v4018_v4 = vsel %vm10574_vm4, %v4013_v18, %v4017_v31  ;;  %v5244_v49 = vrot.slane %v5242_v63, 4  ;;  %5364 = vst.msk [vmem:[#allocation3 + $0xb0] sm:$0xf] %vm2286_vm6, %v5243_v44  ;;  %v12743_v54 = vrot.slane %v4029_v16, 5  ;;  %v3118_v26 = vpop.permute.xlu1 %3117 }
 0x561   : > { %4467 = vst.msk [vmem:[#allocation3 + $0xa8] sm:$0xf] %vm3159_vm5, %v4380_v25  ;;  %v5133_v30 = vld [vmem:[#allocation2 + $0x5c] sm:$0x1]  ;;  %v3984_v45 = vsel %vm10574_vm4, %v3979_v62, %v12646_v29  ;;  %v5239_v2 = vsel %vm10543_vm3, %v5237_v51, %v5238_v24  ;;  %v4033_v39 = vshrl.u32 %v12709_v46, 16  ;;  %v4039_v32 = vshll.u32 %v3700_v20, 16  ;;  %6322 = vmatmul.mubr.bf16.gmra.mxu1 %v7808_v43 }
 0x562   : > { %4148 = vst.msk [vmem:[#allocation3 + $0x1fc] sm:$0xf] %vm2286_vm6, %v4018_v4  ;;  %v5134_v47 = vld [vmem:[#allocation2 + $0x60] sm:$0xe]  ;;  %v8638_v11 = vld [vmem:[#allocation3 + $0x84] ss:$20 sps:$4 sm:$0xff]   ;;  %v5246_v41 = vsel %vm10543_vm3, %v5244_v49, %v5245_v7 }
 0x563   : > { %v8640_v3 = vld [vmem:[#allocation3 + $0x80] ss:$20 sps:$4 sm:$0xff]   ;;  %4145 = vst.msk [vmem:[#allocation3 + $0x1c0] sm:$0xf] %vm2286_vm6, %v3984_v45  ;;  %5363 = vst.msk [vmem:[#allocation3 + $0x9c] sm:$0xf] %vm2286_vm6, %v5239_v2  ;;  %6442 = vmatprep.mubr.bf16.mxu0 %v8638_v11 }
 0x564   : > { %v3996_v29 = vshrl.u32 %v3695_v57, 16  ;;  %v8631_v13 = vld [vmem:[#allocation3 + $0x16c] ss:$20 sps:$4 sm:$0xff]   ;;  %5093 = vst.msk [vmem:[#allocation3 + $0xc0] sm:$0xf] %vm3159_vm5, %v5007_v19  ;;  %v4035_v40 = vrot.slane %v4033_v39, 4  ;;  %6443 = vmatmul.mubr.bf16.gmra.mxu0 %v8640_v3  ;;  %v5011_v18 = vpop.permute.xlu1 %5010 }
 0x565   : > { %5365 = vst.msk [vmem:[#allocation3 + $0xc4] sm:$0xf] %vm2286_vm6, %v5246_v41  ;;  %v4041_v12 = vrot.slane %v4039_v32, 5  ;;  %v3999_v14 = vshll.u32 %v3695_v57, 16  ;;  %v7756_v0 = vrot.slane %v5131_v60, 9  ;;  %v5249_v53 = vrot.slane %v5132_v27, 5  ;;  %6329 = vmatprep.mubr.bf16.mxu1 %v8631_v13  ;;  %v3584_v60 = vpop.permute.xlu0 %3583 }
 0x566   : > { %5092 = vst.msk [vmem:[#allocation3 + $0xac] sm:$0xf] %vm3159_vm5, %v5005_v42  ;;  %v3998_v28 = vrot.slane %v3996_v29, 4  ;;  %v5252_v1 = vrot.slane %v5133_v30, 5  ;;  %v5135_v46 = vld [vmem:[#allocation2 + $0x64] sm:$0xf]  ;;  %v4036_v48 = vor.u32 %v4035_v40, %v12743_v54 }
 0x567   : > { %v7757_v8 = vrot.slane %v5134_v47, 9  ;;  %v4001_v38 = vrot.slane %v3999_v14, 5  ;;  %v5136_v56 = vld [vmem:[#allocation2 + $0x68] sm:$0x1]  ;;  %v5256_v50 = vrot.slane %v5135_v46, 5  ;;  %v5250_v34 = vsel %vm10543_vm3, %v7756_v0, %v5249_v53  ;;  %v5445_v15 = vld [vmem:[#allocation3 + $0x17c] sm:$0xff] }
 0x568   : > { %v4519_v33 = vld [vmem:[#allocation2 + $0xb8] sm:$0xf]  ;;  %v5251_v10 = vrot.slane %v5249_v53, 4  ;;  %3187 = vst.msk [vmem:[#allocation3 + $0x21c] sm:$0xf] %vm3159_vm5, %v3118_v26  ;;  %v4037_v58 = vrot.slane %v4036_v48, 4 }
 0x569   : > { %4551 = vst.msk [vmem:[#allocation3 + $0x228] sm:$0xf] %vm2286_vm6, %v4519_v33  ;;  %v4002_v61 = vor.u32 %v4001_v38, %v3998_v28  ;;  %5366 = vst.msk [vmem:[#allocation3 + $0xd8] sm:$0xf] %vm2286_vm6, %v5250_v34  ;;  %v5257_v37 = vsel %vm10543_vm3, %v7757_v8, %v5256_v50  ;;  %v4516_v31 = vld [vmem:[#allocation2 + $0xa8] sm:$0xf]  ;;  %v4384_v3 = vpop.permute.xlu0 %4383 }
 0x56a   : > { %3186 = vst.msk [vmem:[#allocation3 + $0x208] sm:$0xf] %vm3159_vm5, %v3116_v5  ;;  %v5253_v59 = vsel %vm10543_vm3, %v5251_v10, %v5252_v1  ;;  %v5258_v20 = vrot.slane %v5256_v50, 4  ;;  %v5259_v17 = vrot.slane %v5136_v56, 5  ;;  %v3702_v55 = vld [vmem:[#allocation2 + $0xb8] sm:$0xf]  ;;  %v4042_v24 = vsel %vm10574_vm4, %v4037_v58, %v4041_v12 }
 0x56b   : > { %5368 = vst.msk [vmem:[#allocation3 + $0x100] sm:$0xf] %vm2286_vm6, %v5257_v37  ;;  %4548 = vst.msk [vmem:[#allocation3 + $0x1ec] sm:$0xf] %vm2286_vm6, %v4516_v31  ;;  %v4003_v63 = vrot.slane %v4002_v61, 4  ;;  %v4053_v57 = vshll.u32 %v3702_v55, 16 }
 0x56c   : > { %5367 = vst.msk [vmem:[#allocation3 + $0xec] sm:$0xf] %vm2286_vm6, %v5253_v59  ;;  %v3703_v16 = vld [vmem:[#allocation2 + $0xbc] sm:$0x1]  ;;  %v5442_v21 = vld [vmem:[#allocation3 + $0x168] sm:$0xff]  ;;  %v5260_v9 = vsel %vm10543_vm3, %v5258_v20, %v5259_v17  ;;  %v4057_v7 = vshrl.u32 %v3702_v55, 16 }
 0x56d   : > { %4150 = vst.msk [vmem:[#allocation3 + $0x224] sm:$0xf] %vm2286_vm6, %v4042_v24  ;;  %v8636_v25 = vld [vmem:[#allocation3 + $0x194] ss:$20 sps:$4 sm:$0xff]   ;;  %v8643_v36 = vld [vmem:[#allocation3 + $0xac] ss:$20 sps:$4 sm:$0xff]   ;;  %v4008_v51 = vsel %vm10574_vm4, %v4003_v63, %v12698_v6  ;;  %v7813_v27 = vcombine.low %v5442_v21, %v5445_v15  ;;  %v3122_v6 = vpop.permute.xlu1 %3121  ;;  %v5009_v50 = vpop.permute.xlu0 %5008 }
 0x56e   : > { %5095 = vst.msk [vmem:[#allocation3 + $0xe8] sm:$0xf] %vm3159_vm5, %v5011_v18  ;;  %v8645_v62 = vld [vmem:[#allocation3 + $0xa8] ss:$20 sps:$4 sm:$0xff]   ;;  %v12785_v44 = vrot.slane %v4053_v57, 5  ;;  %v4059_v35 = vrot.slane %v4057_v7, 4  ;;  %6450 = vmatprep.mubr.bf16.mxu0 %v8643_v36 }
 0x56f   : > { %5369 = vst.msk [vmem:[#allocation3 + $0x114] sm:$0xf] %vm2286_vm6, %v5260_v9  ;;  %4147 = vst.msk [vmem:[#allocation3 + $0x1e8] sm:$0xf] %vm2286_vm6, %v4008_v51  ;;  %v4063_v4 = vshll.u32 %v3703_v16, 16  ;;  %6330 = vmatmul.mubr.bf16.gmra.mxu1 %v7813_v27  ;;  %6451 = vmatmul.mubr.bf16.gmra.mxu0 %v8645_v62  ;;  %v5451_v13 = vld [vmem:[#allocation3 + $0x1a4] sm:$0xff] }
 0x570   : > { %3653 = vst.msk [vmem:[#allocation3 + $0x20c] sm:$0xf] %vm3159_vm5, %v3584_v60  ;;  %v3698_v49 = vld [vmem:[#allocation2 + $0xa8] sm:$0xf]  ;;  %v5137_v30 = vld [vmem:[#allocation2 + $0x6c] sm:$0xe]  ;;  %v4060_v47 = vor.u32 %v4059_v35, %v12785_v44  ;;  %6337 = vmatprep.mubr.bf16.mxu1 %v8636_v25 }
 0x571   : > { %v4020_v45 = vshrl.u32 %v3698_v49, 16  ;;  %v4023_v2 = vshll.u32 %v3698_v49, 16  ;;  %v5138_v39 = vld [vmem:[#allocation2 + $0x70] sm:$0xf]  ;;  %v5139_v32 = vld [vmem:[#allocation2 + $0x74] sm:$0x1]  ;;  %v5015_v46 = vpop.permute.xlu1 %5014  ;;  %v3120_v21 = vpop.permute.xlu0 %3119 }
 0x572   : > { %v4065_v43 = vrot.slane %v4063_v4, 5  ;;  %v7758_v19 = vrot.slane %v5137_v30, 9  ;;  %v5263_v11 = vrot.slane %v5138_v39, 5  ;;  %3189 = vst.msk [vmem:[#allocation3 + $0x244] sm:$0xf] %vm3159_vm5, %v3122_v6  ;;  %v5266_v42 = vrot.slane %v5139_v32, 5 }
 0x573   : > { %v4022_v41 = vrot.slane %v4020_v45, 4  ;;  %v4025_v29 = vrot.slane %v4023_v2, 5  ;;  %4469 = vst.msk [vmem:[#allocation3 + $0xd0] sm:$0xf] %vm3159_vm5, %v4384_v3  ;;  %v4061_v40 = vrot.slane %v4060_v47, 4  ;;  %v5448_v56 = vld [vmem:[#allocation3 + $0x190] sm:$0xff] }
 0x574   : > { %v5264_v12 = vsel %vm10543_vm3, %v7758_v19, %v5263_v11  ;;  %v5265_v14 = vrot.slane %v5263_v11, 4  ;;  %v5140_v28 = vld [vmem:[#allocation2 + $0x78] sm:$0xe]  ;;  %v5141_v53 = vld [vmem:[#allocation2 + $0x7c] sm:$0xf]  ;;  %v7818_v5 = vcombine.low %v5448_v56, %v5451_v13  ;;  %v5454_v51 = vld [vmem:[#allocation3 + $0x1b8] sm:$0xff] }
 0x575   : > { %v4026_v0 = vor.u32 %v4025_v29, %v4022_v41  ;;  %5370 = vst.msk [vmem:[#allocation3 + $0x128] sm:$0xf] %vm2286_vm6, %v5264_v12  ;;  %v5142_v1 = vld [vmem:[#allocation2 + $0x80] sm:$0x1]  ;;  %v4066_v8 = vsel %vm10574_vm4, %v4061_v40, %v4065_v43  ;;  %v7759_v38 = vrot.slane %v5140_v28, 9  ;;  %v5270_v34 = vrot.slane %v5141_v53, 5  ;;  %v3126_v24 = vpop.permute.xlu1 %3125  ;;  %v3588_v47 = vpop.permute.xlu0 %3587 }
 0x576   : > { %v5267_v48 = vsel %vm10543_vm3, %v5265_v14, %v5266_v42  ;;  %v8641_v33 = vld [vmem:[#allocation3 + $0x1bc] ss:$20 sps:$4 sm:$0xff]   ;;  %5097 = vst.msk [vmem:[#allocation3 + $0x110] sm:$0xf] %vm3159_vm5, %v5015_v46  ;;  %v5273_v10 = vrot.slane %v5142_v1, 5 }
 0x577   : > { %4152 = vst.msk [vmem:[#allocation3 + $0x24c] sm:$0xf] %vm2286_vm6, %v4066_v8  ;;  %v4027_v26 = vrot.slane %v4026_v0, 4  ;;  %5371 = vst.msk [vmem:[#allocation3 + $0x13c] sm:$0xf] %vm2286_vm6, %v5267_v48  ;;  %v5271_v15 = vsel %vm10543_vm3, %v7759_v38, %v5270_v34  ;;  %v5272_v59 = vrot.slane %v5270_v34, 4  ;;  %6338 = vmatmul.mubr.bf16.gmra.mxu1 %v7818_v5 }
 0x578   : > { %5094 = vst.msk [vmem:[#allocation3 + $0xd4] sm:$0xf] %vm3159_vm5, %v5009_v50  ;;  %v4521_v58 = vld [vmem:[#allocation2 + $0xc4] sm:$0xf]  ;;  %v4518_v61 = vld [vmem:[#allocation2 + $0xb4] sm:$0xf]  ;;  %6345 = vmatprep.mubr.bf16.mxu1 %v8641_v33 }
 0x579   : > { %v3705_v37 = vld [vmem:[#allocation2 + $0xc4] sm:$0xf]  ;;  %v4032_v31 = vsel %vm10574_vm4, %v4027_v26, %v12743_v54  ;;  %4553 = vst.msk [vmem:[#allocation3 + $0x250] sm:$0xf] %vm2286_vm6, %v4521_v58  ;;  %4550 = vst.msk [vmem:[#allocation3 + $0x214] sm:$0xf] %vm2286_vm6, %v4518_v61  ;;  %v5274_v18 = vsel %vm10543_vm3, %v5272_v59, %v5273_v10  ;;  %v5019_v30 = vpop.permute.xlu1 %5018  ;;  %v4388_v56 = vpop.permute.xlu0 %4387 }
 0x57a   : > { %v3706_v20 = vld [vmem:[#allocation2 + $0xc8] sm:$0x1]  ;;  %v4077_v17 = vshll.u32 %v3705_v37, 16  ;;  %v3701_v55 = vld [vmem:[#allocation2 + $0xb4] sm:$0xf]  ;;  %v4081_v63 = vshrl.u32 %v3705_v37, 16 }
 0x57b   : > { %4149 = vst.msk [vmem:[#allocation3 + $0x210] sm:$0xf] %vm2286_vm6, %v4032_v31  ;;  %5372 = vst.msk [vmem:[#allocation3 + $0x150] sm:$0xf] %vm2286_vm6, %v5271_v15  ;;  %v4087_v16 = vshll.u32 %v3706_v20, 16  ;;  %v4044_v54 = vshrl.u32 %v3701_v55, 16 }
 0x57c   : > { %v4047_v57 = vshll.u32 %v3701_v55, 16  ;;  %3191 = vst.msk [vmem:[#allocation3 + $0x26c] sm:$0xf] %vm3159_vm5, %v3126_v24  ;;  %v12815_v9 = vrot.slane %v4077_v17, 5  ;;  %v5143_v7 = vld [vmem:[#allocation2 + $0x84] sm:$0xe] }
 0x57d   : > { %v5144_v60 = vld [vmem:[#allocation2 + $0x88] sm:$0xf]  ;;  %3188 = vst.msk [vmem:[#allocation3 + $0x230] sm:$0xf] %vm3159_vm5, %v3120_v21  ;;  %v4083_v25 = vrot.slane %v4081_v63, 4  ;;  %v4046_v36 = vrot.slane %v4044_v54, 4  ;;  %v4398_v1 = vpop.permute.xlu1 %4397  ;;  %v5013_v24 = vpop.permute.xlu0 %5012 }
 0x57e   : > { %5373 = vst.msk [vmem:[#allocation3 + $0x164] sm:$0xf] %vm2286_vm6, %v5274_v18  ;;  %v4049_v62 = vrot.slane %v4047_v57, 5  ;;  %v5457_v27 = vld [vmem:[#allocation3 + $0x1cc] sm:$0xff]  ;;  %v5145_v35 = vld [vmem:[#allocation2 + $0x8c] sm:$0x1] }
 0x57f   : > { %v7760_v4 = vrot.slane %v5143_v7, 9  ;;  %v5277_v49 = vrot.slane %v5144_v60, 5  ;;  %v4084_v45 = vor.u32 %v4083_v25, %v12815_v9  ;;  %v4089_v2 = vrot.slane %v4087_v16, 5  ;;  %v5146_v6 = vld [vmem:[#allocation2 + $0x90] sm:$0xe]  ;;  %v5460_v55 = vld [vmem:[#allocation3 + $0x1e0] sm:$0xff] }
 0x580   : > { %v4050_v39 = vor.u32 %v4049_v62, %v4046_v36  ;;  %v5280_v32 = vrot.slane %v5145_v35, 5  ;;  %v8646_v43 = vld [vmem:[#allocation3 + $0x1e4] ss:$20 sps:$4 sm:$0xff]   ;;  %v8648_v19 = vld [vmem:[#allocation3 + $0xd4] ss:$20 sps:$4 sm:$0xff]   ;;  %v7823_v29 = vcombine.low %v5454_v51, %v5457_v27  ;;  %v7761_v0 = vrot.slane %v5146_v6, 9 }
 0x581   : > { %v8650_v11 = vld [vmem:[#allocation3 + $0xd0] ss:$20 sps:$4 sm:$0xff]   ;;  %5099 = vst.msk [vmem:[#allocation3 + $0x138] sm:$0xf] %vm3159_vm5, %v5019_v30  ;;  %v5278_v3 = vsel %vm10543_vm3, %v7760_v4, %v5277_v49  ;;  %v5279_v41 = vrot.slane %v5277_v49, 4  ;;  %v4085_v42 = vrot.slane %v4084_v45, 4  ;;  %6458 = vmatprep.mubr.bf16.mxu0 %v8648_v19  ;;  %v5023_v15 = vpop.permute.xlu1 %5022  ;;  %v3124_v30 = vpop.permute.xlu0 %3123 }
 0x582   : > { %3655 = vst.msk [vmem:[#allocation3 + $0x234] sm:$0xf] %vm3159_vm5, %v3588_v47  ;;  %v4051_v13 = vrot.slane %v4050_v39, 4  ;;  %v5147_v40 = vld [vmem:[#allocation2 + $0x94] sm:$0xf]  ;;  %6346 = vmatmul.mubr.bf16.gmra.mxu1 %v7823_v29  ;;  %6459 = vmatmul.mubr.bf16.gmra.mxu0 %v8650_v11  ;;  %v5463_v10 = vld [vmem:[#allocation3 + $0x1f4] sm:$0xff] }
 0x583   : > { %5374 = vst.msk [vmem:[#allocation3 + $0x178] sm:$0xf] %vm2286_vm6, %v5278_v3  ;;  %v5148_v12 = vld [vmem:[#allocation2 + $0x98] sm:$0x1]  ;;  %v5281_v14 = vsel %vm10543_vm3, %v5279_v41, %v5280_v32  ;;  %v5284_v28 = vrot.slane %v5147_v40, 5  ;;  %v4090_v46 = vsel %vm10574_vm4, %v4085_v42, %v4089_v2  ;;  %6353 = vmatprep.mubr.bf16.mxu1 %v8646_v43  ;;  %v7828_v16 = vcombine.low %v5460_v55, %v5463_v10  ;;  %v5428_v3 = vld [vmem:[#allocation3 + $0x10c] sm:$0xff] }
 0x584   : > { %v5287_v53 = vrot.slane %v5148_v12, 5  ;;  %v4056_v8 = vsel %vm10574_vm4, %v4051_v13, %v12785_v44  ;;  %5375 = vst.msk [vmem:[#allocation3 + $0x18c] sm:$0xf] %vm2286_vm6, %v5281_v14  ;;  %v4523_v48 = vld [vmem:[#allocation2 + $0xd0] sm:$0xf]  ;;  %v5469_v11 = vld [vmem:[#allocation3 + $0x21c] sm:$0xff] }
 0x585   : > { %v4520_v38 = vld [vmem:[#allocation2 + $0xc0] sm:$0xf]  ;;  %4476 = vst.msk [vmem:[#allocation3 + $0x15c] sm:$0xf] %vm3159_vm5, %v4398_v1  ;;  %v5285_v50 = vsel %vm10543_vm3, %v7761_v0, %v5284_v28  ;;  %v5286_v33 = vrot.slane %v5284_v28, 4  ;;  %v4402_v62 = vpop.permute.xlu1 %4401  ;;  %v3592_v1 = vpop.permute.xlu0 %3591 }
 0x586   : > { %4154 = vst.msk [vmem:[#allocation3 + $0x274] sm:$0xf] %vm2286_vm6, %v4090_v46  ;;  %4151 = vst.msk [vmem:[#allocation3 + $0x238] sm:$0xf] %vm2286_vm6, %v4056_v8  ;;  %v3704_v44 = vld [vmem:[#allocation2 + $0xc0] sm:$0xf] }
 0x587   : > { %4555 = vst.msk [vmem:[#allocation3 + $0x278] sm:$0xf] %vm2286_vm6, %v4523_v48  ;;  %4552 = vst.msk [vmem:[#allocation3 + $0x23c] sm:$0xf] %vm2286_vm6, %v4520_v38  ;;  %v5149_v26 = vld [vmem:[#allocation2 + $0x9c] sm:$0xe]  ;;  %v5288_v5 = vsel %vm10543_vm3, %v5286_v33, %v5287_v53 }
 0x588   : > { %4471 = vst.msk [vmem:[#allocation3 + $0xf8] sm:$0xf] %vm3159_vm5, %v4388_v56  ;;  %v5150_v34 = vld [vmem:[#allocation2 + $0xa0] sm:$0xf]  ;;  %v4068_v58 = vshrl.u32 %v3704_v44, 16  ;;  %v4071_v61 = vshll.u32 %v3704_v44, 16 }
 0x589   : > { %5376 = vst.msk [vmem:[#allocation3 + $0x1a0] sm:$0xf] %vm2286_vm6, %v5285_v50  ;;  %v5151_v37 = vld [vmem:[#allocation2 + $0xa4] sm:$0x1]  ;;  %v7762_v31 = vrot.slane %v5149_v26, 9  ;;  %v5291_v59 = vrot.slane %v5150_v34, 5  ;;  %v5027_v13 = vpop.permute.xlu1 %5026 }
 0x58a   : > { %5377 = vst.msk [vmem:[#allocation3 + $0x1b4] sm:$0xf] %vm2286_vm6, %v5288_v5  ;;  %v5294_v20 = vrot.slane %v5151_v37, 5  ;;  %v5152_v17 = vld [vmem:[#allocation2 + $0xa8] sm:$0xe]  ;;  %v4070_v63 = vrot.slane %v4068_v58, 4  ;;  %6354 = vmatmul.mubr.bf16.gmra.mxu1 %v7828_v16 }
 0x58b   : > { %5101 = vst.msk [vmem:[#allocation3 + $0x160] sm:$0xf] %vm3159_vm5, %v5023_v15  ;;  %5096 = vst.msk [vmem:[#allocation3 + $0xfc] sm:$0xf] %vm3159_vm5, %v5013_v24  ;;  %v4073_v54 = vrot.slane %v4071_v61, 5  ;;  %v5292_v57 = vsel %vm10543_vm3, %v7762_v31, %v5291_v59  ;;  %v5293_v21 = vrot.slane %v5291_v59, 4  ;;  %v4392_v31 = vpop.permute.xlu0 %4391 }
 0x58c   : > { %v5153_v18 = vld [vmem:[#allocation2 + $0xac] sm:$0xf]  ;;  %v5154_v7 = vld [vmem:[#allocation2 + $0xb0] sm:$0x1]  ;;  %v8652_v60 = vld [vmem:[#allocation3 + $0x20c] ss:$20 sps:$4 sm:$0xff]  }
 0x58d   : > { %5378 = vst.msk [vmem:[#allocation3 + $0x1c8] sm:$0xf] %vm2286_vm6, %v5292_v57  ;;  %v7763_v25 = vrot.slane %v5152_v17, 9  ;;  %v5298_v36 = vrot.slane %v5153_v18, 5  ;;  %v4074_v51 = vor.u32 %v4073_v54, %v4070_v63  ;;  %v5295_v27 = vsel %vm10543_vm3, %v5293_v21, %v5294_v20  ;;  %v4522_v4 = vld [vmem:[#allocation2 + $0xcc] sm:$0xf]  ;;  %6361 = vmatprep.mubr.bf16.mxu1 %v8652_v60  ;;  %v4406_v61 = vpop.permute.xlu1 %4405 }
 0x58e   : > { %v5301_v35 = vrot.slane %v5154_v7, 5  ;;  %v5155_v49 = vld [vmem:[#allocation2 + $0xb4] sm:$0xe]  ;;  %4478 = vst.msk [vmem:[#allocation3 + $0x184] sm:$0xf] %vm3159_vm5, %v4402_v62  ;;  %v5466_v53 = vld [vmem:[#allocation3 + $0x208] sm:$0xff] }
 0x58f   : > { %5379 = vst.msk [vmem:[#allocation3 + $0x1dc] sm:$0xf] %vm2286_vm6, %v5295_v27  ;;  %v5299_v45 = vsel %vm10543_vm3, %v7763_v25, %v5298_v36  ;;  %v5300_v2 = vrot.slane %v5298_v36, 4  ;;  %4554 = vst.msk [vmem:[#allocation3 + $0x264] sm:$0xf] %vm2286_vm6, %v4522_v4  ;;  %v7764_v32 = vrot.slane %v5155_v49, 9  ;;  %v7833_v38 = vcombine.low %v5466_v53, %v5469_v11  ;;  %v5017_v16 = vpop.permute.xlu0 %5016 }
 0x590   : > { %v5156_v39 = vld [vmem:[#allocation2 + $0xb8] sm:$0xf]  ;;  %3190 = vst.msk [vmem:[#allocation3 + $0x258] sm:$0xf] %vm3159_vm5, %v3124_v30  ;;  %v4075_v6 = vrot.slane %v4074_v51, 4  ;;  %v5475_v17 = vld [vmem:[#allocation3 + $0x244] sm:$0xff] }
 0x591   : > { %5380 = vst.msk [vmem:[#allocation3 + $0x1f0] sm:$0xf] %vm2286_vm6, %v5299_v45  ;;  %v5157_v47 = vld [vmem:[#allocation2 + $0xbc] sm:$0x1]  ;;  %v5305_v43 = vrot.slane %v5156_v39, 5  ;;  %v5302_v41 = vsel %vm10543_vm3, %v5300_v2, %v5301_v35  ;;  %v5031_v24 = vpop.permute.xlu1 %5030  ;;  %v5472_v63 = vld [vmem:[#allocation3 + $0x230] sm:$0xff] }
 0x592   : > { %v5158_v19 = vld [vmem:[#allocation2 + $0xc0] sm:$0xe]  ;;  %v5308_v29 = vrot.slane %v5157_v47, 5  ;;  %v4080_v40 = vsel %vm10574_vm4, %v4075_v6, %v12815_v9  ;;  %5381 = vst.msk [vmem:[#allocation3 + $0x204] sm:$0xf] %vm2286_vm6, %v5302_v41  ;;  %v5425_v46 = vld [vmem:[#allocation3 + $0xf8] sm:$0xff]  ;;  %6362 = vmatmul.mubr.bf16.gmra.mxu1 %v7833_v38  ;;  %v7838_v54 = vcombine.low %v5472_v63, %v5475_v17 }
 0x593   : > { %v7765_v42 = vrot.slane %v5158_v19, 9  ;;  %v5306_v12 = vsel %vm10543_vm3, %v7764_v32, %v5305_v43  ;;  %v5307_v14 = vrot.slane %v5305_v43, 4  ;;  %v5159_v0 = vld [vmem:[#allocation2 + $0xc4] sm:$0xf]  ;;  %v5160_v28 = vld [vmem:[#allocation2 + $0xc8] sm:$0x1]  ;;  %v7800_v56 = vcombine.low %v5425_v46, %v5428_v3  ;;  %v4396_v18 = vpop.permute.xlu0 %4395 }
 0x594   : > { %v8654_v8 = vld [vmem:[#allocation3 + $0xfc] ss:$20 sps:$4 sm:$0xff]   ;;  %v8656_v48 = vld [vmem:[#allocation3 + $0x234] ss:$20 sps:$4 sm:$0xff]   ;;  %5103 = vst.msk [vmem:[#allocation3 + $0x188] sm:$0xf] %vm3159_vm5, %v5027_v13 }
 0x595   : > { %4153 = vst.msk [vmem:[#allocation3 + $0x260] sm:$0xf] %vm2286_vm6, %v4080_v40  ;;  %5382 = vst.msk [vmem:[#allocation3 + $0x218] sm:$0xf] %vm2286_vm6, %v5306_v12  ;;  %v5312_v22 = vrot.slane %v5159_v0, 5  ;;  %v5315_v9 = vrot.slane %v5160_v28, 5  ;;  %v5309_v50 = vsel %vm10543_vm3, %v5307_v14, %v5308_v29  ;;  %6466 = vmatprep.mubr.bf16.mxu0 %v8654_v8  ;;  %6369 = vmatprep.mubr.bf16.mxu1 %v8656_v48  ;;  %v4410_v21 = vpop.permute.xlu1 %4409 }
 0x596   : > { %3657 = vst.msk [vmem:[#allocation3 + $0x25c] sm:$0xf] %vm3159_vm5, %v3592_v1  ;;  %v5161_v33 = vld [vmem:[#allocation2 + $0xcc] sm:$0xe]  ;;  %v5162_v44 = vld [vmem:[#allocation2 + $0xd0] sm:$0xf]  ;;  %6467 = vmatmul.mubr.bf16.gmra.mxu0 %v7800_v56 }
 0x597   : > { %5383 = vst.msk [vmem:[#allocation3 + $0x22c] sm:$0xf] %vm2286_vm6, %v5309_v50  ;;  %v5313_v26 = vsel %vm10543_vm3, %v7765_v42, %v5312_v22  ;;  %v5314_v34 = vrot.slane %v5312_v22, 4  ;;  %v5163_v10 = vld [vmem:[#allocation2 + $0xd4] sm:$0x1]  ;;  %v7766_v5 = vrot.slane %v5161_v33, 9  ;;  %v5021_v25 = vpop.permute.xlu0 %5020 }
 0x598   : > { %v5319_v58 = vrot.slane %v5162_v44, 5  ;;  %5384 = vst.msk [vmem:[#allocation3 + $0x240] sm:$0xf] %vm2286_vm6, %v5313_v26  ;;  %v5322_v37 = vrot.slane %v5163_v10, 5  ;;  %v5481_v7 = vld [vmem:[#allocation3 + $0x26c] sm:$0xff]  ;;  %v5434_v62 = vld [vmem:[#allocation3 + $0x134] sm:$0xff] }
 0x599   : > { %4480 = vst.msk [vmem:[#allocation3 + $0x1ac] sm:$0xf] %vm3159_vm5, %v4406_v61  ;;  %v5316_v15 = vsel %vm10543_vm3, %v5314_v34, %v5315_v9  ;;  %4473 = vst.msk [vmem:[#allocation3 + $0x120] sm:$0xf] %vm3159_vm5, %v4392_v31  ;;  %v5035_v60 = vpop.permute.xlu1 %5034  ;;  %v8662_v4 = vld [vmem:[#allocation3 + $0x10] ss:$20 sps:$4 sm:$0xff]  }
 0x59a   : > { %v5320_v59 = vsel %vm10543_vm3, %v7766_v5, %v5319_v58  ;;  %v5321_v20 = vrot.slane %v5319_v58, 4  ;;  %5385 = vst.msk [vmem:[#allocation3 + $0x254] sm:$0xf] %vm2286_vm6, %v5316_v15  ;;  %6370 = vmatmul.mubr.bf16.gmra.mxu1 %v7838_v54  ;;  %v5440_v32 = vld [vmem:[#allocation3 + $0x15c] sm:$0xff]  ;;  %v8665_v43 = vld [vmem:[#allocation3 + $0x38] ss:$20 sps:$4 sm:$0xff]  }
 0x59b   : > { %5386 = vst.msk [vmem:[#allocation3 + $0x268] sm:$0xf] %vm2286_vm6, %v5320_v59  ;;  %v4400_v30 = vpop.permute.xlu0 %4399  ;;  %v8666_v19 = vld [vmem:[#allocation3 + $0x60] ss:$20 sps:$4 sm:$0xff]   ;;  %v5446_v13 = vld [vmem:[#allocation3 + $0x184] sm:$0xff] }
 0x59c   : > { %v5323_v55 = vsel %vm10543_vm3, %v5321_v20, %v5322_v37  ;;  %5105 = vst.msk [vmem:[#allocation3 + $0x1b0] sm:$0xf] %vm3159_vm5, %v5031_v24  ;;  %5098 = vst.msk [vmem:[#allocation3 + $0x124] sm:$0xf] %vm3159_vm5, %v5017_v16  ;;  %v8669_v14 = vld [vmem:[#allocation3 + $0x88] ss:$20 sps:$4 sm:$0xff]  }
 0x59d   : > { %5387 = vst.msk [vmem:[#allocation3 + $0x27c] sm:$0xf] %vm2286_vm6, %v5323_v55  ;;  %v8658_v57 = vld [vmem:[#allocation3 + $0x25c] ss:$20 sps:$4 sm:$0xff]   ;;  %v4414_v49 = vpop.permute.xlu1 %4413  ;;  %v8673_v38 = vld [vmem:[#allocation3 + $0xd8] ss:$20 sps:$4 sm:$0xff]  }
 0x59e   : > { %6377 = vmatprep.mubr.bf16.mxu1 %v8658_v57  ;;  %4482 = vst.msk [vmem:[#allocation3 + $0x1d4] sm:$0xf] %vm3159_vm5, %v4410_v21  ;;  %4475 = vst.msk [vmem:[#allocation3 + $0x148] sm:$0xf] %vm3159_vm5, %v4396_v18  ;;  %v5478_v52 = vld [vmem:[#allocation3 + $0x258] sm:$0xff]  ;;  %v12922_v15 = vld [vmem:[%s13908_s5 + $0x18] sm:$0xff] }
 0x59f   : > { %5107 = vst.msk [vmem:[#allocation3 + $0x1d8] sm:$0xf] %vm3159_vm5, %v5035_v60  ;;  %5100 = vst.msk [vmem:[#allocation3 + $0x14c] sm:$0xf] %vm3159_vm5, %v5021_v25  ;;  %v7843_v27 = vcombine.low %v5478_v52, %v5481_v7  ;;  %v5025_v2 = vpop.permute.xlu0 %5024  ;;  %v8670_v0 = vld [vmem:[#allocation3 + $0xb0] ss:$20 sps:$4 sm:$0xff]   ;;  %8456 = vmatpush3.msra.mxu0 %v12922_v15 }
 0x5a0   : > { %4484 = vst.msk [vmem:[#allocation3 + $0x1fc] sm:$0xf] %vm3159_vm5, %v4414_v49  ;;  %4477 = vst.msk [vmem:[#allocation3 + $0x170] sm:$0xf] %vm3159_vm5, %v4400_v30  ;;  %v8674_v56 = vld [vmem:[#allocation3 + $0x100] ss:$20 sps:$4 sm:$0xff]   ;;  %8457 = vmatprep.subr.mxu0 %v14135_v23 }
 0x5a1   : > { %v5039_v45 = vpop.permute.xlu1 %5038  ;;  %5102 = vst.msk [vmem:[#allocation3 + $0x174] sm:$0xf] %vm3159_vm5, %v5025_v2  ;;  %v8677_v61 = vld [vmem:[#allocation3 + $0x128] ss:$20 sps:$4 sm:$0xff]   ;;  %v8678_v37 = vld [vmem:[#allocation3 + $0x150] ss:$20 sps:$4 sm:$0xff]  }
 0x5a2   : > { %6378 = vmatmul.mubr.bf16.gmra.mxu1 %v7843_v27  ;;  %5109 = vst.msk [vmem:[#allocation3 + $0x200] sm:$0xf] %vm3159_vm5, %v5039_v45  ;;  %14149 = vst [vmem:[#allocation48_spill] sm:$0xff] %v12922_v15  ;;  %v8682_v55 = vld [vmem:[#allocation3 + $0x178] ss:$20 sps:$4 sm:$0xff]  }
 0x5a3   : > { %v5431_v36 = vld [vmem:[#allocation3 + $0x120] sm:$0xff]  ;;  %8423 = vmatprep.mubr.msk.bf16.mxu1 %vm1104_vm2, %v8662_v4  ;;  %v4404_v3 = vpop.permute.xlu0 %4403  ;;  %v5452_v48 = vld [vmem:[#allocation3 + $0x1ac] sm:$0xff]  ;;  %v8687_v21 = vld [vmem:[#allocation3 + $0x1c8] ss:$20 sps:$4 sm:$0xff]  }
 0x5a4   : > { %v8660_v51 = vld [vmem:[#allocation3 + $0x124] ss:$20 sps:$4 sm:$0xff]   ;;  %v7805_v35 = vcombine.low %v5431_v36, %v5434_v62  ;;  %4479 = vst.msk [vmem:[#allocation3 + $0x198] sm:$0xf] %vm3159_vm5, %v4404_v3  ;;  %v8683_v24 = vld [vmem:[#allocation3 + $0x1a0] ss:$20 sps:$4 sm:$0xff]  }
 0x5a5   : > { %6474 = vmatprep.mubr.bf16.mxu0 %v8660_v51  ;;  %v4418_v11 = vpop.permute.xlu1 %4417  ;;  %v8688_v18 = vld [vmem:[#allocation3 + $0x1f0] ss:$20 sps:$4 sm:$0xff]   ;;  %v8692_v36 = vld [vmem:[#allocation3 + $0x218] ss:$20 sps:$4 sm:$0xff]   ;;  %v8693_v62 = vld [vmem:[#allocation3 + $0x240] ss:$20 sps:$4 sm:$0xff]  }
 0x5a6   : > { %6475 = vmatmul.mubr.bf16.gmra.mxu0 %v7805_v35  ;;  %v5437_v39 = vld [vmem:[#allocation3 + $0x148] sm:$0xff]  ;;  %4486 = vst.msk [vmem:[#allocation3 + $0x224] sm:$0xf] %vm3159_vm5, %v4418_v11  ;;  %v5458_v10 = vld [vmem:[#allocation3 + $0x1d4] sm:$0xff] }
 0x5a7   : > { %v8663_v6 = vld [vmem:[#allocation3 + $0x14c] ss:$20 sps:$4 sm:$0xff]   ;;  %v7810_v47 = vcombine.low %v5437_v39, %v5440_v32  ;;  %v5029_v29 = vpop.permute.xlu0 %5028  ;;  %v8697_v35 = vld [vmem:[#allocation3 + $0x268] ss:$20 sps:$4 sm:$0xff]  }
 0x5a8   : > { %6482 = vmatprep.mubr.bf16.mxu0 %v8663_v6  ;;  %v5443_v42 = vld [vmem:[#allocation3 + $0x170] sm:$0xff]  ;;  %5104 = vst.msk [vmem:[#allocation3 + $0x19c] sm:$0xf] %vm3159_vm5, %v5029_v29  ;;  %v12942_v4 = vld [vmem:[%s13908_s5 + $0x10] sm:$0xff] }
 0x5a9   : > { %v5043_v41 = vpop.permute.xlu1 %5042  ;;  %v8667_v40 = vld [vmem:[#allocation3 + $0x174] ss:$20 sps:$4 sm:$0xff]   ;;  %v7815_v12 = vcombine.low %v5443_v42, %v5446_v13  ;;  %14150 = vst [vmem:[#allocation49_spill] sm:$0xff] %v12942_v4  ;;  %8458 = vmatpush3.msra.mxu0 %v12942_v4 }
 0x5aa   : > { %8424 = vmatmul.mubr.msk.bf16.vlgmr.msra.gmra.mxu1 %vm1104_vm2, %v8665_v43  ;;  %5111 = vst.msk [vmem:[#allocation3 + $0x228] sm:$0xf] %vm3159_vm5, %v5043_v41  ;;  %8459 = vmatprep.subr.mxu0 %v14135_v23 }
 0x5ab   : > { %8427 = vmatprep.mubr.msk.bf16.mxu1 %vm1104_vm2, %v8666_v19  ;;  %v4408_v53 = vpop.permute.xlu0 %4407 }
 0x5ac   : > { %4481 = vst.msk [vmem:[#allocation3 + $0x1c0] sm:$0xf] %vm3159_vm5, %v4408_v53 }
 0x5ad   : > { %v4422_v28 = vpop.permute.xlu1 %4421 }
 0x5ae   : > { %6483 = vmatmul.mubr.bf16.gmra.mxu0 %v7810_v47  ;;  %4488 = vst.msk [vmem:[#allocation3 + $0x24c] sm:$0xf] %vm3159_vm5, %v4422_v28 }
 0x5af   : > { %6490 = vmatprep.mubr.bf16.mxu0 %v8667_v40  ;;  %v5033_v46 = vpop.permute.xlu0 %5032  ;;  %v5449_v8 = vld [vmem:[#allocation3 + $0x198] sm:$0xff] }
 0x5b0   : > { %v8671_v22 = vld [vmem:[#allocation3 + $0x19c] ss:$20 sps:$4 sm:$0xff]   ;;  %5106 = vst.msk [vmem:[#allocation3 + $0x1c4] sm:$0xf] %vm3159_vm5, %v5033_v46  ;;  %v7820_v9 = vcombine.low %v5449_v8, %v5452_v48 }
 0x5b1   : > { %v5047_v1 = vpop.permute.xlu1 %5046 }
 0x5b2   : > { %8428 = vmatmul.mubr.msk.bf16.gmra.mxu1 %vm1104_vm2, %v8669_v14  ;;  %5113 = vst.msk [vmem:[#allocation3 + $0x250] sm:$0xf] %vm3159_vm5, %v5047_v1  ;;  %v12963_v1 = vld [vmem:[%s13908_s5 + $0x8] sm:$0xff] }
 0x5b3   : > { %8431 = vmatprep.mubr.msk.bf16.mxu1 %vm1104_vm2, %v8670_v0  ;;  %v4412_v33 = vpop.permute.xlu0 %4411  ;;  %14151 = vst [vmem:[#allocation15_spill] sm:$0xff] %v12963_v1  ;;  %8460 = vmatpush3.msra.mxu0 %v12963_v1 }
 0x5b4   : > { %4483 = vst.msk [vmem:[#allocation3 + $0x1e8] sm:$0xf] %vm3159_vm5, %v4412_v33  ;;  %8461 = vmatprep.subr.mxu0 %v14135_v23 }
 0x5b5   : > { %v4426_v50 = vpop.permute.xlu1 %4425 }
 0x5b6   : > { %6491 = vmatmul.mubr.bf16.gmra.mxu0 %v7815_v12  ;;  %4490 = vst.msk [vmem:[#allocation3 + $0x274] sm:$0xf] %vm3159_vm5, %v4426_v50  ;;  %v12974_v50 = vld [vmem:[%s13909_s6] ss:$0 sm:$0xff] }
 0x5b7   : > { %6498 = vmatprep.mubr.bf16.mxu0 %v8671_v22  ;;  %v5037_v26 = vpop.permute.xlu0 %5036  ;;  %v5455_v34 = vld [vmem:[#allocation3 + $0x1c0] sm:$0xff] }
 0x5b8   : > { %v8675_v5 = vld [vmem:[#allocation3 + $0x1c4] ss:$20 sps:$4 sm:$0xff]   ;;  %5108 = vst.msk [vmem:[#allocation3 + $0x1ec] sm:$0xf] %vm3159_vm5, %v5037_v26  ;;  %v7825_v58 = vcombine.low %v5455_v34, %v5458_v10 }
 0x5b9   : > { %v5051_v44 = vpop.permute.xlu1 %5050 }
 0x5ba   : > { %8432 = vmatmul.mubr.msk.bf16.gmra.mxu1 %vm1104_vm2, %v8673_v38  ;;  %5115 = vst.msk [vmem:[#allocation3 + $0x278] sm:$0xf] %vm3159_vm5, %v5051_v44 }
 0x5bb   : > { %8435 = vmatprep.mubr.msk.bf16.mxu1 %vm1104_vm2, %v8674_v56  ;;  %v4416_v31 = vpop.permute.xlu0 %4415  ;;  %v8679_v20 = vld [vmem:[#allocation3 + $0x1e8] ss:$20 sps:$4 sm:$0xff]  }
 0x5bc   : > { %4485 = vst.msk [vmem:[#allocation3 + $0x210] sm:$0xf] %vm3159_vm5, %v4416_v31 }
 0x5be   : > { %6499 = vmatmul.mubr.bf16.gmra.mxu0 %v7820_v9 }
 0x5bf   : > { %6506 = vmatprep.mubr.bf16.mxu0 %v8675_v5  ;;  %v5041_v59 = vpop.permute.xlu0 %5040  ;;  %v8681_v17 = vld [vmem:[#allocation3 + $0x1ec] ss:$20 sps:$4 sm:$0xff]  }
 0x5c0   : > { %5110 = vst.msk [vmem:[#allocation3 + $0x214] sm:$0xf] %vm3159_vm5, %v5041_v59 }
 0x5c2   : > { %8436 = vmatmul.mubr.msk.bf16.gmra.mxu1 %vm1104_vm2, %v8677_v61 }
 0x5c3   : > { %8439 = vmatprep.mubr.msk.bf16.mxu1 %vm1104_vm2, %v8678_v37  ;;  %v4420_v63 = vpop.permute.xlu0 %4419  ;;  %v8684_v54 = vld [vmem:[#allocation3 + $0x210] ss:$20 sps:$4 sm:$0xff]  }
 0x5c4   : > { %4487 = vst.msk [vmem:[#allocation3 + $0x238] sm:$0xf] %vm3159_vm5, %v4420_v63 }
 0x5c6   : > { %6507 = vmatmul.mubr.bf16.gmra.mxu0 %v7825_v58 }
 0x5c7   : > { %6514 = vmatprep.mubr.bf16.mxu0 %v8681_v17  ;;  %v5045_v16 = vpop.permute.xlu0 %5044  ;;  %v8686_v57 = vld [vmem:[#allocation3 + $0x214] ss:$20 sps:$4 sm:$0xff]  }
 0x5c8   : > { %5112 = vst.msk [vmem:[#allocation3 + $0x23c] sm:$0xf] %vm3159_vm5, %v5045_v16 }
 0x5ca   : > { %8440 = vmatmul.mubr.msk.bf16.gmra.mxu1 %vm1104_vm2, %v8682_v55 }
 0x5cb   : > { %8443 = vmatprep.mubr.msk.bf16.mxu1 %vm1104_vm2, %v8683_v24  ;;  %v4424_v52 = vpop.permute.xlu0 %4423  ;;  %v8689_v60 = vld [vmem:[#allocation3 + $0x238] ss:$20 sps:$4 sm:$0xff]  }
 0x5cc   : > { %4489 = vst.msk [vmem:[#allocation3 + $0x260] sm:$0xf] %vm3159_vm5, %v4424_v52  ;;  %v8103_v49 = vpop.f32.mrf.mxu1 }
 0x5ce   : > { %6515 = vmatmul.mubr.bf16.gmra.mxu0 %v8679_v20  ;;  %v8104_v30 = vpop.f32.mrf.mxu1 }
 0x5cf   : > { %6522 = vmatprep.mubr.bf16.mxu0 %v8686_v57  ;;  %v5049_v7 = vpop.permute.xlu0 %5048  ;;  %v8691_v25 = vld [vmem:[#allocation3 + $0x23c] ss:$20 sps:$4 sm:$0xff]   ;;  %v8105_v45 = vadd.f32 %v8104_v30, %v8103_v49  ;;  %v13012_v30 = vld [vmem:[%s13908_s5] sm:$0xff] }
 0x5d0   : > { %5114 = vst.msk [vmem:[#allocation3 + $0x264] sm:$0xf] %vm3159_vm5, %v5049_v7  ;;  %v8106_v2 = vpop.f32.mrf.mxu1  ;;  %14152 = vst [vmem:[#allocation16_spill] sm:$0xff] %v13012_v30  ;;  %8462 = vmatpush3.msra.mxu0 %v13012_v30 }
 0x5d1   : > { %v6260_v10 = vadd.f32 %v8105_v45, %v12974_v50  ;;  %8466 = vmatprep.subr.mxu0 %v14135_v23 }
 0x5d2   : > { %8444 = vmatmul.mubr.msk.bf16.gmra.mxu1 %vm1104_vm2, %v8687_v21  ;;  %v8107_v39 = vpop.f32.mrf.mxu1 }
 0x5d3   : > { %8447 = vmatprep.mubr.msk.bf16.mxu1 %vm1104_vm2, %v8688_v18  ;;  %v8694_v51 = vld [vmem:[#allocation3 + $0x260] ss:$20 sps:$4 sm:$0xff]   ;;  %v12948_v32 = vadd.f32 %v8107_v39, %v8106_v2 }
 0x5d4   : > { %v8109_v6 = vpop.f32.mrf.mxu1 }
 0x5d6   : > { %6523 = vmatmul.mubr.bf16.gmra.mxu0 %v8684_v54  ;;  %v8110_v47 = vpop.f32.mrf.mxu1 }
 0x5d7   : > { %6530 = vmatprep.mubr.bf16.mxu0 %v8691_v25  ;;  %v8696_v27 = vld [vmem:[#allocation3 + $0x264] ss:$20 sps:$4 sm:$0xff]   ;;  %v12950_v43 = vadd.f32 %v8110_v47, %v8109_v6 }
 0x5d8   : > { %v8112_v19 = vpop.f32.mrf.mxu1 }
 0x5da   : > { %8448 = vmatmul.mubr.msk.bf16.gmra.mxu1 %vm1104_vm2, %v8692_v36  ;;  %v8113_v11 = vpop.f32.mrf.mxu1 }
 0x5db   : > { %8451 = vmatprep.mubr.msk.bf16.mxu1 %vm1104_vm2, %v8693_v62  ;;  %v12952_v3 = vadd.f32 %v8113_v11, %v8112_v19 }
 0x5de   : > { %6531 = vmatmul.mubr.bf16.gmra.mxu0 %v8689_v60 }
 0x5df   : > { %6538 = vmatprep.mubr.bf16.mxu0 %v8696_v27 }
 0x5e2   : > { %8452 = vmatmul.mubr.msk.bf16.gmra.mxu1 %vm1104_vm2, %v8697_v35 }
 0x5e5   : > { %v8115_v41 = vpop.f32.mrf.mxu1 }
 0x5e6   : > { %6539 = vmatmul.mubr.bf16.gmra.mxu0 %v8694_v51 }
 0x5e7   : > { %8463 = vmatprep.mubr.msk.f32.mxu0 %vm8840_vm1, %v14135_v23  ;;  %v8116_v29 = vpop.f32.mrf.mxu1 }
 0x5e8   : > { %v12954_v42 = vadd.f32 %v8116_v29, %v8115_v41 }
 0x5e9   : > { %v8118_v13 = vpop.f32.mrf.mxu1 }
 0x5eb   : > { %v8119_v40 = vpop.f32.mrf.mxu1 }
 0x5ec   : > { %v12956_v12 = vadd.f32 %v8119_v40, %v8118_v13 }
 0x5f2   : > { %v8121_v14 = vpop.f32.mrf.mxu1 }
 0x5f4   : > { %v8122_v0 = vpop.f32.mrf.mxu1 }
 0x5f5   : > { %v12958_v28 = vadd.f32 %v8122_v0, %v8121_v14 }
 0x5f6   : > { %v8124_v53 = vpop.f32.mrf.mxu1 }
 0x5f8   : > { %v8125_v46 = vpop.f32.mrf.mxu1 }
 0x5f9   : > { %v12967_v8 = vadd.f32 %v8125_v46, %v8124_v53 }
 0x5fa   : > { %v8127_v48 = vpop.f32.mrf.mxu1 }
 0x5fc   : > { %v8128_v22 = vpop.f32.mrf.mxu1 }
 0x5fd   : > { %v12969_v9 = vadd.f32 %v8128_v22, %v8127_v48 }
 0x5fe   : > { %v8130_v38 = vpop.f32.mrf.mxu1 }
 0x600   : > { %v8131_v56 = vpop.f32.mrf.mxu1 }
 0x601   : > { %v12976_v33 = vadd.f32 %v8131_v56, %v8130_v38 }
 0x602   : > { %v8133_v26 = vpop.f32.mrf.mxu1 }
 0x604   : > { %v8215_v44 = vpop.f32.mrf.mxu0  ;;  %v8134_v5 = vpop.f32.mrf.mxu1 }
 0x605   : > { %v12979_v61 = vadd.f32 %v8134_v5, %v8133_v26 }
 0x606   : > { %v8216_v34 = vpop.f32.mrf.mxu0  ;;  %v8136_v31 = vpop.f32.mrf.mxu1 }
 0x607   : > { %v8217_v58 = vadd.f32 %v8216_v34, %v8215_v44 }
 0x608   : > { %v12981_v37 = vpop.f32.mrf.mxu0  ;;  %v8137_v17 = vpop.f32.mrf.mxu1 }
 0x609   : > { %v12983_v59 = vadd.f32 %v8217_v58, %v6260_v10  ;;  %v12987_v55 = vadd.f32 %v8137_v17, %v8136_v31 }
 0x60a   : > { %v12985_v20 = vpop.f32.mrf.mxu0 }
 0x60d   : > { %v8139_v63 = vpop.f32.mrf.mxu1 }
 0x60f   : > { %v12989_v24 = vpop.f32.mrf.mxu0  ;;  %v8140_v54 = vpop.f32.mrf.mxu1 }
 0x610   : > { %v12993_v57 = vadd.f32 %v8140_v54, %v8139_v63 }
 0x611   : > { %v12991_v16 = vpop.f32.mrf.mxu0  ;;  %v8142_v18 = vpop.f32.mrf.mxu1 }
 0x613   : > { %v12995_v21 = vpop.f32.mrf.mxu0  ;;  %v8143_v7 = vpop.f32.mrf.mxu1 }
 0x614   : > { %v12999_v60 = vadd.f32 %v8143_v7, %v8142_v18 }
 0x615   : > { %v12997_v52 = vpop.f32.mrf.mxu0 }
 0x619   : > { %v8145_v36 = vpop.f32.mrf.mxu1 }
 0x61b   : > { %v13001_v25 = vpop.f32.mrf.mxu0  ;;  %v8146_v51 = vpop.f32.mrf.mxu1 }
 0x61c   : > { %v13005_v27 = vadd.f32 %v8146_v51, %v8145_v36 }
 0x61d   : > { %v13003_v62 = vpop.f32.mrf.mxu0  ;;  %v8148_v49 = vpop.f32.mrf.mxu1 }
 0x61f   : > { %v13007_v35 = vpop.f32.mrf.mxu0  ;;  %v8149_v2 = vpop.f32.mrf.mxu1 }
 0x620   : > { %v13018_v39 = vadd.f32 %v8149_v2, %v8148_v49 }
 0x621   : > { %v13014_v45 = vpop.f32.mrf.mxu0  ;;  %v8151_v47 = vpop.f32.mrf.mxu1 }
 0x623   : > { %v8152_v11 = vpop.f32.mrf.mxu1 }
 0x624   : > { %v13020_v6 = vpop.f32.mrf.mxu0  ;;  %v13024_v41 = vadd.f32 %v8152_v11, %v8151_v47 }
 0x625   : > { %v8154_v13 = vpop.f32.mrf.mxu1 }
 0x626   : > { %v13022_v19 = vpop.f32.mrf.mxu0 }
 0x627   : > { %v8155_v40 = vpop.f32.mrf.mxu1 }
 0x628   : > { %v13026_v29 = vpop.f32.mrf.mxu0  ;;  %v13030_v0 = vadd.f32 %v8155_v40, %v8154_v13 }
 0x62a   : > { %v13028_v14 = vpop.f32.mrf.mxu0 }
 0x62f   : > { %v8157_v53 = vpop.f32.mrf.mxu1  ;;  %v13032_v48 = vpop.f32.mrf.mxu0 }
 0x631   : > { %v8158_v46 = vpop.f32.mrf.mxu1  ;;  %v13036_v44 = vpop.f32.mrf.mxu0 }
 0x632   : > { %v13034_v22 = vadd.f32 %v8158_v46, %v8157_v53 }
 0x633   : > { %v8160_v38 = vpop.f32.mrf.mxu1  ;;  %v13040_v5 = vpop.f32.mrf.mxu0 }
 0x635   : > { %v8161_v56 = vpop.f32.mrf.mxu1  ;;  %v13044_v63 = vpop.f32.mrf.mxu0 }
 0x636   : > { %v13038_v26 = vadd.f32 %v8161_v56, %v8160_v38 }
 0x637   : > { %v8163_v34 = vpop.f32.mrf.mxu1 }
 0x639   : > { %v8164_v10 = vpop.f32.mrf.mxu1 }
 0x63a   : > { %v13042_v58 = vadd.f32 %v8164_v10, %v8163_v34 }
 0x63b   : > { %v8166_v31 = vpop.f32.mrf.mxu1 }
 0x63c   : > { %14153 = vst [vmem:[#allocation50_spill] sm:$0xff] %v13042_v58  ;;  %v8232_v58 = vadd.f32 %v13014_v45, %v13007_v35 }
 0x63d   : > { %v8167_v17 = vpop.f32.mrf.mxu1 }
 0x63e   : > { %v13046_v54 = vadd.f32 %v8167_v17, %v8166_v31 }
 0x640   : > { %14154 = vst [vmem:[#allocation5_spill] sm:$0xff] %v13046_v54 }
 0x642   : > { %v8169_v18 = vpop.f32.mrf.mxu1  ;;  %v13048_v36 = vpop.f32.mrf.mxu0 }
 0x644   : > { %v8170_v7 = vpop.f32.mrf.mxu1  ;;  %v13052_v47 = vpop.f32.mrf.mxu0 }
 0x645   : > { %v13050_v51 = vadd.f32 %v8170_v7, %v8169_v18 }
 0x646   : > { %v8172_v49 = vpop.f32.mrf.mxu1  ;;  %v13056_v53 = vpop.f32.mrf.mxu0 }
 0x647   : > { %14155 = vst [vmem:[#allocation6_spill] sm:$0xff] %v13050_v51 }
 0x648   : > { %v8173_v2 = vpop.f32.mrf.mxu1  ;;  %v13060_v56 = vpop.f32.mrf.mxu0 }
 0x649   : > { %v13054_v11 = vadd.f32 %v8173_v2, %v8172_v49 }
 0x64a   : > { %v8175_v13 = vpop.f32.mrf.mxu1 }
 0x64b   : > { %14156 = vst [vmem:[#allocation7_spill] sm:$0xff] %v13054_v11 }
 0x64c   : > { %v8176_v40 = vpop.f32.mrf.mxu1 }
 0x64d   : > { %v13058_v46 = vadd.f32 %v8176_v40, %v8175_v13 }
 0x64e   : > { %v8178_v38 = vpop.f32.mrf.mxu1 }
 0x64f   : > { %14157 = vst [vmem:[#allocation8_spill] sm:$0xff] %v13058_v46 }
 0x650   : > { %v8179_v34 = vpop.f32.mrf.mxu1 }
 0x651   : > { %v13062_v10 = vadd.f32 %v8179_v34, %v8178_v38 }
 0x652   : > { %v8181_v31 = vpop.f32.mrf.mxu1 }
 0x653   : > { %14158 = vst [vmem:[#allocation9_spill] sm:$0xff] %v13062_v10 }
 0x654   : > { %v8182_v18 = vpop.f32.mrf.mxu1 }
 0x655   : > { %v13066_v7 = vadd.f32 %v8182_v18, %v8181_v31 }
 0x656   : > { %v13064_v17 = vpop.f32.mrf.mxu0  ;;  %v8184_v49 = vpop.f32.mrf.mxu1 }
 0x657   : > { %14159 = vst [vmem:[#allocation10_spill] sm:$0xff] %v13066_v7 }
 0x658   : > { %v13068_v2 = vpop.f32.mrf.mxu0  ;;  %v8185_v30 = vpop.f32.mrf.mxu1 }
 0x659   : > { %v13070_v1 = vadd.f32 %v8185_v30, %v8184_v49 }
 0x65a   : > { %v8187_v13 = vpop.f32.mrf.mxu1  ;;  %v13072_v40 = vpop.f32.mrf.mxu0 }
 0x65b   : > { %14160 = vst [vmem:[#allocation11_spill] sm:$0xff] %v13070_v1 }
 0x65c   : > { %v8188_v4 = vpop.f32.mrf.mxu1  ;;  %v13076_v34 = vpop.f32.mrf.mxu0 }
 0x65d   : > { %v13074_v23 = vadd.f32 %v8188_v4, %v8187_v13 }
 0x65e   : > { %v8190_v38 = vpop.f32.mrf.mxu1 }
 0x65f   : > { %14161 = vst [vmem:[#allocation12_spill] sm:$0xff] %v13074_v23 }
 0x660   : > { %v8191_v15 = vpop.f32.mrf.mxu1 }
 0x661   : > { %v13078_v10 = vadd.f32 %v8191_v15, %v8190_v38  ;;  %v8220_v38 = vadd.f32 %v12985_v20, %v12981_v37  ;;  %v6271_v20 = vadd.f32 %v12952_v3, %v12974_v50 }
 0x662   : > { %v8193_v31 = vpop.f32.mrf.mxu1 }
 0x663   : > { %14162 = vst [vmem:[#allocation13_spill] sm:$0xff] %v13078_v10  ;;  %v8223_v10 = vadd.f32 %v12991_v16, %v12989_v24 }
 0x664   : > { %v8194_v7 = vpop.f32.mrf.mxu1 }
 0x665   : > { %v13084_v30 = vadd.f32 %v8194_v7, %v8193_v31  ;;  %v6263_v31 = vadd.f32 %v12948_v32, %v12974_v50 }
 0x666   : > { %v13080_v18 = vpop.f32.mrf.mxu0  ;;  %v13086_v49 = vpop.f32.mrf.mxu1 }
 0x667   : > { %14163 = vst [vmem:[#allocation14_spill] sm:$0xff] %v13084_v30  ;;  %14164 = vst [vmem:[#allocation17_spill] sm:$0xff] %v13086_v49  ;;  %v6268_v30 = vadd.f32 %v12950_v43, %v12974_v50  ;;  %v8229_v49 = vadd.f32 %v13003_v62, %v13001_v25  ;;  %v6424_v32 = vadd.f32 %v8220_v38, %v6263_v31 }
 0x668   : > { %v13082_v46 = vpop.f32.mrf.mxu0  ;;  %v13090_v4 = vpop.f32.mrf.mxu1  ;;  %v6276_v43 = vadd.f32 %v12954_v42, %v12974_v50 }
 0x669   : > { %14165 = vst [vmem:[#allocation18_spill] sm:$0xff] %v13090_v4  ;;  %v8226_v4 = vadd.f32 %v12997_v52, %v12995_v21  ;;  %v6429_v24 = vadd.f32 %v8223_v10, %v6268_v30  ;;  %v8235_v30 = vadd.f32 %v13022_v19, %v13020_v6  ;;  %v8238_v6 = vadd.f32 %v13028_v14, %v13026_v29 }
 0x66a   : > { %v13088_v1 = vpop.f32.mrf.mxu0  ;;  %v8425_v15 = vpop.f32.mrf.mxu1  ;;  %v6292_v14 = vadd.f32 %v12969_v9, %v12974_v50  ;;  %v8244_v9 = vadd.f32 %v13044_v63, %v13040_v5  ;;  %v8250_v5 = vadd.f32 %v13060_v56, %v13056_v53  ;;  %v6308_v56 = vadd.f32 %v12993_v57, %v12974_v50 }
 0x66b   : > { %v13121_v52 = vadd.f32 %v8425_v15, %v6429_v24  ;;  %v6432_v25 = vadd.f32 %v8226_v4, %v6271_v20  ;;  %v6279_v15 = vadd.f32 %v12956_v12, %v12974_v50  ;;  %v8256_v57 = vadd.f32 %v13076_v34, %v13072_v40 }
 0x66c   : > { %v13092_v13 = vpop.f32.mrf.mxu0  ;;  %v6581_v7 = vpop.f32.mrf.mxu1 }
 0x66d   : > { %v13115_v16 = vadd.f32 %v6581_v7, %v12983_v59  ;;  %v6437_v59 = vadd.f32 %v8229_v49, %v6276_v43  ;;  %v6284_v49 = vadd.f32 %v12958_v28, %v12974_v50  ;;  %v6711_v19 = vsel %vm733_vm0, %v13121_v52, 0.0 }
 0x66e   : > { %v13094_v23 = vpop.f32.mrf.mxu0  ;;  %v8426_v37 = vpop.f32.mrf.mxu1  ;;  %v6440_v29 = vadd.f32 %v8232_v58, %v6279_v15  ;;  %v8247_v15 = vadd.f32 %v13052_v47, %v13048_v36  ;;  %v8253_v47 = vadd.f32 %v13068_v2, %v13064_v17  ;;  %v8262_v40 = vadd.f32 %v13092_v13, %v13088_v1 }
 0x66f   : > { %v6708_v42 = vsel %vm733_vm0, %v13115_v16, 0.0  ;;  %v13133_v38 = vadd.f32 %v8426_v37, %v6432_v25  ;;  %v8241_v37 = vadd.f32 %v13036_v44, %v13032_v48  ;;  %v6445_v43 = vadd.f32 %v8235_v30, %v6284_v49 }
 0x670   : > { %v13100_v11 = vpop.f32.mrf.mxu0  ;;  %v6584_v21 = vpop.f32.mrf.mxu1  ;;  %v6295_v49 = vadd.f32 %v12976_v33, %v12974_v50  ;;  %v6324_v1 = vadd.f32 %v13024_v41, %v12974_v50 }
 0x671   : > { %v13123_v62 = vadd.f32 %v6584_v21, %v6424_v32  ;;  %v6287_v32 = vadd.f32 %v12967_v8, %v12974_v50  ;;  %v6713_v28 = vsel %vm733_vm0, %v13133_v38, 0.0  ;;  %v6453_v58 = vadd.f32 %v8241_v37, %v6292_v14 }
 0x672   : > { %v13110_v51 = vpop.f32.mrf.mxu0  ;;  %v8429_v10 = vpop.f32.mrf.mxu1  ;;  %v6300_v37 = vadd.f32 %v12979_v61, %v12974_v50  ;;  %v6456_v53 = vadd.f32 %v8244_v9, %v6295_v49  ;;  %v8259_v9 = vadd.f32 %v13082_v46, %v13080_v18  ;;  %v8265_v18 = vadd.f32 %v13100_v11, %v13094_v23 }
 0x673   : > { %v6709_v4 = vsel %vm733_vm0, %v13123_v62, 0.0  ;;  %v13161_v48 = vadd.f32 %v8429_v10, %v6445_v43 }
 0x674   : > { %v13119_v54 = vpop.f32.mrf.mxu0  ;;  %v6710_v7 = vadd.f32 %v6709_v4, %v6708_v42  ;;  %v6597_v45 = vpop.f32.mrf.mxu1  ;;  %v6448_v42 = vadd.f32 %v8238_v6, %v6287_v32  ;;  %v6461_v43 = vadd.f32 %v8247_v15, %v6300_v37  ;;  %v6316_v37 = vadd.f32 %v13005_v27, %v12974_v50 }
 0x675   : > { %v13147_v31 = vadd.f32 %v6597_v45, %v6437_v59  ;;  %v6719_v63 = vsel %vm733_vm0, %v13161_v48, 0.0 }
 0x676   : > { %v13127_v3 = vpop.f32.mrf.mxu0  ;;  %v6712_v20 = vadd.f32 %v6711_v19, %v6710_v7  ;;  %v8430_v24 = vpop.f32.mrf.mxu1 }
 0x677   : > { %v6715_v44 = vsel %vm733_vm0, %v13147_v31, 0.0  ;;  %v13173_v45 = vadd.f32 %v8430_v24, %v6448_v42 }
 0x678   : > { %v13139_v35 = vpop.f32.mrf.mxu0  ;;  %v6714_v21 = vadd.f32 %v6713_v28, %v6712_v20  ;;  %v6600_v59 = vpop.f32.mrf.mxu1  ;;  %v6303_v28 = vadd.f32 %v12987_v55, %v12974_v50 }
 0x679   : > { %v13165_v4 = vadd.f32 %v6600_v59, %v6440_v29  ;;  %v6721_v61 = vsel %vm733_vm0, %v13173_v45, 0.0  ;;  %v8271_v41 = vadd.f32 %v13139_v35, %v13127_v3 }
 0x67a   : > { %v13151_v12 = vpop.f32.mrf.mxu0  ;;  %v6716_v8 = vadd.f32 %v6715_v44, %v6714_v21  ;;  %v8433_v30 = vpop.f32.mrf.mxu1  ;;  %v6464_v59 = vadd.f32 %v8250_v5, %v6303_v28 }
 0x67b   : > { %v6717_v10 = vsel %vm733_vm0, %v13165_v4, 0.0  ;;  %v13201_v17 = vadd.f32 %v8433_v30, %v6461_v43 }
 0x67c   : > { %v13159_v25 = vpop.f32.mrf.mxu0  ;;  %v6718_v6 = vadd.f32 %v6717_v10, %v6716_v8  ;;  %v6613_v20 = vpop.f32.mrf.mxu1  ;;  %v6311_v10 = vadd.f32 %v12999_v60, %v12974_v50 }
 0x67d   : > { %v13187_v36 = vadd.f32 %v6613_v20, %v6453_v58  ;;  %v6469_v58 = vadd.f32 %v8253_v47, %v6308_v56  ;;  %v6727_v46 = vsel %vm733_vm0, %v13201_v17, 0.0  ;;  %v6319_v47 = vadd.f32 %v13018_v39, %v12974_v50 }
 0x67e   : > { %v13167_v7 = vpop.f32.mrf.mxu0  ;;  %v6720_v24 = vadd.f32 %v6719_v63, %v6718_v6  ;;  %v8434_v32 = vpop.f32.mrf.mxu1 }
 0x67f   : > { %v6723_v2 = vsel %vm733_vm0, %v13187_v36, 0.0  ;;  %v13213_v15 = vadd.f32 %v8434_v32, %v6464_v59  ;;  %v6472_v32 = vadd.f32 %v8256_v57, %v6311_v10  ;;  %v6480_v11 = vadd.f32 %v8262_v40, %v6319_v47 }
 0x680   : > { %v13179_v19 = vpop.f32.mrf.mxu0  ;;  %v6722_v29 = vadd.f32 %v6721_v61, %v6720_v24  ;;  %v6616_v21 = vpop.f32.mrf.mxu1  ;;  %v6477_v24 = vadd.f32 %v8259_v9, %v6316_v37 }
 0x681   : > { %v13205_v44 = vadd.f32 %v6616_v21, %v6456_v53  ;;  %v6729_v27 = vsel %vm733_vm0, %v13213_v15, 0.0  ;;  %v6485_v21 = vadd.f32 %v8265_v18, %v6324_v1  ;;  %v8277_v35 = vadd.f32 %v13179_v19, %v13167_v7 }
 0x682   : > { %v13191_v33 = vpop.f32.mrf.mxu0  ;;  %v6724_v55 = vadd.f32 %v6723_v2, %v6722_v29  ;;  %v8437_v8 = vpop.f32.mrf.mxu1  ;;  %v8268_v2 = vadd.f32 %v13119_v54, %v13110_v51  ;;  %v8274_v54 = vadd.f32 %v13159_v25, %v13151_v12  ;;  %v14166_v12 = vld [vmem:[#allocation50_spill] sm:$0xff] }
 0x683   : > { %v6725_v30 = vsel %vm733_vm0, %v13205_v44, 0.0  ;;  %v13235_v43 = vadd.f32 %v8437_v8, %v6477_v24  ;;  %v6327_v8 = vadd.f32 %v13030_v0, %v12974_v50  ;;  %v6340_v25 = vadd.f32 %v14166_v12, %v12974_v50 }
 0x684   : > { %v13199_v14 = vpop.f32.mrf.mxu0  ;;  %v6726_v49 = vadd.f32 %v6725_v30, %v6724_v55  ;;  %v6629_v20 = vpop.f32.mrf.mxu1  ;;  %v6332_v30 = vadd.f32 %v13034_v22, %v12974_v50 }
 0x685   : > { %v13225_v34 = vadd.f32 %v6629_v20, %v6469_v58  ;;  %v6735_v51 = vsel %vm733_vm0, %v13235_v43, 0.0  ;;  %v6335_v20 = vadd.f32 %v13038_v26, %v12974_v50  ;;  %v6488_v40 = vadd.f32 %v8268_v2, %v6327_v8 }
 0x686   : > { %v13207_v42 = vpop.f32.mrf.mxu0  ;;  %v6728_v5 = vadd.f32 %v6727_v46, %v6726_v49  ;;  %v8438_v60 = vpop.f32.mrf.mxu1  ;;  %v6493_v37 = vadd.f32 %v8271_v41, %v6332_v30  ;;  %v8280_v1 = vadd.f32 %v13199_v14, %v13191_v33  ;;  %v14168_v41 = vld [vmem:[#allocation6_spill] sm:$0xff]  ;;  %v14169_v30 = vld [vmem:[#allocation7_spill] sm:$0xff] }
 0x687   : > { %v6731_v23 = vsel %vm733_vm0, %v13225_v34, 0.0  ;;  %v13245_v59 = vadd.f32 %v8438_v60, %v6480_v11  ;;  %v6496_v19 = vadd.f32 %v8274_v54, %v6335_v20  ;;  %v14167_v11 = vld [vmem:[#allocation5_spill] sm:$0xff]  ;;  %v6351_v54 = vadd.f32 %v14169_v30, %v12974_v50  ;;  %v14174_v30 = vld [vmem:[#allocation12_spill] sm:$0xff] }
 0x688   : > { %v8282_v6 = vpop.f32.mrf.mxu0  ;;  %v6730_v13 = vadd.f32 %v6729_v27, %v6728_v5  ;;  %v6632_v61 = vpop.f32.mrf.mxu1 }
 0x689   : > { %v13239_v53 = vadd.f32 %v6632_v61, %v6472_v32  ;;  %v6737_v22 = vsel %vm733_vm0, %v13245_v59, 0.0  ;;  %v6501_v32 = vadd.f32 %v8277_v35, %v6340_v25 }
 0x68a   : > { %v8284_v63 = vpop.f32.mrf.mxu0  ;;  %v6732_v39 = vadd.f32 %v6731_v23, %v6730_v13  ;;  %v8441_v29 = vpop.f32.mrf.mxu1  ;;  %v8283_v13 = vadd.f32 %v8282_v6, %v13207_v42 }
 0x68b   : > { %v6733_v55 = vsel %vm733_vm0, %v13239_v53, 0.0  ;;  %v13267_v60 = vadd.f32 %v8441_v29, %v6493_v37 }
 0x68c   : > { %v8285_v28 = vpop.f32.mrf.mxu0  ;;  %v6734_v58 = vadd.f32 %v6733_v55, %v6732_v39  ;;  %v6645_v9 = vpop.f32.mrf.mxu1  ;;  %v6343_v39 = vadd.f32 %v14167_v11, %v12974_v50  ;;  %v6348_v55 = vadd.f32 %v14168_v41, %v12974_v50 }
 0x68d   : > { %v13257_v3 = vadd.f32 %v6645_v9, %v6485_v21  ;;  %v8286_v8 = vadd.f32 %v8285_v28, %v8284_v63  ;;  %v6743_v33 = vsel %vm733_vm0, %v13267_v60, 0.0 }
 0x68e   : > { %v8287_v56 = vpop.f32.mrf.mxu0  ;;  %v6736_v10 = vadd.f32 %v6735_v51, %v6734_v58  ;;  %v8442_v0 = vpop.f32.mrf.mxu1  ;;  %v6509_v35 = vadd.f32 %v8283_v13, %v6348_v55 }
 0x68f   : > { %v6739_v7 = vsel %vm733_vm0, %v13257_v3, 0.0  ;;  %v13276_v61 = vadd.f32 %v8442_v0, %v6496_v19  ;;  %v14170_v0 = vld [vmem:[#allocation8_spill] sm:$0xff] }
 0x690   : > { %v8288_v57 = vpop.f32.mrf.mxu0  ;;  %v6738_v46 = vadd.f32 %v6737_v22, %v6736_v10  ;;  %v6648_v5 = vpop.f32.mrf.mxu1  ;;  %v6504_v10 = vadd.f32 %v8280_v1, %v6343_v39  ;;  %v6356_v63 = vadd.f32 %v14170_v0, %v12974_v50  ;;  %v14172_v39 = vld [vmem:[#allocation10_spill] sm:$0xff] }
 0x691   : > { %v13271_v47 = vadd.f32 %v6648_v5, %v6488_v40  ;;  %v8289_v42 = vadd.f32 %v8288_v57, %v8287_v56  ;;  %v6745_v51 = vsel %vm733_vm0, %v13276_v61, 0.0  ;;  %v6512_v57 = vadd.f32 %v8286_v8, %v6351_v54 }
 0x692   : > { %v8290_v49 = vpop.f32.mrf.mxu0  ;;  %v6740_v26 = vadd.f32 %v6739_v7, %v6738_v46  ;;  %v8445_v24 = vpop.f32.mrf.mxu1  ;;  %v6372_v54 = vadd.f32 %v14174_v30, %v12974_v50 }
 0x693   : > { %v6741_v23 = vsel %vm733_vm0, %v13271_v47, 0.0  ;;  %v13294_v37 = vadd.f32 %v8445_v24, %v6509_v35  ;;  %v6517_v5 = vadd.f32 %v8289_v42, %v6356_v63  ;;  %v14171_v24 = vld [vmem:[#allocation9_spill] sm:$0xff] }
 0x694   : > { %v8291_v18 = vpop.f32.mrf.mxu0  ;;  %v6742_v29 = vadd.f32 %v6741_v23, %v6740_v26  ;;  %v6661_v2 = vpop.f32.mrf.mxu1  ;;  %v6359_v1 = vadd.f32 %v14171_v24, %v12974_v50 }
 0x695   : > { %v13286_v14 = vadd.f32 %v6661_v2, %v6501_v32  ;;  %v8292_v7 = vadd.f32 %v8291_v18, %v8290_v49  ;;  %v6751_v2 = vsel %vm733_vm0, %v13294_v37, 0.0  ;;  %v14173_v18 = vld [vmem:[#allocation11_spill] sm:$0xff] }
 0x696   : > { %v8293_v27 = vpop.f32.mrf.mxu0  ;;  %v6744_v6 = vadd.f32 %v6743_v33, %v6742_v29  ;;  %v8446_v9 = vpop.f32.mrf.mxu1  ;;  %v6364_v29 = vadd.f32 %v14172_v39, %v12974_v50 }
 0x697   : > { %v6747_v56 = vsel %vm733_vm0, %v13286_v14, 0.0  ;;  %v13300_v26 = vadd.f32 %v8446_v9, %v6512_v57  ;;  %v6520_v9 = vadd.f32 %v8292_v7, %v6359_v1  ;;  %v14175_v7 = vld [vmem:[#allocation13_spill] sm:$0xff] }
 0x698   : > { %v8294_v21 = vpop.f32.mrf.mxu0  ;;  %v6746_v28 = vadd.f32 %v6745_v51, %v6744_v6  ;;  %v6664_v22 = vpop.f32.mrf.mxu1 }
 0x699   : > { %v13298_v40 = vadd.f32 %v6664_v22, %v6504_v10  ;;  %v8295_v19 = vadd.f32 %v8294_v21, %v8293_v27  ;;  %v6367_v27 = vadd.f32 %v14173_v18, %v12974_v50  ;;  %v6753_v33 = vsel %vm733_vm0, %v13300_v26, 0.0 }
 0x69a   : > { %v8296_v58 = vpop.f32.mrf.mxu0  ;;  %v6748_v12 = vadd.f32 %v6747_v56, %v6746_v28  ;;  %v8449_v46 = vpop.f32.mrf.mxu1 }
 0x69b   : > { %v6749_v32 = vsel %vm733_vm0, %v13298_v40, 0.0  ;;  %v6525_v42 = vadd.f32 %v8295_v19, %v6364_v29  ;;  %v14176_v19 = vld [vmem:[#allocation17_spill] sm:$0xff] }
 0x69c   : > { %v8297_v20 = vpop.f32.mrf.mxu0  ;;  %v6750_v13 = vadd.f32 %v6749_v32, %v6748_v12  ;;  %v6677_v11 = vpop.f32.mrf.mxu1  ;;  %v14177_v32 = vld [vmem:[#allocation18_spill] sm:$0xff] }
 0x69d   : > { %v8298_v41 = vadd.f32 %v8297_v20, %v8296_v58  ;;  %v13310_v49 = vadd.f32 %v6677_v11, %v6517_v5  ;;  %v13318_v10 = vadd.f32 %v8449_v46, %v6525_v42  ;;  %v6375_v46 = vadd.f32 %v14175_v7, %v12974_v50  ;;  %v14178_v11 = vld [vmem:[#allocation14_spill] sm:$0xff] }
 0x69e   : > { %v8299_v25 = vpop.f32.mrf.mxu0  ;;  %v6752_v21 = vadd.f32 %v6751_v2, %v6750_v13  ;;  %v8450_v8 = vpop.f32.mrf.mxu1  ;;  %v8198_v24 = vadd.f32 %v14177_v32, %v14176_v19  ;;  %v6380_v39 = vadd.f32 %v14178_v11, %v12974_v50  ;;  %v14180_v11 = vmov 0.0  }
 0x69f   : > { %v6755_v0 = vsel %vm733_vm0, %v13310_v49, 0.0  ;;  %v6528_v63 = vadd.f32 %v8298_v41, %v6367_v27  ;;  %v6759_v29 = vsel %vm733_vm0, %v13318_v10, 0.0 }
 0x6a0   : > { %v8300_v23 = vpop.f32.mrf.mxu0  ;;  %v6754_v51 = vadd.f32 %v6753_v33, %v6752_v21  ;;  %v6680_v58 = vpop.f32.mrf.mxu1  ;;  %v6383_v42 = vadd.f32 %v8198_v24, %v12974_v50 }
 0x6a1   : > { %v8301_v6 = vadd.f32 %v8300_v23, %v8299_v25  ;;  %v13322_v28 = vadd.f32 %v6680_v58, %v6520_v9  ;;  %v13324_v57 = vadd.f32 %v8450_v8, %v6528_v63 }
 0x6a2   : > { %v8302_v55 = vpop.f32.mrf.mxu0  ;;  %v6756_v20 = vadd.f32 %v6755_v0, %v6754_v51  ;;  %v8453_v56 = vpop.f32.mrf.mxu1 }
 0x6a3   : > { %v6757_v25 = vsel %vm733_vm0, %v13322_v28, 0.0  ;;  %v6533_v5 = vadd.f32 %v8301_v6, %v6372_v54 }
 0x6a4   : > { %v8303_v35 = vpop.f32.mrf.mxu0  ;;  %v6758_v1 = vadd.f32 %v6757_v25, %v6756_v20  ;;  %v6693_v23 = vpop.f32.mrf.mxu1 }
 0x6a5   : > { %v8304_v12 = vadd.f32 %v8303_v35, %v8302_v55  ;;  %v13336_v41 = vadd.f32 %v6693_v23, %v6533_v5  ;;  %v6761_v55 = vsel %vm733_vm0, %v13324_v57, 0.0  ;;  %v14179_v23 = vld [vmem:[#allocation48_spill] sm:$0xff] }
 0x6a6   : > { %v8305_v22 = vpop.f32.mrf.mxu0  ;;  %v6760_v18 = vadd.f32 %v6759_v29, %v6758_v1  ;;  %v8454_v21 = vpop.f32.mrf.mxu1  ;;  %v14182_v29 = vld [vmem:[#allocation15_spill] sm:$0xff] }
 0x6a7   : > { %v6536_v33 = vadd.f32 %v8304_v12, %v6375_v46  ;;  %v6763_v51 = vsel %vm733_vm0, %v13336_v41, 0.0 }
 0x6a8   : > { %v8306_v13 = vpop.f32.mrf.mxu0  ;;  %v6762_v6 = vadd.f32 %v6761_v55, %v6760_v18  ;;  %v6696_v30 = vpop.f32.mrf.mxu1 }
 0x6a9   : > { %v8307_v2 = vadd.f32 %v8306_v13, %v8305_v22  ;;  %v13345_v58 = vadd.f32 %v6696_v30, %v6536_v33 }
 0x6aa   : > { %v8308_v27 = vpop.f32.mrf.mxu0  ;;  %v6764_v0 = vadd.f32 %v6763_v51, %v6762_v6 }
 0x6ab   : > { %v6541_v8 = vadd.f32 %v8307_v2, %v6380_v39  ;;  %v6765_v20 = vsel %vm733_vm0, %v13345_v58, 0.0  ;;  %v14181_v39 = vld [vmem:[#allocation49_spill] sm:$0xff]  ;;  %v14183_v2 = vld [vmem:[#allocation16_spill] sm:$0xff] }
 0x6ac   : > { %v8309_v9 = vpop.f32.mrf.mxu0  ;;  %v6766_v22 = vadd.f32 %v6765_v20, %v6764_v0 }
 0x6ad   : > { %v13341_v54 = vadd.f32 %v8453_v56, %v6541_v8  ;;  %v8310_v35 = vadd.f32 %v8309_v9, %v8308_v27 }
 0x6af   : > { %v6544_v63 = vadd.f32 %v8310_v35, %v6383_v42  ;;  %v6767_v50 = vsel %vm733_vm0, %v13341_v54, 0.0 }
 0x6b0   : > { %v6768_v25 = vadd.f32 %v6767_v50, %v6766_v22 }
 0x6b1   : > { %v13349_v12 = vadd.f32 %v8454_v21, %v6544_v63  ;;  %v14184_v21 = vld [vmem:[#allocation4_spill] sm:$0xff] }
 0x6b3   : > { %v6769_v56 = vsel %vm733_vm0, %v13349_v12, 0.0 }
 0x6b4   : > { %v6770_v5 = vadd.f32 %v6769_v56, %v6768_v25 }
 0x6b6   : > { %v6771_v7 = vrot.slane %v6770_v5, 4 }
 0x6b8   : > { %v6772_v46 = vadd.f32 %v6771_v7, %v6770_v5 }
 0x6ba   : > { %v6773_v19 = vrot.slane %v6772_v46, 2 }
 0x6bc   : > { %v6774_v32 = vadd.f32 %v6773_v19, %v6772_v46 }
 0x6be   : > { %v6775_v24 = vrot.slane %v6774_v32, 1 }
 0x6c0   : > { %v6776_v1 = vadd.f32 %v6775_v24, %v6774_v32 }
 0x6c2   : > { %v6777_v13 = vmul.f32 0.00390625, %v6776_v1 }
 0x6c4   : > { %8464 = vmatmul.mubr.msk.f32.vlgmr.msra.gmra.mxu0 %vm733_vm0, %v6777_v13 }
 0x6c5   : > { %8467 = vmatpush3.msra.mxu0 %v14179_v23  ;;  %8474 = vmatprep.mubr.msk.f32.mxu0 %vm8840_vm1, %v14180_v11 }
 0x6c6   : > { %8468 = vmatprep.subr.mxu0 %v14180_v11 }
 0x6c7   : > { %8469 = vmatpush3.msra.mxu0 %v14181_v39 }
 0x6c8   : > { %8470 = vmatprep.subr.mxu0 %v14180_v11 }
 0x6c9   : > { %8471 = vmatpush3.msra.mxu0 %v14182_v29 }
 0x6ca   : > { %8472 = vmatprep.subr.mxu0 %v14180_v11 }
 0x6cb   : > { %8473 = vmatpush3.msra.mxu0 %v14183_v2 }
 0x784   : > { %v6851_v18 = vpop.f32.mrf.mxu0 }
 0x785   : > { %v13366_v55 = vrot.slane %v6851_v18, %v14184_v21 }
 0x786   : > { %v8465_v27 = vpop.f32.mrf.mxu0 }
 0x787   : > { %v13370_v8 = vsub.f32 %v13115_v16, %v13366_v55  ;;  %v13374_v33 = vsub.f32 %v13123_v62, %v13366_v55  ;;  %v13378_v42 = vsub.f32 %v13121_v52, %v13366_v55  ;;  %v13382_v6 = vsub.f32 %v13133_v38, %v13366_v55 }
 0x788   : > { %v13390_v16 = vsub.f32 %v13147_v31, %v13366_v55  ;;  %v13396_v52 = vsub.f32 %v13165_v4, %v13366_v55  ;;  %v13404_v63 = vsub.f32 %v13161_v48, %v13366_v55  ;;  %v13411_v4 = vsub.f32 %v13173_v45, %v13366_v55 }
 0x789   : > { %v6891_v9 = vmul.f32 %v13370_v8, %v13370_v8  ;;  %v6892_v30 = vmul.f32 %v13374_v33, %v13374_v33  ;;  %v6893_v62 = vmul.f32 %v13378_v42, %v13378_v42  ;;  %v6894_v38 = vmul.f32 %v13382_v6, %v13382_v6 }
 0x78a   : > { %v6895_v31 = vmul.f32 %v13390_v16, %v13390_v16  ;;  %v6896_v50 = vmul.f32 %v13396_v52, %v13396_v52  ;;  %v13418_v48 = vsub.f32 %v13187_v36, %v13366_v55  ;;  %v6897_v5 = vmul.f32 %v13404_v63, %v13404_v63 }
 0x78b   : > { %v6923_v51 = vsel %vm733_vm0, %v6891_v9, 0.0  ;;  %v6924_v35 = vsel %vm733_vm0, %v6892_v30, 0.0  ;;  %v6926_v20 = vsel %vm733_vm0, %v6893_v62, 0.0  ;;  %v6928_v25 = vsel %vm733_vm0, %v6894_v38, 0.0 }
 0x78c   : > { %v6925_v0 = vadd.f32 %v6924_v35, %v6923_v51  ;;  %v6930_v7 = vsel %vm733_vm0, %v6895_v31, 0.0  ;;  %v13425_v45 = vsub.f32 %v13205_v44, %v13366_v55  ;;  %v6898_v19 = vmul.f32 %v13411_v4, %v13411_v4 }
 0x78d   : > { %v6932_v32 = vsel %vm733_vm0, %v6896_v50, 0.0  ;;  %v13432_v36 = vsub.f32 %v13201_v17, %v13366_v55  ;;  %v6899_v1 = vmul.f32 %v13418_v48, %v13418_v48  ;;  %v6934_v13 = vsel %vm733_vm0, %v6897_v5, 0.0 }
 0x78e   : > { %v6927_v22 = vadd.f32 %v6926_v20, %v6925_v0  ;;  %v13439_v44 = vsub.f32 %v13213_v15, %v13366_v55  ;;  %v6900_v11 = vmul.f32 %v13425_v45, %v13425_v45  ;;  %v6936_v39 = vsel %vm733_vm0, %v6898_v19, 0.0 }
 0x78f   : > { %v13446_v17 = vsub.f32 %v13225_v34, %v13366_v55  ;;  %v6901_v2 = vmul.f32 %v13432_v36, %v13432_v36  ;;  %v6938_v18 = vsel %vm733_vm0, %v6899_v1, 0.0  ;;  %v13453_v15 = vsub.f32 %v13239_v53, %v13366_v55 }
 0x790   : > { %v6929_v56 = vadd.f32 %v6928_v25, %v6927_v22  ;;  %v6902_v9 = vmul.f32 %v13439_v44, %v13439_v44  ;;  %v6940_v30 = vsel %vm733_vm0, %v6900_v11, 0.0  ;;  %v13460_v34 = vsub.f32 %v13235_v43, %v13366_v55 }
 0x791   : > { %v6903_v38 = vmul.f32 %v13446_v17, %v13446_v17  ;;  %v6942_v51 = vsel %vm733_vm0, %v6901_v2, 0.0  ;;  %v13467_v53 = vsub.f32 %v13245_v59, %v13366_v55  ;;  %v6904_v0 = vmul.f32 %v13453_v15, %v13453_v15 }
 0x792   : > { %v6931_v46 = vadd.f32 %v6930_v7, %v6929_v56  ;;  %v6944_v31 = vsel %vm733_vm0, %v6902_v9, 0.0  ;;  %v13474_v43 = vsub.f32 %v13257_v3, %v13366_v55  ;;  %v6905_v22 = vmul.f32 %v13460_v34, %v13460_v34 }
 0x793   : > { %v6946_v50 = vsel %vm733_vm0, %v6903_v38, 0.0  ;;  %v13481_v59 = vsub.f32 %v13271_v47, %v13366_v55  ;;  %v6906_v56 = vmul.f32 %v13467_v53, %v13467_v53  ;;  %v6948_v5 = vsel %vm733_vm0, %v6904_v0, 0.0 }
 0x794   : > { %v6933_v24 = vadd.f32 %v6932_v32, %v6931_v46  ;;  %v13488_v3 = vsub.f32 %v13267_v60, %v13366_v55  ;;  %v6907_v46 = vmul.f32 %v13474_v43, %v13474_v43  ;;  %v6950_v19 = vsel %vm733_vm0, %v6905_v22, 0.0 }
 0x795   : > { %v13495_v47 = vsub.f32 %v13276_v61, %v13366_v55  ;;  %v6952_v1 = vsel %vm733_vm0, %v6906_v56, 0.0  ;;  %v13502_v60 = vsub.f32 %v13286_v14, %v13366_v55  ;;  %v13509_v61 = vsub.f32 %v13298_v40, %v13366_v55 }
 0x796   : > { %v6935_v23 = vadd.f32 %v6934_v13, %v6933_v24  ;;  %v6908_v24 = vmul.f32 %v13481_v59, %v13481_v59  ;;  %v6954_v11 = vsel %vm733_vm0, %v6907_v46, 0.0  ;;  %v13516_v14 = vsub.f32 %v13294_v37, %v13366_v55 }
 0x797   : > { %v13523_v40 = vsub.f32 %v13300_v26, %v13366_v55  ;;  %v13530_v37 = vsub.f32 %v13310_v49, %v13366_v55  ;;  %v13537_v26 = vsub.f32 %v13322_v28, %v13366_v55  ;;  %v13544_v49 = vsub.f32 %v13318_v10, %v13366_v55 }
 0x798   : > { %v6937_v29 = vadd.f32 %v6936_v39, %v6935_v23  ;;  %v6909_v23 = vmul.f32 %v13488_v3, %v13488_v3  ;;  %v6956_v2 = vsel %vm733_vm0, %v6908_v24, 0.0  ;;  %v13551_v28 = vsub.f32 %v13324_v57, %v13366_v55 }
 0x799   : > { %v13558_v10 = vsub.f32 %v13336_v41, %v13366_v55  ;;  %v13565_v57 = vsub.f32 %v13345_v58, %v13366_v55  ;;  %v13572_v41 = vsub.f32 %v13341_v54, %v13366_v55  ;;  %v6890_v58 = vsub.f32 %v13349_v12, %v13366_v55 }
 0x79a   : > { %v6939_v27 = vadd.f32 %v6938_v18, %v6937_v29  ;;  %v6910_v29 = vmul.f32 %v13495_v47, %v13495_v47  ;;  %v6958_v9 = vsel %vm733_vm0, %v6909_v23, 0.0 }
 0x79c   : > { %v6941_v62 = vadd.f32 %v6940_v30, %v6939_v27  ;;  %v6911_v27 = vmul.f32 %v13502_v60, %v13502_v60  ;;  %v6960_v38 = vsel %vm733_vm0, %v6910_v29, 0.0 }
 0x79e   : > { %v6943_v35 = vadd.f32 %v6942_v51, %v6941_v62  ;;  %v6912_v62 = vmul.f32 %v13509_v61, %v13509_v61  ;;  %v6962_v0 = vsel %vm733_vm0, %v6911_v27, 0.0 }
 0x7a0   : > { %v6945_v20 = vadd.f32 %v6944_v31, %v6943_v35  ;;  %v6913_v35 = vmul.f32 %v13516_v14, %v13516_v14  ;;  %v6964_v22 = vsel %vm733_vm0, %v6912_v62, 0.0 }
 0x7a2   : > { %v6947_v25 = vadd.f32 %v6946_v50, %v6945_v20  ;;  %v6914_v20 = vmul.f32 %v13523_v40, %v13523_v40  ;;  %v6966_v56 = vsel %vm733_vm0, %v6913_v35, 0.0 }
 0x7a4   : > { %v6949_v7 = vadd.f32 %v6948_v5, %v6947_v25  ;;  %v6915_v25 = vmul.f32 %v13530_v37, %v13530_v37  ;;  %v6968_v46 = vsel %vm733_vm0, %v6914_v20, 0.0 }
 0x7a6   : > { %v6951_v32 = vadd.f32 %v6950_v19, %v6949_v7  ;;  %v6916_v7 = vmul.f32 %v13537_v26, %v13537_v26  ;;  %v6970_v24 = vsel %vm733_vm0, %v6915_v25, 0.0 }
 0x7a8   : > { %v6953_v13 = vadd.f32 %v6952_v1, %v6951_v32  ;;  %v6917_v32 = vmul.f32 %v13544_v49, %v13544_v49  ;;  %v6972_v23 = vsel %vm733_vm0, %v6916_v7, 0.0 }
 0x7aa   : > { %v6955_v39 = vadd.f32 %v6954_v11, %v6953_v13  ;;  %v6918_v13 = vmul.f32 %v13551_v28, %v13551_v28  ;;  %v6974_v29 = vsel %vm733_vm0, %v6917_v32, 0.0 }
 0x7ac   : > { %v6957_v18 = vadd.f32 %v6956_v2, %v6955_v39  ;;  %v6919_v39 = vmul.f32 %v13558_v10, %v13558_v10  ;;  %v6976_v27 = vsel %vm733_vm0, %v6918_v13, 0.0 }
 0x7ae   : > { %v6959_v30 = vadd.f32 %v6958_v9, %v6957_v18  ;;  %v6920_v18 = vmul.f32 %v13565_v57, %v13565_v57  ;;  %v6978_v54 = vsel %vm733_vm0, %v6919_v39, 0.0 }
 0x7b0   : > { %v6961_v51 = vadd.f32 %v6960_v38, %v6959_v30  ;;  %v6921_v30 = vmul.f32 %v13572_v41, %v13572_v41  ;;  %v6922_v38 = vmul.f32 %v6890_v58, %v6890_v58 }
 0x7b2   : > { %v6963_v31 = vadd.f32 %v6962_v0, %v6961_v51  ;;  %v6980_v51 = vsel %vm733_vm0, %v6920_v18, 0.0  ;;  %v6982_v0 = vsel %vm733_vm0, %v6921_v30, 0.0  ;;  %v6984_v12 = vsel %vm733_vm0, %v6922_v38, 0.0 }
 0x7b4   : > { %v6965_v50 = vadd.f32 %v6964_v22, %v6963_v31 }
 0x7b6   : > { %v6967_v5 = vadd.f32 %v6966_v56, %v6965_v50 }
 0x7b8   : > { %v6969_v19 = vadd.f32 %v6968_v46, %v6967_v5 }
 0x7ba   : > { %v6971_v1 = vadd.f32 %v6970_v24, %v6969_v19 }
 0x7bc   : > { %v6973_v11 = vadd.f32 %v6972_v23, %v6971_v1 }
 0x7be   : > { %v6975_v2 = vadd.f32 %v6974_v29, %v6973_v11 }
 0x7c0   : > { %v6977_v9 = vadd.f32 %v6976_v27, %v6975_v2 }
 0x7c2   : > { %v6979_v62 = vadd.f32 %v6978_v54, %v6977_v9 }
 0x7c4   : > { %v6981_v35 = vadd.f32 %v6980_v51, %v6979_v62 }
 0x7c6   : > { %v6983_v31 = vadd.f32 %v6982_v0, %v6981_v35 }
 0x7c8   : > { %v6985_v55 = vadd.f32 %v6984_v12, %v6983_v31 }
 0x7ca   : > { %v6986_v20 = vrot.slane %v6985_v55, 4 }
 0x7cc   : > { %v6987_v22 = vadd.f32 %v6986_v20, %v6985_v55 }
 0x7ce   : > { %v6988_v50 = vrot.slane %v6987_v22, 2 }
 0x7d0   : > { %v6989_v25 = vadd.f32 %v6988_v50, %v6987_v22 }
 0x7d2   : > { %v6990_v56 = vrot.slane %v6989_v25, 1 }
 0x7d4   : > { %v6991_v5 = vadd.f32 %v6990_v56, %v6989_v25 }
 0x7d6   : > { %v6992_v7 = vmul.f32 0.00390625, %v6991_v5 }
 0x7d8   : > { %8475 = vmatmul.mubr.msk.f32.vlgmr.msra.gmra.mxu0 %vm733_vm0, %v6992_v7 }
 0x898   : > { %v7062_v46 = vpop.f32.mrf.mxu0 }
 0x899   : > { %v7063_v19 = vadd.f32 1e-05, %v7062_v46 }
 0x89a   : > { %v8476_v32 = vpop.f32.mrf.mxu0 }
 0x89b   : > { %8764 = vrsqrt.f32 %v7063_v19 }
 0x8a8   : > { %v8765_v24 = vpop.eup %8764 }
 0x8a9   : > { %v7070_v1 = vrot.slane %v8765_v24, %v14184_v21 }
 0x8ab   : > { %v7071_v13 = vmul.f32 %v7070_v1, %v13370_v8  ;;  %v7072_v23 = vmul.f32 %v7070_v1, %v13374_v33  ;;  %v7073_v11 = vmul.f32 %v7070_v1, %v13378_v42  ;;  %v7074_v39 = vmul.f32 %v7070_v1, %v13382_v6 }
 0x8ac   : > { %v7075_v29 = vmul.f32 %v7070_v1, %v13390_v16  ;;  %v7076_v2 = vmul.f32 %v7070_v1, %v13396_v52  ;;  %v7077_v18 = vmul.f32 %v7070_v1, %v13404_v63  ;;  %v7078_v27 = vmul.f32 %v7070_v1, %v13411_v4 }
 0x8ad   : > { %v7079_v9 = vmul.f32 %v7070_v1, %v13418_v48  ;;  %v7080_v21 = vmul.f32 %v7070_v1, %v13425_v45  ;;  %v7081_v8 = vmul.f32 %v7070_v1, %v13432_v36  ;;  %v7082_v33 = vmul.f32 %v7070_v1, %v13439_v44  ;;  %v7902_v36 = vld [vmem:[%s13909_s6 + $0x1] ss:$0 sm:$0xff] }
 0x8ae   : > { %v7083_v42 = vmul.f32 %v7070_v1, %v13446_v17  ;;  %v7084_v6 = vmul.f32 %v7070_v1, %v13453_v15  ;;  %v7085_v16 = vmul.f32 %v7070_v1, %v13460_v34  ;;  %v7086_v52 = vmul.f32 %v7070_v1, %v13467_v53 }
 0x8af   : > { %v7087_v63 = vmul.f32 %v7070_v1, %v13474_v43  ;;  %v7088_v4 = vmul.f32 %v7070_v1, %v13481_v59  ;;  %v7089_v48 = vmul.f32 %v7070_v1, %v13488_v3  ;;  %v7090_v45 = vmul.f32 %v7070_v1, %v13495_v47 }
 0x8b0   : > { %v7091_v44 = vmul.f32 %v7070_v1, %v13502_v60  ;;  %v7092_v17 = vmul.f32 %v7070_v1, %v13509_v61  ;;  %v7093_v15 = vmul.f32 %v7070_v1, %v13516_v14  ;;  %v7094_v34 = vmul.f32 %v7070_v1, %v13523_v40 }
 0x8b1   : > { %v7095_v53 = vmul.f32 %v7070_v1, %v13530_v37  ;;  %v7096_v43 = vmul.f32 %v7070_v1, %v13537_v26  ;;  %v7097_v59 = vmul.f32 %v7070_v1, %v13544_v49  ;;  %v7098_v3 = vmul.f32 %v7070_v1, %v13551_v28  ;;  %v13627_v26 = vld [vmem:[%s13909_s6 + $0x2] ss:$0 sm:$0xff] }
 0x8b2   : > { %v7099_v47 = vmul.f32 %v7070_v1, %v13558_v10  ;;  %v7100_v30 = vmul.f32 %v7070_v1, %v13565_v57  ;;  %v7101_v60 = vmul.f32 %v7070_v1, %v13572_v41  ;;  %v7102_v54 = vmul.f32 %v7070_v1, %v6890_v58 }
 0x8b3   : > { %v7108_v61 = vmul.f32 %v7902_v36, %v7071_v13  ;;  %v7109_v62 = vmul.f32 %v7902_v36, %v7072_v23  ;;  %v7110_v14 = vmul.f32 %v7902_v36, %v7073_v11  ;;  %v7123_v38 = vmul.f32 %v7902_v36, %v7086_v52 }
 0x8b4   : > { %v7111_v40 = vmul.f32 %v7902_v36, %v7074_v39  ;;  %v7112_v51 = vmul.f32 %v7902_v36, %v7075_v29  ;;  %v7113_v37 = vmul.f32 %v7902_v36, %v7076_v2  ;;  %v7124_v35 = vmul.f32 %v7902_v36, %v7087_v63 }
 0x8b5   : > { %v7114_v49 = vmul.f32 %v7902_v36, %v7077_v18  ;;  %v7115_v28 = vmul.f32 %v7902_v36, %v7078_v27  ;;  %v7116_v10 = vmul.f32 %v7902_v36, %v7079_v9  ;;  %v7117_v57 = vmul.f32 %v7902_v36, %v7080_v21 }
 0x8b6   : > { %v7118_v0 = vmul.f32 %v7902_v36, %v7081_v8  ;;  %v7119_v41 = vmul.f32 %v7902_v36, %v7082_v33  ;;  %v7120_v58 = vmul.f32 %v7902_v36, %v7083_v42  ;;  %v7121_v31 = vmul.f32 %v7902_v36, %v7084_v6 }
 0x8b7   : > { %v7122_v12 = vmul.f32 %v7902_v36, %v7085_v16  ;;  %v7125_v55 = vmul.f32 %v7902_v36, %v7088_v4  ;;  %v7126_v20 = vmul.f32 %v7902_v36, %v7089_v48  ;;  %v7139_v22 = vmul.f32 %v7902_v36, %v7102_v54 }
 0x8b8   : > { %v7127_v50 = vmul.f32 %v7902_v36, %v7090_v45  ;;  %v7128_v25 = vmul.f32 %v7902_v36, %v7091_v44  ;;  %v7129_v56 = vmul.f32 %v7902_v36, %v7092_v17  ;;  %v7161_v5 = vadd.f32 %v13627_v26, %v7124_v35 }
 0x8b9   : > { %v7130_v7 = vmul.f32 %v7902_v36, %v7093_v15  ;;  %v7131_v46 = vmul.f32 %v7902_v36, %v7094_v34  ;;  %v7132_v19 = vmul.f32 %v7902_v36, %v7095_v53  ;;  %v7133_v32 = vmul.f32 %v7902_v36, %v7096_v43 }
 0x8ba   : > { %v7134_v24 = vmul.f32 %v7902_v36, %v7097_v59  ;;  %v13630_v1 = vmul.f32 %v7902_v36, %v7098_v3  ;;  %v13632_v13 = vmul.f32 %v7902_v36, %v7099_v47  ;;  %v7225_v23 = vmul.f32 %v7161_v5, %v7161_v5 }
 0x8bb   : > { %v13634_v11 = vmul.f32 %v7902_v36, %v7100_v30  ;;  %v13636_v39 = vmul.f32 %v7902_v36, %v7101_v60  ;;  %v13639_v29 = vadd.f32 %v13627_v26, %v7108_v61  ;;  %v13642_v2 = vadd.f32 %v13627_v26, %v7109_v62 }
 0x8bc   : > { %v7257_v18 = vmul.f32 %v7225_v23, %v7161_v5  ;;  %v13645_v27 = vadd.f32 %v13627_v26, %v7110_v14  ;;  %v13648_v9 = vadd.f32 %v13627_v26, %v7111_v40  ;;  %v13651_v21 = vadd.f32 %v13627_v26, %v7123_v38 }
 0x8bd   : > { %v13653_v8 = vmul.f32 0.5, %v7161_v5  ;;  %v13656_v33 = vadd.f32 %v13627_v26, %v7112_v51  ;;  %v13659_v42 = vadd.f32 %v13627_v26, %v7113_v37  ;;  %v13662_v6 = vadd.f32 %v13627_v26, %v7114_v49 }
 0x8be   : > { %v7289_v16 = vmul.f32 0.044715, %v7257_v18  ;;  %v13665_v52 = vadd.f32 %v13627_v26, %v7115_v28  ;;  %v13668_v63 = vadd.f32 %v13627_v26, %v7116_v10  ;;  %v13671_v4 = vadd.f32 %v13627_v26, %v7125_v55 }
 0x8bf   : > { %v13674_v48 = vadd.f32 %v13627_v26, %v7117_v57  ;;  %v13677_v45 = vadd.f32 %v13627_v26, %v7118_v0  ;;  %v13680_v36 = vadd.f32 %v13627_v26, %v7119_v41  ;;  %v13683_v44 = vadd.f32 %v13627_v26, %v7126_v20 }
 0x8c0   : > { %v7321_v17 = vadd.f32 %v7289_v16, %v7161_v5  ;;  %v13686_v15 = vadd.f32 %v13627_v26, %v7120_v58  ;;  %v13689_v34 = vadd.f32 %v13627_v26, %v7121_v31  ;;  %v13692_v53 = vadd.f32 %v13627_v26, %v7122_v12 }
 0x8c1   : > { %v13695_v43 = vadd.f32 %v13627_v26, %v7127_v50  ;;  %v13698_v59 = vadd.f32 %v13627_v26, %v7128_v25  ;;  %v13701_v3 = vadd.f32 %v13627_v26, %v7139_v22  ;;  %v7209_v47 = vmul.f32 %v13639_v29, %v13639_v29 }
 0x8c2   : > { %v7353_v30 = vmul.f32 0.7978846, %v7321_v17  ;;  %v13706_v60 = vadd.f32 %v13627_v26, %v7129_v56  ;;  %v7226_v54 = vmul.f32 %v13671_v4, %v13671_v4  ;;  %v7210_v61 = vmul.f32 %v13642_v2, %v13642_v2 }
 0x8c3   : > { %v13713_v62 = vadd.f32 %v13627_v26, %v7130_v7  ;;  %v13716_v14 = vadd.f32 %v13627_v26, %v7131_v46  ;;  %v7241_v38 = vmul.f32 %v7209_v47, %v13639_v29  ;;  %v7227_v40 = vmul.f32 %v13683_v44, %v13683_v44 }
 0x8c4   : > { %8766 = vtanh.f32 %v7353_v30  ;;  %v7258_v51 = vmul.f32 %v7226_v54, %v13671_v4  ;;  %v7242_v37 = vmul.f32 %v7210_v61, %v13642_v2  ;;  %v7211_v35 = vmul.f32 %v13645_v27, %v13645_v27 }
 0x8c5   : > { %v13726_v49 = vadd.f32 %v13627_v26, %v7132_v19  ;;  %v7273_v28 = vmul.f32 0.044715, %v7241_v38  ;;  %v7259_v10 = vmul.f32 %v7227_v40, %v13683_v44  ;;  %v7228_v57 = vmul.f32 %v13695_v43, %v13695_v43 }
 0x8c6   : > { %v13732_v0 = vadd.f32 %v13627_v26, %v7133_v32  ;;  %v7290_v41 = vmul.f32 0.044715, %v7258_v51  ;;  %v7274_v58 = vmul.f32 0.044715, %v7242_v37  ;;  %v7243_v31 = vmul.f32 %v7211_v35, %v13645_v27 }
 0x8c7   : > { %v7305_v12 = vadd.f32 %v7273_v28, %v13639_v29  ;;  %v7291_v55 = vmul.f32 0.044715, %v7259_v10  ;;  %v7260_v20 = vmul.f32 %v7228_v57, %v13695_v43  ;;  %v7212_v22 = vmul.f32 %v13648_v9, %v13648_v9 }
 0x8c8   : > { %v13740_v50 = vadd.f32 %v13627_v26, %v7134_v24  ;;  %v7322_v25 = vadd.f32 %v7290_v41, %v13671_v4  ;;  %v7306_v56 = vadd.f32 %v7274_v58, %v13642_v2  ;;  %v7275_v5 = vmul.f32 0.044715, %v7243_v31 }
 0x8c9   : > { %v7337_v7 = vmul.f32 0.7978846, %v7305_v12  ;;  %v7323_v46 = vadd.f32 %v7291_v55, %v13683_v44  ;;  %v7292_v19 = vmul.f32 0.044715, %v7260_v20  ;;  %v7244_v32 = vmul.f32 %v7212_v22, %v13648_v9 }
 0x8ca   : > { %v7354_v23 = vmul.f32 0.7978846, %v7322_v25  ;;  %v7338_v18 = vmul.f32 0.7978846, %v7306_v56  ;;  %v7307_v16 = vadd.f32 %v7275_v5, %v13645_v27  ;;  %v7229_v17 = vmul.f32 %v13698_v59, %v13698_v59 }
 0x8cb   : > { %8768 = vtanh.f32 %v7337_v7  ;;  %v7355_v24 = vmul.f32 0.7978846, %v7323_v46  ;;  %v7324_v47 = vadd.f32 %v7292_v19, %v13695_v43  ;;  %v7276_v30 = vmul.f32 0.044715, %v7244_v32 }
 0x8cc   : > { %v13752_v54 = vadd.f32 %v13627_v26, %v13630_v1  ;;  %8770 = vtanh.f32 %v7354_v23  ;;  %v7339_v61 = vmul.f32 0.7978846, %v7307_v16  ;;  %v7261_v38 = vmul.f32 %v7229_v17, %v13698_v59 }
 0x8cd   : > { %8772 = vtanh.f32 %v7338_v18  ;;  %v7356_v40 = vmul.f32 0.7978846, %v7324_v47  ;;  %v7308_v51 = vadd.f32 %v7276_v30, %v13648_v9  ;;  %v7213_v37 = vmul.f32 %v13656_v33, %v13656_v33 }
 0x8ce   : > { %v13760_v35 = vadd.f32 %v13627_v26, %v13632_v13  ;;  %8774 = vtanh.f32 %v7355_v24  ;;  %v7293_v28 = vmul.f32 0.044715, %v7261_v38  ;;  %v7230_v1 = vmul.f32 %v13706_v60, %v13706_v60 }
 0x8cf   : > { %v13766_v10 = vadd.f32 %v13627_v26, %v13634_v11  ;;  %8776 = vtanh.f32 %v7339_v61  ;;  %v7340_v57 = vmul.f32 0.7978846, %v7308_v51  ;;  %v7245_v41 = vmul.f32 %v7213_v37, %v13656_v33 }
 0x8d0   : > { %8778 = vtanh.f32 %v7356_v40  ;;  %v7325_v58 = vadd.f32 %v7293_v28, %v13698_v59  ;;  %v7262_v31 = vmul.f32 %v7230_v1, %v13706_v60  ;;  %v7214_v13 = vmul.f32 %v13659_v42, %v13659_v42 }
 0x8d1   : > { %v8767_v12 = vpop.eup %8766  ;;  %v13775_v55 = vadd.f32 %v13627_v26, %v13636_v39  ;;  %v7177_v11 = vmul.f32 0.5, %v13639_v29  ;;  %v7277_v20 = vmul.f32 0.044715, %v7245_v41  ;;  %v7231_v22 = vmul.f32 %v13713_v62, %v13713_v62 }
 0x8d2   : > { %v7417_v25 = vadd.f32 1.0, %v8767_v12  ;;  %v7357_v56 = vmul.f32 0.7978846, %v7325_v58  ;;  %v7294_v5 = vmul.f32 0.044715, %v7262_v31  ;;  %v7246_v7 = vmul.f32 %v7214_v13, %v13659_v42 }
 0x8d3   : > { %8780 = vtanh.f32 %v7340_v57  ;;  %v7309_v46 = vadd.f32 %v7277_v20, %v13656_v33  ;;  %v7263_v19 = vmul.f32 %v7231_v22, %v13713_v62  ;;  %v7215_v26 = vmul.f32 %v13662_v6, %v13662_v6 }
 0x8d4   : > { %v7449_v39 = vmul.f32 %v7417_v25, %v13653_v8  ;;  %8782 = vtanh.f32 %v7357_v56  ;;  %v7326_v29 = vadd.f32 %v7294_v5, %v13706_v60  ;;  %v7278_v32 = vmul.f32 0.044715, %v7246_v7 }
 0x8d5   : > { %v7194_v23 = vmul.f32 0.5, %v13671_v4  ;;  %v7341_v18 = vmul.f32 0.7978846, %v7309_v46  ;;  %v7295_v16 = vmul.f32 0.044715, %v7263_v19  ;;  %v7247_v17 = vmul.f32 %v7215_v26, %v13662_v6 }
 0x8d6   : > { %7497 = vxpose.xlu1.b32.start [1/16] (narrow) %v7449_v39, 32  ;;  %v7178_v24 = vmul.f32 0.5, %v13642_v2  ;;  %v7358_v47 = vmul.f32 0.7978846, %v7326_v29  ;;  %v7310_v30 = vadd.f32 %v7278_v32, %v13659_v42  ;;  %v7232_v61 = vmul.f32 %v13716_v14, %v13716_v14 }
 0x8d7   : > { %8784 = vtanh.f32 %v7341_v18  ;;  %v7327_v8 = vadd.f32 %v7295_v16, %v13713_v62  ;;  %v7279_v38 = vmul.f32 0.044715, %v7247_v17  ;;  %v7216_v4 = vmul.f32 %v13665_v52, %v13665_v52 }
 0x8d8   : > { %v8769_v40 = vpop.eup %8768  ;;  %v7195_v51 = vmul.f32 0.5, %v13683_v44  ;;  %8786 = vtanh.f32 %v7358_v47  ;;  %v7342_v37 = vmul.f32 0.7978846, %v7310_v30  ;;  %v7264_v2 = vmul.f32 %v7232_v61, %v13716_v14 }
 0x8d9   : > { %v8771_v28 = vpop.eup %8770  ;;  %v7401_v1 = vadd.f32 1.0, %v8769_v40  ;;  %v7359_v57 = vmul.f32 0.7978846, %v7327_v8  ;;  %v7311_v41 = vadd.f32 %v7279_v38, %v13662_v6  ;;  %v7248_v58 = vmul.f32 %v7216_v4, %v13665_v52 }
 0x8da   : > { %v8773_v31 = vpop.eup %8772  ;;  %v7418_v13 = vadd.f32 1.0, %v8771_v28  ;;  %8788 = vtanh.f32 %v7342_v37  ;;  %v7296_v12 = vmul.f32 0.044715, %v7264_v2  ;;  %v7233_v20 = vmul.f32 %v13726_v49, %v13726_v49 }
 0x8db   : > { %v8775_v22 = vpop.eup %8774  ;;  %v7433_v44 = vmul.f32 %v7401_v1, %v7177_v11  ;;  %v7402_v25 = vadd.f32 1.0, %v8773_v31  ;;  %8790 = vtanh.f32 %v7359_v57  ;;  %v7343_v56 = vmul.f32 0.7978846, %v7311_v41 }
 0x8dc   : > { %v8777_v5 = vpop.eup %8776  ;;  %v7450_v7 = vmul.f32 %v7418_v13, %v7194_v23  ;;  %v7419_v46 = vadd.f32 1.0, %v8775_v22  ;;  %v7328_v19 = vadd.f32 %v7296_v12, %v13716_v14  ;;  %v7280_v26 = vmul.f32 0.044715, %v7248_v58 }
 0x8dd   : > { %v8779_v39 = vpop.eup %8778  ;;  %7465 = vxpose.xlu0.b32.start [1/16] (narrow) %v7433_v44, 32  ;;  %v7179_v29 = vmul.f32 0.5, %v13645_v27  ;;  %v7196_v32 = vmul.f32 0.5, %v13695_v43  ;;  %8792 = vtanh.f32 %v7343_v56  ;;  %v7265_v18 = vmul.f32 %v7233_v20, %v13726_v49 }
 0x8de   : > { %7498 = vxpose.xlu1.b32.cont [2/16] (narrow) %v7450_v7, 32  ;;  %v7403_v11 = vadd.f32 1.0, %v8777_v5  ;;  %v7180_v16 = vmul.f32 0.5, %v13648_v9  ;;  %v7360_v17 = vmul.f32 0.7978846, %v7328_v19  ;;  %v7312_v23 = vadd.f32 %v7280_v26, %v13665_v52 }
 0x8df   : > { %v7434_v47 = vmul.f32 %v7402_v25, %v7178_v24  ;;  %v7451_v30 = vmul.f32 %v7419_v46, %v7195_v51  ;;  %v7197_v61 = vmul.f32 0.5, %v13698_v59  ;;  %v7297_v8 = vmul.f32 0.044715, %v7265_v18 }
 0x8e0   : > { %v8781_v38 = vpop.eup %8780  ;;  %v7420_v4 = vadd.f32 1.0, %v8779_v39  ;;  %8794 = vtanh.f32 %v7360_v17  ;;  %v7344_v27 = vmul.f32 0.7978846, %v7312_v23  ;;  %v7217_v43 = vmul.f32 %v13668_v63, %v13668_v63 }
 0x8e1   : > { %v8783_v40 = vpop.eup %8782  ;;  %7466 = vxpose.xlu0.b32.cont [2/16] (narrow) %v7434_v47, 32  ;;  %v7181_v37 = vmul.f32 0.5, %v13656_v33  ;;  %v7198_v9 = vmul.f32 0.5, %v13706_v60  ;;  %v7329_v2 = vadd.f32 %v7297_v8, %v13726_v49  ;;  %v7234_v24 = vmul.f32 %v13732_v0, %v13732_v0 }
 0x8e2   : > { %7499 = vxpose.xlu1.b32.cont [3/16] (narrow) %v7451_v30, 32  ;;  %v7435_v59 = vmul.f32 %v7403_v11, %v7179_v29  ;;  %v13817_v51 = vmul.f32 0.5, %v13659_v42  ;;  %8796 = vtanh.f32 %v7344_v27  ;;  %v7249_v28 = vmul.f32 %v7217_v43, %v13668_v63 }
 0x8e3   : > { %v7404_v1 = vadd.f32 1.0, %v8781_v38  ;;  %v7361_v57 = vmul.f32 0.7978846, %v7329_v2  ;;  %v7266_v41 = vmul.f32 %v7234_v24, %v13732_v0  ;;  %v7218_v33 = vmul.f32 %v13674_v48, %v13674_v48 }
 0x8e4   : > { %v8785_v60 = vpop.eup %8784  ;;  %v7452_v58 = vmul.f32 %v7420_v4, %v7196_v32  ;;  %v7421_v31 = vadd.f32 1.0, %v8783_v40  ;;  %v7281_v13 = vmul.f32 0.044715, %v7249_v28  ;;  %v7235_v12 = vmul.f32 %v13740_v50, %v13740_v50 }
 0x8e5   : > { %v8787_v20 = vpop.eup %8786  ;;  %7467 = vxpose.xlu0.b32.cont [3/16] (narrow) %v7435_v59, 32  ;;  %v7199_v42 = vmul.f32 0.5, %v13713_v62  ;;  %8798 = vtanh.f32 %v7361_v57  ;;  %v7298_v22 = vmul.f32 0.044715, %v7266_v41  ;;  %v7250_v44 = vmul.f32 %v7218_v33, %v13674_v48 }
 0x8e6   : > { %7500 = vxpose.xlu1.b32.cont [4/16] (narrow) %v7452_v58, 32  ;;  %v7405_v25 = vadd.f32 1.0, %v8785_v60  ;;  %v7313_v56 = vadd.f32 %v7281_v13, %v13668_v63  ;;  %v7267_v5 = vmul.f32 %v7235_v12, %v13740_v50  ;;  %v7219_v7 = vmul.f32 %v13677_v45, %v13677_v45 }
 0x8e7   : > { %v8789_v46 = vpop.eup %8788  ;;  %v7436_v19 = vmul.f32 %v7404_v1, %v7180_v16  ;;  %v7422_v26 = vadd.f32 1.0, %v8787_v20  ;;  %v7330_v39 = vadd.f32 %v7298_v22, %v13732_v0  ;;  %v7282_v29 = vmul.f32 0.044715, %v7250_v44 }
 0x8e8   : > { %v8791_v62 = vpop.eup %8790  ;;  %v7453_v32 = vmul.f32 %v7421_v31, %v7197_v61  ;;  %v7183_v18 = vmul.f32 0.5, %v13662_v6  ;;  %v7345_v11 = vmul.f32 0.7978846, %v7313_v56  ;;  %v7299_v17 = vmul.f32 0.044715, %v7267_v5 }
 0x8e9   : > { %7468 = vxpose.xlu0.b32.cont [4/16] (narrow) %v7436_v19, 32  ;;  %v7200_v23 = vmul.f32 0.5, %v13716_v14  ;;  %v7362_v47 = vmul.f32 0.7978846, %v7330_v39  ;;  %v7314_v30 = vadd.f32 %v7282_v29, %v13674_v48  ;;  %v7251_v8 = vmul.f32 %v7219_v7, %v13677_v45 }
 0x8ea   : > { %v8793_v38 = vpop.eup %8792  ;;  %7501 = vxpose.xlu1.b32.cont [5/16] (narrow) %v7453_v32, 32  ;;  %v7437_v16 = vmul.f32 %v7405_v25, %v7181_v37  ;;  %8800 = vtanh.f32 %v7345_v11  ;;  %v7331_v4 = vadd.f32 %v7299_v17, %v13740_v50  ;;  %v7236_v61 = vmul.f32 %v13752_v54, %v13752_v54 }
 0x8eb   : > { %v7454_v6 = vmul.f32 %v7422_v26, %v7198_v9  ;;  %v7406_v27 = vadd.f32 1.0, %v8789_v46  ;;  %8802 = vtanh.f32 %v7362_v47  ;;  %v7346_v43 = vmul.f32 0.7978846, %v7314_v30 }
 0x8ec   : > { %v7423_v40 = vadd.f32 1.0, %v8791_v62  ;;  %v7363_v14 = vmul.f32 0.7978846, %v7331_v4  ;;  %v7283_v2 = vmul.f32 0.044715, %v7251_v8  ;;  %v7268_v24 = vmul.f32 %v7236_v61, %v13752_v54 }
 0x8ed   : > { %v8795_v59 = vpop.eup %8794  ;;  %7469 = vxpose.xlu0.b32.cont [5/16] (narrow) %v7437_v16, 32  ;;  %v7407_v28 = vadd.f32 1.0, %v8793_v38  ;;  %v7184_v37 = vmul.f32 0.5, %v13665_v52  ;;  %8804 = vtanh.f32 %v7346_v43  ;;  %v7220_v1 = vmul.f32 %v13680_v36, %v13680_v36 }
 0x8ee   : > { %7502 = vxpose.xlu1.b32.cont [6/16] (narrow) %v7454_v6, 32  ;;  %v7201_v9 = vmul.f32 0.5, %v13726_v49  ;;  %8806 = vtanh.f32 %v7363_v14  ;;  %v7315_v57 = vadd.f32 %v7283_v2, %v13677_v45  ;;  %v7300_v41 = vmul.f32 0.044715, %v7268_v24 }
 0x8ef   : > { %v8797_v33 = vpop.eup %8796  ;;  %v7438_v60 = vmul.f32 %v7406_v27, %v13817_v51  ;;  %v7252_v58 = vmul.f32 %v7220_v1, %v13680_v36  ;;  %v7237_v31 = vmul.f32 %v13760_v35, %v13760_v35  ;;  %v7221_v52 = vmul.f32 %v13686_v15, %v13686_v15 }
 0x8f0   : > { %v7455_v13 = vmul.f32 %v7423_v40, %v7199_v42  ;;  %v7424_v12 = vadd.f32 1.0, %v8795_v59  ;;  %v7347_v20 = vmul.f32 0.7978846, %v7315_v57  ;;  %v7332_v49 = vadd.f32 %v7300_v41, %v13752_v54 }
 0x8f1   : > { %7470 = vxpose.xlu0.b32.cont [6/16] (narrow) %v7438_v60, 32  ;;  %v7439_v22 = vmul.f32 %v7407_v28, %v7183_v18  ;;  %v7284_v44 = vmul.f32 0.044715, %v7252_v58  ;;  %v7269_v25 = vmul.f32 %v7237_v31, %v13760_v35  ;;  %v7253_v51 = vmul.f32 %v7221_v52, %v13686_v15 }
 0x8f2   : > { %v8799_v56 = vpop.eup %8798  ;;  %7503 = vxpose.xlu1.b32.cont [7/16] (narrow) %v7455_v13, 32  ;;  %v7408_v5 = vadd.f32 1.0, %v8797_v33  ;;  %8808 = vtanh.f32 %v7347_v20  ;;  %v7364_v7 = vmul.f32 0.7978846, %v7332_v49  ;;  %v7238_v46 = vmul.f32 %v13766_v10, %v13766_v10 }
 0x8f3   : > { %v7425_v42 = vadd.f32 1.0, %v8799_v56  ;;  %v7316_v19 = vadd.f32 %v7284_v44, %v13680_v36  ;;  %v7301_v26 = vmul.f32 0.044715, %v7269_v25  ;;  %v7285_v39 = vmul.f32 0.044715, %v7253_v51 }
 0x8f4   : > { %v7456_v29 = vmul.f32 %v7424_v12, %v7200_v23  ;;  %8810 = vtanh.f32 %v7364_v7  ;;  %v7270_v62 = vmul.f32 %v7238_v46, %v13766_v10  ;;  %v7222_v32 = vmul.f32 %v13689_v34, %v13689_v34 }
 0x8f5   : > { %7471 = vxpose.xlu0.b32.cont [7/16] (narrow) %v7439_v22, 32  ;;  %v7185_v18 = vmul.f32 0.5, %v13668_v63  ;;  %v7348_v11 = vmul.f32 0.7978846, %v7316_v19  ;;  %v7333_v17 = vadd.f32 %v7301_v26, %v13760_v35  ;;  %v7317_v47 = vadd.f32 %v7285_v39, %v13686_v15 }
 0x8f6   : > { %7504 = vxpose.xlu1.b32.cont [8/16] (narrow) %v7456_v29, 32  ;;  %v7440_v30 = vmul.f32 %v7408_v5, %v7184_v37  ;;  %v7302_v8 = vmul.f32 0.044715, %v7270_v62  ;;  %v7254_v38 = vmul.f32 %v7222_v32, %v13689_v34  ;;  %v7239_v23 = vmul.f32 %v13775_v55, %v13775_v55 }
 0x8f7   : > { %v8801_v16 = vpop.eup %8800  ;;  %v7457_v4 = vmul.f32 %v7425_v42, %v7201_v9  ;;  %8812 = vtanh.f32 %v7348_v11  ;;  %v7365_v61 = vmul.f32 0.7978846, %v7333_v17  ;;  %v7349_v6 = vmul.f32 0.7978846, %v7317_v47 }
 0x8f8   : > { %v8803_v27 = vpop.eup %8802  ;;  %v7409_v63 = vadd.f32 1.0, %v8801_v16  ;;  %v7334_v43 = vadd.f32 %v7302_v8, %v13766_v10  ;;  %v7286_v40 = vmul.f32 0.044715, %v7254_v38  ;;  %v7271_v14 = vmul.f32 %v7239_v23, %v13775_v55 }
 0x8f9   : > { %7472 = vxpose.xlu0.b32.cont [8/16] (narrow) %v7440_v30, 32  ;;  %v7202_v2 = vmul.f32 0.5, %v13732_v0  ;;  %v7426_v24 = vadd.f32 1.0, %v8803_v27  ;;  %8814 = vtanh.f32 %v7365_v61  ;;  %v7223_v59 = vmul.f32 %v13692_v53, %v13692_v53 }
 0x8fa   : > { %v8805_v28 = vpop.eup %8804  ;;  %7505 = vxpose.xlu1.b32.cont [9/16] (narrow) %v7457_v4, 32  ;;  %v7441_v37 = vmul.f32 %v7409_v63, %v7185_v18  ;;  %8816 = vtanh.f32 %v7349_v6  ;;  %v7366_v1 = vmul.f32 0.7978846, %v7334_v43  ;;  %v7318_v9 = vadd.f32 %v7286_v40, %v13689_v34 }
 0x8fb   : > { %v8807_v57 = vpop.eup %8806  ;;  %v7458_v41 = vmul.f32 %v7426_v24, %v7202_v2  ;;  %v7410_v33 = vadd.f32 1.0, %v8805_v28  ;;  %v7303_v60 = vmul.f32 0.044715, %v7271_v14  ;;  %v7255_v58 = vmul.f32 %v7223_v59, %v13692_v53 }
 0x8fc   : > { %v7427_v31 = vadd.f32 1.0, %v8807_v57  ;;  %8818 = vtanh.f32 %v7366_v1  ;;  %v7350_v0 = vmul.f32 0.7978846, %v7318_v9  ;;  %v7240_v52 = vmul.f32 %v13701_v3, %v13701_v3 }
 0x8fd   : > { %7473 = vxpose.xlu0.b32.cont [9/16] (narrow) %v7441_v37, 32  ;;  %v7186_v13 = vmul.f32 0.5, %v13674_v48  ;;  %v7335_v12 = vadd.f32 %v7303_v60, %v13775_v55  ;;  %v7287_v20 = vmul.f32 0.044715, %v7255_v58  ;;  %v7203_v49 = vmul.f32 0.5, %v13740_v50 }
 0x8fe   : > { %7506 = vxpose.xlu1.b32.cont [10/16] (narrow) %v7458_v41, 32  ;;  %8820 = vtanh.f32 %v7350_v0  ;;  %v7272_v22 = vmul.f32 %v7240_v52, %v13701_v3  ;;  %v7224_v44 = vmul.f32 %v13651_v21, %v13651_v21  ;;  %v7187_v50 = vmul.f32 0.5, %v13677_v45 }
 0x8ff   : > { %v8809_v25 = vpop.eup %8808  ;;  %v7442_v51 = vmul.f32 %v7410_v33, %v7186_v13  ;;  %v7367_v56 = vmul.f32 0.7978846, %v7335_v12  ;;  %v7319_v5 = vadd.f32 %v7287_v20, %v13692_v53  ;;  %v7459_v7 = vmul.f32 %v7427_v31, %v7203_v49 }
 0x900   : > { %v7411_v46 = vadd.f32 1.0, %v8809_v25  ;;  %v7304_v48 = vmul.f32 0.044715, %v7272_v22  ;;  %v7256_v42 = vmul.f32 %v7224_v44, %v13651_v21  ;;  %v7204_v39 = vmul.f32 0.5, %v13752_v54 }
 0x901   : > { %v8811_v19 = vpop.eup %8810  ;;  %7474 = vxpose.xlu0.b32.cont [10/16] (narrow) %v7442_v51, 32  ;;  %8822 = vtanh.f32 %v7367_v56  ;;  %v7351_v26 = vmul.f32 0.7978846, %v7319_v5  ;;  %v7188_v8 = vmul.f32 0.5, %v13680_v36  ;;  %v7205_v4 = vmul.f32 0.5, %v13760_v35 }
 0x902   : > { %7507 = vxpose.xlu1.b32.cont [11/16] (narrow) %v7459_v7, 32  ;;  %v7428_v29 = vadd.f32 1.0, %v8811_v19  ;;  %v7336_v62 = vadd.f32 %v7304_v48, %v13701_v3  ;;  %v7288_v32 = vmul.f32 0.044715, %v7256_v42  ;;  %v7443_v18 = vmul.f32 %v7411_v46, %v7187_v50 }
 0x903   : > { %8824 = vtanh.f32 %v7351_v26  ;;  %v7189_v43 = vmul.f32 0.5, %v13686_v15  ;;  %v7206_v2 = vmul.f32 0.5, %v13766_v10  ;;  %v7190_v28 = vmul.f32 0.5, %v13689_v34 }
 0x904   : > { %v8813_v11 = vpop.eup %8812  ;;  %v7460_v17 = vmul.f32 %v7428_v29, %v7204_v39  ;;  %v7368_v47 = vmul.f32 0.7978846, %v7336_v62  ;;  %v7320_v30 = vadd.f32 %v7288_v32, %v13651_v21  ;;  %v7207_v1 = vmul.f32 0.5, %v13775_v55 }
 0x905   : > { %7475 = vxpose.xlu0.b32.cont [11/16] (narrow) %v7443_v18, 32  ;;  %v7412_v45 = vadd.f32 1.0, %v8813_v11  ;;  %v7191_v41 = vmul.f32 0.5, %v13692_v53  ;;  %v7208_v58 = vmul.f32 0.5, %v13701_v3  ;;  %v7192_v52 = vmul.f32 0.5, %v13651_v21 }
 0x906   : > { %v8815_v38 = vpop.eup %8814  ;;  %7508 = vxpose.xlu1.b32.cont [12/16] (narrow) %v7460_v17, 32  ;;  %8826 = vtanh.f32 %v7368_v47  ;;  %v7352_v23 = vmul.f32 0.7978846, %v7320_v30 }
 0x907   : > { %v8817_v54 = vpop.eup %8816  ;;  %v7444_v16 = vmul.f32 %v7412_v45, %v7188_v8  ;;  %v7429_v61 = vadd.f32 1.0, %v8815_v38 }
 0x908   : > { %v7413_v6 = vadd.f32 1.0, %v8817_v54  ;;  %8828 = vtanh.f32 %v7352_v23 }
 0x909   : > { %v8819_v27 = vpop.eup %8818  ;;  %7476 = vxpose.xlu0.b32.cont [12/16] (narrow) %v7444_v16, 32  ;;  %v7461_v63 = vmul.f32 %v7429_v61, %v7205_v4 }
 0x90a   : > { %v7430_v40 = vadd.f32 1.0, %v8819_v27  ;;  %v7445_v36 = vmul.f32 %v7413_v6, %v7189_v43 }
 0x90b   : > { %v8821_v14 = vpop.eup %8820  ;;  %7509 = vxpose.xlu1.b32.cont [13/16] (narrow) %v7461_v63, 32 }
 0x90c   : > { %v7414_v24 = vadd.f32 1.0, %v8821_v14  ;;  %v7462_v59 = vmul.f32 %v7430_v40, %v7206_v2 }
 0x90d   : > { %7477 = vxpose.xlu0.b32.cont [13/16] (narrow) %v7445_v36, 32 }
 0x90e   : > { %v8823_v35 = vpop.eup %8822  ;;  %v7446_v37 = vmul.f32 %v7414_v24, %v7190_v28 }
 0x90f   : > { %7510 = vxpose.xlu1.b32.cont [14/16] (narrow) %v7462_v59, 32  ;;  %v7431_v9 = vadd.f32 1.0, %v8823_v35 }
 0x910   : > { %v8825_v57 = vpop.eup %8824 }
 0x911   : > { %7478 = vxpose.xlu0.b32.cont [14/16] (narrow) %v7446_v37, 32  ;;  %v7463_v15 = vmul.f32 %v7431_v9, %v7207_v1  ;;  %v7415_v33 = vadd.f32 1.0, %v8825_v57 }
 0x913   : > { %v8827_v60 = vpop.eup %8826  ;;  %7511 = vxpose.xlu1.b32.cont [15/16] (narrow) %v7463_v15, 32  ;;  %v7447_v10 = vmul.f32 %v7415_v33, %v7191_v41 }
 0x914   : > { %v7432_v31 = vadd.f32 1.0, %v8827_v60 }
 0x915   : > { %v8829_v34 = vpop.eup %8828  ;;  %7479 = vxpose.xlu0.b32.cont [15/16] (narrow) %v7447_v10, 32 }
 0x916   : > { %v7464_v0 = vmul.f32 %v7432_v31, %v7208_v58  ;;  %v7416_v55 = vadd.f32 1.0, %v8829_v34 }
 0x918   : > { %7512 = vxpose.xlu1.b32.end [16/16] (narrow) %v7464_v0, 32  ;;  %v7448_v13 = vmul.f32 %v7416_v55, %v7192_v52 }
 0x91a   : > { %7480 = vxpose.xlu0.b32.end [16/16] (narrow) %v7448_v13, 32 }
 0x958   : > { %v7513_v53 = vpop.trf.xlu1 }
 0x959   : > { %7530 = vst [vmem:[%s278_s13 + $0x8] sm:$0xff] %v7513_v53 }
 0x95a   : > { %v7481_v12 = vpop.trf.xlu0 }
 0x95b   : > { %7529 = vst [vmem:[%s278_s13] sm:$0xff] %v7481_v12 }
 0x95c   : > { %v7514_v3 = vpop.trf.xlu1 }
 0x95d   : > { %7532 = vst [vmem:[%s278_s13 + $0x18] sm:$0xff] %v7514_v3 }
 0x95e   : > { %v7482_v20 = vpop.trf.xlu0 }
 0x95f   : > { %7531 = vst [vmem:[%s278_s13 + $0x10] sm:$0xff] %v7482_v20 }
 0x960   : > { %v7515_v49 = vpop.trf.xlu1 }
 0x961   : > { %7534 = vst [vmem:[%s278_s13 + $0x28] sm:$0xff] %v7515_v49 }
 0x962   : > { %v7483_v21 = vpop.trf.xlu0 }
 0x963   : > { %7533 = vst [vmem:[%s278_s13 + $0x20] sm:$0xff] %v7483_v21 }
 0x964   : > { %v7516_v22 = vpop.trf.xlu1 }
 0x965   : > { %7536 = vst [vmem:[%s278_s13 + $0x38] sm:$0xff] %v7516_v22 }
 0x966   : > { %v7484_v44 = vpop.trf.xlu0 }
 0x967   : > { %7535 = vst [vmem:[%s278_s13 + $0x30] sm:$0xff] %v7484_v44 }
 0x968 PF: > { %s17_s24 = sadd.s32 1, %s8837_s24  }
 0x969   : > { %p14_p4 = scmp.ge.s32.totalorder %s17_s24, 4  }
 0x96b   :  { %16 = sbr.rel (!%p14_p4) target bundleno = 1 (0x1), region = 81 }

</bundles_post_ra>
